<compile_context>
chip_gen: v5e
topology: v5e:2x2
jax: 0.10.0
libtpu: 0.0.40
codegen_flags: <defaults>
</compile_context>

<pallas_src>
import functools

import jax
import jax.numpy as jnp
from jax import lax
from jax.experimental import pallas as pl
from jax.experimental.pallas import tpu as pltpu


def _round_up(n, m):
    return (n + m - 1) // m * m


def _choose_tile(S):
    # Lane-dense tile width, grown from 128 per the perf review (fewer grid
    # steps, longer uninterrupted EUP/VPU runs), but never padding a short
    # sequence past the next 128-lane boundary.
    return min(512, _round_up(S, 128))


def _balanced_perm(nt):
    # q-tile visit order 0, nt-1, 1, nt-2, ...  With the q axis marked
    # "parallel", a megacore (v7x) split of this order gives each TensorCore
    # ~equal lower-triangular (causal) area.  Identity for nt == 1.
    order = []
    lo, hi = 0, nt - 1
    while lo <= hi:
        order.append(lo)
        if hi != lo:
            order.append(hi)
        lo += 1
        hi -= 1
    return jnp.asarray(order, dtype=jnp.int32)


# ---------------------------------------------------------------------------
# Fused kernel: QKV projection + flash-style causal attention on rank-1 scores
# ---------------------------------------------------------------------------
def _fused_attn_kernel(perm_ref, x_ref, w_ref, b_ref, o_ref,
                       qkv_sc, m_sc, l_sc, acc_sc, *, tile, nt):
    gq = pl.program_id(0)          # grid position on the (parallel) q axis
    ki = pl.program_id(1)          # key tile (reduction axis, innermost)
    qi = perm_ref[gq]              # physical q tile (balanced interleave)

    @pl.when(ki == 0)
    def _start_q_tile():
        # Fused QKV projection: one (B,Sp)@(Sp,3Sp) MXU matmul into VMEM
        # scratch (review item 1) -- no second launch / HBM round trip.  It is
        # recomputed per q tile so every q tile is self-contained under a
        # megacore split of the parallel axis; default nt == 1 => computed once.
        # (M = B rows keeps the MXU M-starved by construction -- accepted per
        #  review item 12; the win here is launch/DMA elimination.)
        qkv = (jnp.dot(x_ref[...], w_ref[...],
                       preferred_element_type=jnp.float32) + b_ref[...])
        for t in range(3 * nt):                     # static unroll, lane-dense slabs
            qkv_sc[t] = qkv[:, t * tile:(t + 1) * tile]
        m_sc[...] = jnp.full(m_sc.shape, -jnp.inf, m_sc.dtype)
        l_sc[...] = jnp.zeros(l_sc.shape, l_sc.dtype)
        acc_sc[...] = jnp.zeros(acc_sc.shape, acc_sc.dtype)

    def _process(masked_tile):
        # "Transposed" rank-1 scores: s[b, j, i] = k[b, j] * q[b, i] with the
        # query index on LANES, so m/l/acc and the output stay lane-dense and
        # q needs no per-step relayout (review items 2 & 8); only k/v pay one
        # lane->sublane broadcast per live step.
        q_row = qkv_sc[qi][:, None, :]              # (B, 1, Tq)
        k = qkv_sc[nt + ki]                         # (B, Tk) lane-dense
        v = qkv_sc[2 * nt + ki]                     # (B, Tk) lane-dense
        s = k[:, :, None] * q_row                   # (B, Tk, Tq)

        if masked_tile:
            # Diagonal tile: keep key j <= query i.  One where feeds both the
            # column max and the exp (masked exps underflow to exactly 0).
            krow = lax.broadcasted_iota(jnp.int32, (tile, tile), 0)   # key j
            qcol = lax.broadcasted_iota(jnp.int32, (tile, tile), 1)   # query i
            s = jnp.where((qcol >= krow)[None], s, jnp.float32(-1e9))
            m_cur = jnp.max(s, axis=1, keepdims=True)                 # (B,1,Tq)
        else:
            # Unmasked tile: rank-1 structure (review item 9):
            # max_j k_j*q_i == q_i*kmax if q_i >= 0 else q_i*kmin.
            kmax = jnp.max(k, axis=-1, keepdims=True)[:, :, None]     # (B,1,1)
            kmin = jnp.min(k, axis=-1, keepdims=True)[:, :, None]
            m_cur = jnp.where(q_row >= 0, q_row * kmax, q_row * kmin)

        m_prev = m_sc[...]
        m_new = jnp.maximum(m_prev, m_cur)
        alpha = jnp.exp(m_prev - m_new)             # rescale old partials
        # (Optional v6e/v7x micro-opt per review: exp in bf16.  Kept f32 so the
        #  2e-5 tolerance holds on every chip, incl. v5e which has no bf16 EUP.)
        p = jnp.exp(s - m_new)                      # (B, Tk, Tq)
        # Numerator & denominator via VPU multiply + sublane reductions -- no
        # pathologically shaped N=1 MXU matmul (review item 7).
        l_sc[...] = alpha * l_sc[...] + jnp.sum(p, axis=1, keepdims=True)
        acc_sc[...] = alpha * acc_sc[...] + jnp.sum(p * v[:, :, None], axis=1,
                                                    keepdims=True)
        m_sc[...] = m_new

    @pl.when(ki < qi)        # strictly below the diagonal: unmasked tile
    def _off_diag():
        _process(masked_tile=False)

    @pl.when(ki == qi)       # diagonal tile: mask, then finalize this q tile
    def _diag():
        _process(masked_tile=True)
        # One normalisation per output element; lane-dense (B, 1, Tq) store.
        # pl.reciprocal(..., approx=True) is a drop-in here if ~1e-4 relative
        # error is acceptable; exact divide kept to hold the 2e-5 tolerance.
        o_ref[...] = (acc_sc[...] / l_sc[...]).astype(o_ref.dtype)

    # ki > qi: causally dead.  q/k/v live in VMEM scratch and x/w/b blocks are
    # grid-constant, so these steps issue NO DMA (review item 3b); only the
    # fixed per-step cost remains (zero dead steps at the default nt == 1).


# ---------------------------------------------------------------------------
# Wrapper
# ---------------------------------------------------------------------------
def prepare_params(wq, bq, wk, bk, wv, bv, tile=None):
    """Fold the three nn.Linear layers into one padded (Sp, 3*Sp) weight and a
    (1, 3*Sp) bias.  Call ONCE -- nothing is transposed/concatenated per call."""
    S = wq.shape[0]
    tile = _choose_tile(S) if tile is None else tile
    Sp = _round_up(S, tile)
    pad2 = ((0, Sp - S), (0, Sp - S))

    def _w(w):  # PyTorch (out, in) -> (in, out), zero-padded
        return jnp.pad(jnp.asarray(w, jnp.float32).T, pad2)

    def _b(b):
        return jnp.pad(jnp.asarray(b, jnp.float32), (0, Sp - S))

    w_qkv = jnp.concatenate([_w(wq), _w(wk), _w(wv)], axis=1)        # (Sp, 3Sp)
    b_qkv = jnp.concatenate([_b(bq), _b(bk), _b(bv)]).reshape(1, 3 * Sp)
    return w_qkv, b_qkv


def attention_block_forward(x, w_qkv, b_qkv, tile=None):
    """x: (B, S) float32; (w_qkv, b_qkv) from prepare_params (same `tile`)."""
    B, S = x.shape
    tile = _choose_tile(S) if tile is None else tile
    Sp = w_qkv.shape[0]
    assert Sp == _round_up(S, tile), "params were prepared with a different tile"
    nt = Sp // tile

    if Sp != S:
        # Zero-padding is exact: padded keys are always in the (masked) diagonal
        # tile of the last q tile; padded query rows are sliced off below.
        x = jnp.pad(x, ((0, 0), (0, Sp - S)))

    perm = _balanced_perm(nt)

    out3 = pl.pallas_call(
        functools.partial(_fused_attn_kernel, tile=tile, nt=nt),
        out_shape=jax.ShapeDtypeStruct((B, 1, Sp), jnp.float32),
        grid_spec=pltpu.PrefetchScalarGridSpec(
            num_scalar_prefetch=1,                       # q-tile permutation
            grid=(nt, nt),                               # (q tiles, key tiles)
            in_specs=[
                pl.BlockSpec((B, Sp), lambda gq, ki, p: (0, 0)),        # x
                pl.BlockSpec((Sp, 3 * Sp), lambda gq, ki, p: (0, 0)),   # w_qkv
                pl.BlockSpec((1, 3 * Sp), lambda gq, ki, p: (0, 0)),    # b_qkv
            ],
            out_specs=pl.BlockSpec((B, 1, tile),
                                   lambda gq, ki, p: (0, 0, p[gq])),
            scratch_shapes=[
                pltpu.VMEM((3 * nt, B, tile), jnp.float32),   # resident q|k|v tiles
                pltpu.VMEM((B, 1, tile), jnp.float32),        # running max  m
                pltpu.VMEM((B, 1, tile), jnp.float32),        # denominator  l
                pltpu.VMEM((B, 1, tile), jnp.float32),        # numerator    acc
            ]),
        compiler_params=pltpu.CompilerParams(
            dimension_semantics=("parallel", "arbitrary"),
            # Residency: w_qkv (x2 buffers) + O(B*tile^2) f32 intermediates;
            # ~3 MiB at default shapes.  48 MiB keeps headroom under v7x's
            # 64 MiB physical VMEM while allowing larger tiles on v5e/v6e.
            vmem_limit_bytes=48 * 1024 * 1024),
        cost_estimate=pl.CostEstimate(
            flops=2 * B * Sp * 3 * Sp * nt + 4 * B * Sp * Sp,
            transcendentals=B * Sp * Sp,
            bytes_accessed=4 * (3 * Sp * Sp + 3 * Sp + 2 * B * Sp)),
    )(perm, x, w_qkv, b_qkv)

    out = out3.reshape(B, Sp)
    return out[:, :S] if Sp != S else out


# ---------------------------------------------------------------------------
# Pure-JAX reference (mirrors the PyTorch forward) + self-test
# ---------------------------------------------------------------------------
def _reference(x, wq, bq, wk, bk, wv, bv):
    q = x @ wq.T + bq
    k = x @ wk.T + bk
    v = x @ wv.T + bv
    scores = q[:, :, None] * k[:, None, :]
    S = x.shape[1]
    keep = jnp.tril(jnp.ones((S, S), dtype=bool))
    scores = jnp.where(keep[None], scores, -1e9)
    attn = jax.nn.softmax(scores, axis=-1)
    return jnp.einsum("bij,bj->bi", attn, v)


def _run_case(B, S, key, tile=None, tol=2e-5):
    kx, kq, kbq, kk, kbk, kv, kbv = jax.random.split(key, 7)
    x = jax.random.normal(kx, (B, S), dtype=jnp.float32)
    bound = 1.0 / (S ** 0.5)  # nn.Linear default init bound
    wq = jax.random.uniform(kq, (S, S), jnp.float32, -bound, bound)
    bq = jax.random.uniform(kbq, (S,), jnp.float32, -bound, bound)
    wk = jax.random.uniform(kk, (S, S), jnp.float32, -bound, bound)
    bk = jax.random.uniform(kbk, (S,), jnp.float32, -bound, bound)
    wv = jax.random.uniform(kv, (S, S), jnp.float32, -bound, bound)
    bv = jax.random.uniform(kbv, (S,), jnp.float32, -bound, bound)

    w_qkv, b_qkv = prepare_params(wq, bq, wk, bk, wv, bv, tile=tile)  # once
    out = jax.block_until_ready(
        attention_block_forward(x, w_qkv, b_qkv, tile=tile))

    ref = _reference(x, wq, bq, wk, bk, wv, bv)
    assert out.shape == (B, S)
    err = jnp.max(jnp.abs(out - ref))
    assert jnp.allclose(out, ref, atol=tol, rtol=tol), (
        f"mismatch vs reference (S={S}): max abs err {err}")
    return out


if __name__ == "__main__":
    key = jax.random.PRNGKey(0)
    k1, k2, k3 = jax.random.split(key, 3)
    _run_case(2, 200, k1)                       # module default seq_len: nt=1, tile=256
    _run_case(2, 128, k2)                       # exact lane multiple, tile=128
    _run_case(2, 600, k3, tile=256, tol=1e-4)   # multi-tile causal path (nt=3)
    print("KERNEL_OK")
</pallas_src>

<mosaic_0001>
module attributes {stable_mosaic.version = 11 : i64} {
  func.func @_fused_attn_kernel(%arg0: i32, %arg1: i32, %arg2: memref<1xi32, #tpu.memory_space<smem>>, %arg3: memref<2x256xf32, #tpu.memory_space<vmem>>, %arg4: memref<256x768xf32, #tpu.memory_space<vmem>>, %arg5: memref<1x768xf32, #tpu.memory_space<vmem>>, %arg6: memref<2x1x256xf32, #tpu.memory_space<vmem>>, %arg7: memref<3x2x256xf32, #tpu.memory_space<vmem>>, %arg8: memref<2x1x256xf32, #tpu.memory_space<vmem>>, %arg9: memref<2x1x256xf32, #tpu.memory_space<vmem>>, %arg10: memref<2x1x256xf32, #tpu.memory_space<vmem>>) attributes {dimension_semantics = [#tpu.dimension_semantics<parallel>, #tpu.dimension_semantics<arbitrary>], iteration_bounds = array<i64: 1, 1>, scalar_prefetch = 1 : i64, scratch_operands = 4 : i64, tpu.core_type = #tpu.core_type<tc>, window_params = [{pipeline_mode = #tpu.pipeline_mode<synchronous>, transform_indices = @transform_0, window_bounds = array<i64: 2, 256>}, {pipeline_mode = #tpu.pipeline_mode<synchronous>, transform_indices = @transform_1, window_bounds = array<i64: 256, 768>}, {pipeline_mode = #tpu.pipeline_mode<synchronous>, transform_indices = @transform_2, window_bounds = array<i64: 1, 768>}, {transform_indices = @transform_3, window_bounds = array<i64: 2, 1, 256>}]} {
    %0 = arith.index_cast %arg0 : i32 to index
    %1 = memref.load %arg2[%0] : memref<1xi32, #tpu.memory_space<smem>>
    %c0_i32 = arith.constant 0 : i32
    %2 = arith.cmpi eq, %arg1, %c0_i32 : i32
    %3 = arith.extui %2 : i1 to i32
    %c0_i32_0 = arith.constant 0 : i32
    %4 = arith.cmpi ne, %3, %c0_i32_0 : i32
    scf.if %4 {
      %c0 = arith.constant 0 : index
      %c0_3 = arith.constant 0 : index
      %11 = vector.load %arg3[%c0, %c0_3] : memref<2x256xf32, #tpu.memory_space<vmem>>, vector<2x256xf32>
      %c0_4 = arith.constant 0 : index
      %c0_5 = arith.constant 0 : index
      %12 = vector.load %arg4[%c0_4, %c0_5] : memref<256x768xf32, #tpu.memory_space<vmem>>, vector<256x768xf32>
      %cst = arith.constant dense<0.000000e+00> : vector<2x768xf32>
      %13 = tpu.matmul %11, %12, %cst {dimension_numbers = #tpu.dot_dimension_numbers<[1], [0], [0], [1], [0, 0, 1, 1], [], []>} : vector<2x256xf32>, vector<256x768xf32>, vector<2x768xf32> -> vector<2x768xf32>
      %c0_6 = arith.constant 0 : index
      %c0_7 = arith.constant 0 : index
      %14 = vector.load %arg5[%c0_6, %c0_7] : memref<1x768xf32, #tpu.memory_space<vmem>>, vector<1x768xf32>
      %15 = vector.broadcast %14 : vector<1x768xf32> to vector<2x768xf32>
      %16 = arith.addf %13, %15 : vector<2x768xf32>
      %17 = vector.extract_strided_slice %16 {offsets = [0, 0], sizes = [2, 256], strides = [1, 1]} : vector<2x768xf32> to vector<2x256xf32>
      %c0_8 = arith.constant 0 : index
      %c0_9 = arith.constant 0 : index
      %c0_10 = arith.constant 0 : index
      %18 = vector.load %arg7[%c0_8, %c0_9, %c0_10] : memref<3x2x256xf32, #tpu.memory_space<vmem>>, vector<1x2x256xf32>
      %19 = vector.shape_cast %18 : vector<1x2x256xf32> to vector<2x256xf32>
      %20 = vector.shape_cast %17 : vector<2x256xf32> to vector<1x2x256xf32>
      tpu.vector_store %arg7[%c0_8, %c0_9, %c0_10], %20 {strides = array<i32>} : memref<3x2x256xf32, #tpu.memory_space<vmem>>, vector<1x2x256xf32>,
      %21 = vector.extract_strided_slice %16 {offsets = [0, 256], sizes = [2, 256], strides = [1, 1]} : vector<2x768xf32> to vector<2x256xf32>
      %c1 = arith.constant 1 : index
      %c0_11 = arith.constant 0 : index
      %c0_12 = arith.constant 0 : index
      %22 = vector.load %arg7[%c1, %c0_11, %c0_12] : memref<3x2x256xf32, #tpu.memory_space<vmem>>, vector<1x2x256xf32>
      %23 = vector.shape_cast %22 : vector<1x2x256xf32> to vector<2x256xf32>
      %24 = vector.shape_cast %21 : vector<2x256xf32> to vector<1x2x256xf32>
      tpu.vector_store %arg7[%c1, %c0_11, %c0_12], %24 {strides = array<i32>} : memref<3x2x256xf32, #tpu.memory_space<vmem>>, vector<1x2x256xf32>,
      %25 = vector.extract_strided_slice %16 {offsets = [0, 512], sizes = [2, 256], strides = [1, 1]} : vector<2x768xf32> to vector<2x256xf32>
      %c2 = arith.constant 2 : index
      %c0_13 = arith.constant 0 : index
      %c0_14 = arith.constant 0 : index
      %26 = vector.load %arg7[%c2, %c0_13, %c0_14] : memref<3x2x256xf32, #tpu.memory_space<vmem>>, vector<1x2x256xf32>
      %27 = vector.shape_cast %26 : vector<1x2x256xf32> to vector<2x256xf32>
      %28 = vector.shape_cast %25 : vector<2x256xf32> to vector<1x2x256xf32>
      tpu.vector_store %arg7[%c2, %c0_13, %c0_14], %28 {strides = array<i32>} : memref<3x2x256xf32, #tpu.memory_space<vmem>>, vector<1x2x256xf32>,
      %cst_15 = arith.constant 0xFF800000 : f32
      %29 = vector.broadcast %cst_15 : f32 to vector<2x1x256xf32>
      %c0_16 = arith.constant 0 : index
      %c0_17 = arith.constant 0 : index
      %c0_18 = arith.constant 0 : index
      %30 = vector.load %arg8[%c0_16, %c0_17, %c0_18] : memref<2x1x256xf32, #tpu.memory_space<vmem>>, vector<2x1x256xf32>
      tpu.vector_store %arg8[%c0_16, %c0_17, %c0_18], %29 {strides = array<i32>} : memref<2x1x256xf32, #tpu.memory_space<vmem>>, vector<2x1x256xf32>,
      %cst_19 = arith.constant 0.000000e+00 : f32
      %31 = vector.broadcast %cst_19 : f32 to vector<2x1x256xf32>
      %c0_20 = arith.constant 0 : index
      %c0_21 = arith.constant 0 : index
      %c0_22 = arith.constant 0 : index
      %32 = vector.load %arg9[%c0_20, %c0_21, %c0_22] : memref<2x1x256xf32, #tpu.memory_space<vmem>>, vector<2x1x256xf32>
      tpu.vector_store %arg9[%c0_20, %c0_21, %c0_22], %31 {strides = array<i32>} : memref<2x1x256xf32, #tpu.memory_space<vmem>>, vector<2x1x256xf32>,
      %cst_23 = arith.constant 0.000000e+00 : f32
      %33 = vector.broadcast %cst_23 : f32 to vector<2x1x256xf32>
      %c0_24 = arith.constant 0 : index
      %c0_25 = arith.constant 0 : index
      %c0_26 = arith.constant 0 : index
      %34 = vector.load %arg10[%c0_24, %c0_25, %c0_26] : memref<2x1x256xf32, #tpu.memory_space<vmem>>, vector<2x1x256xf32>
      tpu.vector_store %arg10[%c0_24, %c0_25, %c0_26], %33 {strides = array<i32>} : memref<2x1x256xf32, #tpu.memory_space<vmem>>, vector<2x1x256xf32>,
    } else {
    }
    %5 = arith.cmpi slt, %arg1, %1 : i32
    %6 = arith.extui %5 : i1 to i32
    %c0_i32_1 = arith.constant 0 : i32
    %7 = arith.cmpi ne, %6, %c0_i32_1 : i32
    scf.if %7 {
      %11 = arith.index_cast %1 : i32 to index
      %c0 = arith.constant 0 : index
      %c0_3 = arith.constant 0 : index
      %12 = vector.load %arg7[%11, %c0, %c0_3] : memref<3x2x256xf32, #tpu.memory_space<vmem>>, vector<1x2x256xf32>
      %13 = vector.shape_cast %12 : vector<1x2x256xf32> to vector<2x256xf32>
      %14 = vector.shape_cast %13 : vector<2x256xf32> to vector<2x1x256xf32>
      %c1_i32 = arith.constant 1 : i32
      %15 = arith.addi %c1_i32, %arg1 : i32
      %16 = arith.index_cast %15 : i32 to index
      %c0_4 = arith.constant 0 : index
      %c0_5 = arith.constant 0 : index
      %17 = vector.load %arg7[%16, %c0_4, %c0_5] : memref<3x2x256xf32, #tpu.memory_space<vmem>>, vector<1x2x256xf32>
      %18 = vector.shape_cast %17 : vector<1x2x256xf32> to vector<2x256xf32>
      %c2_i32 = arith.constant 2 : i32
      %19 = arith.addi %c2_i32, %arg1 : i32
      %20 = arith.index_cast %19 : i32 to index
      %c0_6 = arith.constant 0 : index
      %c0_7 = arith.constant 0 : index
      %21 = vector.load %arg7[%20, %c0_6, %c0_7] : memref<3x2x256xf32, #tpu.memory_space<vmem>>, vector<1x2x256xf32>
      %22 = vector.shape_cast %21 : vector<1x2x256xf32> to vector<2x256xf32>
      %23 = vector.shape_cast %18 : vector<2x256xf32> to vector<2x256x1xf32>
      %24 = vector.broadcast %23 : vector<2x256x1xf32> to vector<2x256x256xf32>
      %25 = vector.broadcast %14 : vector<2x1x256xf32> to vector<2x256x256xf32>
      %26 = arith.mulf %24, %25 : vector<2x256x256xf32>
      %cst = arith.constant dense<0xFF800000> : vector<2xf32>
      %27 = vector.multi_reduction <maximumf>, %18, %cst [1] : vector<2x256xf32> to vector<2xf32>
      %28 = vector.shape_cast %27 : vector<2xf32> to vector<2x1xf32>
      %29 = vector.shape_cast %28 : vector<2x1xf32> to vector<2x1x1xf32>
      %cst_8 = arith.constant dense<0x7F800000> : vector<2xf32>
      %30 = vector.multi_reduction <minimumf>, %18, %cst_8 [1] : vector<2x256xf32> to vector<2xf32>
      %31 = vector.shape_cast %30 : vector<2xf32> to vector<2x1xf32>
      %32 = vector.shape_cast %31 : vector<2x1xf32> to vector<2x1x1xf32>
      %cst_9 = arith.constant 0.000000e+00 : f32
      %33 = vector.broadcast %cst_9 : f32 to vector<2x1x256xf32>
      %34 = arith.cmpf oge, %14, %33 : vector<2x1x256xf32>
      %35 = vector.broadcast %29 : vector<2x1x1xf32> to vector<2x1x256xf32>
      %36 = arith.mulf %14, %35 : vector<2x1x256xf32>
      %37 = vector.broadcast %32 : vector<2x1x1xf32> to vector<2x1x256xf32>
      %38 = arith.mulf %14, %37 : vector<2x1x256xf32>
      %39 = arith.select %34, %36, %38 : vector<2x1x256xi1>, vector<2x1x256xf32>
      %c0_10 = arith.constant 0 : index
      %c0_11 = arith.constant 0 : index
      %c0_12 = arith.constant 0 : index
      %40 = vector.load %arg8[%c0_10, %c0_11, %c0_12] : memref<2x1x256xf32, #tpu.memory_space<vmem>>, vector<2x1x256xf32>
      %41 = arith.maximumf %40, %39 : vector<2x1x256xf32>
      %42 = arith.subf %40, %41 : vector<2x1x256xf32>
      %43 = math.exp %42 : vector<2x1x256xf32>
      %44 = vector.broadcast %41 : vector<2x1x256xf32> to vector<2x256x256xf32>
      %45 = arith.subf %26, %44 : vector<2x256x256xf32>
      %46 = math.exp %45 : vector<2x256x256xf32>
      %c0_13 = arith.constant 0 : index
      %c0_14 = arith.constant 0 : index
      %c0_15 = arith.constant 0 : index
      %47 = vector.load %arg9[%c0_13, %c0_14, %c0_15] : memref<2x1x256xf32, #tpu.memory_space<vmem>>, vector<2x1x256xf32>
      %48 = arith.mulf %43, %47 : vector<2x1x256xf32>
      %cst_16 = arith.constant dense<0.000000e+00> : vector<2x256xf32>
      %49 = vector.multi_reduction <add>, %46, %cst_16 [1] : vector<2x256x256xf32> to vector<2x256xf32>
      %50 = vector.shape_cast %49 : vector<2x256xf32> to vector<2x1x256xf32>
      %51 = arith.addf %48, %50 : vector<2x1x256xf32>
      %c0_17 = arith.constant 0 : index
      %c0_18 = arith.constant 0 : index
      %c0_19 = arith.constant 0 : index
      %52 = vector.load %arg9[%c0_17, %c0_18, %c0_19] : memref<2x1x256xf32, #tpu.memory_space<vmem>>, vector<2x1x256xf32>
      tpu.vector_store %arg9[%c0_17, %c0_18, %c0_19], %51 {strides = array<i32>} : memref<2x1x256xf32, #tpu.memory_space<vmem>>, vector<2x1x256xf32>,
      %c0_20 = arith.constant 0 : index
      %c0_21 = arith.constant 0 : index
      %c0_22 = arith.constant 0 : index
      %53 = vector.load %arg10[%c0_20, %c0_21, %c0_22] : memref<2x1x256xf32, #tpu.memory_space<vmem>>, vector<2x1x256xf32>
      %54 = arith.mulf %43, %53 : vector<2x1x256xf32>
      %55 = vector.shape_cast %22 : vector<2x256xf32> to vector<2x256x1xf32>
      %56 = vector.broadcast %55 : vector<2x256x1xf32> to vector<2x256x256xf32>
      %57 = arith.mulf %46, %56 : vector<2x256x256xf32>
      %cst_23 = arith.constant dense<0.000000e+00> : vector<2x256xf32>
      %58 = vector.multi_reduction <add>, %57, %cst_23 [1] : vector<2x256x256xf32> to vector<2x256xf32>
      %59 = vector.shape_cast %58 : vector<2x256xf32> to vector<2x1x256xf32>
      %60 = arith.addf %54, %59 : vector<2x1x256xf32>
      %c0_24 = arith.constant 0 : index
      %c0_25 = arith.constant 0 : index
      %c0_26 = arith.constant 0 : index
      %61 = vector.load %arg10[%c0_24, %c0_25, %c0_26] : memref<2x1x256xf32, #tpu.memory_space<vmem>>, vector<2x1x256xf32>
      tpu.vector_store %arg10[%c0_24, %c0_25, %c0_26], %60 {strides = array<i32>} : memref<2x1x256xf32, #tpu.memory_space<vmem>>, vector<2x1x256xf32>,
      %c0_27 = arith.constant 0 : index
      %c0_28 = arith.constant 0 : index
      %c0_29 = arith.constant 0 : index
      %62 = vector.load %arg8[%c0_27, %c0_28, %c0_29] : memref<2x1x256xf32, #tpu.memory_space<vmem>>, vector<2x1x256xf32>
      tpu.vector_store %arg8[%c0_27, %c0_28, %c0_29], %41 {strides = array<i32>} : memref<2x1x256xf32, #tpu.memory_space<vmem>>, vector<2x1x256xf32>,
    } else {
    }
    %8 = arith.cmpi eq, %arg1, %1 : i32
    %9 = arith.extui %8 : i1 to i32
    %c0_i32_2 = arith.constant 0 : i32
    %10 = arith.cmpi ne, %9, %c0_i32_2 : i32
    scf.if %10 {
      %11 = arith.index_cast %1 : i32 to index
      %c0 = arith.constant 0 : index
      %c0_3 = arith.constant 0 : index
      %12 = vector.load %arg7[%11, %c0, %c0_3] : memref<3x2x256xf32, #tpu.memory_space<vmem>>, vector<1x2x256xf32>
      %13 = vector.shape_cast %12 : vector<1x2x256xf32> to vector<2x256xf32>
      %14 = vector.shape_cast %13 : vector<2x256xf32> to vector<2x1x256xf32>
      %c1_i32 = arith.constant 1 : i32
      %15 = arith.addi %c1_i32, %arg1 : i32
      %16 = arith.index_cast %15 : i32 to index
      %c0_4 = arith.constant 0 : index
      %c0_5 = arith.constant 0 : index
      %17 = vector.load %arg7[%16, %c0_4, %c0_5] : memref<3x2x256xf32, #tpu.memory_space<vmem>>, vector<1x2x256xf32>
      %18 = vector.shape_cast %17 : vector<1x2x256xf32> to vector<2x256xf32>
      %c2_i32 = arith.constant 2 : i32
      %19 = arith.addi %c2_i32, %arg1 : i32
      %20 = arith.index_cast %19 : i32 to index
      %c0_6 = arith.constant 0 : index
      %c0_7 = arith.constant 0 : index
      %21 = vector.load %arg7[%20, %c0_6, %c0_7] : memref<3x2x256xf32, #tpu.memory_space<vmem>>, vector<1x2x256xf32>
      %22 = vector.shape_cast %21 : vector<1x2x256xf32> to vector<2x256xf32>
      %23 = vector.shape_cast %18 : vector<2x256xf32> to vector<2x256x1xf32>
      %24 = vector.broadcast %23 : vector<2x256x1xf32> to vector<2x256x256xf32>
      %25 = vector.broadcast %14 : vector<2x1x256xf32> to vector<2x256x256xf32>
      %26 = arith.mulf %24, %25 : vector<2x256x256xf32>
      %27 = tpu.iota {dimensions = array<i32: 0>} : vector<256x256xi32>
      %28 = tpu.iota {dimensions = array<i32: 1>} : vector<256x256xi32>
      %29 = arith.cmpi sge, %28, %27 : vector<256x256xi32>
      %30 = vector.shape_cast %29 : vector<256x256xi1> to vector<1x256x256xi1>
      %cst = arith.constant -1.000000e+09 : f32
      %31 = vector.shape_cast %30 : vector<1x256x256xi1> to vector<1x256x256xi1>
      %32 = vector.broadcast %31 : vector<1x256x256xi1> to vector<2x256x256xi1>
      %33 = vector.broadcast %cst : f32 to vector<2x256x256xf32>
      %34 = arith.select %32, %26, %33 : vector<2x256x256xi1>, vector<2x256x256xf32>
      %cst_8 = arith.constant dense<0xFF800000> : vector<2x256xf32>
      %35 = vector.multi_reduction <maximumf>, %34, %cst_8 [1] : vector<2x256x256xf32> to vector<2x256xf32>
      %36 = vector.shape_cast %35 : vector<2x256xf32> to vector<2x1x256xf32>
      %c0_9 = arith.constant 0 : index
      %c0_10 = arith.constant 0 : index
      %c0_11 = arith.constant 0 : index
      %37 = vector.load %arg8[%c0_9, %c0_10, %c0_11] : memref<2x1x256xf32, #tpu.memory_space<vmem>>, vector<2x1x256xf32>
      %38 = arith.maximumf %37, %36 : vector<2x1x256xf32>
      %39 = arith.subf %37, %38 : vector<2x1x256xf32>
      %40 = math.exp %39 : vector<2x1x256xf32>
      %41 = vector.broadcast %38 : vector<2x1x256xf32> to vector<2x256x256xf32>
      %42 = arith.subf %34, %41 : vector<2x256x256xf32>
      %43 = math.exp %42 : vector<2x256x256xf32>
      %c0_12 = arith.constant 0 : index
      %c0_13 = arith.constant 0 : index
      %c0_14 = arith.constant 0 : index
      %44 = vector.load %arg9[%c0_12, %c0_13, %c0_14] : memref<2x1x256xf32, #tpu.memory_space<vmem>>, vector<2x1x256xf32>
      %45 = arith.mulf %40, %44 : vector<2x1x256xf32>
      %cst_15 = arith.constant dense<0.000000e+00> : vector<2x256xf32>
      %46 = vector.multi_reduction <add>, %43, %cst_15 [1] : vector<2x256x256xf32> to vector<2x256xf32>
      %47 = vector.shape_cast %46 : vector<2x256xf32> to vector<2x1x256xf32>
      %48 = arith.addf %45, %47 : vector<2x1x256xf32>
      %c0_16 = arith.constant 0 : index
      %c0_17 = arith.constant 0 : index
      %c0_18 = arith.constant 0 : index
      %49 = vector.load %arg9[%c0_16, %c0_17, %c0_18] : memref<2x1x256xf32, #tpu.memory_space<vmem>>, vector<2x1x256xf32>
      tpu.vector_store %arg9[%c0_16, %c0_17, %c0_18], %48 {strides = array<i32>} : memref<2x1x256xf32, #tpu.memory_space<vmem>>, vector<2x1x256xf32>,
      %c0_19 = arith.constant 0 : index
      %c0_20 = arith.constant 0 : index
      %c0_21 = arith.constant 0 : index
      %50 = vector.load %arg10[%c0_19, %c0_20, %c0_21] : memref<2x1x256xf32, #tpu.memory_space<vmem>>, vector<2x1x256xf32>
      %51 = arith.mulf %40, %50 : vector<2x1x256xf32>
      %52 = vector.shape_cast %22 : vector<2x256xf32> to vector<2x256x1xf32>
      %53 = vector.broadcast %52 : vector<2x256x1xf32> to vector<2x256x256xf32>
      %54 = arith.mulf %43, %53 : vector<2x256x256xf32>
      %cst_22 = arith.constant dense<0.000000e+00> : vector<2x256xf32>
      %55 = vector.multi_reduction <add>, %54, %cst_22 [1] : vector<2x256x256xf32> to vector<2x256xf32>
      %56 = vector.shape_cast %55 : vector<2x256xf32> to vector<2x1x256xf32>
      %57 = arith.addf %51, %56 : vector<2x1x256xf32>
      %c0_23 = arith.constant 0 : index
      %c0_24 = arith.constant 0 : index
      %c0_25 = arith.constant 0 : index
      %58 = vector.load %arg10[%c0_23, %c0_24, %c0_25] : memref<2x1x256xf32, #tpu.memory_space<vmem>>, vector<2x1x256xf32>
      tpu.vector_store %arg10[%c0_23, %c0_24, %c0_25], %57 {strides = array<i32>} : memref<2x1x256xf32, #tpu.memory_space<vmem>>, vector<2x1x256xf32>,
      %c0_26 = arith.constant 0 : index
      %c0_27 = arith.constant 0 : index
      %c0_28 = arith.constant 0 : index
      %59 = vector.load %arg8[%c0_26, %c0_27, %c0_28] : memref<2x1x256xf32, #tpu.memory_space<vmem>>, vector<2x1x256xf32>
      tpu.vector_store %arg8[%c0_26, %c0_27, %c0_28], %38 {strides = array<i32>} : memref<2x1x256xf32, #tpu.memory_space<vmem>>, vector<2x1x256xf32>,
      %c0_29 = arith.constant 0 : index
      %c0_30 = arith.constant 0 : index
      %c0_31 = arith.constant 0 : index
      %60 = vector.load %arg10[%c0_29, %c0_30, %c0_31] : memref<2x1x256xf32, #tpu.memory_space<vmem>>, vector<2x1x256xf32>
      %c0_32 = arith.constant 0 : index
      %c0_33 = arith.constant 0 : index
      %c0_34 = arith.constant 0 : index
      %61 = vector.load %arg9[%c0_32, %c0_33, %c0_34] : memref<2x1x256xf32, #tpu.memory_space<vmem>>, vector<2x1x256xf32>
      %62 = arith.divf %60, %61 : vector<2x1x256xf32>
      %c0_35 = arith.constant 0 : index
      %c0_36 = arith.constant 0 : index
      %c0_37 = arith.constant 0 : index
      %63 = vector.load %arg6[%c0_35, %c0_36, %c0_37] : memref<2x1x256xf32, #tpu.memory_space<vmem>>, vector<2x1x256xf32>
      tpu.vector_store %arg6[%c0_35, %c0_36, %c0_37], %62 {strides = array<i32>} : memref<2x1x256xf32, #tpu.memory_space<vmem>>, vector<2x1x256xf32>,
    } else {
    }
    return
  }
  func.func @transform_0(%arg0: i32, %arg1: i32, %arg2: memref<1xi32, #tpu.memory_space<smem>>) -> (i32, i32) {
    %c0_i32 = arith.constant 0 : i32
    %c0_i32_0 = arith.constant 0 : i32
    %c0_i32_1 = arith.constant 0 : i32
    return %c0_i32, %c0_i32_0 : i32, i32
  }
  func.func @transform_1(%arg0: i32, %arg1: i32, %arg2: memref<1xi32, #tpu.memory_space<smem>>) -> (i32, i32) {
    %c0_i32 = arith.constant 0 : i32
    %c0_i32_0 = arith.constant 0 : i32
    %c0_i32_1 = arith.constant 0 : i32
    return %c0_i32, %c0_i32_0 : i32, i32
  }
  func.func @transform_2(%arg0: i32, %arg1: i32, %arg2: memref<1xi32, #tpu.memory_space<smem>>) -> (i32, i32) {
    %c0_i32 = arith.constant 0 : i32
    %c0_i32_0 = arith.constant 0 : i32
    %c0_i32_1 = arith.constant 0 : i32
    return %c0_i32, %c0_i32_0 : i32, i32
  }
  func.func @transform_3(%arg0: i32, %arg1: i32, %arg2: memref<1xi32, #tpu.memory_space<smem>>) -> (i32, i32, i32) {
    %0 = arith.index_cast %arg0 : i32 to index
    %1 = memref.load %arg2[%0] : memref<1xi32, #tpu.memory_space<smem>>
    %c0_i32 = arith.constant 0 : i32
    %c0_i32_0 = arith.constant 0 : i32
    %c0_i32_1 = arith.constant 0 : i32
    return %c0_i32, %c0_i32_0, %1 : i32, i32, i32
  }
}

</mosaic_0001>

<bundles_post_ra>
// kernel: tpu_custom_call.1
= control target key start
LH: loop header
LB: loop body
LE: loop exit
PB: predicated region body
PF: predicated region fallthrough
CT: control target
= control target key end

     0   :  { %s9407_s0 = inlined_call_operand.<no memory space> [shape: s32[1], index: 0, kind: input, shape index: {}]   ;;  %s9408_s1 = inlined_call_operand.hbm [shape: f32[2,256], index: 1, kind: input, shape index: {}]   ;;  %s9409_s2 = inlined_call_operand.hbm [shape: f32[256,768], index: 2, kind: input, shape index: {}]   ;;  %s9410_s3 = inlined_call_operand.hbm [shape: f32[1,768], index: 3, kind: input, shape index: {}]   ;;  %s9411_s4 = inlined_call_operand.hbm [shape: f32[2,1,256], index: 4, kind: output, shape index: {}]  }
   0x1   :  { %9 = sst [smem:[#allocation7]] %s9407_s0 }
   0x2   :  { %10 = vsyncpa [#allocation9], 0 }
   0x3   :  { %11 = vsyncpa [#allocation12], 0  ;;  %s28_s19 = sshll.u32 %s9409_s2, 4  ;;  %s29_s19 = int_to_ptr.hbm [resolvable:$true] %s28_s19 }
   0x4   :  { %12 = vsyncpa [#allocation10], 0  ;;  %s5659_s20 = smov [#allocation11]   ;;  %s18_s24 = sshll.u32 %s9408_s1, 4  ;;  %s19_s24 = int_to_ptr.hbm [resolvable:$true] %s18_s24 }
   0x5   :  { %s30_s21 = sshll.u32 %s5659_s20, 4  ;;  %s5660_s25 = smov 768   ;;  %s31_s21 = int_to_ptr.vmem [resolvable:$true] %s30_s21 }
   0x6   :  { %s5661_s26 = smov 48   ;;  %s5662_s0 = smov [#allocation8]  }
   0x7   :  { %36 = dma.hbm_to_vmem [thread:$0]  %s29_s19, 24576, %s31_s21, [#allocation12], %s5660_s25, %s5660_s25, %s5661_s26  }
   0x8   :  { %s20_s27 = sshll.u32 %s5662_s0, 4  ;;  %s42_s30 = sshll.u32 %s9410_s3, 4  ;;  %s21_s27 = int_to_ptr.vmem [resolvable:$true] %s20_s27  ;;  %s43_s30 = int_to_ptr.hbm [resolvable:$true] %s42_s30 }
   0x9   :  { %23 = dma.hbm_to_vmem [thread:$0]  %s19_s24, 64, %s21_s27, [#allocation9]  }
   0xa   :  { %s5663_s2 = smov [#allocation13]  }
   0xb   :  { %s44_s5 = sshll.u32 %s5663_s2, 4  ;;  %s45_s5 = int_to_ptr.vmem [resolvable:$true] %s44_s5 }
   0xc   :  { %47 = dma.hbm_to_vmem [thread:$0]  %s43_s30, 96, %s45_s5, [#allocation12]  }
   0xd   :  { %5653 = dma.done.wait [#allocation9], 64  }
   0xe   :  { %5654 = vsyncadd [#allocation9], 4294967232 }
   0xf   :  { %5655 = dma.done.wait [#allocation12], 24672  }
  0x10   :  { %5656 = vsyncadd [#allocation12], 4294942624  ;;  %v9412_v0 = vlaneseq  ;;  %s5706_s1 = sld [smem:[#allocation7]]  ;;  %v9701_v1 = vmov 0  ;;  %v5664_v2 = vmov -inf   ;;  %v5665_v3 = vmov 0.0  }
  0x11   :  { %v159_v4 = vld [vmem:[#allocation11 + $0x2d8] sm:$0xff]  ;;  %v153_v5 = vld [vmem:[#allocation11 + $0x2a8] sm:$0xff]  ;;  %v158_v10 = vld [vmem:[#allocation11 + $0x2d0] sm:$0xff]  ;;  %vm523_vm1 = vcmask 1041408  }
  0x12   :  { %vm5709_vm0 = vcmp.lt.s32.totalorder %v9412_v0, 256  ;;  %v255_v6 = vld [vmem:[#allocation11 + $0x5d8] sm:$0xff]  ;;  %320 = vmatpush.msra.mxu2 %v159_v4  ;;  %v249_v7 = vld [vmem:[#allocation11 + $0x5a8] sm:$0xff]  ;;  %v152_v11 = vld [vmem:[#allocation11 + $0x2a0] sm:$0xff]  ;;  %280 = vmatpush.msra.mxu0 %v158_v10 }
  0x13   :  { %v9702_v1 = vsel %vm5709_vm0, 4294967295, %v9701_v1  ;;  %545 = vst.msk [vmem:[#allocation3] sm:$0x3] %vm5709_vm0, %v5664_v2  ;;  %340 = vmatpush.msra.mxu3 %v255_v6  ;;  %v147_v8 = vld [vmem:[#allocation11 + $0x278] sm:$0xff]  ;;  %v254_v12 = vld [vmem:[#allocation11 + $0x5d0] sm:$0xff]  ;;  %v141_v13 = vld [vmem:[#allocation11 + $0x248] sm:$0xff] }
  0x14   :  { %9703 = vst [vmem:[#allocation18_spill] sm:$0xff] %v9702_v1  ;;  %v243_v9 = vld [vmem:[#allocation11 + $0x578] sm:$0xff]  ;;  %321 = vmatpush.msra.mxu2 %v153_v5  ;;  %v237_v14 = vld [vmem:[#allocation11 + $0x548] sm:$0xff]  ;;  %300 = vmatpush.msra.mxu1 %v254_v12  ;;  %v146_v15 = vld [vmem:[#allocation11 + $0x270] sm:$0xff] }
  0x15   :  { %546 = vst.msk [vmem:[#allocation3 + $0x2] sm:$0x3] %vm5709_vm0, %v5664_v2  ;;  %341 = vmatpush.msra.mxu3 %v249_v7  ;;  %v248_v16 = vld [vmem:[#allocation11 + $0x5a0] sm:$0xff]  ;;  %v135_v17 = vld [vmem:[#allocation11 + $0x218] sm:$0xff]  ;;  %281 = vmatpush.msra.mxu0 %v152_v11  ;;  %v242_v19 = vld [vmem:[#allocation11 + $0x570] sm:$0xff] }
  0x16   :  { %547 = vst.msk [vmem:[#allocation4] sm:$0x3] %vm5709_vm0, %v5665_v3  ;;  %322 = vmatpush.msra.mxu2 %v147_v8  ;;  %v231_v18 = vld [vmem:[#allocation11 + $0x518] sm:$0xff]  ;;  %301 = vmatpush.msra.mxu1 %v248_v16  ;;  %v140_v20 = vld [vmem:[#allocation11 + $0x240] sm:$0xff]  ;;  %v129_v22 = vld [vmem:[#allocation11 + $0x1e8] sm:$0xff]  ;;  %p4833_p0 = scmp.le.s32.totalorder %s5706_s1, 0 }
  0x17   :  { %548 = vst.msk [vmem:[#allocation4 + $0x2] sm:$0x3] %vm5709_vm0, %v5665_v3  ;;  %342 = vmatpush.msra.mxu3 %v243_v9  ;;  %v236_v21 = vld [vmem:[#allocation11 + $0x540] sm:$0xff]  ;;  %282 = vmatpush.msra.mxu0 %v146_v15  ;;  %v225_v23 = vld [vmem:[#allocation11 + $0x4e8] sm:$0xff]  ;;  %v134_v24 = vld [vmem:[#allocation11 + $0x210] sm:$0xff] }
  0x18   :  { %549 = vst.msk [vmem:[#allocation5] sm:$0x3] %vm5709_vm0, %v5665_v3  ;;  %323 = vmatpush.msra.mxu2 %v141_v13  ;;  %302 = vmatpush.msra.mxu1 %v242_v19  ;;  %v230_v25 = vld [vmem:[#allocation11 + $0x510] sm:$0xff]  ;;  %v123_v26 = vld [vmem:[#allocation11 + $0x1b8] sm:$0xff]  ;;  %v128_v28 = vld [vmem:[#allocation11 + $0x1e0] sm:$0xff] }
  0x19   :  { %550 = vst.msk [vmem:[#allocation5 + $0x2] sm:$0x3] %vm5709_vm0, %v5665_v3  ;;  %343 = vmatpush.msra.mxu3 %v237_v14  ;;  %283 = vmatpush.msra.mxu0 %v140_v20  ;;  %v219_v27 = vld [vmem:[#allocation11 + $0x4b8] sm:$0xff]  ;;  %v224_v29 = vld [vmem:[#allocation11 + $0x4e0] sm:$0xff]  ;;  %v117_v30 = vld [vmem:[#allocation11 + $0x188] sm:$0xff] }
  0x1a   :  { %324 = vmatpush.msra.mxu2 %v135_v17  ;;  %303 = vmatpush.msra.mxu1 %v236_v21  ;;  %v213_v31 = vld [vmem:[#allocation11 + $0x488] sm:$0xff]  ;;  %v122_v32 = vld [vmem:[#allocation11 + $0x1b0] sm:$0xff]  ;;  %v111_v34 = vld [vmem:[#allocation11 + $0x158] sm:$0xff] }
  0x1b   :  { %344 = vmatpush.msra.mxu3 %v231_v18  ;;  %284 = vmatpush.msra.mxu0 %v134_v24  ;;  %v218_v33 = vld [vmem:[#allocation11 + $0x4b0] sm:$0xff]  ;;  %v207_v35 = vld [vmem:[#allocation11 + $0x458] sm:$0xff]  ;;  %v116_v36 = vld [vmem:[#allocation11 + $0x180] sm:$0xff] }
  0x1c   :  { %325 = vmatpush.msra.mxu2 %v129_v22  ;;  %304 = vmatpush.msra.mxu1 %v230_v25  ;;  %v212_v37 = vld [vmem:[#allocation11 + $0x480] sm:$0xff]  ;;  %v105_v38 = vld [vmem:[#allocation11 + $0x128] sm:$0xff]  ;;  %v110_v40 = vld [vmem:[#allocation11 + $0x150] sm:$0xff] }
  0x1d   :  { %345 = vmatpush.msra.mxu3 %v225_v23  ;;  %285 = vmatpush.msra.mxu0 %v128_v28  ;;  %v201_v39 = vld [vmem:[#allocation11 + $0x428] sm:$0xff]  ;;  %v206_v41 = vld [vmem:[#allocation11 + $0x450] sm:$0xff]  ;;  %v99_v42 = vld [vmem:[#allocation11 + $0xf8] sm:$0xff] }
  0x1e   :  { %326 = vmatpush.msra.mxu2 %v123_v26  ;;  %305 = vmatpush.msra.mxu1 %v224_v29  ;;  %v195_v43 = vld [vmem:[#allocation11 + $0x3f8] sm:$0xff]  ;;  %v104_v44 = vld [vmem:[#allocation11 + $0x120] sm:$0xff]  ;;  %v93_v46 = vld [vmem:[#allocation11 + $0xc8] sm:$0xff] }
  0x1f   :  { %346 = vmatpush.msra.mxu3 %v219_v27  ;;  %286 = vmatpush.msra.mxu0 %v122_v32  ;;  %v200_v45 = vld [vmem:[#allocation11 + $0x420] sm:$0xff]  ;;  %v189_v47 = vld [vmem:[#allocation11 + $0x3c8] sm:$0xff]  ;;  %v98_v48 = vld [vmem:[#allocation11 + $0xf0] sm:$0xff] }
  0x20   :  { %327 = vmatpush.msra.mxu2 %v117_v30  ;;  %306 = vmatpush.msra.mxu1 %v218_v33  ;;  %v194_v49 = vld [vmem:[#allocation11 + $0x3f0] sm:$0xff]  ;;  %v87_v50 = vld [vmem:[#allocation11 + $0x98] sm:$0xff]  ;;  %v92_v52 = vld [vmem:[#allocation11 + $0xc0] sm:$0xff] }
  0x21   :  { %347 = vmatpush.msra.mxu3 %v213_v31  ;;  %287 = vmatpush.msra.mxu0 %v116_v36  ;;  %v183_v51 = vld [vmem:[#allocation11 + $0x398] sm:$0xff]  ;;  %v188_v53 = vld [vmem:[#allocation11 + $0x3c0] sm:$0xff]  ;;  %v81_v54 = vld [vmem:[#allocation11 + $0x68] sm:$0xff] }
  0x22   :  { %328 = vmatpush.msra.mxu2 %v111_v34  ;;  %307 = vmatpush.msra.mxu1 %v212_v37  ;;  %v177_v55 = vld [vmem:[#allocation11 + $0x368] sm:$0xff]  ;;  %v86_v56 = vld [vmem:[#allocation11 + $0x90] sm:$0xff]  ;;  %v75_v58 = vld [vmem:[#allocation11 + $0x38] sm:$0xff] }
  0x23   :  { %348 = vmatpush.msra.mxu3 %v207_v35  ;;  %288 = vmatpush.msra.mxu0 %v110_v40  ;;  %v182_v57 = vld [vmem:[#allocation11 + $0x390] sm:$0xff]  ;;  %v171_v59 = vld [vmem:[#allocation11 + $0x338] sm:$0xff]  ;;  %v80_v60 = vld [vmem:[#allocation11 + $0x60] sm:$0xff] }
  0x24   :  { %329 = vmatpush.msra.mxu2 %v105_v38  ;;  %308 = vmatpush.msra.mxu1 %v206_v41  ;;  %v176_v61 = vld [vmem:[#allocation11 + $0x360] sm:$0xff]  ;;  %v69_v62 = vld [vmem:[#allocation11 + $0x8] sm:$0xff]  ;;  %v74_v4 = vld [vmem:[#allocation11 + $0x30] sm:$0xff] }
  0x25   :  { %349 = vmatpush.msra.mxu3 %v201_v39  ;;  %289 = vmatpush.msra.mxu0 %v104_v44  ;;  %v165_v63 = vld [vmem:[#allocation11 + $0x308] sm:$0xff]  ;;  %v170_v5 = vld [vmem:[#allocation11 + $0x330] sm:$0xff]  ;;  %v155_v6 = vld [vmem:[#allocation11 + $0x2b8] sm:$0xff] }
  0x26   :  { %330 = vmatpush.msra.mxu2 %v99_v42  ;;  %309 = vmatpush.msra.mxu1 %v200_v45  ;;  %v161_v2 = vld [vmem:[#allocation11 + $0x2e8] sm:$0xff]  ;;  %v251_v7 = vld [vmem:[#allocation11 + $0x5b8] sm:$0xff]  ;;  %v68_v8 = vld [vmem:[#allocation11] sm:$0xff] }
  0x27   :  { %350 = vmatpush.msra.mxu3 %v195_v43  ;;  %290 = vmatpush.msra.mxu0 %v98_v48  ;;  %v257_v3 = vld [vmem:[#allocation11 + $0x5e8] sm:$0xff]  ;;  %v164_v9 = vld [vmem:[#allocation11 + $0x300] sm:$0xff]  ;;  %v143_v14 = vld [vmem:[#allocation11 + $0x258] sm:$0xff] }
  0x28   :  { %331 = vmatpush.msra.mxu2 %v93_v46  ;;  %310 = vmatpush.msra.mxu1 %v194_v49  ;;  %v149_v10 = vld [vmem:[#allocation11 + $0x288] sm:$0xff]  ;;  %v160_v12 = vld [vmem:[#allocation11 + $0x2e0] sm:$0xff]  ;;  %v239_v15 = vld [vmem:[#allocation11 + $0x558] sm:$0xff] }
  0x29   :  { %351 = vmatpush.msra.mxu3 %v189_v47  ;;  %291 = vmatpush.msra.mxu0 %v92_v52  ;;  %v245_v11 = vld [vmem:[#allocation11 + $0x588] sm:$0xff]  ;;  %v256_v13 = vld [vmem:[#allocation11 + $0x5e0] sm:$0xff]  ;;  %v154_v16 = vld [vmem:[#allocation11 + $0x2b0] sm:$0xff] }
  0x2a   :  { %332 = vmatpush.msra.mxu2 %v87_v50  ;;  %311 = vmatpush.msra.mxu1 %v188_v53  ;;  %v250_v17 = vld [vmem:[#allocation11 + $0x5b0] sm:$0xff]  ;;  %v137_v18 = vld [vmem:[#allocation11 + $0x228] sm:$0xff]  ;;  %v148_v20 = vld [vmem:[#allocation11 + $0x280] sm:$0xff] }
  0x2b   :  { %352 = vmatpush.msra.mxu3 %v183_v51  ;;  %292 = vmatpush.msra.mxu0 %v86_v56  ;;  %v233_v19 = vld [vmem:[#allocation11 + $0x528] sm:$0xff]  ;;  %v244_v21 = vld [vmem:[#allocation11 + $0x580] sm:$0xff]  ;;  %v131_v22 = vld [vmem:[#allocation11 + $0x1f8] sm:$0xff] }
  0x2c   :  { %333 = vmatpush.msra.mxu2 %v81_v54  ;;  %312 = vmatpush.msra.mxu1 %v182_v57  ;;  %v227_v23 = vld [vmem:[#allocation11 + $0x4f8] sm:$0xff]  ;;  %v142_v25 = vld [vmem:[#allocation11 + $0x250] sm:$0xff]  ;;  %v125_v27 = vld [vmem:[#allocation11 + $0x1c8] sm:$0xff] }
  0x2d   :  { %353 = vmatpush.msra.mxu3 %v177_v55  ;;  %293 = vmatpush.msra.mxu0 %v80_v60  ;;  %v67_v24 = vld [vmem:[#allocation8] sm:$0xf]  ;;  %v238_v26 = vld [vmem:[#allocation11 + $0x550] sm:$0xff]  ;;  %v221_v28 = vld [vmem:[#allocation11 + $0x4c8] sm:$0xff] }
  0x2e   :  { %334 = vmatpush.msra.mxu2 %v75_v58  ;;  %313 = vmatpush.msra.mxu1 %v176_v61  ;;  %275 = vst [vmem:[#allocation1] ss:$4 sm:$0xff] %v67_v24  ;;  %v136_v29 = vld [vmem:[#allocation11 + $0x220] sm:$0xff]  ;;  %v119_v31 = vld [vmem:[#allocation11 + $0x198] sm:$0xff]  ;;  %v130_v33 = vld [vmem:[#allocation11 + $0x1f0] sm:$0xff] }
  0x2f   :  { %354 = vmatpush.msra.mxu3 %v171_v59  ;;  %294 = vmatpush.msra.mxu0 %v74_v4  ;;  %v232_v30 = vld [vmem:[#allocation11 + $0x520] sm:$0xff]  ;;  %v215_v32 = vld [vmem:[#allocation11 + $0x498] sm:$0xff]  ;;  %v226_v34 = vld [vmem:[#allocation11 + $0x4f0] sm:$0xff] }
  0x30   :  { %335 = vmatpush.msra.mxu2 %v69_v62  ;;  %314 = vmatpush.msra.mxu1 %v170_v5  ;;  %v113_v35 = vld [vmem:[#allocation11 + $0x168] sm:$0xff]  ;;  %v124_v37 = vld [vmem:[#allocation11 + $0x1c0] sm:$0xff]  ;;  %v107_v39 = vld [vmem:[#allocation11 + $0x138] sm:$0xff] }
  0x31   :  { %355 = vmatpush.msra.mxu3 %v165_v63  ;;  %295 = vmatpush.msra.mxu0 %v68_v8  ;;  %v209_v36 = vld [vmem:[#allocation11 + $0x468] sm:$0xff]  ;;  %v220_v38 = vld [vmem:[#allocation11 + $0x4c0] sm:$0xff]  ;;  %v203_v40 = vld [vmem:[#allocation11 + $0x438] sm:$0xff] }
  0x32   :  { %400 = vmatpush.msrb.mxu2 %v161_v2  ;;  %315 = vmatpush.msra.mxu1 %v164_v9  ;;  %v118_v41 = vld [vmem:[#allocation11 + $0x190] sm:$0xff]  ;;  %v101_v43 = vld [vmem:[#allocation11 + $0x108] sm:$0xff]  ;;  %v112_v45 = vld [vmem:[#allocation11 + $0x160] sm:$0xff] }
  0x33   :  { %420 = vmatpush.msrb.mxu3 %v257_v3  ;;  %360 = vmatpush.msrb.mxu0 %v160_v12  ;;  %v214_v42 = vld [vmem:[#allocation11 + $0x490] sm:$0xff]  ;;  %v197_v44 = vld [vmem:[#allocation11 + $0x408] sm:$0xff]  ;;  %v208_v46 = vld [vmem:[#allocation11 + $0x460] sm:$0xff] }
  0x34   :  { %401 = vmatpush.msrb.mxu2 %v155_v6  ;;  %380 = vmatpush.msrb.mxu1 %v256_v13  ;;  %v95_v47 = vld [vmem:[#allocation11 + $0xd8] sm:$0xff]  ;;  %v106_v49 = vld [vmem:[#allocation11 + $0x130] sm:$0xff]  ;;  %v89_v51 = vld [vmem:[#allocation11 + $0xa8] sm:$0xff] }
  0x35   :  { %421 = vmatpush.msrb.mxu3 %v251_v7  ;;  %361 = vmatpush.msrb.mxu0 %v154_v16  ;;  %v191_v48 = vld [vmem:[#allocation11 + $0x3d8] sm:$0xff]  ;;  %v202_v50 = vld [vmem:[#allocation11 + $0x430] sm:$0xff]  ;;  %v185_v52 = vld [vmem:[#allocation11 + $0x3a8] sm:$0xff] }
  0x36   :  { %402 = vmatpush.msrb.mxu2 %v149_v10  ;;  %381 = vmatpush.msrb.mxu1 %v250_v17  ;;  %v100_v53 = vld [vmem:[#allocation11 + $0x100] sm:$0xff]  ;;  %v83_v55 = vld [vmem:[#allocation11 + $0x78] sm:$0xff]  ;;  %v94_v57 = vld [vmem:[#allocation11 + $0xd0] sm:$0xff] }
  0x37   :  { %422 = vmatpush.msrb.mxu3 %v245_v11  ;;  %362 = vmatpush.msrb.mxu0 %v148_v20  ;;  %v196_v54 = vld [vmem:[#allocation11 + $0x400] sm:$0xff]  ;;  %v179_v56 = vld [vmem:[#allocation11 + $0x378] sm:$0xff]  ;;  %v77_v59 = vld [vmem:[#allocation11 + $0x48] sm:$0xff] }
  0x38   :  { %403 = vmatpush.msrb.mxu2 %v143_v14  ;;  %382 = vmatpush.msrb.mxu1 %v244_v21  ;;  %v5725_v58 = vld.sshfl [vmem:[#allocation1] sm:$0xff pattern:$0x73625140]  ;;  %v173_v60 = vld [vmem:[#allocation11 + $0x348] sm:$0xff]  ;;  %v190_v62 = vld [vmem:[#allocation11 + $0x3d0] sm:$0xff] }
  0x39   :  { %423 = vmatpush.msrb.mxu3 %v239_v15  ;;  %363 = vmatpush.msrb.mxu0 %v142_v25  ;;  %v88_v61 = vld [vmem:[#allocation11 + $0xa0] sm:$0xff]  ;;  %v71_v63 = vld [vmem:[#allocation11 + $0x18] sm:$0xff]  ;;  %v82_v6 = vld [vmem:[#allocation11 + $0x70] sm:$0xff] }
  0x3a   :  { %404 = vmatpush.msrb.mxu2 %v137_v18  ;;  %383 = vmatpush.msrb.mxu1 %v238_v26  ;;  %v167_v2 = vld [vmem:[#allocation11 + $0x318] sm:$0xff]  ;;  %v5728_v4 = vld.sshfl [vmem:[#allocation1 + $0x8] sm:$0xff pattern:$0x73625140]  ;;  %v178_v12 = vld [vmem:[#allocation11 + $0x370] sm:$0xff] }
  0x3b   :  { %424 = vmatpush.msrb.mxu3 %v233_v19  ;;  %364 = vmatpush.msrb.mxu0 %v136_v29  ;;  %v163_v3 = vld [vmem:[#allocation11 + $0x2f8] sm:$0xff]  ;;  %v157_v7 = vld [vmem:[#allocation11 + $0x2c8] sm:$0xff]  ;;  %v184_v8 = vld [vmem:[#allocation11 + $0x3a0] sm:$0xff] }
  0x3c   :  { %405 = vmatpush.msrb.mxu2 %v131_v22  ;;  %384 = vmatpush.msrb.mxu1 %v232_v30  ;;  %v259_v5 = vld [vmem:[#allocation11 + $0x5f8] sm:$0xff]  ;;  %v253_v9 = vld [vmem:[#allocation11 + $0x5c8] sm:$0xff]  ;;  %v76_v10 = vld [vmem:[#allocation11 + $0x40] sm:$0xff] }
  0x3d   :  { %425 = vmatpush.msrb.mxu3 %v227_v23  ;;  %365 = vmatpush.msrb.mxu0 %v130_v33  ;;  %v151_v11 = vld [vmem:[#allocation11 + $0x298] sm:$0xff]  ;;  %v70_v14 = vld [vmem:[#allocation11 + $0x10] sm:$0xff]  ;;  %v145_v15 = vld [vmem:[#allocation11 + $0x268] sm:$0xff] }
  0x3e   :  { %406 = vmatpush.msrb.mxu2 %v125_v27  ;;  %385 = vmatpush.msrb.mxu1 %v226_v34  ;;  %v247_v13 = vld [vmem:[#allocation11 + $0x598] sm:$0xff]  ;;  %v172_v16 = vld [vmem:[#allocation11 + $0x340] sm:$0xff]  ;;  %v241_v17 = vld [vmem:[#allocation11 + $0x568] sm:$0xff] }
  0x3f   :  { %426 = vmatpush.msrb.mxu3 %v221_v28  ;;  %366 = vmatpush.msrb.mxu0 %v124_v37  ;;  %v162_v18 = vld [vmem:[#allocation11 + $0x2f0] sm:$0xff]  ;;  %v139_v19 = vld [vmem:[#allocation11 + $0x238] sm:$0xff]  ;;  %v156_v22 = vld [vmem:[#allocation11 + $0x2c0] sm:$0xff] }
  0x40   :  { %407 = vmatpush.msrb.mxu2 %v119_v31  ;;  %386 = vmatpush.msrb.mxu1 %v220_v38  ;;  %v166_v20 = vld [vmem:[#allocation11 + $0x310] sm:$0xff]  ;;  %v235_v21 = vld [vmem:[#allocation11 + $0x538] sm:$0xff]  ;;  %v133_v24 = vld [vmem:[#allocation11 + $0x208] sm:$0xff] }
  0x41   :  { %427 = vmatpush.msrb.mxu3 %v215_v32  ;;  %367 = vmatpush.msrb.mxu0 %v118_v41  ;;  %v258_v23 = vld [vmem:[#allocation11 + $0x5f0] sm:$0xff]  ;;  %v229_v26 = vld [vmem:[#allocation11 + $0x508] sm:$0xff]  ;;  %v252_v27 = vld [vmem:[#allocation11 + $0x5c0] sm:$0xff] }
  0x42   :  { %408 = vmatpush.msrb.mxu2 %v113_v35  ;;  %387 = vmatpush.msrb.mxu1 %v214_v42  ;;  %v150_v25 = vld [vmem:[#allocation11 + $0x290] sm:$0xff]  ;;  %v127_v28 = vld [vmem:[#allocation11 + $0x1d8] sm:$0xff]  ;;  %v144_v29 = vld [vmem:[#allocation11 + $0x260] sm:$0xff] }
  0x43   :  { %428 = vmatpush.msrb.mxu3 %v209_v36  ;;  %368 = vmatpush.msrb.mxu0 %v112_v45  ;;  %v223_v30 = vld [vmem:[#allocation11 + $0x4d8] sm:$0xff]  ;;  %v246_v31 = vld [vmem:[#allocation11 + $0x590] sm:$0xff]  ;;  %v121_v32 = vld [vmem:[#allocation11 + $0x1a8] sm:$0xff] }
  0x44   :  { %409 = vmatpush.msrb.mxu2 %v107_v39  ;;  %388 = vmatpush.msrb.mxu1 %v208_v46  ;;  %v138_v33 = vld [vmem:[#allocation11 + $0x230] sm:$0xff]  ;;  %v217_v34 = vld [vmem:[#allocation11 + $0x4a8] sm:$0xff]  ;;  %v240_v35 = vld [vmem:[#allocation11 + $0x560] sm:$0xff] }
  0x45   :  { %429 = vmatpush.msrb.mxu3 %v203_v40  ;;  %369 = vmatpush.msrb.mxu0 %v106_v49  ;;  %v115_v36 = vld [vmem:[#allocation11 + $0x178] sm:$0xff]  ;;  %v132_v37 = vld [vmem:[#allocation11 + $0x200] sm:$0xff]  ;;  %v234_v39 = vld [vmem:[#allocation11 + $0x530] sm:$0xff] }
  0x46   :  { %410 = vmatpush.msrb.mxu2 %v101_v43  ;;  %389 = vmatpush.msrb.mxu1 %v202_v50  ;;  %v211_v38 = vld [vmem:[#allocation11 + $0x478] sm:$0xff]  ;;  %v109_v40 = vld [vmem:[#allocation11 + $0x148] sm:$0xff]  ;;  %v126_v41 = vld [vmem:[#allocation11 + $0x1d0] sm:$0xff] }
  0x47   :  { %430 = vmatpush.msrb.mxu3 %v197_v44  ;;  %370 = vmatpush.msrb.mxu0 %v100_v53  ;;  %v205_v42 = vld [vmem:[#allocation11 + $0x448] sm:$0xff]  ;;  %v228_v43 = vld [vmem:[#allocation11 + $0x500] sm:$0xff]  ;;  %v103_v44 = vld [vmem:[#allocation11 + $0x118] sm:$0xff] }
  0x48   :  { %411 = vmatpush.msrb.mxu2 %v95_v47  ;;  %390 = vmatpush.msrb.mxu1 %v196_v54  ;;  %v120_v45 = vld [vmem:[#allocation11 + $0x1a0] sm:$0xff]  ;;  %v199_v46 = vld [vmem:[#allocation11 + $0x418] sm:$0xff]  ;;  %v222_v47 = vld [vmem:[#allocation11 + $0x4d0] sm:$0xff] }
  0x49   :  { %431 = vmatpush.msrb.mxu3 %v191_v48  ;;  %371 = vmatpush.msrb.mxu0 %v94_v57  ;;  %v97_v48 = vld [vmem:[#allocation11 + $0xe8] sm:$0xff]  ;;  %v114_v49 = vld [vmem:[#allocation11 + $0x170] sm:$0xff]  ;;  %v216_v50 = vld [vmem:[#allocation11 + $0x4a0] sm:$0xff] }
  0x4a   :  { %412 = vmatpush.msrb.mxu2 %v89_v51  ;;  %391 = vmatpush.msrb.mxu1 %v190_v62  ;;  %v91_v51 = vld [vmem:[#allocation11 + $0xb8] sm:$0xff]  ;;  %v108_v53 = vld [vmem:[#allocation11 + $0x140] sm:$0xff]  ;;  %v210_v54 = vld [vmem:[#allocation11 + $0x470] sm:$0xff] }
  0x4b   :  { %432 = vmatpush.msrb.mxu3 %v185_v52  ;;  %336 = vmatmul.f32.vlgmr.msra.gmra.mxu2 %v5725_v58  ;;  %v193_v52 = vld [vmem:[#allocation11 + $0x3e8] sm:$0xff]  ;;  %v102_v57 = vld [vmem:[#allocation11 + $0x110] sm:$0xff]  ;;  %v96_v62 = vld [vmem:[#allocation11 + $0xe0] sm:$0xff] }
  0x4c   :  { %413 = vmatpush.msrb.mxu2 %v83_v55  ;;  %372 = vmatpush.msrb.mxu0 %v88_v61  ;;  %v85_v55 = vld [vmem:[#allocation11 + $0x88] sm:$0xff] }
  0x4d   :  { %433 = vmatpush.msrb.mxu3 %v179_v56  ;;  %392 = vmatpush.msrb.mxu1 %v184_v8  ;;  %v187_v56 = vld [vmem:[#allocation11 + $0x3b8] sm:$0xff]  ;;  %v181_v61 = vld [vmem:[#allocation11 + $0x388] sm:$0xff]  ;;  %v84_v8 = vld [vmem:[#allocation11 + $0x80] sm:$0xff] }
  0x4e   :  { %414 = vmatpush.msrb.mxu2 %v77_v59  ;;  %356 = vmatmul.f32.vlgmr.msra.gmra.mxu3 %v5728_v4  ;;  %v204_v59 = vld [vmem:[#allocation11 + $0x440] sm:$0xff] }
  0x4f   :  { %434 = vmatpush.msrb.mxu3 %v173_v60  ;;  %373 = vmatpush.msrb.mxu0 %v82_v6  ;;  %v79_v60 = vld [vmem:[#allocation11 + $0x58] sm:$0xff]  ;;  %v192_v6 = vld [vmem:[#allocation11 + $0x3e0] sm:$0xff] }
  0x50   :  { %415 = vmatpush.msrb.mxu2 %v71_v63  ;;  %393 = vmatpush.msrb.mxu1 %v178_v12  ;;  %v198_v63 = vld [vmem:[#allocation11 + $0x410] sm:$0xff]  ;;  %v72_v12 = vld [vmem:[#allocation11 + $0x20] sm:$0xff] }
  0x51   :  { %435 = vmatpush.msrb.mxu3 %v167_v2  ;;  %374 = vmatpush.msrb.mxu0 %v76_v10  ;;  %v73_v2 = vld [vmem:[#allocation11 + $0x28] sm:$0xff]  ;;  %v78_v10 = vld [vmem:[#allocation11 + $0x50] sm:$0xff] }
  0x52   :  { %480 = vmatpush.msra.mxu2 %v163_v3  ;;  %394 = vmatpush.msrb.mxu1 %v172_v16  ;;  %v175_v3 = vld [vmem:[#allocation11 + $0x358] sm:$0xff] }
  0x53   :  { %500 = vmatpush.msra.mxu3 %v259_v5  ;;  %375 = vmatpush.msrb.mxu0 %v70_v14  ;;  %v90_v5 = vld [vmem:[#allocation11 + $0xb0] sm:$0xff]  ;;  %v168_v14 = vld [vmem:[#allocation11 + $0x320] sm:$0xff] }
  0x54   :  { %481 = vmatpush.msra.mxu2 %v157_v7  ;;  %296 = vmatmul.f32.vlgmr.msra.gmra.mxu0 %v5725_v58  ;;  %v169_v7 = vld [vmem:[#allocation11 + $0x328] sm:$0xff] }
  0x55   :  { %501 = vmatpush.msra.mxu3 %v253_v9  ;;  %440 = vmatpush.msra.mxu0 %v162_v18  ;;  %v186_v9 = vld [vmem:[#allocation11 + $0x3b0] sm:$0xff] }
  0x56   :  { %482 = vmatpush.msra.mxu2 %v151_v11  ;;  %395 = vmatpush.msrb.mxu1 %v166_v20  ;;  %v180_v11 = vld [vmem:[#allocation11 + $0x380] sm:$0xff] }
  0x57   :  { %502 = vmatpush.msra.mxu3 %v247_v13  ;;  %316 = vmatmul.f32.vlgmr.msra.gmra.mxu1 %v5728_v4  ;;  %v174_v13 = vld [vmem:[#allocation11 + $0x350] sm:$0xff] }
  0x58   :  { %483 = vmatpush.msra.mxu2 %v145_v15  ;;  %441 = vmatpush.msra.mxu0 %v156_v22  ;;  %v260_v15 = vld [vmem:[#allocation13] sm:$0x3f] }
  0x59   :  { %503 = vmatpush.msra.mxu3 %v241_v17  ;;  %460 = vmatpush.msra.mxu1 %v258_v23  ;;  %v263_v16 = vperm.slane %v260_v15, 1 }
  0x5a   :  { %484 = vmatpush.msra.mxu2 %v139_v19  ;;  %442 = vmatpush.msra.mxu0 %v150_v25  ;;  %v262_v19 = vperm.slane %v260_v15, 0 }
  0x5b   :  { %504 = vmatpush.msra.mxu3 %v235_v21  ;;  %461 = vmatpush.msra.mxu1 %v252_v27 }
  0x5c   :  { %485 = vmatpush.msra.mxu2 %v133_v24  ;;  %443 = vmatpush.msra.mxu0 %v144_v29  ;;  %v264_v29 = vperm.slane %v260_v15, 2 }
  0x5d   :  { %505 = vmatpush.msra.mxu3 %v229_v26  ;;  %462 = vmatpush.msra.mxu1 %v246_v31 }
  0x5e   :  { %486 = vmatpush.msra.mxu2 %v127_v28  ;;  %444 = vmatpush.msra.mxu0 %v138_v33 }
  0x5f   :  { %506 = vmatpush.msra.mxu3 %v223_v30  ;;  %463 = vmatpush.msra.mxu1 %v240_v35 }
  0x60   :  { %487 = vmatpush.msra.mxu2 %v121_v32  ;;  %445 = vmatpush.msra.mxu0 %v132_v37  ;;  %v267_v37 = vperm.slane %v260_v15, 5 }
  0x61   :  { %507 = vmatpush.msra.mxu3 %v217_v34  ;;  %464 = vmatpush.msra.mxu1 %v234_v39  ;;  %v266_v39 = vperm.slane %v260_v15, 4 }
  0x62   :  { %488 = vmatpush.msra.mxu2 %v115_v36  ;;  %446 = vmatpush.msra.mxu0 %v126_v41 }
  0x63   :  { %508 = vmatpush.msra.mxu3 %v211_v38  ;;  %465 = vmatpush.msra.mxu1 %v228_v43 }
  0x64   :  { %489 = vmatpush.msra.mxu2 %v109_v40  ;;  %447 = vmatpush.msra.mxu0 %v120_v45 }
  0x65   :  { %509 = vmatpush.msra.mxu3 %v205_v42  ;;  %466 = vmatpush.msra.mxu1 %v222_v47 }
  0x66   :  { %490 = vmatpush.msra.mxu2 %v103_v44  ;;  %448 = vmatpush.msra.mxu0 %v114_v49 }
  0x67   :  { %510 = vmatpush.msra.mxu3 %v199_v46  ;;  %416 = vmatmul.f32.vlgmr.msrb.gmra.mxu2 %v5725_v58 }
  0x68   :  { %491 = vmatpush.msra.mxu2 %v97_v48  ;;  %467 = vmatpush.msra.mxu1 %v216_v50 }
  0x69   :  { %511 = vmatpush.msra.mxu3 %v193_v52  ;;  %449 = vmatpush.msra.mxu0 %v108_v53 }
  0x6a   :  { %492 = vmatpush.msra.mxu2 %v91_v51  ;;  %436 = vmatmul.f32.vlgmr.msrb.gmra.mxu3 %v5728_v4 }
  0x6b   :  { %468 = vmatpush.msra.mxu1 %v210_v54  ;;  %512 = vmatpush.msra.mxu3 %v187_v56 }
  0x6c   :  { %493 = vmatpush.msra.mxu2 %v85_v55  ;;  %450 = vmatpush.msra.mxu0 %v102_v57 }
  0x6d   :  { %469 = vmatpush.msra.mxu1 %v204_v59  ;;  %513 = vmatpush.msra.mxu3 %v181_v61 }
  0x6e   :  { %494 = vmatpush.msra.mxu2 %v79_v60  ;;  %451 = vmatpush.msra.mxu0 %v96_v62 }
  0x6f   :  { %470 = vmatpush.msra.mxu1 %v198_v63  ;;  %514 = vmatpush.msra.mxu3 %v175_v3 }
  0x70   :  { %495 = vmatpush.msra.mxu2 %v73_v2  ;;  %376 = vmatmul.f32.vlgmr.msrb.gmra.mxu0 %v5725_v58 }
  0x71   :  { %496 = vmatmul.f32.vlgmr.msra.gmra.mxu2 %v5725_v58  ;;  %452 = vmatpush.msra.mxu0 %v90_v5 }
  0x72   :  { %471 = vmatpush.msra.mxu1 %v192_v6  ;;  %515 = vmatpush.msra.mxu3 %v169_v7 }
  0x73   :  { %396 = vmatmul.f32.vlgmr.msrb.gmra.mxu1 %v5728_v4  ;;  %516 = vmatmul.f32.vlgmr.msra.gmra.mxu3 %v5728_v4 }
  0x74   :  { %453 = vmatpush.msra.mxu0 %v84_v8  ;;  %472 = vmatpush.msra.mxu1 %v186_v9 }
  0x76   :  { %454 = vmatpush.msra.mxu0 %v78_v10  ;;  %473 = vmatpush.msra.mxu1 %v180_v11 }
  0x78   :  { %455 = vmatpush.msra.mxu0 %v72_v12  ;;  %474 = vmatpush.msra.mxu1 %v174_v13 }
  0x79   :  { %456 = vmatmul.f32.vlgmr.msra.gmra.mxu0 %v5725_v58  ;;  %v265_v58 = vperm.slane %v260_v15, 3 }
  0x7a   :  { %475 = vmatpush.msra.mxu1 %v168_v14 }
  0x7b   :  { %476 = vmatmul.f32.vlgmr.msra.gmra.mxu1 %v5728_v4 }
  0xce   :  { %v337_v17 = vpop.f32.mrf.mxu2 }
  0xcf   :  { %v338_v18 = vadd.f32 %v337_v17, %v263_v16 }
  0xd1   :  { %v357_v20 = vpop.f32.mrf.mxu3  ;;  %v297_v21 = vpop.f32.mrf.mxu0 }
  0xd2   :  { %v358_v22 = vadd.f32 %v357_v20, %v338_v18  ;;  %v298_v23 = vadd.f32 %v297_v21, %v262_v19 }
  0xd4   :  { %v522_v24 = vrot.slane %v358_v22, 6  ;;  %v317_v25 = vpop.f32.mrf.mxu1 }
  0xd5   :  { %v318_v26 = vadd.f32 %v317_v25, %v298_v23 }
  0xd7   :  { %v524_v27 = vsel %vm523_vm1, %v318_v26, %v522_v24 }
  0xd8   :  { %526 = vst [vmem:[#allocation2] sm:$0xf] %v524_v27 }
  0xea   :  { %v417_v28 = vpop.f32.mrf.mxu2 }
  0xeb   :  { %v418_v4 = vadd.f32 %v417_v28, %v265_v58 }
  0xed   :  { %v377_v30 = vpop.f32.mrf.mxu0  ;;  %v437_v31 = vpop.f32.mrf.mxu3 }
  0xee   :  { %v378_v32 = vadd.f32 %v377_v30, %v264_v29  ;;  %v438_v33 = vadd.f32 %v437_v31, %v418_v4 }
  0xf0   :  { %v397_v34 = vpop.f32.mrf.mxu1  ;;  %v529_v35 = vrot.slane %v438_v33, 6 }
  0xf1   :  { %v398_v36 = vadd.f32 %v397_v34, %v378_v32 }
  0xf3   :  { %v530_v38 = vsel %vm523_vm1, %v398_v36, %v529_v35 }
  0xf4   :  { %533 = vst [vmem:[#allocation2 + $0x4] sm:$0xf] %v530_v38  ;;  %v497_v40 = vpop.f32.mrf.mxu2 }
  0xf5   :  { %v498_v41 = vadd.f32 %v497_v40, %v267_v37 }
  0xf6   :  { %v457_v42 = vpop.f32.mrf.mxu0  ;;  %v517_v44 = vpop.f32.mrf.mxu3 }
  0xf7   :  { %v458_v43 = vadd.f32 %v457_v42, %v266_v39  ;;  %v518_v45 = vadd.f32 %v517_v44, %v498_v41 }
  0xf8   :  { %v477_v46 = vpop.f32.mrf.mxu1  ;;  %554 = sbr.rel (%p4833_p0) target bundleno = 1226 (0x4ca), region = 33 }
  0xf9   :  { %v536_v47 = vrot.slane %v518_v45, 6  ;;  %v478_v48 = vadd.f32 %v477_v46, %v458_v43 }
  0xfb   :  { %v537_v49 = vsel %vm523_vm1, %v478_v48, %v536_v47 }
  0xfc   :  { %540 = vst [vmem:[#allocation2 + $0x8] sm:$0xf] %v537_v49 }
  0xfd   :  { %v5746_v50 = vshrl.u32 %v9412_v0, 7  ;;  %v582_v51 = vld [vmem:[#allocation2 + $0x4] sm:$0xf]  ;;  %s4841_s3 = sshll.u32 %s5706_s1, 2  ;;  %vm563_vm2 = vcmask 1040384   ;;  %vm565_vm3 = vcmask 1042434  }
  0xfe   :  { %589 = vst [vmem:[#allocation1] ss:$4 sm:$0xff] %v582_v51  ;;  %s557_s6 = scalar_lea.vmem [#allocation2], %s4841_s3  ;;  %vm569_vm4 = vcmask 1041409   ;;  %vm571_vm5 = vcmask 1043459   ;;  %vm573_vm6 = vcmask 1042433  }
  0xff   :  { %9704 = vst [vmem:[#allocation19_spill] sm:$0xff] %v5746_v50  ;;  %v5749_v52 = vadd.s32 32, %v5746_v50  ;;  %v5752_v53 = vadd.s32 16, %v5746_v50  ;;  %v5761_v56 = vadd.s32 40, %v5746_v50  ;;  %v5764_v57 = vadd.s32 48, %v5746_v50 }
 0x100   :  { %v5771_v59 = vadd.s32 96, %v5746_v50  ;;  %v5775_v60 = vadd.s32 56, %v5746_v50  ;;  %v5778_v61 = vadd.s32 72, %v5746_v50  ;;  %v5785_v62 = vadd.s32 80, %v5746_v50 }
 0x101   :  { %9705 = vst [vmem:[#allocation20_spill] sm:$0xff] %v5749_v52  ;;  %4854 = vset.pattern.permute.xlu2 %v5749_v52  ;;  %4853 = vset.pattern.permute.xlu1 %v5752_v53  ;;  %v5788_v63 = vadd.s32 88, %v5746_v50  ;;  %v5803_v7 = vadd.s32 112, %v5746_v50  ;;  %v5817_v12 = vadd.s32 120, %v5746_v50  ;;  %v5826_v13 = vadd.s32 8, %v5746_v50 }
 0x102   :  { %9706 = vst [vmem:[#allocation21_spill] sm:$0xff] %v5761_v56  ;;  %4873 = vset.pattern.permute.xlu0 %v5771_v59  ;;  %v5837_v15 = vadd.s32 64, %v5746_v50  ;;  %v5857_v18 = vadd.s32 104, %v5746_v50  ;;  %v5884_v19 = vadd.s32 24, %v5746_v50 }
 0x103   :  { %9707 = vst [vmem:[#allocation22_spill] sm:$0xff] %v5764_v57  ;;  %v587_v8 = vld [vmem:[#allocation2 + $0x8] sm:$0xf] }
 0x104   :  { %9708 = vst [vmem:[#allocation23_spill] sm:$0xff] %v5771_v59 }
 0x105   :  { %v590_v54 = vld.sshfl [vmem:[#allocation1] sm:$0xff pattern:$0x73625140]  ;;  %9709 = vst [vmem:[#allocation24_spill] sm:$0xff] %v5775_v60 }
 0x106   :  { %v5756_v55 = vperm.slane %v590_v54, 0  ;;  %9710 = vst [vmem:[#allocation25_spill] sm:$0xff] %v5778_v61  ;;  %v591_v2 = vld.sshfl [vmem:[#allocation1 + $0x8] sm:$0xff pattern:$0x73625140]  ;;  %v5811_v11 = vperm.slane %v590_v54, 1 }
 0x107   :  { %9711 = vst [vmem:[#allocation26_spill] sm:$0xff] %v5785_v62  ;;  %v5792_v3 = vperm.slane %v591_v2, 0  ;;  %v5834_v14 = vperm.slane %v591_v2, 1 }
 0x108   :  { %9712 = vst [vmem:[#allocation27_spill] sm:$0xff] %v5788_v63 }
 0x109   :  { %623 = vperm.xlu2 %4854, %v5756_v55   ;;  %611 = vperm.xlu1 %4853, %v5756_v55   ;;  %1118 = vst [vmem:[#allocation1] ss:$4 sm:$0xff] %v582_v51 }
 0x10a   :  { %768 = vperm.xlu0 %4873, %v5792_v3   ;;  %9713 = vst [vmem:[#allocation28_spill] sm:$0xff] %v5803_v7 }
 0x10b   :  { %9714 = vst [vmem:[#allocation29_spill] sm:$0xff] %v5817_v12 }
 0x10c   :  { %9715 = vst [vmem:[#allocation30_spill] sm:$0xff] %v5826_v13 }
 0x10d   :  { %9716 = vst [vmem:[#allocation31_spill] sm:$0xff] %v5837_v15 }
 0x10e   :  { %9717 = vst [vmem:[#allocation32_spill] sm:$0xff] %v5857_v18 }
 0x10f   :  { %9718 = vst [vmem:[#allocation33_spill] sm:$0xff] %v5884_v19 }
 0x110   :  { %v5797_v5 = vld.sshfl [vmem:[#allocation1] sm:$0xff pattern:$0x73625140]  ;;  %v5799_v6 = vld.sshfl [vmem:[#allocation1 + $0x8] sm:$0xff pattern:$0x73625140] }
 0x111   :  { %4855 = vset.pattern.permute.xlu2 %v5761_v56  ;;  %4856 = vset.pattern.permute.xlu1 %v5764_v57  ;;  %1133 = vst [vmem:[#allocation1] ss:$4 sm:$0xff] %v582_v51  ;;  %v1123_v42 = vsel %vm523_vm1, %v5797_v5, -inf  ;;  %v1124_v43 = vsel %vm523_vm1, %v5799_v6, -inf }
 0x112   :  { %4882 = vset.pattern.permute.xlu0 %v5764_v57  ;;  %v1125_v47 = vmax.f32 %v1123_v42, %v1124_v43 }
 0x118   :  { %v5807_v9 = vld.sshfl [vmem:[#allocation1] sm:$0xff pattern:$0x73625140]  ;;  %v5809_v10 = vld.sshfl [vmem:[#allocation1 + $0x8] sm:$0xff pattern:$0x73625140] }
 0x119   :  { %629 = vperm.xlu2 %4855, %v5756_v55   ;;  %635 = vperm.xlu1 %4856, %v5756_v55   ;;  %1735 = vst [vmem:[#allocation1] ss:$4 sm:$0xff] %v587_v8 }
 0x11a   :  { %829 = vperm.xlu0 %4882, %v5811_v11  }
 0x120   :  { %v5842_v16 = vld.sshfl [vmem:[#allocation1] sm:$0xff pattern:$0x73625140]  ;;  %v1737_v20 = vld.sshfl [vmem:[#allocation1 + $0x8] sm:$0xff pattern:$0x73625140] }
 0x121   :  { %4857 = vset.pattern.permute.xlu2 %v5775_v60  ;;  %4858 = vset.pattern.permute.xlu1 %v5778_v61  ;;  %v5845_v17 = vperm.slane %v5842_v16, 0  ;;  %v5901_v21 = vperm.slane %v1737_v20, 0  ;;  %v5922_v22 = vperm.slane %v5842_v16, 1  ;;  %v5980_v36 = vperm.slane %v1737_v20, 1 }
 0x122   :  { %4887 = vset.pattern.permute.xlu0 %v5788_v63  ;;  %v1139_v16 = vsel %vm523_vm1, %v5809_v10, inf }
 0x123   :  { %9719 = vst [vmem:[#allocation34_spill] sm:$0xff] %v5922_v22 }
 0x124   :  { %9722 = vst [vmem:[#allocation37_spill] sm:$0xff] %v5980_v36 }
 0x129   :  { %641 = vperm.xlu2 %4857, %v5756_v55   ;;  %653 = vperm.xlu1 %4858, %v5756_v55  }
 0x12a   :  { %859 = vperm.xlu0 %4887, %v5811_v11  }
 0x131   :  { %4859 = vset.pattern.permute.xlu2 %v5785_v62  ;;  %4860 = vset.pattern.permute.xlu1 %v5788_v63 }
 0x132   :  { %4888 = vset.pattern.permute.xlu0 %v5746_v50 }
 0x139   :  { %659 = vperm.xlu2 %4859, %v5756_v55   ;;  %665 = vperm.xlu1 %4860, %v5756_v55  }
 0x13a   :  { %599 = vperm.xlu0 %4888, %v5756_v55  }
 0x141   :  { %4861 = vset.pattern.permute.xlu2 %v5771_v59  ;;  %4862 = vset.pattern.permute.xlu1 %v5803_v7 }
 0x142   :  { %890 = vperm.xlu0 %4888, %v5834_v14  }
 0x149   :  { %671 = vperm.xlu2 %4861, %v5756_v55   ;;  %683 = vperm.xlu1 %4862, %v5756_v55  }
 0x14a   :  { %1745 = vperm.xlu0 %4888, %v5845_v17  }
 0x151   :  { %4863 = vset.pattern.permute.xlu2 %v5817_v12  ;;  %4864 = vset.pattern.permute.xlu1 %v5746_v50 }
 0x152   :  { %4905 = vset.pattern.permute.xlu0 %v5826_v13 }
 0x159   :  { %689 = vperm.xlu2 %4863, %v5756_v55   ;;  %696 = vperm.xlu1 %4864, %v5792_v3  }
 0x15a   :  { %605 = vperm.xlu0 %4905, %v5756_v55  }
 0x161   :  { %4865 = vset.pattern.permute.xlu2 %v5826_v13  ;;  %4867 = vset.pattern.permute.xlu1 %v5761_v56 }
 0x162   :  { %799 = vperm.xlu0 %4905, %v5811_v11  }
 0x163   :  { %v5954_v28 = vpop.permute.xlu2 %623 }
 0x169   :  { %702 = vperm.xlu2 %4865, %v5792_v3   ;;  %726 = vperm.xlu1 %4867, %v5792_v3  }
 0x16a   :  { %1751 = vperm.xlu0 %4905, %v5845_v17  }
 0x171   :  { %4866 = vset.pattern.permute.xlu2 %v5749_v52  ;;  %4869 = vset.pattern.permute.xlu1 %v5837_v15 }
 0x172   :  { %4906 = vset.pattern.permute.xlu0 %v5761_v56 }
 0x173   :  { %v5963_v30 = vpop.permute.xlu2 %629 }
 0x179   :  { %720 = vperm.xlu2 %4866, %v5792_v3   ;;  %744 = vperm.xlu1 %4869, %v5792_v3  }
 0x17a   :  { %920 = vperm.xlu0 %4906, %v5834_v14  }
 0x17b   :  { %v5956_v29 = vpop.permute.xlu1 %611 }
 0x17c   :  { %v5924_v23 = vpop.permute.xlu0 %768 }
 0x181   :  { %4868 = vset.pattern.permute.xlu2 %v5764_v57  ;;  %4871 = vset.pattern.permute.xlu1 %v5785_v62 }
 0x182   :  { %1775 = vperm.xlu0 %4906, %v5845_v17  }
 0x183   :  { %v5972_v33 = vpop.permute.xlu2 %641 }
 0x189   :  { %732 = vperm.xlu2 %4868, %v5792_v3   ;;  %756 = vperm.xlu1 %4871, %v5792_v3  }
 0x18a   :  { %4907 = vset.pattern.permute.xlu0 %v5785_v62 }
 0x18b   :  { %v5965_v31 = vpop.permute.xlu1 %635 }
 0x18c   :  { %v5929_v24 = vpop.permute.xlu0 %829 }
 0x191   :  { %4870 = vset.pattern.permute.xlu2 %v5778_v61  ;;  %4874 = vset.pattern.permute.xlu1 %v5857_v18 }
 0x192   :  { %950 = vperm.xlu0 %4907, %v5834_v14  }
 0x193   :  { %v5982_v37 = vpop.permute.xlu2 %659 }
 0x199   :  { %750 = vperm.xlu2 %4870, %v5792_v3   ;;  %774 = vperm.xlu1 %4874, %v5792_v3  }
 0x19a   :  { %1805 = vperm.xlu0 %4907, %v5845_v17  }
 0x19b   :  { %v5974_v34 = vpop.permute.xlu1 %653 }
 0x19c   :  { %v5934_v25 = vpop.permute.xlu0 %859 }
 0x1a1   :  { %4872 = vset.pattern.permute.xlu2 %v5788_v63  ;;  %4876 = vset.pattern.permute.xlu1 %v5817_v12 }
 0x1a2   :  { %4912 = vset.pattern.permute.xlu0 %v5817_v12 }
 0x1a3   :  { %v5990_v40 = vpop.permute.xlu2 %671 }
 0x1a9   :  { %762 = vperm.xlu2 %4872, %v5792_v3   ;;  %786 = vperm.xlu1 %4876, %v5792_v3  }
 0x1aa   :  { %980 = vperm.xlu0 %4912, %v5834_v14  }
 0x1ab   :  { %v5984_v38 = vpop.permute.xlu1 %665 }
 0x1ac   :  { %v5939_v26 = vpop.permute.xlu0 %599 }
 0x1b1   :  { %4875 = vset.pattern.permute.xlu2 %v5803_v7  ;;  %4878 = vset.pattern.permute.xlu1 %v5752_v53 }
 0x1b2   :  { %1835 = vperm.xlu0 %4912, %v5845_v17  }
 0x1b3   :  { %v6000_v44 = vpop.permute.xlu2 %689 }
 0x1b4   :  { %v5944_v27 = vpop.permute.xlu0 %890 }
 0x1b9   :  { %780 = vperm.xlu2 %4875, %v5792_v3   ;;  %805 = vperm.xlu1 %4878, %v5811_v11  }
 0x1ba   :  { %4917 = vset.pattern.permute.xlu0 %v5749_v52 }
 0x1bb   :  { %v5992_v41 = vpop.permute.xlu1 %683 }
 0x1bc   :  { %v5949_v58 = vpop.permute.xlu0 %1745 }
 0x1bd   :  { %9720 = vst [vmem:[#allocation35_spill] sm:$0xff] %v5949_v58  ;;  %v558_v58 = vld [vmem:[%s557_s6] sm:$0xf] }
 0x1c1   :  { %4877 = vset.pattern.permute.xlu2 %v5746_v50  ;;  %4880 = vset.pattern.permute.xlu1 %v5749_v52 }
 0x1c2   :  { %1769 = vperm.xlu0 %4917, %v5845_v17  }
 0x1c3   :  { %v6008_v48 = vpop.permute.xlu2 %702 }
 0x1c9   :  { %793 = vperm.xlu2 %4877, %v5811_v11   ;;  %817 = vperm.xlu1 %4880, %v5811_v11  }
 0x1ca   :  { %1866 = vperm.xlu0 %4917, %v5901_v21  }
 0x1cb   :  { %v6002_v45 = vpop.permute.xlu1 %696 }
 0x1cc   :  { %v5958_v4 = vpop.permute.xlu0 %605 }
 0x1d1   :  { %4879 = vset.pattern.permute.xlu2 %v5884_v19  ;;  %4883 = vset.pattern.permute.xlu1 %v5775_v60 }
 0x1d2   :  { %4926 = vset.pattern.permute.xlu0 %v5778_v61 }
 0x1d3   :  { %v6015_v54 = vpop.permute.xlu2 %720 }
 0x1d4   :  { %v5968_v32 = vpop.permute.xlu0 %799 }
 0x1d9   :  { %811 = vperm.xlu2 %4879, %v5811_v11   ;;  %835 = vperm.xlu1 %4883, %v5811_v11  }
 0x1da   :  { %1896 = vperm.xlu0 %4926, %v5901_v21  }
 0x1db   :  { %v6010_v49 = vpop.permute.xlu1 %726 }
 0x1dc   :  { %v5978_v35 = vpop.permute.xlu0 %1751 }
 0x1dd   :  { %9721 = vst [vmem:[#allocation36_spill] sm:$0xff] %v5978_v35 }
 0x1e1   :  { %4881 = vset.pattern.permute.xlu2 %v5761_v56  ;;  %4885 = vset.pattern.permute.xlu1 %v5778_v61  ;;  %v561_v56 = vrot.slane %v558_v58, 2 }
 0x1e2   :  { %4931 = vset.pattern.permute.xlu0 %v5803_v7 }
 0x1e3   :  { %v6022_v6 = vpop.permute.xlu2 %732 }
 0x1e9   :  { %823 = vperm.xlu2 %4881, %v5811_v11   ;;  %847 = vperm.xlu1 %4885, %v5811_v11  }
 0x1ea   :  { %1926 = vperm.xlu0 %4931, %v5901_v21  }
 0x1eb   :  { %v6017_v2 = vpop.permute.xlu1 %744 }
 0x1ec   :  { %v5988_v39 = vpop.permute.xlu0 %920 }
 0x1f1   :  { %4884 = vset.pattern.permute.xlu2 %v5837_v15  ;;  %4889 = vset.pattern.permute.xlu1 %v5771_v59 }
 0x1f2   :  { %4936 = vset.pattern.permute.xlu0 %v5884_v19 }
 0x1f3   :  { %v6034_v42 = vpop.permute.xlu2 %750 }
 0x1f4   :  { %v6004_v46 = vpop.permute.xlu0 %1775 }
 0x1f5   :  { %9723 = vst [vmem:[#allocation38_spill] sm:$0xff] %v6004_v46 }
 0x1f9   :  { %841 = vperm.xlu2 %4884, %v5811_v11   ;;  %865 = vperm.xlu1 %4889, %v5811_v11  }
 0x1fa   :  { %1957 = vperm.xlu0 %4936, %v5922_v22  }
 0x1fb   :  { %v6024_v8 = vpop.permute.xlu1 %756 }
 0x201   :  { %4886 = vset.pattern.permute.xlu2 %v5785_v62  ;;  %4891 = vset.pattern.permute.xlu1 %v5803_v7 }
 0x202   :  { %4937 = vset.pattern.permute.xlu0 %v5837_v15 }
 0x203   :  { %v6040_v0 = vpop.permute.xlu2 %762 }
 0x204   :  { %v6013_v51 = vpop.permute.xlu0 %950 }
 0x205   :  { %9724 = vst [vmem:[#allocation39_spill] sm:$0xff] %v6013_v51 }
 0x209   :  { %853 = vperm.xlu2 %4886, %v5811_v11   ;;  %877 = vperm.xlu1 %4891, %v5811_v11  }
 0x20a   :  { %647 = vperm.xlu0 %4937, %v5756_v55  }
 0x20b   :  { %v6036_v43 = vpop.permute.xlu1 %774 }
 0x20c   :  { %v6020_v5 = vpop.permute.xlu0 %1805 }
 0x20d   :  { %9725 = vst [vmem:[#allocation40_spill] sm:$0xff] %v6020_v5 }
 0x211   :  { %4890 = vset.pattern.permute.xlu2 %v5857_v18  ;;  %4893 = vset.pattern.permute.xlu1 %v5826_v13 }
 0x212   :  { %1987 = vperm.xlu0 %4937, %v5922_v22  }
 0x219   :  { %871 = vperm.xlu2 %4890, %v5811_v11   ;;  %896 = vperm.xlu1 %4893, %v5834_v14  }
 0x21a   :  { %4942 = vset.pattern.permute.xlu0 %v5857_v18 }
 0x21c   :  { %v6032_v20 = vpop.permute.xlu0 %980 }
 0x21d   :  { %9726 = vst [vmem:[#allocation41_spill] sm:$0xff] %v6032_v20 }
 0x221   :  { %4892 = vset.pattern.permute.xlu2 %v5817_v12  ;;  %4895 = vset.pattern.permute.xlu1 %v5764_v57 }
 0x222   :  { %677 = vperm.xlu0 %4942, %v5756_v55  }
 0x229   :  { %883 = vperm.xlu2 %4892, %v5811_v11   ;;  %926 = vperm.xlu1 %4895, %v5834_v14   ;;  %v1138_v11 = vsel %vm523_vm1, %v5807_v9, inf  ;;  %v6042_v9 = vpop.permute.xlu1 %786 }
 0x22a   :  { %2017 = vperm.xlu0 %4942, %v5922_v22  }
 0x231   :  { %4894 = vset.pattern.permute.xlu2 %v5749_v52  ;;  %4897 = vset.pattern.permute.xlu1 %v5837_v15  ;;  %v6049_v10 = vpop.permute.xlu1 %805 }
 0x232   :  { %4947 = vset.pattern.permute.xlu0 %v5752_v53 }
 0x239   :  { %914 = vperm.xlu2 %4894, %v5834_v14   ;;  %938 = vperm.xlu1 %4897, %v5834_v14  }
 0x23a   :  { %708 = vperm.xlu0 %4947, %v5792_v3  }
 0x241   :  { %4896 = vset.pattern.permute.xlu2 %v5775_v60  ;;  %4899 = vset.pattern.permute.xlu1 %v5788_v63 }
 0x242   :  { %2048 = vperm.xlu0 %4947, %v5980_v36  }
 0x249   :  { %932 = vperm.xlu2 %4896, %v5834_v14   ;;  %956 = vperm.xlu1 %4899, %v5834_v14  }
 0x24a   :  { %4952 = vset.pattern.permute.xlu0 %v5775_v60 }
 0x251   :  { %4898 = vset.pattern.permute.xlu2 %v5778_v61  ;;  %4901 = vset.pattern.permute.xlu1 %v5857_v18 }
 0x252   :  { %738 = vperm.xlu0 %4952, %v5792_v3  }
 0x259   :  { %944 = vperm.xlu2 %4898, %v5834_v14   ;;  %968 = vperm.xlu1 %4901, %v5834_v14  }
 0x25a   :  { %2078 = vperm.xlu0 %4952, %v5980_v36  }
 0x261   :  { %4900 = vset.pattern.permute.xlu2 %v5771_v59  ;;  %4903 = vset.pattern.permute.xlu1 %v5884_v19 }
 0x262   :  { %4961 = vset.pattern.permute.xlu0 %v5771_v59 }
 0x269   :  { %962 = vperm.xlu2 %4900, %v5834_v14  }
 0x26a   :  { %2108 = vperm.xlu0 %4961, %v5980_v36   ;;  %v6044_v36 = vpop.permute.xlu0 %1835 }
 0x26b   :  { %9727 = vst [vmem:[#allocation42_spill] sm:$0xff] %v6044_v36 }
 0x271   :  { %4902 = vset.pattern.permute.xlu2 %v5803_v7 }
 0x272   :  { %4965 = vset.pattern.permute.xlu0 %v5817_v12  ;;  %v6051_v20 = vpop.permute.xlu0 %1769 }
 0x273   :  { %9728 = vst [vmem:[#allocation43_spill] sm:$0xff] %v6051_v20 }
 0x279   :  { %974 = vperm.xlu2 %4902, %v5834_v14  }
 0x281   :  { %4904 = vset.pattern.permute.xlu2 %v5752_v53 }
 0x283   :  { %1126 = vmax.xlane.f32.xlu1 %v1125_v47  ;;  %v1140_v47 = vmin.f32 %v1138_v11, %v1139_v16  ;;  %v6056_v16 = vpop.permute.xlu1 %817 }
 0x28b   :  { %v6064_v52 = vpop.permute.xlu1 %835 }
 0x293   :  { %v6072_v36 = vpop.permute.xlu1 %847 }
 0x29c   :  { %617 = vperm.xlu1 %4903, %v5756_v55   ;;  %v6047_v55 = vpop.permute.xlu2 %780 }
 0x2a2   :  { %1141 = vmin.xlane.f32.xlu2 %v1140_v47 }
 0x2a4   :  { %714 = vperm.xlu1 %4903, %v5792_v3   ;;  %v6054_v11 = vpop.permute.xlu2 %793  ;;  %v6059_v3 = vpop.permute.xlu0 %1866 }
 0x2a5   :  { %9729 = vst [vmem:[#allocation44_spill] sm:$0xff] %v6059_v3  ;;  %v6078_v3 = vpop.permute.xlu1 %865 }
 0x2ac   :  { %908 = vperm.xlu1 %4903, %v5834_v14   ;;  %v6062_v47 = vpop.permute.xlu2 %811  ;;  %v6068_v12 = vpop.permute.xlu0 %1896 }
 0x2ad   :  { %9730 = vst [vmem:[#allocation45_spill] sm:$0xff] %v6068_v12  ;;  %v6086_v62 = vpop.permute.xlu1 %877 }
 0x2ae   :  { %9732 = vst [vmem:[#allocation47_spill] sm:$0xff] %v6086_v62 }
 0x2b4   :  { %1763 = vperm.xlu1 %4903, %v5845_v17   ;;  %v6070_v22 = vpop.permute.xlu2 %823  ;;  %v6080_v5 = vpop.permute.xlu0 %1926 }
 0x2b5   :  { %9731 = vst [vmem:[#allocation46_spill] sm:$0xff] %v6080_v5  ;;  %v6094_v20 = vpop.permute.xlu1 %896 }
 0x2b6   :  { %9734 = vst [vmem:[#allocation49_spill] sm:$0xff] %v6094_v20 }
 0x2ba   :  { %902 = vperm.xlu2 %4904, %v5834_v14  }
 0x2bc   :  { %4909 = vset.pattern.permute.xlu1 %v5775_v60  ;;  %v6076_v14 = vpop.permute.xlu2 %841  ;;  %v6088_v46 = vpop.permute.xlu0 %1957 }
 0x2bd   :  { %9733 = vst [vmem:[#allocation48_spill] sm:$0xff] %v6088_v46  ;;  %v6102_v35 = vpop.permute.xlu1 %926 }
 0x2be   :  { %9737 = vst [vmem:[#allocation52_spill] sm:$0xff] %v6102_v35  ;;  %v560_v35 = vrot.slane %v558_v58, 1 }
 0x2c2   :  { %1757 = vperm.xlu2 %4904, %v5845_v17  }
 0x2c4   :  { %1787 = vperm.xlu1 %4909, %v5845_v17   ;;  %v6084_v12 = vpop.permute.xlu2 %853  ;;  %v6097_v5 = vpop.permute.xlu0 %647 }
 0x2c5   :  { %9735 = vst [vmem:[#allocation50_spill] sm:$0xff] %v6097_v5  ;;  %v6111_v20 = vpop.permute.xlu1 %938 }
 0x2c6   :  { %9740 = vst [vmem:[#allocation55_spill] sm:$0xff] %v6111_v20 }
 0x2ca   :  { %4908 = vset.pattern.permute.xlu2 %v5764_v57 }
 0x2cc   :  { %4911 = vset.pattern.permute.xlu1 %v5778_v61  ;;  %v6092_v61 = vpop.permute.xlu2 %871  ;;  %v6106_v46 = vpop.permute.xlu0 %1987 }
 0x2cd   :  { %9738 = vst [vmem:[#allocation53_spill] sm:$0xff] %v6106_v46  ;;  %v6117_v5 = vpop.permute.xlu1 %956  ;;  %v564_v46 = vsel %vm563_vm2, %v558_v58, %v560_v35 }
 0x2ce   :  { %9742 = vst [vmem:[#allocation57_spill] sm:$0xff] %v6117_v5 }
 0x2d2   :  { %1781 = vperm.xlu2 %4908, %v5845_v17  }
 0x2d4   :  { %1799 = vperm.xlu1 %4911, %v5845_v17   ;;  %v6100_v60 = vpop.permute.xlu2 %883 }
 0x2d5   :  { %9736 = vst [vmem:[#allocation51_spill] sm:$0xff] %v6100_v60 }
 0x2da   :  { %4910 = vset.pattern.permute.xlu2 %v5837_v15 }
 0x2dc   :  { %4914 = vset.pattern.permute.xlu1 %v5771_v59  ;;  %v6109_v59 = vpop.permute.xlu2 %914 }
 0x2dd   :  { %9739 = vst [vmem:[#allocation54_spill] sm:$0xff] %v6109_v59 }
 0x2e2   :  { %1793 = vperm.xlu2 %4910, %v5845_v17  }
 0x2e4   :  { %1817 = vperm.xlu1 %4914, %v5845_v17   ;;  %v6115_v15 = vpop.permute.xlu2 %932 }
 0x2e5   :  { %9741 = vst [vmem:[#allocation56_spill] sm:$0xff] %v6115_v15  ;;  %v6129_v15 = vpop.permute.xlu1 %968 }
 0x2e6   :  { %9745 = vst [vmem:[#allocation60_spill] sm:$0xff] %v6129_v15 }
 0x2ea   :  { %4913 = vset.pattern.permute.xlu2 %v5788_v63  ;;  %v562_v63 = vrot.slane %v558_v58, 3 }
 0x2ec   :  { %4916 = vset.pattern.permute.xlu1 %v5803_v7  ;;  %v6119_v7 = vpop.permute.xlu0 %677  ;;  %v566_v20 = vsel %vm565_vm3, %v561_v56, %v562_v63  ;;  %v6127_v60 = vpop.permute.xlu2 %944  ;;  %v572_v62 = vsel %vm571_vm5, %v561_v56, %v562_v63 }
 0x2ed   :  { %9743 = vst [vmem:[#allocation58_spill] sm:$0xff] %v6119_v7  ;;  %v6125_v59 = vsel %vm523_vm1, %v564_v46, %v566_v20 }
 0x2ee   :  { %9744 = vst [vmem:[#allocation59_spill] sm:$0xff] %v6127_v60  ;;  %v6132_v5 = vperm.slane %v6125_v59, 0  ;;  %v6135_v7 = vperm.slane %v6125_v59, 1  ;;  %vm1148_vm7 = vcmp.ge.f32.partialorder %v6125_v59, 0.0 }
 0x2f0   :  { %v6142_v46 = vmul.f32 %v6132_v5, %v5954_v28  ;;  %v6146_v20 = vmul.f32 %v6135_v7, %v5954_v28  ;;  %v6150_v15 = vmul.f32 %v6132_v5, %v5963_v30  ;;  %v6155_v56 = vmul.f32 %v6135_v7, %v5963_v30 }
 0x2f1   :  { %v6159_v63 = vmul.f32 %v6132_v5, %v5956_v29  ;;  %v6177_v30 = vmul.f32 %v6132_v5, %v5965_v31  ;;  %v6181_v60 = vmul.f32 %v6135_v7, %v5965_v31  ;;  %v6203_v31 = vmul.f32 %v6132_v5, %v5990_v40 }
 0x2f2   :  { %1811 = vperm.xlu2 %4913, %v5845_v17  }
 0x2f3   :  { %9750 = vst [vmem:[#allocation65_spill] sm:$0xff] %v6203_v31  ;;  %v6225_v31 = vmul.f32 %v6135_v7, %v6000_v44 }
 0x2f4   :  { %1829 = vperm.xlu1 %4916, %v5845_v17   ;;  %v6137_v51 = vpop.permute.xlu0 %2017  ;;  %v6165_v28 = vpop.permute.xlu2 %962 }
 0x2f5   :  { %9746 = vst [vmem:[#allocation61_spill] sm:$0xff] %v6137_v51  ;;  %v6173_v51 = vmul.f32 %v6135_v7, %v5972_v33 }
 0x2f6   :  { %9753 = vst [vmem:[#allocation68_spill] sm:$0xff] %v6225_v31 }
 0x2f7   :  { %9747 = vst [vmem:[#allocation62_spill] sm:$0xff] %v6173_v51  ;;  %v6207_v51 = vmul.f32 %v6135_v7, %v5990_v40  ;;  %v6229_v40 = vmul.f32 %v6132_v5, %v5992_v41 }
 0x2f9   :  { %9751 = vst [vmem:[#allocation66_spill] sm:$0xff] %v6207_v51  ;;  %v6241_v51 = vmul.f32 %v6135_v7, %v6008_v48 }
 0x2fa   :  { %4915 = vset.pattern.permute.xlu2 %v5857_v18  ;;  %v570_v18 = vsel %vm569_vm4, %v558_v58, %v560_v35  ;;  %v6169_v35 = vmul.f32 %v6132_v5, %v5972_v33  ;;  %v6195_v33 = vmul.f32 %v6132_v5, %v5974_v34 }
 0x2fb   :  { %v574_v58 = vsel %vm573_vm6, %v570_v18, %v572_v62  ;;  %v6187_v62 = vmul.f32 %v6132_v5, %v5982_v37  ;;  %v6191_v18 = vmul.f32 %v6135_v7, %v5982_v37  ;;  %v6211_v37 = vmul.f32 %v6132_v5, %v5984_v38  ;;  %9755 = vst [vmem:[#allocation70_spill] sm:$0xff] %v6241_v51 }
 0x2fc   :  { %4919 = vset.pattern.permute.xlu1 %v5826_v13  ;;  %v6199_v13 = vmul.f32 %v6135_v7, %v5974_v34  ;;  %v6221_v34 = vmul.f32 %v6132_v5, %v6000_v44  ;;  %v6245_v44 = vmul.f32 %v6132_v5, %v6002_v45  ;;  %v6247_v31 = vpop.permute.xlu0 %708  ;;  %v6264_v51 = vmul.f32 %v6132_v5, %v6010_v49 }
 0x2fd   :  { %9748 = vst [vmem:[#allocation63_spill] sm:$0xff] %v6187_v62  ;;  %v6217_v62 = vmul.f32 %v6135_v7, %v5984_v38  ;;  %v6237_v38 = vmul.f32 %v6132_v5, %v6008_v48  ;;  %v6260_v48 = vmul.f32 %v6135_v7, %v6015_v54 }
 0x2fe   :  { %9749 = vst [vmem:[#allocation64_spill] sm:$0xff] %v6191_v18  ;;  %v6213_v18 = vrot.slane %v574_v58, 1  ;;  %v6233_v58 = vmul.f32 %v6135_v7, %v5992_v41  ;;  %v6252_v41 = vmul.f32 %v6135_v7, %v6002_v45  ;;  %v6272_v45 = vmul.f32 %v6132_v5, %v6022_v6 }
 0x2ff   :  { %9752 = vst [vmem:[#allocation67_spill] sm:$0xff] %v6221_v34  ;;  %v6256_v34 = vmul.f32 %v6132_v5, %v6015_v54  ;;  %v6284_v54 = vmul.f32 %v6132_v5, %v6017_v2 }
 0x300   :  { %9754 = vst [vmem:[#allocation69_spill] sm:$0xff] %v6237_v38  ;;  %v6268_v38 = vmul.f32 %v6135_v7, %v6010_v49  ;;  %v6288_v49 = vmul.f32 %v6135_v7, %v6017_v2  ;;  %v6309_v2 = vmul.f32 %v6135_v7, %v6024_v8  ;;  %vm1149_vm8 = vcmp.ge.f32.partialorder %v6213_v18, 0.0 }
 0x301   :  { %9756 = vst [vmem:[#allocation71_spill] sm:$0xff] %v6256_v34  ;;  %v6279_v34 = vperm.slane %v6213_v18, 0 }
 0x302   :  { %1823 = vperm.xlu2 %4915, %v5845_v17   ;;  %v6163_v17 = vmul.f32 %v6135_v7, %v5956_v29  ;;  %v6183_v29 = vpop.xlane.xlu1 %1126  ;;  %9757 = vst [vmem:[#allocation72_spill] sm:$0xff] %v6272_v45  ;;  %v6292_v45 = vmul.f32 %v6132_v5, %v6034_v42 }
 0x303   :  { %9759 = vst [vmem:[#allocation74_spill] sm:$0xff] %v6284_v54  ;;  %v6305_v54 = vmul.f32 %v6132_v5, %v6024_v8  ;;  %v6331_v8 = vmul.f32 %v6132_v5, %v6047_v55 }
 0x304   :  { %1848 = vperm.xlu1 %4919, %v5901_v21   ;;  %9760 = vst [vmem:[#allocation75_spill] sm:$0xff] %v6288_v49 }
 0x305   :  { %9761 = vst [vmem:[#allocation76_spill] sm:$0xff] %v6292_v45  ;;  %v6313_v45 = vmul.f32 %v6132_v5, %v6040_v0 }
 0x306   :  { %9763 = vst [vmem:[#allocation78_spill] sm:$0xff] %v6305_v54  ;;  %v6327_v54 = vmul.f32 %v6135_v7, %v6036_v43 }
 0x307   :  { %9764 = vst [vmem:[#allocation79_spill] sm:$0xff] %v6313_v45  ;;  %v6335_v45 = vmul.f32 %v6135_v7, %v6047_v55  ;;  %v6355_v55 = vmul.f32 %v6279_v34, %v6049_v10 }
 0x308   :  { %9767 = vst [vmem:[#allocation82_spill] sm:$0xff] %v6327_v54 }
 0x309   :  { %9768 = vst [vmem:[#allocation83_spill] sm:$0xff] %v6331_v8 }
 0x30a   :  { %4918 = vset.pattern.permute.xlu2 %v5746_v50  ;;  %v6276_v50 = vmul.f32 %v6135_v7, %v6022_v6  ;;  %v6295_v6 = vperm.slane %v6213_v18, 1  ;;  %9769 = vst [vmem:[#allocation84_spill] sm:$0xff] %v6335_v45  ;;  %v6359_v45 = vmul.f32 %v6132_v5, %v5924_v23 }
 0x30b   :  { %9774 = vst [vmem:[#allocation89_spill] sm:$0xff] %v6355_v55 }
 0x30c   :  { %9758 = vst [vmem:[#allocation73_spill] sm:$0xff] %v6276_v50  ;;  %4921 = vset.pattern.permute.xlu1 %v5884_v19  ;;  %v6297_v50 = vpop.permute.xlu2 %974  ;;  %v6301_v19 = vmul.f32 %v6135_v7, %v6034_v42  ;;  %v6323_v42 = vmul.f32 %v6132_v5, %v6036_v43  ;;  %v6347_v43 = vmul.f32 %v6279_v34, %v6054_v11 }
 0x30d   :  { %9762 = vst [vmem:[#allocation77_spill] sm:$0xff] %v6297_v50  ;;  %v6319_v50 = vmul.f32 %v6135_v7, %v6040_v0  ;;  %v6339_v0 = vmul.f32 %v6132_v5, %v6042_v9  ;;  %v6351_v54 = vmul.f32 %v6295_v6, %v6054_v11  ;;  %v6371_v11 = vmul.f32 %v6279_v34, %v6062_v47 }
 0x30e   :  { %v6315_v49 = vpop.permute.xlu1 %617  ;;  %9766 = vst [vmem:[#allocation81_spill] sm:$0xff] %v6323_v42  ;;  %v6379_v55 = vmul.f32 %v6295_v6, %v5929_v24  ;;  %v6539_v1 = vmul.f32 %v6295_v6, %v6092_v61 }
 0x30f   :  { %9765 = vst [vmem:[#allocation80_spill] sm:$0xff] %v6319_v50  ;;  %v6343_v50 = vmul.f32 %v6135_v7, %v6042_v9  ;;  %v6363_v9 = vmul.f32 %v6135_v7, %v5924_v23  ;;  %v6384_v23 = vmul.f32 %v6295_v6, %v6062_v47  ;;  %v6404_v47 = vmul.f32 %v6132_v5, %v5939_v26 }
 0x310   :  { %9770 = vst [vmem:[#allocation85_spill] sm:$0xff] %v6339_v0 }
 0x311   :  { %9771 = vst [vmem:[#allocation86_spill] sm:$0xff] %v6343_v50  ;;  %v6367_v50 = vmul.f32 %v6295_v6, %v6049_v10  ;;  %v6388_v10 = vmul.f32 %v6279_v34, %v6056_v16 }
 0x312   :  { %9772 = vst [vmem:[#allocation87_spill] sm:$0xff] %v6347_v43  ;;  %1842 = vperm.xlu2 %4918, %v5901_v21  }
 0x313   :  { %9773 = vst [vmem:[#allocation88_spill] sm:$0xff] %v6351_v54  ;;  %v6375_v54 = vmul.f32 %v6279_v34, %v5929_v24  ;;  %v6400_v24 = vmul.f32 %v6295_v6, %v6056_v16  ;;  %v6417_v16 = vmul.f32 %v6295_v6, %v6070_v22 }
 0x314   :  { %9775 = vst [vmem:[#allocation90_spill] sm:$0xff] %v6367_v50  ;;  %1860 = vperm.xlu1 %4921, %v5901_v21   ;;  %v6441_v50 = vmul.f32 %v6279_v34, %v6076_v14 }
 0x315   :  { %9776 = vst [vmem:[#allocation91_spill] sm:$0xff] %v6371_v11  ;;  %v6392_v11 = vmul.f32 %v6279_v34, %v5934_v25 }
 0x316   :  { %9777 = vst [vmem:[#allocation92_spill] sm:$0xff] %v6375_v54  ;;  %v6396_v54 = vmul.f32 %v6295_v6, %v5934_v25  ;;  %v6413_v25 = vmul.f32 %v6279_v34, %v6070_v22 }
 0x317   :  { %9778 = vst [vmem:[#allocation93_spill] sm:$0xff] %v6379_v55  ;;  %v1129_v55 = vperm.slane %v6183_v29, 0 }
 0x318   :  { %9779 = vst [vmem:[#allocation94_spill] sm:$0xff] %v6384_v23  ;;  %v6408_v23 = vpop.permute.xlu0 %2048 }
 0x319   :  { %9780 = vst [vmem:[#allocation95_spill] sm:$0xff] %v6388_v10  ;;  %v1130_v10 = vperm.slane %v6183_v29, 1  ;;  %v1142_v29 = vpop.xlane.xlu2 %1141 }
 0x31a   :  { %9781 = vst [vmem:[#allocation96_spill] sm:$0xff] %v6392_v11  ;;  %v6425_v11 = vmul.f32 %v6279_v34, %v5944_v27  ;;  %v1145_v22 = vperm.slane %v1142_v29, 1  ;;  %4920 = vset.pattern.permute.xlu2 %v5752_v53 }
 0x31b   :  { %9782 = vst [vmem:[#allocation97_spill] sm:$0xff] %v6396_v54  ;;  %v6421_v54 = vmul.f32 %v6135_v7, %v5939_v26  ;;  %v6437_v26 = vmul.f32 %v6295_v6, %v6064_v52 }
 0x31c   :  { %9783 = vst [vmem:[#allocation98_spill] sm:$0xff] %v6400_v24  ;;  %v1144_v24 = vperm.slane %v1142_v29, 0  ;;  %4923 = vset.pattern.permute.xlu1 %v5764_v57  ;;  %v6533_v57 = vmul.f32 %v6295_v6, %v5988_v39 }
 0x31d   :  { %9784 = vst [vmem:[#allocation99_spill] sm:$0xff] %v6408_v23  ;;  %v6429_v23 = vmul.f32 %v6279_v34, %v6064_v52  ;;  %v1153_v52 = vmul.f32 %v1145_v22, %v6213_v18  ;;  %v6478_v22 = vmul.f32 %v6279_v34, %v6084_v12 }
 0x31e   :  { %9785 = vst [vmem:[#allocation100_spill] sm:$0xff] %v6413_v25  ;;  %v6433_v25 = vmul.f32 %v6295_v6, %v5944_v27  ;;  %v1151_v27 = vmul.f32 %v1130_v10, %v6213_v18  ;;  %v1152_v29 = vmul.f32 %v1144_v24, %v6125_v59  ;;  %v6465_v10 = vmul.f32 %v6135_v7, %v5958_v4 }
 0x31f   :  { %9786 = vst [vmem:[#allocation101_spill] sm:$0xff] %v6417_v16  ;;  %v715_v16 = vpop.permute.xlu1 %714 }
 0x320   :  { %9787 = vst [vmem:[#allocation102_spill] sm:$0xff] %v6425_v11  ;;  %v1150_v11 = vmul.f32 %v1129_v55, %v6125_v59  ;;  %v6461_v55 = vmul.f32 %v6132_v5, %v5958_v4  ;;  %v6469_v59 = vmul.f32 %v6295_v6, %v6072_v36  ;;  %v1155_v24 = vsel %vm1149_vm8, %v1151_v27, %v1153_v52 }
 0x321   :  { %9788 = vst [vmem:[#allocation103_spill] sm:$0xff] %v6429_v23  ;;  %v6447_v23 = vld [vmem:[#allocation3 + $0x2] sm:$0x3]  ;;  %v6482_v4 = vmul.f32 %v6295_v6, %v5968_v32  ;;  %v6497_v27 = vmul.f32 %v6295_v6, %v6078_v3 }
 0x322   :  { %9789 = vst [vmem:[#allocation104_spill] sm:$0xff] %v6433_v25  ;;  %v1156_v25 = vld [vmem:[#allocation3] sm:$0x3]  ;;  %v1154_v18 = vsel %vm1148_vm7, %v1150_v11, %v1152_v29  ;;  %v6493_v11 = vmul.f32 %v6279_v34, %v6078_v3  ;;  %1854 = vperm.xlu2 %4920, %v5901_v21  }
 0x323   :  { %9790 = vst [vmem:[#allocation105_spill] sm:$0xff] %v6437_v26  ;;  %v6453_v26 = vmul.f32 %v6295_v6, %v6076_v14  ;;  %v6473_v14 = vmul.f32 %v6279_v34, %v5968_v32  ;;  %v6501_v32 = vmul.f32 %v6279_v34, %v5988_v39 }
 0x324   :  { %9791 = vst [vmem:[#allocation106_spill] sm:$0xff] %v6441_v50  ;;  %v6457_v50 = vmul.f32 %v6279_v34, %v6072_v36  ;;  %v6485_v36 = vmax.f32 %v6447_v23, %v1155_v24  ;;  %v903_v24 = vpop.permute.xlu2 %902  ;;  %1878 = vperm.xlu1 %4923, %v5901_v21  }
 0x325   :  { %9792 = vst [vmem:[#allocation107_spill] sm:$0xff] %v6447_v23  ;;  %v6522_v52 = vmul.f32 %v6279_v34, %v903_v24  ;;  %v6525_v23 = vmul.f32 %v6295_v6, %v903_v24  ;;  %v1029_v24 = vmul.f32 %v6135_v7, %v715_v16 }
 0x326   :  { %9793 = vst [vmem:[#allocation108_spill] sm:$0xff] %v6453_v26  ;;  %v6513_v3 = vperm.slane %v6485_v36, 0 }
 0x327   :  { %9794 = vst [vmem:[#allocation109_spill] sm:$0xff] %v6457_v50  ;;  %v1158_v50 = vmax.f32 %v1156_v25, %v1154_v18 }
 0x328   :  { %9795 = vst [vmem:[#allocation110_spill] sm:$0xff] %v6469_v59  ;;  %v6489_v59 = vmul.f32 %v6295_v6, %v6084_v12 }
 0x329   :  { %9796 = vst [vmem:[#allocation111_spill] sm:$0xff] %v6473_v14  ;;  %v1160_v29 = vsub.f32 %v1156_v25, %v1158_v50  ;;  %v6506_v12 = vperm.slane %v1158_v50, 0  ;;  %v6508_v18 = vperm.slane %v1158_v50, 1  ;;  %v739_v25 = vpop.permute.xlu0 %738 }
 0x32a   :  { %9797 = vst [vmem:[#allocation112_spill] sm:$0xff] %v6478_v22  ;;  %v9811_v22 = vld [vmem:[#allocation47_spill] sm:$0xff] }
 0x32b   :  { %9798 = vst [vmem:[#allocation113_spill] sm:$0xff] %v6482_v4  ;;  %v6548_v39 = vmul.f32 %v6279_v34, %v9811_v22  ;;  %v1162_v4 = vmul.f32 1.442695, %v1160_v29  ;;  %v6601_v29 = vmul.f32 %v6279_v34, %v6165_v28 }
 0x32c   :  { %9799 = vst [vmem:[#allocation114_spill] sm:$0xff] %v6485_v36 }
 0x32d   :  { %9800 = vst [vmem:[#allocation115_spill] sm:$0xff] %v6489_v59  ;;  %v9817_v59 = vld [vmem:[#allocation56_spill] sm:$0xff]  ;;  %4966 = vpow2.f32 %v1162_v4  ;;  %v9829_v4 = vld [vmem:[#allocation21_spill] sm:$0xff] }
 0x32e   :  { %9801 = vst [vmem:[#allocation116_spill] sm:$0xff] %v6493_v11  ;;  %v1028_v11 = vmul.f32 %v6132_v5, %v715_v16  ;;  %v9815_v16 = vld [vmem:[#allocation39_spill] sm:$0xff]  ;;  %4922 = vset.pattern.permute.xlu2 %v9829_v4 }
 0x32f   :  { %9802 = vst [vmem:[#allocation117_spill] sm:$0xff] %v6497_v27  ;;  %v6516_v27 = vperm.slane %v6485_v36, 1 }
 0x330   :  { %9803 = vst [vmem:[#allocation118_spill] sm:$0xff] %v6501_v32  ;;  %v909_v32 = vpop.permute.xlu1 %908  ;;  %v1214_v26 = vsub.f32 %v1028_v11, %v6506_v12  ;;  %v6574_v11 = vmul.f32 %v6295_v6, %v9815_v16 }
 0x331   :  { %2418 = vst.msk [vmem:[#allocation3] sm:$0x3] %vm5709_vm0, %v1158_v50  ;;  %v6529_v50 = vmul.f32 %v6279_v34, %v6092_v61  ;;  %v6556_v61 = vmul.f32 %v6279_v34, %v909_v32 }
 0x332   :  { %9804 = vst [vmem:[#allocation119_spill] sm:$0xff] %v6513_v3 }
 0x333   :  { %9805 = vst [vmem:[#allocation120_spill] sm:$0xff] %v6516_v27 }
 0x334   :  { %2419 = vst.msk [vmem:[#allocation3 + $0x2] sm:$0x3] %vm5709_vm0, %v6485_v36  ;;  %v1036_v36 = vmul.f32 %v6132_v5, %v739_v25 }
 0x335   :  { %9806 = vst [vmem:[#allocation121_spill] sm:$0xff] %v6522_v52  ;;  %v9822_v52 = vld [vmem:[#allocation51_spill] sm:$0xff] }
 0x336   :  { %9807 = vst [vmem:[#allocation122_spill] sm:$0xff] %v6525_v23  ;;  %v6568_v23 = vmul.f32 %v6295_v6, %v9817_v59  ;;  %1872 = vperm.xlu2 %4922, %v5901_v21  }
 0x337   :  { %9808 = vst [vmem:[#allocation123_spill] sm:$0xff] %v6529_v50  ;;  %v6564_v50 = vmul.f32 %v6279_v34, %v9817_v59  ;;  %v6584_v59 = vmul.f32 %v6279_v34, %v9822_v52 }
 0x338   :  { %9809 = vst [vmem:[#allocation124_spill] sm:$0xff] %v6533_v57  ;;  %v6552_v57 = vmul.f32 %v6295_v6, %v9811_v22  ;;  %v1215_v22 = vsub.f32 %v1029_v24, %v6508_v18 }
 0x339   :  { %9810 = vst [vmem:[#allocation125_spill] sm:$0xff] %v6539_v1  ;;  %v6560_v1 = vmul.f32 %v6279_v34, %v9815_v16  ;;  %v6605_v16 = vmul.f32 %v6295_v6, %v6165_v28 }
 0x33a   :  { %9812 = vst [vmem:[#allocation47_spill] sm:$0xff] %v6548_v39  ;;  %v1382_v24 = vmul.f32 1.442695, %v1215_v22 }
 0x33b   :  { %9813 = vst [vmem:[#allocation126_spill] sm:$0xff] %v6552_v57  ;;  %v1222_v57 = vsub.f32 %v1036_v36, %v6506_v12  ;;  %v6593_v36 = vmul.f32 %v6295_v6, %v9822_v52  ;;  %v1177_v52 = vsub.f32 %v6421_v54, %v6508_v18  ;;  %v1179_v54 = vsub.f32 %v6465_v10, %v6508_v18 }
 0x33c   :  { %9814 = vst [vmem:[#allocation127_spill] sm:$0xff] %v6556_v61  ;;  %v997_v61 = vmul.f32 %v6135_v7, %v6315_v49  ;;  %v6639_v10 = vmul.f32 %v6135_v7, %v739_v25 }
 0x33d   :  { %9816 = vst [vmem:[#allocation39_spill] sm:$0xff] %v6560_v1  ;;  %v6578_v1 = vmul.f32 %v6295_v6, %v909_v32  ;;  %v1380_v32 = vmul.f32 1.442695, %v1214_v26  ;;  %v1310_v14 = vmul.f32 1.442695, %v1179_v54 }
 0x33e   :  { %9818 = vst [vmem:[#allocation56_spill] sm:$0xff] %v6564_v50  ;;  %v1178_v50 = vsub.f32 %v6461_v55, %v6506_v12 }
 0x33f   :  { %9819 = vst [vmem:[#allocation128_spill] sm:$0xff] %v6568_v23  ;;  %v9827_v23 = vld [vmem:[#allocation50_spill] sm:$0xff]  ;;  %4968 = vpow2.f32 %v1380_v32 }
 0x340   :  { %9820 = vst [vmem:[#allocation129_spill] sm:$0xff] %v6574_v11  ;;  %v1176_v11 = vsub.f32 %v6404_v47, %v6506_v12  ;;  %v6611_v26 = vmul.f32 %v6132_v5, %v9827_v23  ;;  %v6615_v39 = vmul.f32 %v6135_v7, %v9827_v23  ;;  %v1396_v47 = vmul.f32 1.442695, %v1222_v57 }
 0x341   :  { %9821 = vst [vmem:[#allocation130_spill] sm:$0xff] %v6578_v1  ;;  %v9828_v1 = vld [vmem:[#allocation58_spill] sm:$0xff]  ;;  %v996_v23 = vmul.f32 %v6132_v5, %v6315_v49  ;;  %v1180_v57 = vsub.f32 %v6159_v63, %v6506_v12  ;;  %4970 = vpow2.f32 %v1382_v24  ;;  %v1183_v63 = vsub.f32 %v997_v61, %v6508_v18 }
 0x342   :  { %9823 = vst [vmem:[#allocation51_spill] sm:$0xff] %v6584_v59  ;;  %v6621_v28 = vmul.f32 %v6132_v5, %v9828_v1  ;;  %v6625_v22 = vmul.f32 %v6135_v7, %v9828_v1  ;;  %v1304_v55 = vmul.f32 1.442695, %v1176_v11  ;;  %v1181_v1 = vsub.f32 %v6163_v17, %v6508_v18  ;;  %v9830_v17 = vld [vmem:[#allocation31_spill] sm:$0xff] }
 0x343   :  { %9824 = vst [vmem:[#allocation131_spill] sm:$0xff] %v6593_v36  ;;  %v1306_v36 = vmul.f32 1.442695, %v1177_v52  ;;  %4972 = vpow2.f32 %v1396_v47  ;;  %v1308_v59 = vmul.f32 1.442695, %v1178_v50  ;;  %v1182_v32 = vsub.f32 %v996_v23, %v6506_v12  ;;  %4925 = vset.pattern.permute.xlu1 %v9830_v17  ;;  %v6654_v52 = vpop.eup %4966 }
 0x344   :  { %9825 = vst [vmem:[#allocation132_spill] sm:$0xff] %v6601_v29  ;;  %v6650_v24 = vmul.f32 %v6132_v5, %v6247_v31  ;;  %4974 = vpow2.f32 %v1304_v55  ;;  %v1312_v25 = vmul.f32 1.442695, %v1180_v57  ;;  %v1184_v50 = vsub.f32 %v6142_v46, %v6506_v12 }
 0x345   :  { %9826 = vst [vmem:[#allocation133_spill] sm:$0xff] %v6605_v16  ;;  %4976 = vpow2.f32 %v1306_v36  ;;  %v1314_v61 = vmul.f32 1.442695, %v1181_v1  ;;  %v1185_v47 = vsub.f32 %v6146_v20, %v6508_v18  ;;  %v1316_v54 = vmul.f32 1.442695, %v1182_v32  ;;  %v6658_v23 = vpop.eup %4968  ;;  %v1758_v32 = vpop.permute.xlu2 %1757  ;;  %v9834_v16 = vld [vmem:[#allocation35_spill] sm:$0xff] }
 0x346   :  { %9831 = vst [vmem:[#allocation50_spill] sm:$0xff] %v6654_v52  ;;  %4978 = vpow2.f32 %v1308_v59  ;;  %v1186_v5 = vsub.f32 %v6150_v15, %v6506_v12  ;;  %v1187_v57 = vsub.f32 %v6155_v56, %v6508_v18  ;;  %v1188_v46 = vsub.f32 %v6177_v30, %v6506_v12  ;;  %v9833_v30 = vld [vmem:[#allocation62_spill] sm:$0xff]  ;;  %v1764_v52 = vpop.permute.xlu1 %1763 }
 0x347   :  { %v6666_v55 = vpop.eup %4970  ;;  %4980 = vpow2.f32 %v1310_v14  ;;  %v1318_v20 = vmul.f32 1.442695, %v1183_v63  ;;  %v1189_v1 = vsub.f32 %v6181_v60, %v6508_v18  ;;  %v1320_v15 = vmul.f32 1.442695, %v1184_v50 }
 0x348   :  { %4982 = vpow2.f32 %v1312_v25  ;;  %v1190_v56 = vsub.f32 %v6169_v35, %v6506_v12  ;;  %v1191_v11 = vsub.f32 %v9833_v30, %v6508_v18  ;;  %v1322_v49 = vmul.f32 1.442695, %v1185_v47 }
 0x349   :  { %v6672_v59 = vpop.eup %4972  ;;  %4984 = vpow2.f32 %v1314_v61  ;;  %v1324_v17 = vmul.f32 1.442695, %v1186_v5  ;;  %v1326_v36 = vmul.f32 1.442695, %v1187_v57  ;;  %v1328_v60 = vmul.f32 1.442695, %v1188_v46 }
 0x34a   :  { %9832 = vst [vmem:[#allocation58_spill] sm:$0xff] %v6672_v59  ;;  %v4975_v14 = vpop.eup %4974  ;;  %4986 = vpow2.f32 %v1316_v54  ;;  %v1330_v63 = vmul.f32 1.442695, %v1189_v1  ;;  %v1192_v25 = vsub.f32 %v6611_v26, %v6506_v12  ;;  %v1193_v35 = vsub.f32 %v6615_v39, %v6508_v18  ;;  %v9835_v1 = vld [vmem:[#allocation36_spill] sm:$0xff] }
 0x34b   :  { %v4977_v50 = vpop.eup %4976  ;;  %v2128_v29 = vmul.f32 %v4975_v14, %v9834_v16  ;;  %4988 = vpow2.f32 %v1318_v20  ;;  %1890 = vperm.xlu1 %4925, %v5901_v21   ;;  %v1194_v61 = vsub.f32 %v6195_v33, %v6506_v12  ;;  %v1332_v5 = vmul.f32 1.442695, %v1190_v56 }
 0x34c   :  { %v4979_v47 = vpop.eup %4978  ;;  %v2129_v54 = vmul.f32 %v4977_v50, %v9834_v16  ;;  %4990 = vpow2.f32 %v1320_v15  ;;  %v1334_v57 = vmul.f32 1.442695, %v1191_v11  ;;  %v1336_v20 = vmul.f32 1.442695, %v1192_v25 }
 0x34d   :  { %v4981_v46 = vpop.eup %4980  ;;  %v1564_v26 = vadd.f32 %v4979_v47, %v4975_v14  ;;  %v2130_v30 = vmul.f32 %v4979_v47, %v9835_v1  ;;  %4992 = vpow2.f32 %v1322_v49  ;;  %v1338_v27 = vmul.f32 1.442695, %v1193_v35 }
 0x34e   :  { %v4983_v4 = vpop.eup %4982  ;;  %v1601_v59 = vadd.f32 %v4981_v46, %v4977_v50  ;;  %v2131_v39 = vmul.f32 %v4981_v46, %v9835_v1  ;;  %v1195_v33 = vsub.f32 %v6199_v13, %v6508_v18  ;;  %v1340_v11 = vmul.f32 1.442695, %v1194_v61  ;;  %v9836_v46 = vld [vmem:[#allocation24_spill] sm:$0xff]  ;;  %v9837_v61 = vld [vmem:[#allocation43_spill] sm:$0xff] }
 0x34f   :  { %v4985_v43 = vpop.eup %4984  ;;  %v1565_v16 = vadd.f32 %v4983_v4, %v1564_v26  ;;  %v2132_v15 = vmul.f32 %v4983_v4, %v1758_v32  ;;  %v2256_v56 = vadd.f32 %v2130_v30, %v2128_v29  ;;  %4994 = vpow2.f32 %v1324_v17  ;;  %4924 = vset.pattern.permute.xlu2 %v9836_v46  ;;  %v1782_v26 = vpop.permute.xlu2 %1781  ;;  %v9838_v17 = vld [vmem:[#allocation27_spill] sm:$0xff] }
 0x350   :  { %v4987_v3 = vpop.eup %4986  ;;  %v1602_v14 = vadd.f32 %v4985_v43, %v1601_v59  ;;  %v2133_v0 = vmul.f32 %v4985_v43, %v1758_v32  ;;  %v2293_v47 = vadd.f32 %v2131_v39, %v2129_v54  ;;  %4996 = vpow2.f32 %v1326_v36  ;;  %v1788_v54 = vpop.permute.xlu1 %1787 }
 0x351   :  { %v4989_v49 = vpop.eup %4988  ;;  %v2257_v25 = vadd.f32 %v2256_v56, %v2132_v15  ;;  %v1566_v8 = vadd.f32 %v4987_v3, %v1565_v16  ;;  %v2134_v50 = vmul.f32 %v4987_v3, %v1764_v52  ;;  %4998 = vpow2.f32 %v1328_v60  ;;  %v9840_v16 = vld [vmem:[#allocation63_spill] sm:$0xff]  ;;  %v9841_v56 = vld [vmem:[#allocation38_spill] sm:$0xff] }
 0x352   :  { %v4991_v35 = vpop.eup %4990  ;;  %v2294_v1 = vadd.f32 %v2293_v47, %v2133_v0  ;;  %v1603_v13 = vadd.f32 %v4989_v49, %v1602_v14  ;;  %v2135_v42 = vmul.f32 %v4989_v49, %v1764_v52  ;;  %5000 = vpow2.f32 %v1330_v63 }
 0x353   :  { %v4993_v29 = vpop.eup %4992  ;;  %v1567_v4 = vadd.f32 %v4991_v35, %v1566_v8  ;;  %v2136_v59 = vmul.f32 %v4991_v35, %v9837_v61  ;;  %v2258_v43 = vadd.f32 %v2257_v25, %v2134_v50  ;;  %4928 = vset.pattern.permute.xlu1 %v9838_v17  ;;  %5002 = vpow2.f32 %v1332_v5 }
 0x354   :  { %v1604_v32 = vadd.f32 %v4993_v29, %v1603_v13  ;;  %v2137_v3 = vmul.f32 %v4993_v29, %v9837_v61  ;;  %v2295_v36 = vadd.f32 %v2294_v1, %v2135_v42  ;;  %v6698_v0 = vmul.f32 %v6135_v7, %v6247_v31  ;;  %v9842_v31 = vld [vmem:[#allocation64_spill] sm:$0xff] }
 0x355   :  { %v2259_v52 = vadd.f32 %v2258_v43, %v2136_v59  ;;  %5004 = vpow2.f32 %v1334_v57  ;;  %v1342_v60 = vmul.f32 1.442695, %v1195_v33  ;;  %v4995_v8 = vpop.eup %4994  ;;  %v9839_v30 = vsub.f32 %v6639_v10, %v6508_v18 }
 0x356   :  { %v2296_v39 = vadd.f32 %v2295_v36, %v2137_v3  ;;  %5006 = vpow2.f32 %v1336_v20  ;;  %v1196_v42 = vsub.f32 %v9840_v16, %v6506_v12  ;;  %v4997_v5 = vpop.eup %4996  ;;  %v1568_v15 = vadd.f32 %v4995_v8, %v1567_v4 }
 0x357   :  { %v6703_v63 = vmul.f32 1.442695, %v9839_v30  ;;  %v2138_v7 = vmul.f32 %v4995_v8, %v9841_v56  ;;  %5008 = vpow2.f32 %v1338_v27  ;;  %v1197_v57 = vsub.f32 %v9842_v31, %v6508_v18  ;;  %v4999_v33 = vpop.eup %4998  ;;  %1884 = vperm.xlu2 %4924, %v5901_v21   ;;  %v1794_v29 = vpop.permute.xlu2 %1793 }
 0x358   :  { %v1605_v14 = vadd.f32 %v4997_v5, %v1604_v32  ;;  %v2139_v47 = vmul.f32 %v4997_v5, %v9841_v56  ;;  %5010 = vpow2.f32 %v1340_v11  ;;  %v1198_v10 = vsub.f32 %v6211_v37, %v6506_v12  ;;  %v5001_v20 = vpop.eup %5000  ;;  %v1800_v16 = vpop.permute.xlu1 %1799 }
 0x359   :  { %v1569_v49 = vadd.f32 %v4999_v33, %v1568_v15  ;;  %v2140_v25 = vmul.f32 %v4999_v33, %v1782_v26  ;;  %v2260_v50 = vadd.f32 %v2259_v52, %v2138_v7  ;;  %5012 = vpow2.f32 %v1342_v60  ;;  %v5003_v35 = vpop.eup %5002 }
 0x35a   :  { %v1606_v27 = vadd.f32 %v5001_v20, %v1605_v14  ;;  %v2141_v1 = vmul.f32 %v5001_v20, %v1782_v26  ;;  %v2297_v13 = vadd.f32 %v2296_v39, %v2139_v47  ;;  %v1199_v4 = vsub.f32 %v6217_v62, %v6508_v18 }
 0x35b   :  { %v5005_v61 = vpop.eup %5004  ;;  %v2261_v11 = vadd.f32 %v2260_v50, %v2140_v25  ;;  %v1570_v59 = vadd.f32 %v5003_v35, %v1569_v49  ;;  %v2142_v43 = vmul.f32 %v5003_v35, %v1788_v54  ;;  %1908 = vperm.xlu1 %4928, %v5901_v21   ;;  %v1344_v37 = vmul.f32 1.442695, %v1196_v42  ;;  %v9843_v25 = vld [vmem:[#allocation26_spill] sm:$0xff]  ;;  %v9844_v50 = vld [vmem:[#allocation65_spill] sm:$0xff] }
 0x35c   :  { %v5007_v32 = vpop.eup %5006  ;;  %v2298_v3 = vadd.f32 %v2297_v13, %v2141_v1  ;;  %v1607_v36 = vadd.f32 %v5005_v61, %v1606_v27  ;;  %v2143_v52 = vmul.f32 %v5005_v61, %v1788_v54  ;;  %v1346_v60 = vmul.f32 1.442695, %v1197_v57  ;;  %v9845_v27 = vld [vmem:[#allocation66_spill] sm:$0xff] }
 0x35d   :  { %v5009_v8 = vpop.eup %5008  ;;  %v2262_v30 = vadd.f32 %v2261_v11, %v2142_v43  ;;  %v1571_v26 = vadd.f32 %v5007_v32, %v1570_v59  ;;  %v2144_v39 = vmul.f32 %v5007_v32, %v1794_v29  ;;  %5014 = vpow2.f32 %v1344_v37 }
 0x35e   :  { %v5011_v5 = vpop.eup %5010  ;;  %v2299_v62 = vadd.f32 %v2298_v3, %v2143_v52  ;;  %v1608_v15 = vadd.f32 %v5009_v8, %v1607_v36  ;;  %v2145_v56 = vmul.f32 %v5009_v8, %v1794_v29  ;;  %5016 = vpow2.f32 %v1346_v60  ;;  %v9847_v36 = vld [vmem:[#allocation40_spill] sm:$0xff] }
 0x35f   :  { %v5013_v7 = vpop.eup %5012  ;;  %v2263_v31 = vadd.f32 %v2262_v30, %v2144_v39  ;;  %v1572_v33 = vadd.f32 %v5011_v5, %v1571_v26  ;;  %v2146_v42 = vmul.f32 %v5011_v5, %v1800_v16  ;;  %v1348_v14 = vmul.f32 1.442695, %v1198_v10  ;;  %4927 = vset.pattern.permute.xlu2 %v9843_v25  ;;  %v1812_v8 = vpop.permute.xlu2 %1811 }
 0x360   :  { %v2300_v47 = vadd.f32 %v2299_v62, %v2145_v56  ;;  %v1609_v20 = vadd.f32 %v5013_v7, %v1608_v15  ;;  %v2147_v54 = vmul.f32 %v5013_v7, %v1800_v16  ;;  %v1350_v57 = vmul.f32 1.442695, %v1199_v4  ;;  %v9846_v4 = vld [vmem:[#allocation32_spill] sm:$0xff] }
 0x361   :  { %v2264_v49 = vadd.f32 %v2263_v31, %v2146_v42  ;;  %5018 = vpow2.f32 %v1348_v14  ;;  %v1200_v35 = vsub.f32 %v9844_v50, %v6506_v12  ;;  %v1201_v1 = vsub.f32 %v9845_v27, %v6508_v18  ;;  %v9849_v15 = vld [vmem:[#allocation68_spill] sm:$0xff] }
 0x362   :  { %v2301_v13 = vadd.f32 %v2300_v47, %v2147_v54  ;;  %5020 = vpow2.f32 %v1350_v57  ;;  %v1202_v29 = vsub.f32 %v6621_v28, %v6506_v12  ;;  %v1203_v10 = vsub.f32 %v6625_v22, %v6508_v18 }
 0x363   :  { %v5015_v61 = vpop.eup %5014  ;;  %4930 = vset.pattern.permute.xlu1 %v9846_v4  ;;  %v1352_v11 = vmul.f32 1.442695, %v1200_v35  ;;  %v1354_v59 = vmul.f32 1.442695, %v1201_v1  ;;  %v1204_v43 = vsub.f32 %v6229_v40, %v6506_v12  ;;  %v1205_v37 = vsub.f32 %v6233_v58, %v6508_v18  ;;  %v9848_v40 = vld [vmem:[#allocation67_spill] sm:$0xff]  ;;  %v9850_v1 = vld [vmem:[#allocation69_spill] sm:$0xff] }
 0x364   :  { %v5017_v32 = vpop.eup %5016  ;;  %v1573_v3 = vadd.f32 %v5015_v61, %v1572_v33  ;;  %v2148_v52 = vmul.f32 %v5015_v61, %v9847_v36  ;;  %v1356_v60 = vmul.f32 1.442695, %v1202_v29  ;;  %v1358_v28 = vmul.f32 1.442695, %v1203_v10  ;;  %v9851_v10 = vld [vmem:[#allocation70_spill] sm:$0xff] }
 0x365   :  { %v1610_v30 = vadd.f32 %v5017_v32, %v1609_v20  ;;  %v2149_v22 = vmul.f32 %v5017_v32, %v9847_v36  ;;  %5022 = vpow2.f32 %v1352_v11  ;;  %v1360_v26 = vmul.f32 1.442695, %v1204_v43  ;;  %v1818_v43 = vpop.permute.xlu1 %1817 }
 0x366   :  { %v2265_v39 = vadd.f32 %v2264_v49, %v2148_v52  ;;  %5024 = vpow2.f32 %v1354_v59  ;;  %v1362_v16 = vmul.f32 1.442695, %v1205_v37  ;;  %v1206_v5 = vsub.f32 %v9848_v40, %v6506_v12 }
 0x367   :  { %v5019_v62 = vpop.eup %5018  ;;  %v2302_v58 = vadd.f32 %v2301_v13, %v2149_v22  ;;  %5026 = vpow2.f32 %v1356_v60  ;;  %v1207_v56 = vsub.f32 %v9849_v15, %v6508_v18  ;;  %v1208_v7 = vsub.f32 %v6245_v44, %v6506_v12  ;;  %1902 = vperm.xlu2 %4927, %v5901_v21  }
 0x368   :  { %v5021_v31 = vpop.eup %5020  ;;  %v1574_v33 = vadd.f32 %v5019_v62, %v1573_v3  ;;  %v2150_v42 = vmul.f32 %v5019_v62, %v1812_v8  ;;  %5028 = vpow2.f32 %v1358_v28  ;;  %v1209_v14 = vsub.f32 %v6252_v41, %v6508_v18 }
 0x369   :  { %v1611_v47 = vadd.f32 %v5021_v31, %v1610_v30  ;;  %v2151_v20 = vmul.f32 %v5021_v31, %v1812_v8  ;;  %5030 = vpow2.f32 %v1360_v26  ;;  %v1364_v54 = vmul.f32 1.442695, %v1206_v5 }
 0x36a   :  { %v2266_v57 = vadd.f32 %v2265_v39, %v2150_v42  ;;  %5032 = vpow2.f32 %v1362_v16  ;;  %v1366_v49 = vmul.f32 1.442695, %v1207_v56  ;;  %v1368_v50 = vmul.f32 1.442695, %v1208_v7 }
 0x36b   :  { %v5023_v35 = vpop.eup %5022  ;;  %v2303_v27 = vadd.f32 %v2302_v58, %v2151_v20  ;;  %1920 = vperm.xlu1 %4930, %v5901_v21   ;;  %5034 = vpow2.f32 %v1364_v54  ;;  %v1370_v44 = vmul.f32 1.442695, %v1209_v14  ;;  %v1210_v13 = vsub.f32 %v9850_v1, %v6506_v12  ;;  %v9853_v58 = vld [vmem:[#allocation23_spill] sm:$0xff]  ;;  %v1824_v20 = vpop.permute.xlu2 %1823 }
 0x36c   :  { %v5025_v41 = vpop.eup %5024  ;;  %v1575_v29 = vadd.f32 %v5023_v35, %v1574_v33  ;;  %5036 = vpow2.f32 %v1366_v49  ;;  %v1211_v61 = vsub.f32 %v9851_v10, %v6508_v18  ;;  %v1212_v11 = vsub.f32 %v6650_v24, %v6506_v12  ;;  %v9852_v24 = vld [vmem:[#allocation71_spill] sm:$0xff]  ;;  %v9854_v33 = vld [vmem:[#allocation49_spill] sm:$0xff] }
 0x36d   :  { %v5027_v59 = vpop.eup %5026  ;;  %v1612_v37 = vadd.f32 %v5025_v41, %v1611_v47  ;;  %5038 = vpow2.f32 %v1368_v50  ;;  %v1372_v32 = vmul.f32 1.442695, %v1210_v13  ;;  %v1213_v3 = vsub.f32 %v6698_v0, %v6508_v18  ;;  %v9855_v54 = vld [vmem:[#allocation19_spill] sm:$0xff] }
 0x36e   :  { %v5029_v36 = vpop.eup %5028  ;;  %v2152_v52 = vmul.f32 %v5023_v35, %v1818_v43  ;;  %v2153_v60 = vmul.f32 %v5025_v41, %v1818_v43  ;;  %v1576_v28 = vadd.f32 %v5027_v59, %v1575_v29  ;;  %5040 = vpow2.f32 %v1370_v44  ;;  %v9857_v29 = vld [vmem:[#allocation42_spill] sm:$0xff] }
 0x36f   :  { %v6751_v8 = vpop.eup %5030  ;;  %v1613_v30 = vadd.f32 %v5029_v36, %v1612_v37  ;;  %5042 = vpow2.f32 %v1372_v32  ;;  %v1374_v22 = vmul.f32 1.442695, %v1211_v61  ;;  %v1216_v26 = vsub.f32 %v9852_v24, %v6506_v12  ;;  %4929 = vset.pattern.permute.xlu2 %v9853_v58 }
 0x370   :  { %v6755_v39 = vpop.eup %5032  ;;  %v2267_v16 = vadd.f32 %v2266_v57, %v2152_v52  ;;  %v2304_v40 = vadd.f32 %v2303_v27, %v2153_v60  ;;  %v1577_v5 = vadd.f32 %v6751_v8, %v1576_v28  ;;  %v1217_v0 = vsub.f32 %v6260_v48, %v6508_v18  ;;  %v9856_v27 = vld [vmem:[#allocation54_spill] sm:$0xff]  ;;  %v9858_v60 = vld [vmem:[#allocation72_spill] sm:$0xff] }
 0x371   :  { %v5035_v62 = vpop.eup %5034  ;;  %v1614_v15 = vadd.f32 %v6755_v39, %v1613_v30  ;;  %5044 = vpow2.f32 %v1374_v22  ;;  %v1376_v56 = vmul.f32 1.442695, %v1212_v11  ;;  %v1378_v7 = vmul.f32 1.442695, %v1213_v3  ;;  %v9859_v30 = vld [vmem:[#allocation73_spill] sm:$0xff] }
 0x372   :  { %v5037_v31 = vpop.eup %5036  ;;  %v6764_v42 = vmul.f32 %v6279_v34, %v9854_v33  ;;  %v6768_v14 = vmul.f32 %v6295_v6, %v9854_v33  ;;  %5046 = vpow2.f32 %v6703_v63  ;;  %v1578_v48 = vadd.f32 %v5035_v62, %v1577_v5 }
 0x373   :  { %v6771_v47 = vpop.eup %5038  ;;  %4933 = vset.pattern.permute.xlu1 %v9855_v54  ;;  %v1615_v57 = vadd.f32 %v5037_v31, %v1614_v15  ;;  %5048 = vpow2.f32 %v1376_v56  ;;  %v1384_v49 = vmul.f32 1.442695, %v1216_v26  ;;  %v1218_v50 = vsub.f32 %v6264_v51, %v6506_v12  ;;  %v9862_v56 = vld [vmem:[#allocation76_spill] sm:$0xff] }
 0x374   :  { %v6776_v35 = vpop.eup %5040  ;;  %v6780_v44 = vmul.f32 %v6279_v34, %v9856_v27  ;;  %v1579_v63 = vadd.f32 %v6771_v47, %v1578_v48  ;;  %5050 = vpow2.f32 %v1378_v7  ;;  %v1386_v1 = vmul.f32 1.442695, %v1217_v0 }
 0x375   :  { %v6783_v13 = vpop.eup %5042  ;;  %v1616_v41 = vadd.f32 %v6776_v35, %v1615_v57  ;;  %v6787_v10 = vmul.f32 %v5035_v62, %v9857_v29  ;;  %v6790_v61 = vmul.f32 %v5037_v31, %v9857_v29  ;;  %v1219_v51 = vsub.f32 %v6268_v38, %v6508_v18  ;;  %v9860_v38 = vld [vmem:[#allocation74_spill] sm:$0xff] }
 0x376   :  { %v2154_v11 = vmul.f32 %v5027_v59, %v1824_v20  ;;  %v2155_v43 = vmul.f32 %v5029_v36, %v1824_v20  ;;  %v1580_v37 = vadd.f32 %v6783_v13, %v1579_v63  ;;  %v1388_v32 = vmul.f32 1.442695, %v1218_v50  ;;  %v9861_v36 = vld [vmem:[#allocation75_spill] sm:$0xff] }
 0x377   :  { %v6795_v3 = vpop.eup %5044  ;;  %5052 = vpow2.f32 %v1384_v49  ;;  %v1390_v52 = vmul.f32 1.442695, %v1219_v51  ;;  %v1220_v28 = vsub.f32 %v9858_v60, %v6506_v12  ;;  %v1221_v22 = vsub.f32 %v9859_v30, %v6508_v18  ;;  %1914 = vperm.xlu2 %4929, %v5901_v21   ;;  %v9863_v49 = vld [vmem:[#allocation34_spill] sm:$0xff] }
 0x378   :  { %v6801_v24 = vpop.eup %5046  ;;  %v1617_v26 = vadd.f32 %v6795_v3, %v1616_v41  ;;  %5054 = vpow2.f32 %v1386_v1  ;;  %v1224_v59 = vsub.f32 %v9860_v38, %v6506_v12  ;;  %v1225_v5 = vsub.f32 %v9861_v36, %v6508_v18  ;;  %v9864_v1 = vld [vmem:[#allocation78_spill] sm:$0xff] }
 0x379   :  { %v6808_v0 = vpop.eup %5048  ;;  %v1392_v62 = vmul.f32 1.442695, %v1220_v28  ;;  %v1394_v15 = vmul.f32 1.442695, %v1221_v22  ;;  %v1226_v7 = vsub.f32 %v9862_v56, %v6506_v12  ;;  %v1227_v31 = vsub.f32 %v6301_v19, %v6508_v18  ;;  %v9865_v22 = vld [vmem:[#allocation79_spill] sm:$0xff] }
 0x37a   :  { %v6815_v33 = vpop.eup %5050  ;;  %v2268_v48 = vadd.f32 %v2267_v16, %v2154_v11  ;;  %v1581_v20 = vadd.f32 %v6808_v0, %v1580_v37  ;;  %5056 = vpow2.f32 %v1388_v32  ;;  %v1400_v57 = vmul.f32 1.442695, %v1224_v59  ;;  %v1830_v11 = vpop.permute.xlu1 %1829 }
 0x37b   :  { %1939 = vperm.xlu1 %4933, %v9863_v49   ;;  %v1618_v50 = vadd.f32 %v6815_v33, %v1617_v26  ;;  %5058 = vpow2.f32 %v1390_v52  ;;  %v1402_v63 = vmul.f32 1.442695, %v1225_v5  ;;  %v1228_v41 = vsub.f32 %v9864_v1, %v6506_v12  ;;  %v1843_v1 = vpop.permute.xlu2 %1842 }
 0x37c   :  { %v2305_v29 = vadd.f32 %v2304_v40, %v2155_v43  ;;  %v1582_v51 = vadd.f32 %v6658_v23, %v1581_v20  ;;  %5060 = vpow2.f32 %v1392_v62  ;;  %v1229_v19 = vsub.f32 %v6309_v2, %v6508_v18  ;;  %v9866_v62 = vld [vmem:[#allocation80_spill] sm:$0xff] }
 0x37d   :  { %v6825_v16 = vpop.eup %5052  ;;  %v1619_v37 = vadd.f32 %v6666_v55, %v1618_v50  ;;  %5062 = vpow2.f32 %v1394_v15  ;;  %v1404_v32 = vmul.f32 1.442695, %v1226_v7  ;;  %v1406_v60 = vmul.f32 1.442695, %v1227_v31 }
 0x37e   :  { %v6828_v52 = vpop.eup %5054  ;;  %v2156_v28 = vmul.f32 %v6751_v8, %v1830_v11  ;;  %v2157_v40 = vmul.f32 %v6755_v39, %v1830_v11  ;;  %v1583_v43 = vadd.f32 %v6825_v16, %v1582_v51  ;;  %5064 = vpow2.f32 %v1400_v57  ;;  %v9867_v39 = vld [vmem:[#allocation29_spill] sm:$0xff] }
 0x37f   :  { %v1620_v30 = vadd.f32 %v6828_v52, %v1619_v37  ;;  %5066 = vpow2.f32 %v1402_v63  ;;  %v1408_v2 = vmul.f32 1.442695, %v1228_v41  ;;  %v1230_v26 = vsub.f32 %v9865_v22, %v6506_v12  ;;  %4932 = vset.pattern.permute.xlu2 %v9867_v39  ;;  %v9868_v11 = vld [vmem:[#allocation81_spill] sm:$0xff]  ;;  %v9869_v37 = vld [vmem:[#allocation82_spill] sm:$0xff]  ;;  %v9871_v22 = vld [vmem:[#allocation84_spill] sm:$0xff] }
 0x380   :  { %v6836_v38 = vpop.eup %5056  ;;  %v2269_v59 = vadd.f32 %v2268_v48, %v2156_v28  ;;  %v2306_v36 = vadd.f32 %v2305_v29, %v2157_v40  ;;  %v1410_v5 = vmul.f32 1.442695, %v1229_v19  ;;  %v1231_v8 = vsub.f32 %v9866_v62, %v6508_v18 }
 0x381   :  { %v6840_v15 = vpop.eup %5058  ;;  %5068 = vpow2.f32 %v1404_v32  ;;  %v1412_v56 = vmul.f32 1.442695, %v1230_v26  ;;  %v1232_v7 = vsub.f32 %v6359_v45, %v6506_v12  ;;  %v1233_v31 = vsub.f32 %v6363_v9, %v6508_v18 }
 0x382   :  { %v6847_v20 = vpop.eup %5060  ;;  %v2270_v48 = vadd.f32 %v2269_v59, %v6787_v10  ;;  %v2307_v57 = vadd.f32 %v2306_v36, %v6790_v61  ;;  %5070 = vpow2.f32 %v1406_v60  ;;  %v1414_v50 = vmul.f32 1.442695, %v1231_v8  ;;  %v9870_v60 = vld [vmem:[#allocation83_spill] sm:$0xff]  ;;  %v9872_v36 = vld [vmem:[#allocation85_spill] sm:$0xff] }
 0x383   :  { %v6851_v63 = vpop.eup %5062  ;;  %4935 = vset.pattern.permute.xlu1 %v5752_v53  ;;  %v1584_v41 = vadd.f32 %v6836_v38, %v1583_v43  ;;  %v1621_v45 = vadd.f32 %v6840_v15, %v1620_v30  ;;  %5072 = vpow2.f32 %v1408_v2  ;;  %v1416_v29 = vmul.f32 1.442695, %v1232_v7 }
 0x384   :  { %v6856_v9 = vpop.eup %5064  ;;  %v2160_v51 = vmul.f32 %v6771_v47, %v1843_v1  ;;  %v2161_v10 = vmul.f32 %v6776_v35, %v1843_v1  ;;  %5074 = vpow2.f32 %v1410_v5  ;;  %v1418_v61 = vmul.f32 1.442695, %v1233_v31  ;;  %v9874_v31 = vld [vmem:[#allocation119_spill] sm:$0xff]  ;;  %v9877_v1 = vld [vmem:[#allocation88_spill] sm:$0xff] }
 0x385   :  { %v6860_v19 = vpop.eup %5066  ;;  %5076 = vpow2.f32 %v1412_v56  ;;  %v1234_v53 = vsub.f32 %v9868_v11, %v6506_v12  ;;  %v1235_v32 = vsub.f32 %v9869_v37, %v6508_v18  ;;  %v1236_v28 = vsub.f32 %v9870_v60, %v6506_v12  ;;  %v9879_v37 = vld [vmem:[#allocation113_spill] sm:$0xff] }
 0x386   :  { %v6870_v40 = vmul.f32 %v6295_v6, %v9856_v27  ;;  %v2271_v47 = vadd.f32 %v2270_v48, %v2160_v51  ;;  %v2308_v35 = vadd.f32 %v2307_v57, %v2161_v10  ;;  %5078 = vpow2.f32 %v1414_v50  ;;  %v9873_v27 = vld [vmem:[#allocation86_spill] sm:$0xff]  ;;  %v9875_v48 = vld [vmem:[#allocation87_spill] sm:$0xff]  ;;  %v9876_v50 = vld [vmem:[#allocation120_spill] sm:$0xff] }
 0x387   :  { %v6872_v43 = vpop.eup %5068  ;;  %5080 = vpow2.f32 %v1416_v29  ;;  %v1420_v30 = vmul.f32 1.442695, %v1234_v53  ;;  %v1422_v2 = vmul.f32 1.442695, %v1235_v32  ;;  %v1237_v26 = vsub.f32 %v9871_v22, %v6508_v18  ;;  %1932 = vperm.xlu2 %4932, %v5901_v21   ;;  %v9881_v22 = vld [vmem:[#allocation90_spill] sm:$0xff] }
 0x388   :  { %v6876_v59 = vpop.eup %5070  ;;  %5082 = vpow2.f32 %v1418_v61  ;;  %v1238_v5 = vsub.f32 %v9872_v36, %v6506_v12  ;;  %v1239_v62 = vsub.f32 %v9873_v27, %v6508_v18  ;;  %v1424_v8 = vmul.f32 1.442695, %v1236_v28  ;;  %v9878_v18 = vld [vmem:[#allocation111_spill] sm:$0xff] }
 0x389   :  { %v6882_v56 = vpop.eup %5072  ;;  %5084 = vpow2.f32 %v1420_v30  ;;  %v1426_v7 = vmul.f32 1.442695, %v1237_v26  ;;  %v1240_v57 = vsub.f32 %v9875_v48, %v9874_v31  ;;  %v1241_v29 = vsub.f32 %v9877_v1, %v9876_v50  ;;  %v9880_v30 = vld [vmem:[#allocation89_spill] sm:$0xff] }
 0x38a   :  { %v6889_v51 = vpop.eup %5074  ;;  %5086 = vpow2.f32 %v1422_v2  ;;  %v1428_v12 = vmul.f32 1.442695, %v1238_v5  ;;  %v1430_v10 = vmul.f32 1.442695, %v1239_v62  ;;  %v1242_v61 = vsub.f32 %v9878_v18, %v9874_v31  ;;  %v1849_v5 = vpop.permute.xlu1 %1848  ;;  %v9882_v18 = vld [vmem:[#allocation58_spill] sm:$0xff] }
 0x38b   :  { %v6893_v11 = vpop.eup %5076  ;;  %1951 = vperm.xlu1 %4935, %v9863_v49   ;;  %5088 = vpow2.f32 %v1424_v8  ;;  %v1432_v21 = vmul.f32 1.442695, %v1240_v57  ;;  %v1434_v53 = vmul.f32 1.442695, %v1241_v29  ;;  %v1243_v32 = vsub.f32 %v9879_v37, %v9876_v50 }
 0x38c   :  { %v6898_v60 = vpop.eup %5078  ;;  %5090 = vpow2.f32 %v1426_v7  ;;  %v1436_v28 = vmul.f32 1.442695, %v1242_v61  ;;  %v1244_v2 = vsub.f32 %v9880_v30, %v9874_v31  ;;  %v1245_v26 = vsub.f32 %v9881_v22, %v9876_v50 }
 0x38d   :  { %v6904_v36 = vpop.eup %5080  ;;  %v1585_v27 = vadd.f32 %v6847_v20, %v1584_v41  ;;  %v1622_v62 = vadd.f32 %v6851_v63, %v1621_v45  ;;  %5092 = vpow2.f32 %v1428_v12  ;;  %v1438_v8 = vmul.f32 1.442695, %v1243_v32  ;;  %v9884_v32 = vld [vmem:[#allocation30_spill] sm:$0xff] }
 0x38e   :  { %v6908_v48 = vpop.eup %5082  ;;  %v2162_v7 = vmul.f32 %v6783_v13, %v1849_v5  ;;  %v2163_v57 = vmul.f32 %v6795_v3, %v1849_v5  ;;  %5094 = vpow2.f32 %v1430_v10  ;;  %v1440_v1 = vmul.f32 1.442695, %v1244_v2  ;;  %v9883_v13 = vld [vmem:[#allocation91_spill] sm:$0xff]  ;;  %v9885_v2 = vld [vmem:[#allocation94_spill] sm:$0xff] }
 0x38f   :  { %v6912_v29 = vpop.eup %5084  ;;  %v1586_v61 = vadd.f32 %v9882_v18, %v1585_v27  ;;  %v1623_v37 = vadd.f32 %v6801_v24, %v1622_v62  ;;  %5096 = vpow2.f32 %v1432_v21  ;;  %v1442_v41 = vmul.f32 1.442695, %v1245_v26  ;;  %4934 = vset.pattern.permute.xlu2 %v9884_v32  ;;  %v9886_v21 = vld [vmem:[#allocation95_spill] sm:$0xff] }
 0x390   :  { %v6916_v30 = vpop.eup %5086  ;;  %v6918_v45 = vadd.f32 %v2271_v47, %v2162_v7  ;;  %v6920_v12 = vadd.f32 %v2308_v35, %v2163_v57  ;;  %5098 = vpow2.f32 %v1434_v53  ;;  %v1246_v3 = vsub.f32 %v9883_v13, %v9874_v31  ;;  %v9887_v47 = vld [vmem:[#allocation98_spill] sm:$0xff]  ;;  %v9888_v53 = vld [vmem:[#allocation52_spill] sm:$0xff] }
 0x391   :  { %v6924_v10 = vpop.eup %5088  ;;  %5100 = vpow2.f32 %v1436_v28  ;;  %v1247_v22 = vsub.f32 %v9885_v2, %v9876_v50  ;;  %v1248_v26 = vsub.f32 %v9886_v21, %v9874_v31  ;;  %v1249_v5 = vsub.f32 %v9887_v47, %v9876_v50  ;;  %v9890_v7 = vld [vmem:[#allocation100_spill] sm:$0xff]  ;;  %v1855_v2 = vpop.permute.xlu2 %1854  ;;  %v9892_v21 = vld [vmem:[#allocation21_spill] sm:$0xff] }
 0x392   :  { %v6933_v35 = vpop.eup %5090  ;;  %v6937_v27 = vmul.f32 %v6279_v34, %v9888_v53  ;;  %5102 = vpow2.f32 %v1438_v8  ;;  %v1444_v62 = vmul.f32 1.442695, %v1246_v3  ;;  %v1250_v28 = vsub.f32 %v9890_v7, %v9874_v31  ;;  %v9893_v8 = vld [vmem:[#allocation44_spill] sm:$0xff] }
 0x393   :  { %v6941_v57 = vpop.eup %5092  ;;  %v6945_v13 = vmul.f32 %v6295_v6, %v9888_v53  ;;  %4939 = vset.pattern.permute.xlu1 %v9892_v21  ;;  %v1587_v47 = vadd.f32 %v6856_v9, %v1586_v61  ;;  %v1624_v4 = vadd.f32 %v6860_v19, %v1623_v37  ;;  %5104 = vpow2.f32 %v1440_v1  ;;  %v9895_v37 = vld [vmem:[#allocation101_spill] sm:$0xff] }
 0x394   :  { %9889 = vst [vmem:[#allocation62_spill] sm:$0xff] %v6937_v27  ;;  %v6950_v54 = vpop.eup %5094  ;;  %v6954_v3 = vmul.f32 %v6825_v16, %v9893_v8  ;;  %v6958_v7 = vmul.f32 %v6828_v52, %v9893_v8  ;;  %5106 = vpow2.f32 %v1442_v41  ;;  %v1446_v53 = vmul.f32 1.442695, %v1247_v22  ;;  %v9898_v22 = vld [vmem:[#allocation92_spill] sm:$0xff] }
 0x395   :  { %9891 = vst [vmem:[#allocation35_spill] sm:$0xff] %v6945_v13  ;;  %v6960_v32 = vpop.eup %5096  ;;  %5108 = vpow2.f32 %v1444_v62  ;;  %v1448_v21 = vmul.f32 1.442695, %v1248_v26  ;;  %v1450_v61 = vmul.f32 1.442695, %v1249_v5  ;;  %v1251_v1 = vsub.f32 %v9895_v37, %v9876_v50  ;;  %v9899_v26 = vld [vmem:[#allocation93_spill] sm:$0xff] }
 0x396   :  { %9894 = vst [vmem:[#allocation36_spill] sm:$0xff] %v6960_v32  ;;  %v6964_v39 = vpop.eup %5098  ;;  %v2164_v17 = vmul.f32 %v6808_v0, %v1855_v2  ;;  %v2165_v16 = vmul.f32 %v6815_v33, %v1855_v2  ;;  %5110 = vpow2.f32 %v1446_v53  ;;  %v1452_v13 = vmul.f32 1.442695, %v1250_v28  ;;  %v9900_v0 = vld [vmem:[#allocation103_spill] sm:$0xff]  ;;  %v9901_v28 = vld [vmem:[#allocation105_spill] sm:$0xff] }
 0x397   :  { %9896 = vst [vmem:[#allocation24_spill] sm:$0xff] %v6964_v39  ;;  %v6968_v52 = vpop.eup %5100  ;;  %5112 = vpow2.f32 %v1448_v21  ;;  %v1454_v41 = vmul.f32 1.442695, %v1251_v1  ;;  %v1252_v62 = vsub.f32 %v9898_v22, %v9874_v31  ;;  %v1253_v5 = vsub.f32 %v9899_v26, %v9876_v50  ;;  %1945 = vperm.xlu2 %4934, %v9863_v49  }
 0x398   :  { %9897 = vst [vmem:[#allocation43_spill] sm:$0xff] %v6968_v52  ;;  %v6974_v8 = vpop.eup %5102  ;;  %v1638_v37 = vadd.f32 %v6968_v52, %v6960_v32  ;;  %5114 = vpow2.f32 %v1450_v61  ;;  %v1254_v33 = vsub.f32 %v9900_v0, %v9874_v31  ;;  %v1255_v2 = vsub.f32 %v9901_v28, %v9876_v50 }
 0x399   :  { %v6982_v21 = vpop.eup %5104  ;;  %v1588_v53 = vadd.f32 %v6872_v43, %v1587_v47  ;;  %v1625_v1 = vadd.f32 %v6876_v59, %v1624_v4  ;;  %v1675_v22 = vadd.f32 %v6974_v8, %v6964_v39  ;;  %5116 = vpow2.f32 %v1452_v13 }
 0x39a   :  { %9902 = vst [vmem:[#allocation63_spill] sm:$0xff] %v6982_v21  ;;  %v6989_v26 = vpop.eup %5106  ;;  %v1639_v61 = vadd.f32 %v6982_v21, %v1638_v37  ;;  %5118 = vpow2.f32 %v1454_v41  ;;  %v1456_v0 = vmul.f32 1.442695, %v1252_v62  ;;  %v1458_v32 = vmul.f32 1.442695, %v1253_v5  ;;  %v1861_v21 = vpop.permute.xlu1 %1860 }
 0x39b   :  { %9903 = vst [vmem:[#allocation38_spill] sm:$0xff] %v6989_v26  ;;  %v6992_v28 = vpop.eup %5108  ;;  %1969 = vperm.xlu1 %4939, %v9863_v49   ;;  %v1589_v52 = vadd.f32 %v6882_v56, %v1588_v53  ;;  %v1626_v47 = vadd.f32 %v6889_v51, %v1625_v1  ;;  %v1676_v4 = vadd.f32 %v6989_v26, %v1675_v22  ;;  %v1460_v27 = vmul.f32 1.442695, %v1254_v33  ;;  %v9906_v1 = vld [vmem:[#allocation106_spill] sm:$0xff] }
 0x39c   :  { %v6998_v39 = vpop.eup %5110  ;;  %v2273_v13 = vadd.f32 %v6918_v45, %v2164_v17  ;;  %v1640_v37 = vadd.f32 %v6992_v28, %v1639_v61  ;;  %5120 = vpow2.f32 %v1456_v0  ;;  %v1462_v41 = vmul.f32 1.442695, %v1255_v2 }
 0x39d   :  { %9904 = vst [vmem:[#allocation64_spill] sm:$0xff] %v6998_v39  ;;  %v7002_v62 = vpop.eup %5112  ;;  %v2310_v5 = vadd.f32 %v6920_v12, %v2165_v16  ;;  %v1677_v53 = vadd.f32 %v6998_v39, %v1676_v4  ;;  %5122 = vpow2.f32 %v1458_v32  ;;  %v1256_v22 = vsub.f32 %v9906_v1, %v9874_v31 }
 0x39e   :  { %9905 = vst [vmem:[#allocation65_spill] sm:$0xff] %v7002_v62  ;;  %v7008_v33 = vpop.eup %5114  ;;  %v2166_v26 = vmul.f32 %v6658_v23, %v1861_v21  ;;  %v2167_v17 = vmul.f32 %v6666_v55, %v1861_v21  ;;  %v1641_v45 = vadd.f32 %v7002_v62, %v1640_v37  ;;  %5124 = vpow2.f32 %v1460_v27  ;;  %v9910_v55 = vld [vmem:[#allocation108_spill] sm:$0xff] }
 0x39f   :  { %9907 = vst [vmem:[#allocation66_spill] sm:$0xff] %v7008_v33  ;;  %v7013_v2 = vpop.eup %5116  ;;  %v1590_v12 = vadd.f32 %v6893_v11, %v1589_v52  ;;  %v1627_v16 = vadd.f32 %v6898_v60, %v1626_v47  ;;  %v1678_v32 = vadd.f32 %v7008_v33, %v1677_v53  ;;  %5126 = vpow2.f32 %v1462_v41  ;;  %v9911_v37 = vld [vmem:[#allocation20_spill] sm:$0xff]  ;;  %v9912_v52 = vld [vmem:[#allocation109_spill] sm:$0xff]  ;;  %v9913_v47 = vld [vmem:[#allocation110_spill] sm:$0xff] }
 0x3a0   :  { %9908 = vst [vmem:[#allocation40_spill] sm:$0xff] %v7013_v2  ;;  %v7018_v61 = vpop.eup %5118  ;;  %v2274_v0 = vadd.f32 %v2273_v13, %v2166_v26  ;;  %v2311_v4 = vadd.f32 %v2310_v5, %v2167_v17  ;;  %v1642_v23 = vadd.f32 %v7013_v2, %v1641_v45  ;;  %v1257_v21 = vsub.f32 %v9910_v55, %v9876_v50  ;;  %v9915_v17 = vld [vmem:[#allocation112_spill] sm:$0xff] }
 0x3a1   :  { %9909 = vst [vmem:[#allocation67_spill] sm:$0xff] %v7018_v61  ;;  %4938 = vset.pattern.permute.xlu2 %v9911_v37  ;;  %v1679_v27 = vadd.f32 %v7018_v61, %v1678_v32  ;;  %v1258_v1 = vsub.f32 %v9912_v52, %v9874_v31  ;;  %v1259_v53 = vsub.f32 %v9913_v47, %v9876_v50  ;;  %v1464_v41 = vmul.f32 1.442695, %v1256_v22  ;;  %v1873_v32 = vpop.permute.xlu2 %1872 }
 0x3a2   :  { %v7029_v33 = vpop.eup %5120  ;;  %v2275_v26 = vadd.f32 %v2274_v0, %v6954_v3  ;;  %v2312_v13 = vadd.f32 %v2311_v4, %v6958_v7  ;;  %v1466_v5 = vmul.f32 1.442695, %v1257_v21  ;;  %v1260_v45 = vsub.f32 %v9915_v17, %v9874_v31 }
 0x3a3   :  { %9914 = vst [vmem:[#allocation68_spill] sm:$0xff] %v7029_v33  ;;  %v7035_v55 = vpop.eup %5122  ;;  %4941 = vset.pattern.permute.xlu1 %v9836_v46  ;;  %v1591_v52 = vadd.f32 %v6904_v36, %v1590_v12  ;;  %v1628_v47 = vadd.f32 %v6908_v48, %v1627_v16  ;;  %v1643_v22 = vadd.f32 %v7029_v33, %v1642_v23  ;;  %5128 = vpow2.f32 %v1464_v41  ;;  %v9919_v16 = vld [vmem:[#allocation115_spill] sm:$0xff] }
 0x3a4   :  { %9916 = vst [vmem:[#allocation69_spill] sm:$0xff] %v7035_v55  ;;  %v7041_v61 = vpop.eup %5124  ;;  %v2170_v3 = vmul.f32 %v6836_v38, %v1873_v32  ;;  %v2171_v7 = vmul.f32 %v6840_v15, %v1873_v32  ;;  %v1680_v0 = vadd.f32 %v7035_v55, %v1679_v27  ;;  %5130 = vpow2.f32 %v1466_v5  ;;  %v9920_v15 = vld [vmem:[#allocation96_spill] sm:$0xff]  ;;  %v9921_v5 = vld [vmem:[#allocation97_spill] sm:$0xff] }
 0x3a5   :  { %9917 = vst [vmem:[#allocation70_spill] sm:$0xff] %v7041_v61  ;;  %v7046_v4 = vpop.eup %5126  ;;  %v1644_v46 = vadd.f32 %v7041_v61, %v1643_v22  ;;  %v1468_v21 = vmul.f32 1.442695, %v1258_v1  ;;  %v1470_v12 = vmul.f32 1.442695, %v1259_v53  ;;  %v1261_v17 = vsub.f32 %v9919_v16, %v9876_v50  ;;  %v9922_v1 = vld [vmem:[#allocation116_spill] sm:$0xff] }
 0x3a6   :  { %9918 = vst [vmem:[#allocation71_spill] sm:$0xff] %v7046_v4  ;;  %v2276_v23 = vadd.f32 %v2275_v26, %v2170_v3  ;;  %v2313_v41 = vadd.f32 %v2312_v13, %v2171_v7  ;;  %v1681_v33 = vadd.f32 %v7046_v4, %v1680_v0  ;;  %v1472_v2 = vmul.f32 1.442695, %v1260_v45  ;;  %v9923_v22 = vld [vmem:[#allocation117_spill] sm:$0xff]  ;;  %v9924_v26 = vld [vmem:[#allocation123_spill] sm:$0xff] }
 0x3a7   :  { %5132 = vpow2.f32 %v1468_v21  ;;  %v1474_v38 = vmul.f32 1.442695, %v1261_v17  ;;  %v1262_v27 = vsub.f32 %v9920_v15, %v9874_v31  ;;  %v1263_v32 = vsub.f32 %v9921_v5, %v9876_v50  ;;  %v9931_v61 = vld [vmem:[#allocation47_spill] sm:$0xff] }
 0x3a8   :  { %5134 = vpow2.f32 %v1470_v12  ;;  %v1264_v53 = vsub.f32 %v9922_v1, %v9874_v31  ;;  %v1265_v16 = vsub.f32 %v9923_v22, %v9876_v50  ;;  %v1266_v13 = vsub.f32 %v9924_v26, %v9874_v31  ;;  %v9927_v12 = vld [vmem:[#allocation55_spill] sm:$0xff]  ;;  %v9928_v1 = vld [vmem:[#allocation121_spill] sm:$0xff] }
 0x3a9   :  { %v7062_v3 = vpop.eup %5128  ;;  %1963 = vperm.xlu2 %4938, %v9863_v49   ;;  %v1592_v45 = vadd.f32 %v6912_v29, %v1591_v52  ;;  %v1629_v7 = vadd.f32 %v6916_v30, %v1628_v47  ;;  %5136 = vpow2.f32 %v1472_v2  ;;  %v1476_v0 = vmul.f32 1.442695, %v1262_v27  ;;  %v9930_v27 = vld [vmem:[#allocation125_spill] sm:$0xff] }
 0x3aa   :  { %9925 = vst [vmem:[#allocation23_spill] sm:$0xff] %v7062_v3  ;;  %v7067_v21 = vpop.eup %5130  ;;  %v7071_v17 = vmul.f32 %v6279_v34, %v9927_v12  ;;  %v1645_v15 = vadd.f32 %v7062_v3, %v1644_v46  ;;  %5138 = vpow2.f32 %v1474_v38  ;;  %v1478_v5 = vmul.f32 1.442695, %v1263_v32  ;;  %v1879_v32 = vpop.permute.xlu1 %1878 }
 0x3ab   :  { %9926 = vst [vmem:[#allocation49_spill] sm:$0xff] %v7067_v21  ;;  %v9929_v22 = vsub.f32 %v9928_v1, %v9874_v31  ;;  %1981 = vperm.xlu1 %4941, %v9863_v49   ;;  %v1682_v52 = vadd.f32 %v7067_v21, %v1681_v33  ;;  %5140 = vpow2.f32 %v1476_v0  ;;  %v1480_v2 = vmul.f32 1.442695, %v1264_v53  ;;  %v9933_v1 = vld [vmem:[#allocation126_spill] sm:$0xff]  ;;  %v9934_v33 = vld [vmem:[#allocation51_spill] sm:$0xff] }
 0x3ac   :  { %5142 = vpow2.f32 %v1478_v5  ;;  %v1482_v47 = vmul.f32 1.442695, %v1265_v16  ;;  %v1267_v4 = vsub.f32 %v9930_v27, %v9876_v50  ;;  %v1268_v46 = vsub.f32 %v9931_v61, %v9874_v31 }
 0x3ad   :  { %v1504_v26 = vmul.f32 1.442695, %v9929_v22  ;;  %v7083_v38 = vpop.eup %5132  ;;  %5144 = vpow2.f32 %v1480_v2  ;;  %v1269_v22 = vsub.f32 %v9933_v1, %v9876_v50  ;;  %v1484_v3 = vmul.f32 1.442695, %v1266_v13 }
 0x3ae   :  { %9932 = vst [vmem:[#allocation54_spill] sm:$0xff] %v7083_v38  ;;  %v1270_v0 = vsub.f32 %v9934_v33, %v9874_v31  ;;  %v7089_v53 = vpop.eup %5134  ;;  %v2172_v16 = vmul.f32 %v6847_v20, %v1879_v32  ;;  %v2173_v5 = vmul.f32 %v6851_v63, %v1879_v32  ;;  %v1646_v27 = vadd.f32 %v7083_v38, %v1645_v15  ;;  %v9939_v32 = vld [vmem:[#allocation22_spill] sm:$0xff] }
 0x3af   :  { %9935 = vst [vmem:[#allocation42_spill] sm:$0xff] %v7089_v53  ;;  %5146 = vpow2.f32 %v1482_v47  ;;  %v7094_v61 = vpop.eup %5136  ;;  %v1593_v2 = vadd.f32 %v6924_v10, %v1592_v45  ;;  %v1630_v21 = vadd.f32 %v6933_v35, %v1629_v7  ;;  %v1683_v13 = vadd.f32 %v7089_v53, %v1682_v52  ;;  %v1560_v47 = vld [vmem:[#allocation4] sm:$0x3] }
 0x3b0   :  { %9936 = vst [vmem:[#allocation72_spill] sm:$0xff] %v7094_v61  ;;  %5148 = vpow2.f32 %v1484_v3  ;;  %v7099_v1 = vpop.eup %5138  ;;  %v7101_v33 = vadd.f32 %v2276_v23, %v2172_v16  ;;  %v7103_v55 = vadd.f32 %v2313_v41, %v2173_v5  ;;  %v1647_v20 = vadd.f32 %v7094_v61, %v1646_v27 }
 0x3b1   :  { %9937 = vst [vmem:[#allocation73_spill] sm:$0xff] %v7099_v1  ;;  %v1486_v63 = vmul.f32 1.442695, %v1267_v4  ;;  %v7106_v15 = vpop.eup %5140  ;;  %4940 = vset.pattern.permute.xlu2 %v9939_v32  ;;  %v1594_v45 = vadd.f32 %v6941_v57, %v1593_v2  ;;  %v1631_v7 = vadd.f32 %v6950_v54, %v1630_v21  ;;  %v1684_v3 = vadd.f32 %v7099_v1, %v1683_v13  ;;  %v9941_v4 = vld [vmem:[#allocation131_spill] sm:$0xff]  ;;  %v1885_v27 = vpop.permute.xlu2 %1884  ;;  %v9943_v1 = vld [vmem:[#allocation50_spill] sm:$0xff] }
 0x3b2   :  { %9938 = vst [vmem:[#allocation74_spill] sm:$0xff] %v7106_v15  ;;  %v1488_v52 = vmul.f32 1.442695, %v1268_v46  ;;  %v7112_v53 = vpop.eup %5142  ;;  %v1648_v23 = vadd.f32 %v7106_v15, %v1647_v20  ;;  %v1490_v41 = vmul.f32 1.442695, %v1269_v22  ;;  %v1271_v16 = vsub.f32 %v9941_v4, %v9876_v50  ;;  %v9944_v20 = vld [vmem:[#allocation122_spill] sm:$0xff] }
 0x3b3   :  { %9940 = vst [vmem:[#allocation75_spill] sm:$0xff] %v7112_v53  ;;  %5150 = vpow2.f32 %v1486_v63  ;;  %v7117_v5 = vpop.eup %5144  ;;  %4944 = vset.pattern.permute.xlu1 %v9843_v25  ;;  %v1595_v2 = vrot.slane %v1594_v45, 4  ;;  %v1632_v21 = vrot.slane %v1631_v7, 4  ;;  %v1685_v13 = vadd.f32 %v7112_v53, %v1684_v3 }
 0x3b4   :  { %5152 = vpow2.f32 %v1504_v26  ;;  %v7124_v61 = vmul.f32 %v9943_v1, %v1560_v47  ;;  %v9945_v22 = vsub.f32 %v9944_v20, %v9876_v50  ;;  %v1649_v4 = vadd.f32 %v7117_v5, %v1648_v23 }
 0x3b5   :  { %v7121_v46 = vpop.eup %5146  ;;  %5154 = vpow2.f32 %v1488_v52  ;;  %v1596_v15 = vadd.f32 %v1595_v2, %v1594_v45  ;;  %v1633_v38 = vadd.f32 %v1632_v21, %v1631_v7  ;;  %v1492_v62 = vmul.f32 1.442695, %v1270_v0  ;;  %v9947_v52 = vld [vmem:[#allocation102_spill] sm:$0xff]  ;;  %v9948_v7 = vld [vmem:[#allocation104_spill] sm:$0xff] }
 0x3b6   :  { %9942 = vst [vmem:[#allocation76_spill] sm:$0xff] %v7121_v46  ;;  %v1506_v63 = vmul.f32 1.442695, %v9945_v22  ;;  %v7130_v26 = vpop.eup %5148  ;;  %v1686_v25 = vadd.f32 %v7121_v46, %v1685_v13  ;;  %v2174_v3 = vmul.f32 %v9882_v18, %v1885_v27  ;;  %v2175_v53 = vmul.f32 %v6801_v24, %v1885_v27 }
 0x3b7   :  { %9946 = vst [vmem:[#allocation34_spill] sm:$0xff] %v7130_v26  ;;  %5156 = vpow2.f32 %v1490_v41  ;;  %v1650_v47 = vadd.f32 %v7130_v26, %v1649_v4  ;;  %v1597_v39 = vrot.slane %v1596_v15, 2  ;;  %v1634_v20 = vrot.slane %v1633_v38, 2 }
 0x3b8   :  { %5158 = vpow2.f32 %v1492_v62  ;;  %v1494_v22 = vmul.f32 1.442695, %v1271_v16  ;;  %v1272_v45 = vsub.f32 %v9947_v52, %v9874_v31  ;;  %v1273_v2 = vsub.f32 %v9948_v7, %v9876_v50  ;;  %v9950_v62 = vld [vmem:[#allocation45_spill] sm:$0xff] }
 0x3b9   :  { %v7136_v23 = vpop.eup %5150  ;;  %v1274_v18 = vsub.f32 %v6764_v42, %v9874_v31  ;;  %v1275_v24 = vsub.f32 %v6768_v14, %v9876_v50  ;;  %1975 = vperm.xlu2 %4940, %v9863_v49   ;;  %v2178_v41 = vmul.f32 %v6872_v43, %v9950_v62  ;;  %v1598_v16 = vadd.f32 %v1597_v39, %v1596_v15 }
 0x3ba   :  { %v7146_v0 = vpop.eup %5152  ;;  %v1635_v27 = vadd.f32 %v1634_v20, %v1633_v38  ;;  %v1687_v21 = vadd.f32 %v7136_v23, %v1686_v25  ;;  %v2179_v4 = vmul.f32 %v6876_v59, %v9950_v62  ;;  %5160 = vpow2.f32 %v1494_v22 }
 0x3bb   :  { %9949 = vst [vmem:[#allocation78_spill] sm:$0xff] %v7146_v0  ;;  %v7152_v13 = vpop.eup %5154  ;;  %v1496_v42 = vmul.f32 1.442695, %v1272_v45  ;;  %v1498_v52 = vmul.f32 1.442695, %v1273_v2  ;;  %1999 = vperm.xlu1 %4944, %v9863_v49   ;;  %v1599_v14 = vrot.slane %v1598_v16, 1  ;;  %v2278_v39 = vadd.f32 %v7101_v33, %v2174_v3 }
 0x3bc   :  { %v1636_v7 = vrot.slane %v1635_v27, 1  ;;  %v1651_v26 = vadd.f32 %v7152_v13, %v1650_v47  ;;  %v1500_v46 = vmul.f32 1.442695, %v1274_v18  ;;  %v2315_v25 = vadd.f32 %v7103_v55, %v2175_v53 }
 0x3bd   :  { %v7158_v43 = vpop.eup %5156  ;;  %5162 = vpow2.f32 %v1496_v42  ;;  %v1502_v38 = vmul.f32 1.442695, %v1275_v24  ;;  %v1891_v59 = vpop.permute.xlu1 %1890  ;;  %v1280_v45 = vsub.f32 %v6780_v44, %v9874_v31  ;;  %v1600_v18 = vadd.f32 %v1599_v14, %v1598_v16 }
 0x3be   :  { %v7162_v15 = vpop.eup %5158  ;;  %v1637_v20 = vadd.f32 %v1636_v7, %v1635_v27  ;;  %v1688_v22 = vadd.f32 %v7158_v43, %v1687_v21  ;;  %5164 = vpow2.f32 %v1498_v52  ;;  %v2176_v47 = vmul.f32 %v6856_v9, %v1891_v59  ;;  %v9951_v27 = vld [vmem:[#allocation118_spill] sm:$0xff]  ;;  %v9952_v9 = vld [vmem:[#allocation124_spill] sm:$0xff] }
 0x3bf   :  { %v2177_v2 = vmul.f32 %v6860_v19, %v1891_v59  ;;  %5166 = vpow2.f32 %v1500_v46  ;;  %v1652_v55 = vadd.f32 %v7162_v15, %v1651_v26  ;;  %v1281_v53 = vsub.f32 %v6870_v40, %v9876_v50  ;;  %v9953_v19 = vld [vmem:[#allocation127_spill] sm:$0xff]  ;;  %v9955_v26 = vld [vmem:[#allocation25_spill] sm:$0xff] }
 0x3c0   :  { %v1716_v33 = vrot.slane %v1637_v20, 7  ;;  %5168 = vpow2.f32 %v1502_v38  ;;  %v7172_v3 = vpop.eup %5160  ;;  %v2279_v24 = vadd.f32 %v2278_v39, %v2176_v47  ;;  %v1282_v44 = vsub.f32 %v9951_v27, %v9874_v31  ;;  %v9957_v38 = vld [vmem:[#allocation59_spill] sm:$0xff]  ;;  %v9958_v20 = vld [vmem:[#allocation130_spill] sm:$0xff] }
 0x3c1   :  { %v2316_v62 = vadd.f32 %v2315_v25, %v2177_v2  ;;  %v1283_v21 = vsub.f32 %v9952_v9, %v9876_v50  ;;  %5170 = vpow2.f32 %v1506_v63  ;;  %v9954_v46 = vsub.f32 %v9953_v19, %v9874_v31  ;;  %4943 = vset.pattern.permute.xlu2 %v9955_v26  ;;  %v1903_v2 = vpop.permute.xlu2 %1902  ;;  %v9964_v9 = vld [vmem:[#allocation35_spill] sm:$0xff] }
 0x3c2   :  { %v1718_v42 = vsel %vm563_vm2, %v1600_v18, %v1716_v33  ;;  %v1689_v40 = vadd.f32 %v7172_v3, %v1688_v22  ;;  %v7188_v14 = vmul.f32 %v6295_v6, %v9927_v12  ;;  %v2280_v7 = vadd.f32 %v2279_v24, %v2178_v41  ;;  %v9960_v41 = vld [vmem:[#allocation62_spill] sm:$0xff] }
 0x3c3   :  { %v1508_v16 = vmul.f32 1.442695, %v9954_v46  ;;  %v7184_v52 = vpop.eup %5162  ;;  %v2317_v39 = vadd.f32 %v2316_v62, %v2179_v4  ;;  %v1722_v63 = vadd.f32 %v1718_v42, %v7124_v61  ;;  %v7195_v59 = vmul.f32 %v6279_v34, %v9957_v38  ;;  %4946 = vset.pattern.permute.xlu1 %v9853_v58 }
 0x3c4   :  { %v7191_v25 = vpop.eup %5164  ;;  %v9959_v47 = vsub.f32 %v9958_v20, %v9876_v50  ;;  %v1653_v12 = vadd.f32 %v7184_v52, %v1652_v55  ;;  %v1284_v4 = vsub.f32 %v9960_v41, %v9874_v31  ;;  %v7208_v61 = vmul.f32 %v6295_v6, %v9957_v38 }
 0x3c5   :  { %9956 = vst [vmem:[#allocation79_spill] sm:$0xff] %v7191_v25  ;;  %v7204_v18 = vpop.eup %5166  ;;  %v2180_v33 = vmul.f32 %v6882_v56, %v1903_v2  ;;  %v2181_v24 = vmul.f32 %v6889_v51, %v1903_v2  ;;  %v1690_v58 = vadd.f32 %v7191_v25, %v1689_v40  ;;  %5172 = vpow2.f32 %v1508_v16  ;;  %v9974_v25 = vld [vmem:[#allocation27_spill] sm:$0xff] }
 0x3c6   :  { %v1510_v22 = vmul.f32 1.442695, %v9959_v47  ;;  %9961 = vst [vmem:[#allocation80_spill] sm:$0xff] %v7204_v18  ;;  %v7215_v27 = vpop.eup %5168  ;;  %v1512_v55 = vmul.f32 1.442695, %v1280_v45  ;;  %v1285_v19 = vsub.f32 %v9964_v9, %v9876_v50  ;;  %v1288_v46 = vsub.f32 %v7071_v17, %v9874_v31  ;;  %v9966_v47 = vld [vmem:[#allocation39_spill] sm:$0xff] }
 0x3c7   :  { %1728 = vst.msk [vmem:[#allocation4] sm:$0x3] %vm5709_vm0, %v1722_v63  ;;  %v2281_v42 = vadd.f32 %v2280_v7, %v2180_v33  ;;  %v2318_v38 = vadd.f32 %v2317_v39, %v2181_v24  ;;  %v1654_v56 = vadd.f32 %v7204_v18, %v1653_v12  ;;  %v1691_v51 = vadd.f32 %v7215_v27, %v1690_v58  ;;  %v7223_v20 = vpop.eup %5170  ;;  %v9970_v58 = vld [vmem:[#allocation41_spill] sm:$0xff] }
 0x3c8   :  { %9963 = vst [vmem:[#allocation81_spill] sm:$0xff] %v7215_v27  ;;  %5174 = vpow2.f32 %v1510_v22  ;;  %v1514_v40 = vmul.f32 1.442695, %v1281_v53  ;;  %v1289_v16 = vsub.f32 %v7188_v14, %v9876_v50  ;;  %v1290_v17 = vsub.f32 %v7195_v59, %v9874_v31  ;;  %v9967_v53 = vld [vmem:[#allocation129_spill] sm:$0xff]  ;;  %v9969_v59 = vld [vmem:[#allocation60_spill] sm:$0xff] }
 0x3c9   :  { %9965 = vst [vmem:[#allocation82_spill] sm:$0xff] %v7223_v20  ;;  %v1655_v45 = vadd.f32 %v7146_v0, %v1654_v56  ;;  %v1692_v63 = vadd.f32 %v7223_v20, %v1691_v51  ;;  %v1291_v7 = vsub.f32 %v7208_v61, %v9876_v50  ;;  %1993 = vperm.xlu2 %4943, %v9863_v49   ;;  %v1516_v39 = vmul.f32 1.442695, %v1282_v44  ;;  %v9968_v14 = vld [vmem:[#allocation57_spill] sm:$0xff] }
 0x3ca   :  { %v7240_v12 = vmul.f32 %v6279_v34, %v9968_v14  ;;  %v7244_v41 = vmul.f32 %v6295_v6, %v9968_v14  ;;  %v7248_v61 = vmul.f32 %v6279_v34, %v9969_v59  ;;  %5176 = vpow2.f32 %v1512_v55 }
 0x3cb   :  { %v7250_v44 = vpop.eup %5172  ;;  %v7254_v33 = vmul.f32 %v6295_v6, %v9969_v59  ;;  %2011 = vperm.xlu1 %4946, %v9863_v49   ;;  %5178 = vpow2.f32 %v1514_v40  ;;  %v1518_v24 = vmul.f32 1.442695, %v1283_v21  ;;  %v7259_v9 = vmul.f32 %v6279_v34, %v9970_v58 }
 0x3cc   :  { %v7271_v59 = vmul.f32 %v6295_v6, %v9970_v58  ;;  %5180 = vpow2.f32 %v1516_v39  ;;  %v1520_v40 = vmul.f32 1.442695, %v1284_v4  ;;  %v1656_v55 = vadd.f32 %v7250_v44, %v1655_v45  ;;  %v9972_v4 = vld [vmem:[#allocation56_spill] sm:$0xff] }
 0x3cd   :  { %v1909_v21 = vpop.permute.xlu1 %1908  ;;  %5182 = vpow2.f32 %v1518_v24  ;;  %v1522_v20 = vmul.f32 1.442695, %v1285_v19  ;;  %v9973_v39 = vsub.f32 %v9972_v4, %v9874_v31 }
 0x3ce   :  { %v7267_v14 = vpop.eup %5174  ;;  %v2182_v56 = vmul.f32 %v6893_v11, %v1909_v21  ;;  %v2183_v22 = vmul.f32 %v6898_v60, %v1909_v21  ;;  %5184 = vpow2.f32 %v1520_v40  ;;  %v1530_v40 = vmul.f32 1.442695, %v1289_v16 }
 0x3cf   :  { %v1693_v51 = vadd.f32 %v7267_v14, %v1692_v63  ;;  %v1524_v2 = vmul.f32 1.442695, %v9973_v39  ;;  %5186 = vpow2.f32 %v1522_v20 }
 0x3d0   :  { %v7279_v0 = vpop.eup %5176  ;;  %v2282_v58 = vadd.f32 %v2281_v42, %v2182_v56  ;;  %v2319_v27 = vadd.f32 %v2318_v38, %v2183_v22  ;;  %v9975_v38 = vld [vmem:[#allocation128_spill] sm:$0xff]  ;;  %v9977_v56 = vld [vmem:[#allocation29_spill] sm:$0xff] }
 0x3d1   :  { %v7281_v18 = vpop.eup %5178  ;;  %4945 = vset.pattern.permute.xlu2 %v9974_v25  ;;  %v1657_v60 = vadd.f32 %v7279_v0, %v1656_v55  ;;  %v9976_v63 = vsub.f32 %v9975_v38, %v9876_v50  ;;  %v1915_v24 = vpop.permute.xlu2 %1914  ;;  %5188 = vpow2.f32 %v1524_v2 }
 0x3d2   :  { %9971 = vst [vmem:[#allocation83_spill] sm:$0xff] %v7281_v18  ;;  %v1694_v45 = vadd.f32 %v7281_v18, %v1693_v51  ;;  %v7293_v42 = vpop.eup %5180  ;;  %v2184_v21 = vmul.f32 %v6904_v36, %v1915_v24  ;;  %v2185_v55 = vmul.f32 %v6908_v48, %v1915_v24  ;;  %v1528_v51 = vmul.f32 1.442695, %v1288_v46 }
 0x3d3   :  { %v1526_v22 = vmul.f32 1.442695, %v9976_v63  ;;  %4949 = vset.pattern.permute.xlu1 %v9977_v56  ;;  %v7301_v4 = vpop.eup %5182  ;;  %v1658_v11 = vadd.f32 %v7293_v42, %v1657_v60  ;;  %v1532_v18 = vmul.f32 1.442695, %v1290_v17  ;;  %v1534_v36 = vmul.f32 1.442695, %v1291_v7 }
 0x3d4   :  { %v2283_v39 = vadd.f32 %v2282_v58, %v2184_v21  ;;  %v2320_v19 = vadd.f32 %v2319_v27, %v2185_v55  ;;  %v1695_v38 = vadd.f32 %v7301_v4, %v1694_v45  ;;  %v7305_v63 = vpop.eup %5184  ;;  %v9978_v17 = vsub.f32 %v9966_v47, %v9874_v31  ;;  %v9980_v47 = vld [vmem:[#allocation46_spill] sm:$0xff] }
 0x3d5   :  { %5190 = vpow2.f32 %v1526_v22  ;;  %v7307_v20 = vpop.eup %5186  ;;  %v1659_v48 = vadd.f32 %v7305_v63, %v1658_v11  ;;  %v9979_v7 = vsub.f32 %v9967_v53, %v9876_v50  ;;  %v2189_v53 = vmul.f32 %v6933_v35, %v9980_v47 }
 0x3d6   :  { %5192 = vpow2.f32 %v1528_v51  ;;  %v1696_v46 = vadd.f32 %v7307_v20, %v1695_v38  ;;  %v1536_v58 = vmul.f32 1.442695, %v9978_v17  ;;  %v9981_v38 = vld [vmem:[#allocation28_spill] sm:$0xff] }
 0x3d7   :  { %5194 = vpow2.f32 %v1530_v40  ;;  %v7312_v27 = vpop.eup %5188  ;;  %v1538_v11 = vmul.f32 1.442695, %v9979_v7  ;;  %v2188_v40 = vmul.f32 %v6924_v10, %v9980_v47  ;;  %v9983_v10 = vsub.f32 %v7244_v41, %v9876_v50  ;;  %v9984_v7 = vld [vmem:[#allocation30_spill] sm:$0xff] }
 0x3d8   :  { %5196 = vpow2.f32 %v1532_v18  ;;  %v1660_v22 = vadd.f32 %v7312_v27, %v1659_v48 }
 0x3d9   :  { %2005 = vperm.xlu2 %4945, %v9863_v49   ;;  %5198 = vpow2.f32 %v1534_v36  ;;  %v9982_v36 = vsub.f32 %v7240_v12, %v9874_v31  ;;  %v1542_v35 = vmul.f32 1.442695, %v9983_v10 }
 0x3da   :  { %5200 = vpow2.f32 %v1536_v58 }
 0x3db   :  { %2029 = vperm.xlu1 %4949, %v9863_v49   ;;  %v7315_v16 = vpop.eup %5190  ;;  %v1540_v48 = vmul.f32 1.442695, %v9982_v36  ;;  %5202 = vpow2.f32 %v1538_v11 }
 0x3dc   :  { %v1697_v18 = vadd.f32 %v7315_v16, %v1696_v46  ;;  %v7327_v24 = vpop.eup %5192 }
 0x3dd   :  { %v1921_v2 = vpop.permute.xlu1 %1920  ;;  %v7329_v21 = vpop.eup %5194  ;;  %5204 = vpow2.f32 %v1540_v48 }
 0x3de   :  { %v2186_v60 = vmul.f32 %v6912_v29, %v1921_v2  ;;  %v2187_v45 = vmul.f32 %v6916_v30, %v1921_v2  ;;  %v1661_v29 = vadd.f32 %v7327_v24, %v1660_v22  ;;  %v1698_v30 = vadd.f32 %v7329_v21, %v1697_v18  ;;  %v7341_v46 = vpop.eup %5196  ;;  %v9987_v18 = vld [vmem:[#allocation77_spill] sm:$0xff] }
 0x3df   :  { %v7346_v2 = vpop.eup %5198  ;;  %v1114_v11 = vmul.f32 %v6279_v34, %v9987_v18  ;;  %5206 = vpow2.f32 %v1542_v35 }
 0x3e0   :  { %v2284_v55 = vadd.f32 %v2283_v39, %v2186_v60  ;;  %v2321_v51 = vadd.f32 %v2320_v19, %v2187_v45  ;;  %v9985_v60 = vld [vmem:[#allocation132_spill] sm:$0xff]  ;;  %v1699_v41 = vadd.f32 %v7346_v2, %v1698_v30  ;;  %v7361_v10 = vpop.eup %5200 }
 0x3e1   :  { %4948 = vset.pattern.permute.xlu2 %v9981_v38  ;;  %v1933_v17 = vpop.permute.xlu2 %1932  ;;  %v9986_v58 = vsub.f32 %v9985_v60, %v9874_v31  ;;  %v1300_v30 = vsub.f32 %v1114_v11, %v9874_v31  ;;  %v9991_v60 = vsub.f32 %v7254_v33, %v9876_v50 }
 0x3e2   :  { %v2285_v19 = vadd.f32 %v2284_v55, %v2188_v40  ;;  %v2322_v39 = vadd.f32 %v2321_v51, %v2189_v53  ;;  %v2190_v12 = vmul.f32 %v6941_v57, %v1933_v17  ;;  %v2191_v22 = vmul.f32 %v6950_v54, %v1933_v17  ;;  %v9988_v51 = vld [vmem:[#allocation133_spill] sm:$0xff]  ;;  %v7365_v57 = vpop.eup %5202 }
 0x3e3   :  { %4951 = vset.pattern.permute.xlu1 %v9984_v7  ;;  %v1544_v45 = vmul.f32 1.442695, %v9986_v58  ;;  %v1662_v55 = vadd.f32 %v7341_v46, %v1661_v29  ;;  %v9989_v47 = vsub.f32 %v9988_v51, %v9876_v50  ;;  %v1115_v54 = vmul.f32 %v6295_v6, %v9987_v18 }
 0x3e4   :  { %v2286_v53 = vadd.f32 %v2285_v19, %v2190_v12  ;;  %v2323_v36 = vadd.f32 %v2322_v39, %v2191_v22  ;;  %v1700_v19 = vadd.f32 %v7365_v57, %v1699_v41  ;;  %v9990_v39 = vsub.f32 %v7248_v61, %v9874_v31 }
 0x3e5   :  { %v1546_v40 = vmul.f32 1.442695, %v9989_v47  ;;  %5208 = vpow2.f32 %v1544_v45  ;;  %v1663_v48 = vadd.f32 %v7361_v10, %v1662_v55  ;;  %v1301_v17 = vsub.f32 %v1115_v54, %v9876_v50  ;;  %v7378_v45 = vpop.eup %5204 }
 0x3e6   :  { %v2287_v34 = vrot.slane %v2286_v53, 4  ;;  %v2324_v29 = vrot.slane %v2323_v36, 4  ;;  %v1548_v35 = vmul.f32 1.442695, %v9990_v39  ;;  %v1550_v58 = vmul.f32 1.442695, %v9991_v60  ;;  %v7381_v12 = vpop.eup %5206 }
 0x3e7   :  { %5210 = vpow2.f32 %v1546_v40  ;;  %v1552_v11 = vmul.f32 1.442695, %v1300_v30  ;;  %v1664_v61 = vadd.f32 %v7378_v45, %v1663_v48  ;;  %v1701_v55 = vadd.f32 %v7381_v12, %v1700_v19  ;;  %v9994_v30 = vld [vmem:[#allocation19_spill] sm:$0xff] }
 0x3e8   :  { %v2288_v6 = vadd.f32 %v2287_v34, %v2286_v53  ;;  %v2325_v7 = vadd.f32 %v2324_v29, %v2323_v36  ;;  %5212 = vpow2.f32 %v1548_v35  ;;  %v1554_v41 = vmul.f32 1.442695, %v1301_v17  ;;  %v1730_v35 = vld [vmem:[#allocation5] sm:$0x3] }
 0x3e9   :  { %2023 = vperm.xlu2 %4948, %v9863_v49   ;;  %v9992_v49 = vld [vmem:[#allocation37_spill] sm:$0xff]  ;;  %5214 = vpow2.f32 %v1550_v58  ;;  %v9993_v40 = vsub.f32 %v7259_v9, %v9874_v31  ;;  %v9995_v19 = vsub.f32 %v7271_v59, %v9876_v50  ;;  %v1732_v58 = vmul.f32 %v9943_v1, %v1730_v35 }
 0x3ea   :  { %v2289_v22 = vrot.slane %v2288_v6, 2  ;;  %v2326_v18 = vrot.slane %v2325_v7, 2  ;;  %5216 = vpow2.f32 %v1552_v11 }
 0x3eb   :  { %2042 = vperm.xlu1 %4951, %v9992_v49   ;;  %v7385_v51 = vpop.eup %5208  ;;  %v1556_v53 = vmul.f32 1.442695, %v9993_v40  ;;  %5218 = vpow2.f32 %v1554_v41  ;;  %v1558_v39 = vmul.f32 1.442695, %v9995_v19  ;;  %v9997_v40 = vld [vmem:[#allocation114_spill] sm:$0xff]  ;;  %v9999_v19 = vld [vmem:[#allocation33_spill] sm:$0xff] }
 0x3ec   :  { %v2290_v47 = vadd.f32 %v2289_v22, %v2288_v6  ;;  %v2327_v33 = vadd.f32 %v2326_v18, %v2325_v7  ;;  %v1665_v29 = vadd.f32 %v7385_v51, %v1664_v61 }
 0x3ed   :  { %v7390_v36 = vpop.eup %5210  ;;  %5220 = vpow2.f32 %v1556_v53 }
 0x3ee   :  { %v2291_v54 = vrot.slane %v2290_v47, 1  ;;  %v2328_v34 = vrot.slane %v2327_v33, 1  ;;  %v1702_v48 = vadd.f32 %v7390_v36, %v1701_v55  ;;  %v7398_v31 = vpop.eup %5212  ;;  %5222 = vpow2.f32 %v1558_v39 }
 0x3ef   :  { %v7401_v9 = vpop.eup %5214  ;;  %v1666_v60 = vadd.f32 %v7398_v31, %v1665_v29 }
 0x3f0   :  { %v2329_v17 = vadd.f32 %v2328_v34, %v2327_v33  ;;  %v2292_v6 = vadd.f32 %v2291_v54, %v2290_v47  ;;  %v1703_v22 = vadd.f32 %v7401_v9, %v1702_v48  ;;  %v7406_v50 = vpop.eup %5216  ;;  %v9996_v33 = vld [vmem:[#allocation107_spill] sm:$0xff] }
 0x3f1   :  { %4950 = vset.pattern.permute.xlu2 %v9994_v30  ;;  %v7409_v18 = vpop.eup %5218  ;;  %v9998_v53 = vsub.f32 %v9996_v33, %v9997_v40 }
 0x3f2   :  { %v2408_v7 = vrot.slane %v2329_v17, 7  ;;  %v1704_v61 = vadd.f32 %v7409_v18, %v1703_v22  ;;  %v1946_v22 = vpop.permute.xlu2 %1945 }
 0x3f3   :  { %4954 = vset.pattern.permute.xlu1 %v9911_v37  ;;  %v1667_v37 = vadd.f32 %v7406_v50, %v1666_v60  ;;  %v7416_v1 = vpop.eup %5220  ;;  %v1164_v54 = vmul.f32 1.442695, %v9998_v53  ;;  %v10000_v53 = vld [vmem:[#allocation43_spill] sm:$0xff] }
 0x3f4   :  { %v2410_v59 = vsel %vm563_vm2, %v2292_v6, %v2408_v7  ;;  %v7418_v55 = vpop.eup %5222  ;;  %v1940_v7 = vpop.permute.xlu1 %1939 }
 0x3f5   :  { %v2414_v11 = vadd.f32 %v2410_v59, %v1732_v58  ;;  %v1668_v41 = vadd.f32 %v7416_v1, %v1667_v37  ;;  %v1705_v47 = vadd.f32 %v7418_v55, %v1704_v61  ;;  %5224 = vpow2.f32 %v1164_v54 }
 0x3f6   :  { %v2194_v54 = vmul.f32 %v10000_v53, %v1946_v22 }
 0x3f7   :  { %2416 = vst.msk [vmem:[#allocation5] sm:$0x3] %vm5709_vm0, %v2414_v11  ;;  %v1669_v34 = vrot.slane %v1668_v41, 4  ;;  %v1706_v29 = vrot.slane %v1705_v47, 4  ;;  %v1561_v11 = vld [vmem:[#allocation4 + $0x2] sm:$0x3] }
 0x3f9   :  { %2036 = vperm.xlu2 %4950, %v9992_v49   ;;  %v1670_v30 = vadd.f32 %v1669_v34, %v1668_v41  ;;  %v1707_v48 = vadd.f32 %v1706_v29, %v1705_v47  ;;  %v2195_v34 = vmul.f32 %v6974_v8, %v1946_v22 }
 0x3fb   :  { %2060 = vperm.xlu1 %4954, %v9992_v49   ;;  %v1671_v39 = vrot.slane %v1670_v30, 2  ;;  %v1708_v35 = vrot.slane %v1707_v48, 2  ;;  %v7428_v59 = vpop.eup %5224 }
 0x3fc   :  { %v1563_v47 = vmul.f32 %v7428_v59, %v1561_v11 }
 0x3fd   :  { %v1672_v17 = vadd.f32 %v1671_v39, %v1670_v30  ;;  %v1709_v6 = vadd.f32 %v1708_v35, %v1707_v48  ;;  %v1952_v33 = vpop.permute.xlu1 %1951  ;;  %v10001_v30 = vld [vmem:[#allocation36_spill] sm:$0xff]  ;;  %v10003_v35 = vld [vmem:[#allocation63_spill] sm:$0xff] }
 0x3fe   :  { %v2192_v48 = vmul.f32 %v10001_v30, %v1940_v7  ;;  %v10009_v30 = vld [vmem:[#allocation66_spill] sm:$0xff] }
 0x3ff   :  { %v1673_v60 = vrot.slane %v1672_v17, 1  ;;  %v1710_v58 = vrot.slane %v1709_v6, 1 }
 0x400   :  { %v2330_v11 = vadd.f32 %v2194_v54, %v2192_v48  ;;  %v10010_v54 = vld [vmem:[#allocation40_spill] sm:$0xff]  ;;  %v10011_v48 = vld [vmem:[#allocation67_spill] sm:$0xff] }
 0x401   :  { %4953 = vset.pattern.permute.xlu2 %v9999_v19  ;;  %v1711_v37 = vadd.f32 %v1710_v58, %v1709_v6  ;;  %v1674_v61 = vadd.f32 %v1673_v60, %v1672_v17  ;;  %v10002_v19 = vld [vmem:[#allocation24_spill] sm:$0xff]  ;;  %v2196_v17 = vmul.f32 %v10003_v35, %v1952_v33  ;;  %v10004_v6 = vld [vmem:[#allocation38_spill] sm:$0xff]  ;;  %v10005_v58 = vld [vmem:[#allocation21_spill] sm:$0xff] }
 0x402   :  { %v2193_v39 = vmul.f32 %v10002_v19, %v1940_v7  ;;  %v2197_v60 = vmul.f32 %v10004_v6, %v1952_v33  ;;  %v10008_v7 = vld [vmem:[#allocation65_spill] sm:$0xff] }
 0x403   :  { %4956 = vset.pattern.permute.xlu1 %v9939_v32  ;;  %v1717_v41 = vrot.slane %v1711_v37, 7  ;;  %v1964_v29 = vpop.permute.xlu2 %1963 }
 0x404   :  { %v2367_v37 = vadd.f32 %v2195_v34, %v2193_v39  ;;  %v2200_v53 = vmul.f32 %v10008_v7, %v1964_v29  ;;  %v2201_v19 = vmul.f32 %v10009_v30, %v1964_v29 }
 0x405   :  { %v1719_v32 = vsel %vm563_vm2, %v1674_v61, %v1717_v41  ;;  %v2331_v61 = vadd.f32 %v2330_v11, %v2196_v17  ;;  %v10006_v41 = vld [vmem:[#allocation48_spill] sm:$0xff] }
 0x406   :  { %v1723_v40 = vadd.f32 %v1719_v32, %v1563_v47  ;;  %v2368_v8 = vadd.f32 %v2367_v37, %v2197_v60  ;;  %v2198_v47 = vmul.f32 %v6992_v28, %v10006_v41  ;;  %v10007_v32 = vld [vmem:[#allocation64_spill] sm:$0xff] }
 0x407   :  { %v10012_v60 = vld [vmem:[#allocation68_spill] sm:$0xff] }
 0x408   :  { %1729 = vst.msk [vmem:[#allocation4 + $0x2] sm:$0x3] %vm5709_vm0, %v1723_v40  ;;  %v2199_v40 = vmul.f32 %v10007_v32, %v10006_v41  ;;  %v2332_v35 = vadd.f32 %v2331_v61, %v2198_v47 }
 0x409   :  { %2054 = vperm.xlu2 %4953, %v9992_v49  }
 0x40a   :  { %v2369_v6 = vadd.f32 %v2368_v8, %v2199_v40  ;;  %v2333_v39 = vadd.f32 %v2332_v35, %v2200_v53  ;;  %v10014_v8 = vld [vmem:[#allocation70_spill] sm:$0xff]  ;;  %v10015_v40 = vld [vmem:[#allocation71_spill] sm:$0xff]  ;;  %v10018_v35 = vld [vmem:[#allocation49_spill] sm:$0xff] }
 0x40b   :  { %2072 = vperm.xlu1 %4956, %v9992_v49   ;;  %v10017_v53 = vld [vmem:[#allocation23_spill] sm:$0xff] }
 0x40c   :  { %v2370_v17 = vadd.f32 %v2369_v6, %v2201_v19 }
 0x40d   :  { %v1970_v22 = vpop.permute.xlu1 %1969 }
 0x40e   :  { %v2202_v34 = vmul.f32 %v10010_v54, %v1970_v22  ;;  %v10016_v54 = vld [vmem:[#allocation53_spill] sm:$0xff] }
 0x40f   :  { %v2208_v19 = vmul.f32 %v10017_v53, %v10016_v54  ;;  %v2209_v6 = vmul.f32 %v10018_v35, %v10016_v54 }
 0x410   :  { %v2334_v37 = vadd.f32 %v2333_v39, %v2202_v34  ;;  %v10020_v39 = vld [vmem:[#allocation26_spill] sm:$0xff] }
 0x411   :  { %4955 = vset.pattern.permute.xlu2 %v10005_v58  ;;  %v10013_v58 = vld [vmem:[#allocation69_spill] sm:$0xff] }
 0x413   :  { %4958 = vset.pattern.permute.xlu1 %v9955_v26  ;;  %v1976_v33 = vpop.permute.xlu2 %1975  ;;  %v2203_v26 = vmul.f32 %v10011_v48, %v1970_v22 }
 0x414   :  { %v2204_v28 = vmul.f32 %v10012_v60, %v1976_v33  ;;  %v2205_v11 = vmul.f32 %v10013_v58, %v1976_v33  ;;  %v10019_v33 = vld [vmem:[#allocation31_spill] sm:$0xff]  ;;  %v10021_v60 = vld [vmem:[#allocation54_spill] sm:$0xff] }
 0x415   :  { %v2371_v41 = vadd.f32 %v2370_v17, %v2203_v26  ;;  %v10022_v58 = vld [vmem:[#allocation42_spill] sm:$0xff] }
 0x416   :  { %v2335_v32 = vadd.f32 %v2334_v37, %v2204_v28 }
 0x417   :  { %v2372_v61 = vadd.f32 %v2371_v41, %v2205_v11  ;;  %v10023_v41 = vld [vmem:[#allocation72_spill] sm:$0xff] }
 0x419   :  { %2066 = vperm.xlu2 %4955, %v9992_v49  }
 0x41b   :  { %2090 = vperm.xlu1 %4958, %v9992_v49  }
 0x41d   :  { %v1982_v29 = vpop.permute.xlu1 %1981 }
 0x41e   :  { %v2206_v47 = vmul.f32 %v10014_v8, %v1982_v29  ;;  %v2207_v7 = vmul.f32 %v10015_v40, %v1982_v29 }
 0x420   :  { %v2336_v22 = vadd.f32 %v2335_v32, %v2206_v47  ;;  %v2373_v30 = vadd.f32 %v2372_v61, %v2207_v7  ;;  %v10024_v32 = vld [vmem:[#allocation73_spill] sm:$0xff]  ;;  %v10025_v47 = vld [vmem:[#allocation74_spill] sm:$0xff]  ;;  %v10026_v7 = vld [vmem:[#allocation75_spill] sm:$0xff] }
 0x421   :  { %4957 = vset.pattern.permute.xlu2 %v10019_v33 }
 0x422   :  { %v2337_v48 = vadd.f32 %v2336_v22, %v2208_v19  ;;  %v2374_v34 = vadd.f32 %v2373_v30, %v2209_v6  ;;  %v10027_v6 = vld [vmem:[#allocation76_spill] sm:$0xff] }
 0x423   :  { %4960 = vset.pattern.permute.xlu1 %v9974_v25  ;;  %v1994_v26 = vpop.permute.xlu2 %1993 }
 0x424   :  { %v2210_v28 = vmul.f32 %v10021_v60, %v1994_v26  ;;  %v2211_v11 = vmul.f32 %v10022_v58, %v1994_v26 }
 0x426   :  { %v2338_v25 = vadd.f32 %v2337_v48, %v2210_v28  ;;  %v2375_v8 = vadd.f32 %v2374_v34, %v2211_v11  ;;  %v10029_v48 = vld [vmem:[#allocation34_spill] sm:$0xff]  ;;  %v10030_v28 = vld [vmem:[#allocation32_spill] sm:$0xff] }
 0x429   :  { %2084 = vperm.xlu2 %4957, %v9992_v49  }
 0x42b   :  { %2102 = vperm.xlu1 %4960, %v9992_v49  }
 0x42d   :  { %v2000_v17 = vpop.permute.xlu1 %1999 }
 0x42e   :  { %v2212_v29 = vmul.f32 %v10023_v41, %v2000_v17  ;;  %v2213_v61 = vmul.f32 %v10024_v32, %v2000_v17  ;;  %v10028_v17 = vld [vmem:[#allocation61_spill] sm:$0xff] }
 0x42f   :  { %v2218_v34 = vmul.f32 %v10029_v48, %v10028_v17  ;;  %v2219_v60 = vmul.f32 %v7136_v23, %v10028_v17 }
 0x430   :  { %v2376_v30 = vadd.f32 %v2375_v8, %v2213_v61 }
 0x431   :  { %4959 = vset.pattern.permute.xlu2 %v10020_v39 }
 0x433   :  { %4963 = vset.pattern.permute.xlu1 %v9981_v38  ;;  %v2006_v37 = vpop.permute.xlu2 %2005  ;;  %v2339_v38 = vadd.f32 %v2338_v25, %v2212_v29 }
 0x434   :  { %v2214_v40 = vmul.f32 %v10025_v47, %v2006_v37  ;;  %v2215_v22 = vmul.f32 %v10026_v7, %v2006_v37 }
 0x436   :  { %v2340_v53 = vadd.f32 %v2339_v38, %v2214_v40  ;;  %v2377_v19 = vadd.f32 %v2376_v30, %v2215_v22  ;;  %v10031_v40 = vld [vmem:[#allocation79_spill] sm:$0xff] }
 0x439   :  { %2096 = vperm.xlu2 %4959, %v9992_v49  }
 0x43b   :  { %2120 = vperm.xlu1 %4963, %v9992_v49  }
 0x43d   :  { %v2012_v54 = vpop.permute.xlu1 %2011 }
 0x43e   :  { %v2216_v35 = vmul.f32 %v7117_v5, %v2012_v54  ;;  %v2217_v33 = vmul.f32 %v10027_v6, %v2012_v54  ;;  %v10032_v54 = vld [vmem:[#allocation80_spill] sm:$0xff]  ;;  %v10035_v6 = vld [vmem:[#allocation78_spill] sm:$0xff] }
 0x440   :  { %v2341_v26 = vadd.f32 %v2340_v53, %v2216_v35  ;;  %v2378_v39 = vadd.f32 %v2377_v19, %v2217_v33  ;;  %v10033_v53 = vld [vmem:[#allocation81_spill] sm:$0xff]  ;;  %v10036_v33 = vld [vmem:[#allocation82_spill] sm:$0xff] }
 0x441   :  { %4962 = vset.pattern.permute.xlu2 %v10030_v28 }
 0x442   :  { %v2342_v58 = vadd.f32 %v2341_v26, %v2218_v34  ;;  %v2379_v11 = vadd.f32 %v2378_v39, %v2219_v60 }
 0x443   :  { %v2024_v37 = vpop.permute.xlu2 %2023 }
 0x444   :  { %v2220_v41 = vmul.f32 %v7152_v13, %v2024_v37  ;;  %v2221_v29 = vmul.f32 %v7158_v43, %v2024_v37  ;;  %v10037_v37 = vld [vmem:[#allocation83_spill] sm:$0xff] }
 0x446   :  { %v2343_v23 = vadd.f32 %v2342_v58, %v2220_v41  ;;  %v2380_v8 = vadd.f32 %v2379_v11, %v2221_v29 }
 0x449   :  { %2114 = vperm.xlu2 %4962, %v9992_v49  }
 0x44d   :  { %v2030_v5 = vpop.permute.xlu1 %2029 }
 0x44e   :  { %v2222_v61 = vmul.f32 %v7162_v15, %v2030_v5  ;;  %v2223_v25 = vmul.f32 %v7172_v3, %v2030_v5  ;;  %v10034_v3 = vld [vmem:[#allocation99_spill] sm:$0xff] }
 0x44f   :  { %v2229_v26 = vmul.f32 %v10036_v33, %v10034_v3 }
 0x450   :  { %v2344_v22 = vadd.f32 %v2343_v23, %v2222_v61 }
 0x451   :  { %4964 = vset.pattern.permute.xlu2 %v9977_v56  ;;  %v2381_v56 = vadd.f32 %v2380_v8, %v2223_v25 }
 0x453   :  { %v2037_v32 = vpop.permute.xlu2 %2036 }
 0x454   :  { %v2224_v47 = vmul.f32 %v7184_v52, %v2037_v32  ;;  %v2225_v7 = vmul.f32 %v10031_v40, %v2037_v32 }
 0x456   :  { %v2345_v30 = vadd.f32 %v2344_v22, %v2224_v47  ;;  %v2382_v13 = vadd.f32 %v2381_v56, %v2225_v7  ;;  %v2079_v56 = vpop.permute.xlu0 %2078 }
 0x459   :  { %2126 = vperm.xlu2 %4964, %v9992_v49   ;;  %v2228_v49 = vmul.f32 %v10035_v6, %v10034_v3 }
 0x45d   :  { %v2043_v38 = vpop.permute.xlu1 %2042 }
 0x45e   :  { %v2226_v43 = vmul.f32 %v10032_v54, %v2043_v38  ;;  %v2227_v19 = vmul.f32 %v10033_v53, %v2043_v38  ;;  %v2238_v38 = vmul.f32 %v7312_v27, %v2079_v56  ;;  %v2109_v33 = vpop.permute.xlu0 %2108 }
 0x460   :  { %v2346_v15 = vadd.f32 %v2345_v30, %v2226_v43  ;;  %v2383_v35 = vadd.f32 %v2382_v13, %v2227_v19  ;;  %v2239_v30 = vmul.f32 %v7315_v16, %v2079_v56 }
 0x462   :  { %v2347_v52 = vadd.f32 %v2346_v15, %v2228_v49  ;;  %v2384_v39 = vadd.f32 %v2383_v35, %v2229_v26 }
 0x463   :  { %v2055_v17 = vpop.permute.xlu2 %2054 }
 0x464   :  { %v2230_v28 = vmul.f32 %v7250_v44, %v2055_v17  ;;  %v2231_v58 = vmul.f32 %v7267_v14, %v2055_v17  ;;  %v2249_v17 = vmul.f32 %v7390_v36, %v2109_v33 }
 0x466   :  { %v2348_v41 = vadd.f32 %v2347_v52, %v2230_v28  ;;  %v2385_v29 = vadd.f32 %v2384_v39, %v2231_v58  ;;  %v2248_v39 = vmul.f32 %v7385_v51, %v2109_v33 }
 0x46d   :  { %v2061_v48 = vpop.permute.xlu1 %2060 }
 0x46e   :  { %v2232_v11 = vmul.f32 %v7279_v0, %v2061_v48  ;;  %v2233_v5 = vmul.f32 %v10037_v37, %v2061_v48 }
 0x470   :  { %v2349_v23 = vadd.f32 %v2348_v41, %v2232_v11  ;;  %v2386_v8 = vadd.f32 %v2385_v29, %v2233_v5 }
 0x473   :  { %v2067_v34 = vpop.permute.xlu2 %2066 }
 0x474   :  { %v2234_v32 = vmul.f32 %v7293_v42, %v2067_v34  ;;  %v2235_v61 = vmul.f32 %v7301_v4, %v2067_v34 }
 0x476   :  { %v2350_v7 = vadd.f32 %v2349_v23, %v2234_v32  ;;  %v2387_v14 = vadd.f32 %v2386_v8, %v2235_v61 }
 0x47d   :  { %v2073_v60 = vpop.permute.xlu1 %2072 }
 0x47e   :  { %v2236_v47 = vmul.f32 %v7305_v63, %v2073_v60  ;;  %v2237_v40 = vmul.f32 %v7307_v20, %v2073_v60 }
 0x480   :  { %v2351_v22 = vadd.f32 %v2350_v7, %v2236_v47  ;;  %v2388_v0 = vadd.f32 %v2387_v14, %v2237_v40  ;;  %v1731_v47 = vld [vmem:[#allocation5 + $0x2] sm:$0x3] }
 0x482   :  { %v2352_v54 = vadd.f32 %v2351_v22, %v2238_v38  ;;  %v2389_v43 = vadd.f32 %v2388_v0, %v2239_v30 }
 0x483   :  { %v2085_v25 = vpop.permute.xlu2 %2084 }
 0x484   :  { %v2240_v42 = vmul.f32 %v7327_v24, %v2085_v25  ;;  %v2241_v4 = vmul.f32 %v7329_v21, %v2085_v25 }
 0x486   :  { %v2353_v19 = vadd.f32 %v2352_v54, %v2240_v42  ;;  %v2390_v15 = vadd.f32 %v2389_v43, %v2241_v4 }
 0x48d   :  { %v2091_v44 = vpop.permute.xlu1 %2090 }
 0x48e   :  { %v2242_v63 = vmul.f32 %v7341_v46, %v2091_v44  ;;  %v2243_v20 = vmul.f32 %v7346_v2, %v2091_v44 }
 0x490   :  { %v2354_v3 = vadd.f32 %v2353_v19, %v2242_v63  ;;  %v2391_v16 = vadd.f32 %v2390_v15, %v2243_v20 }
 0x493   :  { %v2097_v13 = vpop.permute.xlu2 %2096 }
 0x494   :  { %v2244_v35 = vmul.f32 %v7361_v10, %v2097_v13  ;;  %v2245_v27 = vmul.f32 %v7365_v57, %v2097_v13 }
 0x496   :  { %v2355_v6 = vadd.f32 %v2354_v3, %v2244_v35  ;;  %v2392_v49 = vadd.f32 %v2391_v16, %v2245_v27 }
 0x49d   :  { %v2103_v53 = vpop.permute.xlu1 %2102 }
 0x49e   :  { %v2246_v24 = vmul.f32 %v7378_v45, %v2103_v53  ;;  %v2247_v21 = vmul.f32 %v7381_v12, %v2103_v53 }
 0x4a0   :  { %v2356_v46 = vadd.f32 %v2355_v6, %v2246_v24  ;;  %v2393_v52 = vadd.f32 %v2392_v49, %v2247_v21 }
 0x4a2   :  { %v2357_v48 = vadd.f32 %v2356_v46, %v2248_v39  ;;  %v2394_v34 = vadd.f32 %v2393_v52, %v2249_v17 }
 0x4a3   :  { %v2115_v26 = vpop.permute.xlu2 %2114 }
 0x4a4   :  { %v2250_v10 = vmul.f32 %v7398_v31, %v2115_v26  ;;  %v2251_v57 = vmul.f32 %v7401_v9, %v2115_v26 }
 0x4a6   :  { %v2358_v60 = vadd.f32 %v2357_v48, %v2250_v10  ;;  %v2395_v28 = vadd.f32 %v2394_v34, %v2251_v57 }
 0x4ad   :  { %v2121_v2 = vpop.permute.xlu1 %2120 }
 0x4ae   :  { %v2252_v45 = vmul.f32 %v7406_v50, %v2121_v2  ;;  %v2253_v12 = vmul.f32 %v7409_v18, %v2121_v2 }
 0x4b0   :  { %v2359_v11 = vadd.f32 %v2358_v60, %v2252_v45  ;;  %v2396_v37 = vadd.f32 %v2395_v28, %v2253_v12 }
 0x4b3   :  { %v2127_v58 = vpop.permute.xlu2 %2126 }
 0x4b4   :  { %v2254_v5 = vmul.f32 %v7416_v1, %v2127_v58  ;;  %v2255_v51 = vmul.f32 %v7418_v55, %v2127_v58  ;;  %v1733_v1 = vmul.f32 %v7428_v59, %v1731_v47 }
 0x4b6   :  { %v2360_v36 = vadd.f32 %v2359_v11, %v2254_v5  ;;  %v2397_v41 = vadd.f32 %v2396_v37, %v2255_v51 }
 0x4b8   :  { %v2361_v31 = vrot.slane %v2360_v36, 4  ;;  %v2398_v29 = vrot.slane %v2397_v41, 4 }
 0x4ba   :  { %v2362_v9 = vadd.f32 %v2361_v31, %v2360_v36  ;;  %v2399_v32 = vadd.f32 %v2398_v29, %v2397_v41 }
 0x4bc   :  { %v2363_v61 = vrot.slane %v2362_v9, 2  ;;  %v2400_v25 = vrot.slane %v2399_v32, 2 }
 0x4be   :  { %v2364_v50 = vadd.f32 %v2363_v61, %v2362_v9  ;;  %v2401_v23 = vadd.f32 %v2400_v25, %v2399_v32 }
 0x4c0   :  { %v2365_v18 = vrot.slane %v2364_v50, 1  ;;  %v2402_v8 = vrot.slane %v2401_v23, 1 }
 0x4c2   :  { %v2403_v40 = vadd.f32 %v2402_v8, %v2401_v23  ;;  %v2366_v44 = vadd.f32 %v2365_v18, %v2364_v50 }
 0x4c4   :  { %v2409_v7 = vrot.slane %v2403_v40, 7 }
 0x4c6   :  { %v2411_v55 = vsel %vm563_vm2, %v2366_v44, %v2409_v7 }
 0x4c7   :  { %v2415_v14 = vadd.f32 %v2411_v55, %v1733_v1 }
 0x4c9   :  { %2417 = vst.msk [vmem:[#allocation5 + $0x2] sm:$0x3] %vm5709_vm0, %v2415_v14 }
 0x4ca PF:  { %p4837_p1 = scmp.ne.s32.totalorder %s5706_s1, 0 }
 0x4cc   :  { %2423 = sbr.rel (%p4837_p1) target bundleno = 2197 (0x895), region = 37 }
 0x4d1   :  { %v10038_v22 = vlaneseq  ;;  %v2449_v56 = vld [vmem:[#allocation2 + $0x4] sm:$0xf]  ;;  %v2454_v62 = vld [vmem:[#allocation2 + $0x8] sm:$0xf]  ;;  %s4842_s7 = sshll.u32 %s5706_s1, 2  ;;  %vm2438_vm9 = vcmask 1041409  }
 0x4d2   :  { %2456 = vst [vmem:[#allocation1] ss:$4 sm:$0xff] %v2449_v56  ;;  %s2426_s8 = scalar_lea.vmem [#allocation2], %s4842_s7  ;;  %vm2440_vm10 = vcmask 1043459   ;;  %vm2442_vm11 = vcmask 1042433   ;;  %vm2432_vm12 = vcmask 1040384  }
 0x4d3   :  { %v7530_v0 = vshrl.u32 %v10038_v22, 7  ;;  %v2427_v2 = vld [vmem:[%s2426_s8] sm:$0xf]  ;;  %v7695_v5 = vand.u32 127, %v10038_v22  ;;  %vm2434_vm13 = vcmask 1042434  }
 0x4d4   :  { %v2429_v17 = vrot.slane %v2427_v2, 1  ;;  %v2430_v10 = vrot.slane %v2427_v2, 2  ;;  %v2431_v57 = vrot.slane %v2427_v2, 3 }
 0x4d5   :  { %10039 = vst [vmem:[#allocation134_spill] sm:$0xff] %v7530_v0  ;;  %v7533_v38 = vadd.s32 64, %v7530_v0  ;;  %v7536_v59 = vadd.s32 32, %v7530_v0  ;;  %v7539_v30 = vadd.s32 16, %v7530_v0  ;;  %v7552_v54 = vadd.s32 104, %v7530_v0 }
 0x4d6   :  { %v7555_v43 = vadd.s32 40, %v7530_v0  ;;  %v7558_v63 = vadd.s32 24, %v7530_v0  ;;  %v7567_v20 = vadd.s32 56, %v7530_v0  ;;  %v7570_v53 = vadd.s32 48, %v7530_v0  ;;  %10051 = vst [vmem:[#allocation146_spill] sm:$0xff] %v7695_v5 }
 0x4d7   :  { %10040 = vst [vmem:[#allocation135_spill] sm:$0xff] %v7533_v38  ;;  %5232 = vset.pattern.permute.xlu0 %v7533_v38  ;;  %5228 = vset.pattern.permute.xlu2 %v7536_v59  ;;  %v7582_v15 = vadd.s32 80, %v7530_v0  ;;  %v7585_v35 = vadd.s32 72, %v7530_v0  ;;  %v7594_v27 = vadd.s32 96, %v7530_v0  ;;  %v7597_v3 = vadd.s32 88, %v7530_v0 }
 0x4d8   :  { %10041 = vst [vmem:[#allocation136_spill] sm:$0xff] %v7539_v30  ;;  %5226 = vset.pattern.permute.xlu1 %v7539_v30  ;;  %v7606_v16 = vadd.s32 8, %v7530_v0  ;;  %v7609_v24 = vadd.s32 120, %v7530_v0  ;;  %v7612_v21 = vadd.s32 112, %v7530_v0  ;;  %v2439_v48 = vsel %vm2438_vm9, %v2427_v2, %v2429_v17 }
 0x4d9   :  { %v2457_v42 = vld.sshfl [vmem:[#allocation1] sm:$0xff pattern:$0x73625140]  ;;  %v7544_v4 = vld.sshfl [vmem:[#allocation1 + $0x8] sm:$0xff pattern:$0x73625140]  ;;  %v2441_v34 = vsel %vm2440_vm10, %v2430_v10, %v2431_v57  ;;  %v2433_v9 = vsel %vm2432_vm12, %v2427_v2, %v2429_v17  ;;  %v2435_v32 = vsel %vm2434_vm13, %v2430_v10, %v2431_v57  ;;  %vm3029_vm15 = vcmp.ge.s32.totalorder %v7695_v5, %v7536_v59 }
 0x4da   :  { %v7546_v13 = vperm.slane %v2457_v42, 0  ;;  %4078 = vst [vmem:[#allocation1] ss:$4 sm:$0xff] %v2454_v62  ;;  %v7576_v19 = vperm.slane %v7544_v4, 0  ;;  %v7620_v6 = vperm.slane %v2457_v42, 1  ;;  %v7644_v49 = vperm.slane %v7544_v4, 1 }
 0x4db   :  { %10042 = vst [vmem:[#allocation137_spill] sm:$0xff] %v7552_v54  ;;  %v7677_v45 = vsel %vm2442_vm11, %v2439_v48, %v2441_v34  ;;  %vm3023_vm14 = vcmp.ge.s32.totalorder %v7695_v5, %v7606_v16  ;;  %v2437_v25 = vsel %vm523_vm1, %v2433_v9, %v2435_v32  ;;  %vm3031_vm2 = vcmp.ge.s32.totalorder %v7695_v5, %v7555_v43 }
 0x4dc   :  { %10043 = vst [vmem:[#allocation138_spill] sm:$0xff] %v7555_v43  ;;  %v9527_v60 = vrot.slane %v7677_v45, 1  ;;  %v7718_v23 = vperm.slane %v2437_v25, 0  ;;  %v7720_v18 = vperm.slane %v2437_v25, 1  ;;  %vm3033_vm1 = vcmp.ge.s32.totalorder %v7695_v5, %v7570_v53 }
 0x4dd   :  { %10044 = vst [vmem:[#allocation139_spill] sm:$0xff] %v7558_v63  ;;  %vm3035_vm3 = vcmp.ge.s32.totalorder %v7695_v5, %v7567_v20  ;;  %vm3039_vm4 = vcmp.ge.s32.totalorder %v7695_v5, %v7585_v35  ;;  %vm3041_vm5 = vcmp.ge.s32.totalorder %v7695_v5, %v7582_v15  ;;  %vm3037_vm6 = vcmp.ge.s32.totalorder %v7695_v5, %v7533_v38 }
 0x4de   :  { %10045 = vst [vmem:[#allocation140_spill] sm:$0xff] %v7567_v20  ;;  %v7687_v11 = vperm.slane %v9527_v60, 0  ;;  %vm3043_vm7 = vcmp.ge.s32.totalorder %v7695_v5, %v7597_v3  ;;  %vm3045_vm8 = vcmp.ge.s32.totalorder %v7695_v5, %v7594_v27  ;;  %vm9558_vm9 = vcmp.ge.s32.totalorder %v7695_v5, %v7552_v54 }
 0x4df   :  { %2514 = vperm.xlu0 %5232, %v7546_v13   ;;  %2490 = vperm.xlu2 %5228, %v7546_v13   ;;  %10046 = vst [vmem:[#allocation141_spill] sm:$0xff] %v7582_v15  ;;  %vm9552_vm10 = vcmp.ge.s32.totalorder %v7695_v5, %v7612_v21  ;;  %vm9549_vm11 = vcmp.ge.s32.totalorder %v7695_v5, %v7609_v24 }
 0x4e0   :  { %2478 = vperm.xlu1 %5226, %v7546_v13   ;;  %10047 = vst [vmem:[#allocation142_spill] sm:$0xff] %v7609_v24  ;;  %vm3021_vm13 = vcmp.ge.s32.totalorder %v7695_v5, %v7530_v0 }
 0x4e1   :  { %10048 = vst [vmem:[#allocation143_spill] sm:$0xff] %v7612_v21  ;;  %v7692_v37 = vld.sshfl [vmem:[#allocation1] sm:$0xff pattern:$0x73625140] }
 0x4e2   :  { %10049 = vst [vmem:[#allocation144_spill] sm:$0xff] %v7677_v45  ;;  %v7704_v31 = vperm.slane %v7692_v37, 0 }
 0x4e3   :  { %10050 = vst [vmem:[#allocation145_spill] sm:$0xff] %v7687_v11 }
 0x4e4   :  { %10053 = vst [vmem:[#allocation148_spill] sm:$0xff] %v7704_v31 }
 0x4e7   :  { %5237 = vset.pattern.permute.xlu0 %v7552_v54  ;;  %5229 = vset.pattern.permute.xlu2 %v7555_v43 }
 0x4e8   :  { %5227 = vset.pattern.permute.xlu1 %v7558_v63 }
 0x4ef   :  { %2544 = vperm.xlu0 %5237, %v7546_v13   ;;  %2496 = vperm.xlu2 %5229, %v7546_v13  }
 0x4f0   :  { %2484 = vperm.xlu1 %5227, %v7546_v13  }
 0x4f7   :  { %5242 = vset.pattern.permute.xlu0 %v7539_v30  ;;  %5231 = vset.pattern.permute.xlu2 %v7567_v20 }
 0x4f8   :  { %5230 = vset.pattern.permute.xlu1 %v7570_v53 }
 0x4ff   :  { %2575 = vperm.xlu0 %5242, %v7576_v19   ;;  %2508 = vperm.xlu2 %5231, %v7546_v13  }
 0x500   :  { %2502 = vperm.xlu1 %5230, %v7546_v13  }
 0x507   :  { %5247 = vset.pattern.permute.xlu0 %v7567_v20  ;;  %5234 = vset.pattern.permute.xlu2 %v7582_v15 }
 0x508   :  { %5233 = vset.pattern.permute.xlu1 %v7585_v35 }
 0x50f   :  { %2605 = vperm.xlu0 %5247, %v7576_v19   ;;  %2526 = vperm.xlu2 %5234, %v7546_v13  }
 0x510   :  { %2520 = vperm.xlu1 %5233, %v7546_v13  }
 0x517   :  { %5252 = vset.pattern.permute.xlu0 %v7594_v27  ;;  %5236 = vset.pattern.permute.xlu2 %v7594_v27 }
 0x518   :  { %5235 = vset.pattern.permute.xlu1 %v7597_v3 }
 0x51f   :  { %2635 = vperm.xlu0 %5252, %v7576_v19   ;;  %2538 = vperm.xlu2 %5236, %v7546_v13  }
 0x520   :  { %2532 = vperm.xlu1 %5235, %v7546_v13  }
 0x527   :  { %5253 = vset.pattern.permute.xlu0 %v7606_v16  ;;  %5239 = vset.pattern.permute.xlu2 %v7609_v24 }
 0x528   :  { %5238 = vset.pattern.permute.xlu1 %v7612_v21 }
 0x52f   :  { %2472 = vperm.xlu0 %5253, %v7546_v13   ;;  %2556 = vperm.xlu2 %5239, %v7546_v13  }
 0x530   :  { %2550 = vperm.xlu1 %5238, %v7546_v13  }
 0x537   :  { %2666 = vperm.xlu0 %5253, %v7620_v6   ;;  %5241 = vset.pattern.permute.xlu2 %v7606_v16 }
 0x538   :  { %5240 = vset.pattern.permute.xlu1 %v7530_v0 }
 0x539   :  { %v2491_v58 = vpop.permute.xlu2 %2490 }
 0x53a   :  { %v2865_v8 = vmul.f32 %v7718_v23, %v2491_v58  ;;  %v7735_v7 = vmul.f32 %v7720_v18, %v2491_v58 }
 0x53c   :  { %v7744_v55 = vsel %vm3029_vm15, %v2865_v8, -1e+09 }
 0x53f   :  { %5262 = vset.pattern.permute.xlu0 %v7570_v53  ;;  %2569 = vperm.xlu2 %5241, %v7576_v19  }
 0x540   :  { %2563 = vperm.xlu1 %5240, %v7576_v19  }
 0x547   :  { %2696 = vperm.xlu0 %5262, %v7620_v6   ;;  %5244 = vset.pattern.permute.xlu2 %v7536_v59 }
 0x548   :  { %5243 = vset.pattern.permute.xlu1 %v7558_v63 }
 0x549   :  { %v2497_v61 = vpop.permute.xlu2 %2496 }
 0x54a   :  { %v2867_v47 = vmul.f32 %v7718_v23, %v2497_v61  ;;  %v7769_v2 = vmul.f32 %v7720_v18, %v2497_v61 }
 0x54c   :  { %v7753_v22 = vsel %vm3031_vm2, %v2867_v47, -1e+09 }
 0x54f   :  { %5267 = vset.pattern.permute.xlu0 %v7597_v3  ;;  %2587 = vperm.xlu2 %5244, %v7576_v19  }
 0x550   :  { %2581 = vperm.xlu1 %5243, %v7576_v19  }
 0x551   :  { %v7649_v33 = vpop.permute.xlu0 %2514 }
 0x552   :  { %v7683_v28 = vpop.permute.xlu1 %2478 }
 0x553   :  { %v7732_v44 = vmul.f32 %v7720_v18, %v7683_v28 }
 0x555   :  { %v3379_v62 = vmax.f32 %v7735_v7, %v7732_v44 }
 0x557   :  { %2726 = vperm.xlu0 %5267, %v7620_v6   ;;  %5246 = vset.pattern.permute.xlu2 %v7570_v53 }
 0x558   :  { %5245 = vset.pattern.permute.xlu1 %v7555_v43 }
 0x559   :  { %v2509_v40 = vpop.permute.xlu2 %2508 }
 0x55a   :  { %v2871_v4 = vmul.f32 %v7718_v23, %v2509_v40 }
 0x55c   :  { %v7785_v58 = vsel %vm3035_vm3, %v2871_v4, -1e+09  ;;  %v2873_v4 = vmul.f32 %v7718_v23, %v7649_v33 }
 0x55f   :  { %5268 = vset.pattern.permute.xlu0 %v7530_v0  ;;  %2599 = vperm.xlu2 %5246, %v7576_v19  }
 0x560   :  { %2593 = vperm.xlu1 %5245, %v7576_v19  }
 0x561   :  { %v7654_v26 = vpop.permute.xlu0 %2544 }
 0x562   :  { %v7701_v41 = vpop.permute.xlu1 %2484 }
 0x563   :  { %v7748_v14 = vmul.f32 %v7720_v18, %v7701_v41 }
 0x567   :  { %2466 = vperm.xlu0 %5268, %v7546_v13   ;;  %5249 = vset.pattern.permute.xlu2 %v7585_v35  ;;  %v3342_v13 = vmax.f32 %v7753_v22, %v7744_v55 }
 0x568   :  { %5248 = vset.pattern.permute.xlu1 %v7533_v38 }
 0x569   :  { %v2527_v57 = vpop.permute.xlu2 %2526 }
 0x56a   :  { %v2877_v32 = vmul.f32 %v7718_v23, %v2527_v57 }
 0x56f   :  { %2757 = vperm.xlu0 %5268, %v7644_v49   ;;  %2617 = vperm.xlu2 %5249, %v7576_v19  }
 0x570   :  { %2611 = vperm.xlu1 %5248, %v7576_v19  }
 0x571   :  { %v7659_v46 = vpop.permute.xlu0 %2575 }
 0x572   :  { %v2503_v50 = vpop.permute.xlu1 %2502 }
 0x573   :  { %v2869_v1 = vmul.f32 %v7718_v23, %v2503_v50  ;;  %v7780_v34 = vmul.f32 %v7720_v18, %v2503_v50  ;;  %v7800_v50 = vmul.f32 %v7720_v18, %v2509_v40 }
 0x575   :  { %v7760_v42 = vsel %vm3033_vm1, %v2869_v1, -1e+09 }
 0x576   :  { %v3343_v10 = vmax.f32 %v3342_v13, %v7760_v42 }
 0x577   :  { %5277 = vset.pattern.permute.xlu0 %v7555_v43  ;;  %5251 = vset.pattern.permute.xlu2 %v7597_v3 }
 0x578   :  { %5250 = vset.pattern.permute.xlu1 %v7582_v15  ;;  %v3344_v61 = vmax.f32 %v3343_v10, %v7785_v58 }
 0x57f   :  { %2787 = vperm.xlu0 %5277, %v7644_v49   ;;  %2629 = vperm.xlu2 %5251, %v7576_v19  }
 0x580   :  { %2623 = vperm.xlu1 %5250, %v7576_v19  }
 0x581   :  { %v7666_v52 = vpop.permute.xlu0 %2605 }
 0x582   :  { %v2521_v56 = vpop.permute.xlu1 %2520 }
 0x583   :  { %v2875_v17 = vmul.f32 %v7718_v23, %v2521_v56  ;;  %v7804_v1 = vmul.f32 %v7720_v18, %v2521_v56 }
 0x585   :  { %v7792_v9 = vsel %vm3039_vm4, %v2875_v17, -1e+09 }
 0x586   :  { %v3345_v8 = vmax.f32 %v3344_v61, %v7792_v9 }
 0x587   :  { %5282 = vset.pattern.permute.xlu0 %v7582_v15  ;;  %5255 = vset.pattern.permute.xlu2 %v7612_v21 }
 0x588   :  { %5254 = vset.pattern.permute.xlu1 %v7552_v54 }
 0x58f   :  { %2817 = vperm.xlu0 %5282, %v7644_v49   ;;  %2647 = vperm.xlu2 %5255, %v7576_v19  }
 0x590   :  { %2641 = vperm.xlu1 %5254, %v7576_v19  }
 0x591   :  { %v7673_v39 = vpop.permute.xlu0 %2635 }
 0x592   :  { %v2533_v47 = vpop.permute.xlu1 %2532 }
 0x593   :  { %v2879_v56 = vmul.f32 %v7718_v23, %v2533_v47 }
 0x597   :  { %5287 = vset.pattern.permute.xlu0 %v7609_v24  ;;  %5257 = vset.pattern.permute.xlu2 %v7530_v0 }
 0x598   :  { %5256 = vset.pattern.permute.xlu1 %v7609_v24 }
 0x59f   :  { %2847 = vperm.xlu0 %5287, %v7644_v49   ;;  %2660 = vperm.xlu2 %5257, %v7620_v6  }
 0x5a0   :  { %2653 = vperm.xlu1 %5256, %v7576_v19   ;;  %v3380_v19 = vmax.f32 %v3379_v62, %v7748_v14  ;;  %v7809_v62 = vsel %vm3041_vm5, %v2877_v32, -1e+09  ;;  %v7832_v32 = vsel %vm3037_vm6, %v2873_v4, -1e+09  ;;  %v7847_v4 = vmul.f32 %v7720_v18, %v7649_v33 }
 0x5a1   :  { %v7680_v12 = vpop.permute.xlu0 %2472  ;;  %v3346_v13 = vmax.f32 %v3345_v8, %v7809_v62 }
 0x5a7   :  { %5292 = vset.pattern.permute.xlu0 %v7536_v59  ;;  %5259 = vset.pattern.permute.xlu2 %v7558_v63 }
 0x5a8   :  { %5258 = vset.pattern.permute.xlu1 %v7539_v30 }
 0x5a9   :  { %v7697_v51 = vpop.permute.xlu0 %2666 }
 0x5aa   :  { %10052 = vst [vmem:[#allocation147_spill] sm:$0xff] %v7697_v51  ;;  %v2923_v36 = vmul.f32 %v7687_v11, %v7697_v51  ;;  %v3347_v51 = vmax.f32 %v3346_v13, %v7832_v32 }
 0x5ac   :  { %v7711_v29 = vsel %vm3023_vm14, %v2923_v36, -1e+09  ;;  %v3381_v36 = vmax.f32 %v3380_v19, %v7769_v2  ;;  %v2539_v19 = vpop.permute.xlu2 %2538 }
 0x5ad   :  { %10054 = vst [vmem:[#allocation149_spill] sm:$0xff] %v7711_v29  ;;  %v2881_v8 = vmul.f32 %v7718_v23, %v2539_v19 }
 0x5ae   :  { %v3382_v25 = vmax.f32 %v3381_v36, %v7780_v34  ;;  %v7827_v36 = vmul.f32 %v7720_v18, %v2527_v57 }
 0x5af   :  { %4112 = vperm.xlu0 %5292, %v7704_v31   ;;  %2678 = vperm.xlu2 %5259, %v7620_v6   ;;  %v7858_v13 = vsel %vm3045_vm8, %v2881_v8, -1e+09 }
 0x5b0   :  { %2672 = vperm.xlu1 %5258, %v7620_v6   ;;  %v3383_v40 = vmax.f32 %v3382_v25, %v7800_v50  ;;  %v7836_v25 = vsel %vm3043_vm7, %v2879_v56, -1e+09  ;;  %v7853_v56 = vmul.f32 %v7720_v18, %v2533_v47 }
 0x5b2   :  { %v3384_v10 = vmax.f32 %v3383_v40, %v7804_v1  ;;  %v3348_v40 = vmax.f32 %v3347_v51, %v7836_v25 }
 0x5b4   :  { %v3385_v57 = vmax.f32 %v3384_v10, %v7827_v36  ;;  %v2883_v10 = vmul.f32 %v7718_v23, %v7654_v26  ;;  %v3349_v47 = vmax.f32 %v3348_v40, %v7858_v13 }
 0x5b6   :  { %v3386_v33 = vmax.f32 %v3385_v57, %v7847_v4  ;;  %v7877_v45 = vsel %vm9558_vm9, %v2883_v10, -1e+09  ;;  %v7880_v57 = vadd.s32 144, %v7530_v0 }
 0x5b7   :  { %5297 = vset.pattern.permute.xlu0 %v7585_v35  ;;  %5261 = vset.pattern.permute.xlu2 %v7555_v43  ;;  %10059 = vst [vmem:[#allocation154_spill] sm:$0xff] %v7877_v45  ;;  %v3350_v43 = vmax.f32 %v3349_v47, %v7877_v45  ;;  %v2894_v47 = vmul.f32 %v7720_v18, %v7659_v46 }
 0x5b8   :  { %5260 = vset.pattern.permute.xlu1 %v7536_v59  ;;  %v3387_v8 = vmax.f32 %v3386_v33, %v7853_v56  ;;  %10060 = vst [vmem:[#allocation155_spill] sm:$0xff] %v7880_v57 }
 0x5b9   :  { %v7777_v48 = vpop.permute.xlu0 %2696 }
 0x5ba   :  { %10055 = vst [vmem:[#allocation150_spill] sm:$0xff] %v7777_v48  ;;  %v7904_v48 = vld.sshfl [vmem:[#allocation1 + $0x8] sm:$0xff pattern:$0x73625140] }
 0x5bb   :  { %v7928_v46 = vperm.slane %v7904_v48, 0 }
 0x5bd   :  { %10065 = vst [vmem:[#allocation160_spill] sm:$0xff] %v7928_v46 }
 0x5bf   :  { %4142 = vperm.xlu0 %5297, %v7704_v31   ;;  %2690 = vperm.xlu2 %5261, %v7620_v6  }
 0x5c0   :  { %2684 = vperm.xlu1 %5260, %v7620_v6  }
 0x5c7   :  { %5302 = vset.pattern.permute.xlu0 %v7612_v21  ;;  %5264 = vset.pattern.permute.xlu2 %v7533_v38 }
 0x5c8   :  { %5263 = vset.pattern.permute.xlu1 %v7567_v20 }
 0x5c9   :  { %v7823_v17 = vpop.permute.xlu0 %2726 }
 0x5ca   :  { %10056 = vst [vmem:[#allocation151_spill] sm:$0xff] %v7823_v17  ;;  %v2943_v61 = vmul.f32 %v7687_v11, %v7823_v17  ;;  %v2551_v17 = vpop.permute.xlu1 %2550 }
 0x5cb   :  { %v2885_v51 = vmul.f32 %v7718_v23, %v2551_v17 }
 0x5cc   :  { %v7839_v60 = vsel %vm3043_vm7, %v2943_v61, -1e+09  ;;  %v2557_v61 = vpop.permute.xlu2 %2556 }
 0x5cd   :  { %10057 = vst [vmem:[#allocation152_spill] sm:$0xff] %v7839_v60  ;;  %v7872_v60 = vmul.f32 %v7720_v18, %v2539_v19  ;;  %v7888_v40 = vsel %vm9552_vm10, %v2885_v51, -1e+09  ;;  %v2887_v33 = vmul.f32 %v7718_v23, %v2557_v61  ;;  %v2859_v19 = vmul.f32 %v7718_v23, %v7680_v12 }
 0x5ce   :  { %10062 = vst [vmem:[#allocation157_spill] sm:$0xff] %v7888_v40  ;;  %v7901_v51 = vmul.f32 %v7720_v18, %v7654_v26  ;;  %v3351_v29 = vmax.f32 %v3350_v43, %v7888_v40 }
 0x5cf   :  { %4172 = vperm.xlu0 %5302, %v7704_v31   ;;  %2708 = vperm.xlu2 %5264, %v7620_v6   ;;  %10058 = vst [vmem:[#allocation153_spill] sm:$0xff] %v7872_v60  ;;  %v7883_v31 = vadd.s32 128, %v7695_v5  ;;  %v3388_v10 = vmax.f32 %v3387_v8, %v7872_v60  ;;  %v7918_v26 = vsel %vm9549_vm11, %v2887_v33, -1e+09  ;;  %v7923_v8 = vsel %vm3023_vm14, %v2859_v19, -1e+09 }
 0x5d0   :  { %2702 = vperm.xlu1 %5263, %v7620_v6   ;;  %10063 = vst [vmem:[#allocation158_spill] sm:$0xff] %v7901_v51  ;;  %v3352_v45 = vmax.f32 %v3351_v29, %v7918_v26  ;;  %vm3025_vm14 = vcmp.ge.s32.totalorder %v7695_v5, %v7539_v30 }
 0x5d1   :  { %10061 = vst [vmem:[#allocation156_spill] sm:$0xff] %v7883_v31  ;;  %vm9546_vm7 = vcmp.ge.s32.totalorder %v7883_v31, %v7880_v57  ;;  %v3389_v40 = vmax.f32 %v3388_v10, %v7901_v51  ;;  %v7951_v10 = vmul.f32 %v7720_v18, %v2551_v17  ;;  %v2904_v57 = vmul.f32 %v7720_v18, %v7666_v52 }
 0x5d2   :  { %10064 = vst [vmem:[#allocation159_spill] sm:$0xff] %v7918_v26  ;;  %v7941_v19 = vsel %vm9546_vm7, %v2894_v47, -1e+09  ;;  %vm3027_vm7 = vcmp.ge.s32.totalorder %v7695_v5, %v7558_v63  ;;  %v7959_v47 = vadd.s32 184, %v7530_v0  ;;  %v2914_v52 = vmul.f32 %v7720_v18, %v7673_v39 }
 0x5d3   :  { %10066 = vst [vmem:[#allocation161_spill] sm:$0xff] %v7941_v19  ;;  %v3390_v29 = vmax.f32 %v3389_v40, %v7941_v19  ;;  %v8006_v39 = vadd.s32 136, %v7530_v0  ;;  %v8014_v26 = vadd.s32 152, %v7530_v0 }
 0x5d4   :  { %10067 = vst [vmem:[#allocation162_spill] sm:$0xff] %v7959_v47  ;;  %v2570_v17 = vpop.permute.xlu2 %2569  ;;  %vm9554_vm11 = vcmp.ge.s32.totalorder %v7883_v31, %v7959_v47 }
 0x5d5   :  { %10072 = vst [vmem:[#allocation167_spill] sm:$0xff] %v8006_v39  ;;  %vm9566_vm9 = vcmp.ge.s32.totalorder %v7883_v31, %v8006_v39 }
 0x5d6   :  { %10074 = vst [vmem:[#allocation169_spill] sm:$0xff] %v8014_v26 }
 0x5d7   :  { %5307 = vset.pattern.permute.xlu0 %v7558_v63  ;;  %5266 = vset.pattern.permute.xlu2 %v7582_v15  ;;  %v2861_v15 = vmul.f32 %v7718_v23, %v7683_v28  ;;  %v2863_v28 = vmul.f32 %v7718_v23, %v7701_v41 }
 0x5d8   :  { %5265 = vset.pattern.permute.xlu1 %v7585_v35 }
 0x5d9   :  { %v7911_v11 = vpop.permute.xlu0 %2466  ;;  %v7965_v41 = vsel %vm3025_vm14, %v2861_v15, -1e+09  ;;  %v7975_v40 = vsel %vm3027_vm7, %v2863_v28, -1e+09  ;;  %v7983_v15 = vadd.s32 224, %v7530_v0 }
 0x5da   :  { %v2857_v43 = vmul.f32 %v7718_v23, %v7911_v11  ;;  %v7970_v23 = vmul.f32 %v7720_v18, %v2557_v61  ;;  %v7992_v28 = vsel %vm9554_vm11, %v2904_v57, -1e+09 }
 0x5db   :  { %10069 = vst [vmem:[#allocation164_spill] sm:$0xff] %v7983_v15  ;;  %vm9561_vm10 = vcmp.ge.s32.totalorder %v7883_v31, %v7983_v15 }
 0x5dc   :  { %v7936_v33 = vsel %vm3021_vm13, %v2857_v43, -1e+09  ;;  %v2564_v43 = vpop.permute.xlu1 %2563  ;;  %10068 = vst [vmem:[#allocation163_spill] sm:$0xff] %v7970_v23  ;;  %v2588_v57 = vpop.permute.xlu2 %2587 }
 0x5dd   :  { %v3341_v60 = vmax.f32 %v7936_v33, %v7923_v8  ;;  %10071 = vst [vmem:[#allocation166_spill] sm:$0xff] %v7992_v28 }
 0x5df   :  { %v3353_v51 = vmax.f32 %v3352_v45, %v3341_v60  ;;  %4203 = vperm.xlu0 %5307, %v7928_v46   ;;  %2720 = vperm.xlu2 %5266, %v7620_v6   ;;  %v3391_v60 = vmax.f32 %v3390_v29, %v7951_v10  ;;  %v7987_v29 = vadd.s32 128, %v7530_v0 }
 0x5e0   :  { %2714 = vperm.xlu1 %5265, %v7620_v6  }
 0x5e1   :  { %v3354_v45 = vmax.f32 %v3353_v51, %v7965_v41  ;;  %v3392_v61 = vmax.f32 %v3391_v60, %v7970_v23  ;;  %10070 = vst [vmem:[#allocation165_spill] sm:$0xff] %v7987_v29  ;;  %vm9564_vm11 = vcmp.ge.s32.totalorder %v7883_v31, %v7987_v29 }
 0x5e3   :  { %v3355_v19 = vmax.f32 %v3354_v45, %v7975_v40  ;;  %v3393_v47 = vmax.f32 %v3392_v61, %v7992_v28  ;;  %v2892_v61 = vmul.f32 %v7720_v18, %v2570_v17  ;;  %v8041_v17 = vadd.s32 168, %v7530_v0 }
 0x5e4   :  { %v2582_v5 = vpop.permute.xlu1 %2581 }
 0x5e5   :  { %v3356_v51 = vmax.f32 %v3355_v19, -1e+09  ;;  %v2890_v19 = vmul.f32 %v7720_v18, %v2564_v43  ;;  %10077 = vst [vmem:[#allocation172_spill] sm:$0xff] %v8041_v17 }
 0x5e7   :  { %5312 = vset.pattern.permute.xlu0 %v7533_v38  ;;  %5270 = vset.pattern.permute.xlu2 %v7552_v54  ;;  %v3357_v45 = vmax.f32 %v3356_v51, -1e+09  ;;  %v8011_v51 = vsel %vm9561_vm10, %v2914_v52, -1e+09  ;;  %v8019_v43 = vsel %vm9564_vm11, %v2890_v19, -1e+09  ;;  %v2896_v52 = vmul.f32 %v7720_v18, %v2582_v5  ;;  %v2600_v19 = vpop.permute.xlu2 %2599 }
 0x5e8   :  { %5269 = vset.pattern.permute.xlu1 %v7594_v27  ;;  %10073 = vst [vmem:[#allocation168_spill] sm:$0xff] %v8011_v51  ;;  %v3394_v28 = vmax.f32 %v3393_v47, %v8011_v51  ;;  %vm9580_vm10 = vcmp.ge.s32.totalorder %v7883_v31, %v8014_v26  ;;  %v8038_v47 = vsel %vm9566_vm9, %v2892_v61, -1e+09  ;;  %vm9571_vm9 = vcmp.ge.s32.totalorder %v7883_v31, %v8041_v17 }
 0x5e9   :  { %v3358_v60 = vmax.f32 %v3357_v45, -1e+09  ;;  %10075 = vst [vmem:[#allocation170_spill] sm:$0xff] %v8019_v43  ;;  %v8057_v26 = vadd.s32 176, %v7530_v0 }
 0x5ea   :  { %v3395_v29 = vmax.f32 %v3394_v28, %v8019_v43  ;;  %v8046_v28 = vsel %vm9580_vm10, %v2896_v52, -1e+09 }
 0x5eb   :  { %v3359_v23 = vmax.f32 %v3358_v60, -1e+09  ;;  %10078 = vst [vmem:[#allocation173_spill] sm:$0xff] %v8057_v26 }
 0x5ec   :  { %v2594_v15 = vpop.permute.xlu1 %2593  ;;  %v3396_v43 = vmax.f32 %v3395_v29, %v8038_v47  ;;  %v8069_v29 = vmul.f32 %v7720_v18, %v7680_v12  ;;  %v8085_v12 = vadd.s32 192, %v7530_v0 }
 0x5ed   :  { %v3360_v45 = vmax.f32 %v3359_v23, -1e+09  ;;  %v8032_v23 = vadd.s32 160, %v7530_v0  ;;  %v2900_v61 = vmul.f32 %v7720_v18, %v2594_v15 }
 0x5ee   :  { %v3397_v39 = vmax.f32 %v3396_v43, %v8046_v28  ;;  %v2902_v43 = vmul.f32 %v7720_v18, %v2600_v19  ;;  %10080 = vst [vmem:[#allocation175_spill] sm:$0xff] %v8085_v12 }
 0x5ef   :  { %4233 = vperm.xlu0 %5312, %v7928_v46   ;;  %2738 = vperm.xlu2 %5270, %v7620_v6   ;;  %v3361_v60 = vmax.f32 %v3360_v45, -1e+09  ;;  %10076 = vst [vmem:[#allocation171_spill] sm:$0xff] %v8032_v23  ;;  %v2898_v45 = vmul.f32 %v7720_v18, %v2588_v57  ;;  %vm9568_vm11 = vcmp.ge.s32.totalorder %v7883_v31, %v8032_v23  ;;  %v2618_v23 = vpop.permute.xlu2 %2617 }
 0x5f0   :  { %2732 = vperm.xlu1 %5269, %v7620_v6  }
 0x5f1   :  { %v3362_v5 = vmax.f32 %v3361_v60, -1e+09  ;;  %v8062_v57 = vsel %vm9568_vm11, %v2898_v45, -1e+09  ;;  %vm9576_vm11 = vcmp.ge.s32.totalorder %v7883_v31, %v8057_v26  ;;  %v2908_v26 = vmul.f32 %v7720_v18, %v2618_v23 }
 0x5f2   :  { %v3398_v45 = vmax.f32 %v3397_v39, %v8062_v57  ;;  %v8091_v19 = vsel %vm9576_vm11, %v2902_v43, -1e+09  ;;  %v8105_v43 = vadd.s32 208, %v7530_v0 }
 0x5f3   :  { %v3363_v51 = vmax.f32 %v3362_v5, -1e+09  ;;  %10081 = vst [vmem:[#allocation176_spill] sm:$0xff] %v8091_v19 }
 0x5f4   :  { %v2612_v52 = vpop.permute.xlu1 %2611  ;;  %10083 = vst [vmem:[#allocation178_spill] sm:$0xff] %v8105_v43  ;;  %vm9583_vm10 = vcmp.ge.s32.totalorder %v7883_v31, %v8105_v43 }
 0x5f5   :  { %v3364_v60 = vmax.f32 %v3363_v51, -1e+09  ;;  %v8074_v51 = vsel %vm9571_vm9, %v2900_v61, -1e+09  ;;  %v2906_v39 = vmul.f32 %v7720_v18, %v2612_v52  ;;  %vm9585_vm9 = vcmp.ge.s32.totalorder %v7883_v31, %v8085_v12 }
 0x5f6   :  { %10079 = vst [vmem:[#allocation174_spill] sm:$0xff] %v8074_v51  ;;  %v3399_v17 = vmax.f32 %v3398_v45, %v8074_v51  ;;  %v8165_v12 = vadd.s32 248, %v7530_v0 }
 0x5f7   :  { %5317 = vset.pattern.permute.xlu0 %v7552_v54  ;;  %5272 = vset.pattern.permute.xlu2 %v7609_v24  ;;  %v3365_v15 = vmax.f32 %v3364_v60, -1e+09  ;;  %v8082_v60 = vmul.f32 %v7720_v18, %v7911_v11  ;;  %v8099_v11 = vadd.s32 200, %v7530_v0  ;;  %v8111_v45 = vsel %vm9585_vm9, %v2906_v39, -1e+09 }
 0x5f8   :  { %5271 = vset.pattern.permute.xlu1 %v7612_v21  ;;  %v8129_v39 = vadd.s32 232, %v7530_v0  ;;  %10089 = vst [vmem:[#allocation184_spill] sm:$0xff] %v8165_v12 }
 0x5f9   :  { %v3366_v5 = vmax.f32 %v3365_v15, -1e+09  ;;  %v3378_v15 = vmax.f32 %v8082_v60, %v8069_v29  ;;  %10082 = vst [vmem:[#allocation177_spill] sm:$0xff] %v8099_v11  ;;  %vm9581_vm11 = vcmp.ge.s32.totalorder %v7883_v31, %v8099_v11 }
 0x5fa   :  { %v8126_v23 = vsel %vm9581_vm11, %v2908_v26, -1e+09  ;;  %10085 = vst [vmem:[#allocation180_spill] sm:$0xff] %v8129_v39 }
 0x5fb   :  { %v3367_v61 = vmax.f32 %v3366_v5, -1e+09  ;;  %v3400_v5 = vmax.f32 %v3399_v17, %v8091_v19 }
 0x5fc   :  { %v2624_v24 = vpop.permute.xlu1 %2623 }
 0x5fd   :  { %v3368_v52 = vmax.f32 %v3367_v61, -1e+09  ;;  %v3401_v51 = vmax.f32 %v3400_v5, %v3378_v15  ;;  %v2910_v17 = vmul.f32 %v7720_v18, %v2624_v24 }
 0x5ff   :  { %4263 = vperm.xlu0 %5317, %v7928_v46   ;;  %2750 = vperm.xlu2 %5272, %v7620_v6   ;;  %v2630_v46 = vpop.permute.xlu2 %2629  ;;  %v3402_v19 = vmax.f32 %v3401_v51, %v8111_v45  ;;  %v3369_v61 = vmax.f32 %v3368_v52, -1e+09  ;;  %v8134_v24 = vsel %vm9583_vm10, %v2910_v17, -1e+09  ;;  %vm9587_vm10 = vcmp.ge.s32.totalorder %v7883_v31, %v8129_v39 }
 0x600   :  { %2744 = vperm.xlu1 %5271, %v7620_v6   ;;  %v8121_v6 = vadd.s32 216, %v7530_v0  ;;  %v2912_v51 = vmul.f32 %v7720_v18, %v2630_v46  ;;  %v8148_v46 = vadd.s32 240, %v7530_v0 }
 0x601   :  { %v3403_v5 = vmax.f32 %v3402_v19, %v8126_v23  ;;  %v3370_v26 = vmax.f32 %v3369_v61, -1e+09 }
 0x602   :  { %10084 = vst [vmem:[#allocation179_spill] sm:$0xff] %v8121_v6  ;;  %vm3076_vm11 = vcmp.ge.s32.totalorder %v7883_v31, %v8121_v6  ;;  %vm3082_vm9 = vcmp.ge.s32.totalorder %v7883_v31, %v8148_v46 }
 0x603   :  { %v3404_v43 = vmax.f32 %v3403_v5, %v8134_v24  ;;  %10086 = vst [vmem:[#allocation181_spill] sm:$0xff] %v8148_v46  ;;  %v8153_v19 = vsel %vm3076_vm11, %v2912_v51, -1e+09  ;;  %v3371_v11 = vmax.f32 %v3370_v26, -1e+09 }
 0x604   :  { %v2642_v15 = vpop.permute.xlu1 %2641  ;;  %10087 = vst [vmem:[#allocation182_spill] sm:$0xff] %v8153_v19 }
 0x605   :  { %v2916_v52 = vmul.f32 %v7720_v18, %v2642_v15  ;;  %v3405_v5 = vmax.f32 %v3404_v43, %v8153_v19  ;;  %v3372_v26 = vrot.slane %v3371_v11, 4  ;;  %v8188_v19 = vperm.slane %v7692_v37, 1 }
 0x607   :  { %5274 = vset.pattern.permute.xlu2 %v7539_v30  ;;  %5322 = vset.pattern.permute.xlu0 %v7539_v30  ;;  %v2648_v17 = vpop.permute.xlu2 %2647  ;;  %v8158_v61 = vsel %vm9587_vm10, %v2916_v52, -1e+09  ;;  %vm3084_vm10 = vcmp.ge.s32.totalorder %v7883_v31, %v8165_v12  ;;  %v3373_v6 = vmax.f32 %v3371_v11, %v3372_v26  ;;  %10090 = vst [vmem:[#allocation185_spill] sm:$0xff] %v8188_v19  ;;  %v8194_v12 = vld [vmem:[#allocation3] sm:$0x3] }
 0x608   :  { %5273 = vset.pattern.permute.xlu1 %v7606_v16  ;;  %10088 = vst [vmem:[#allocation183_spill] sm:$0xff] %v8158_v61  ;;  %v2918_v15 = vmul.f32 %v7720_v18, %v2648_v17  ;;  %v3406_v51 = vmax.f32 %v3405_v5, %v8158_v61 }
 0x60a   :  { %v8173_v52 = vsel %vm3082_vm9, %v2918_v15, -1e+09  ;;  %v3374_v15 = vrot.slane %v3373_v6, 2 }
 0x60b   :  { %v3407_v39 = vmax.f32 %v3406_v51, %v8173_v52 }
 0x60c   :  { %v3375_v11 = vmax.f32 %v3373_v6, %v3374_v15 }
 0x60f   :  { %2769 = vperm.xlu2 %5274, %v7644_v49   ;;  %4294 = vperm.xlu0 %5322, %v8188_v19  }
 0x610   :  { %2763 = vperm.xlu1 %5273, %v7644_v49  }
 0x612   :  { %v2654_v43 = vpop.permute.xlu1 %2653 }
 0x613   :  { %v2920_v17 = vmul.f32 %v7720_v18, %v2654_v43  ;;  %v3376_v43 = vrot.slane %v3375_v11, 1 }
 0x615   :  { %v8182_v5 = vsel %vm3084_vm10, %v2920_v17, -1e+09  ;;  %v3377_v31 = vmax.f32 %v3375_v11, %v3376_v43 }
 0x616   :  { %v3408_v61 = vmax.f32 %v3407_v39, %v8182_v5 }
 0x617   :  { %5276 = vset.pattern.permute.xlu2 %v7536_v59  ;;  %5327 = vset.pattern.permute.xlu0 %v7567_v20 }
 0x618   :  { %v3409_v46 = vrot.slane %v3408_v61, 4  ;;  %5275 = vset.pattern.permute.xlu1 %v7558_v63 }
 0x61a   :  { %v3410_v18 = vmax.f32 %v3408_v61, %v3409_v46 }
 0x61c   :  { %v3411_v51 = vrot.slane %v3410_v18, 2 }
 0x61e   :  { %v3412_v26 = vmax.f32 %v3410_v18, %v3411_v51 }
 0x61f   :  { %2781 = vperm.xlu2 %5276, %v7644_v49   ;;  %4324 = vperm.xlu0 %5327, %v8188_v19  }
 0x620   :  { %v3413_v17 = vrot.slane %v3412_v26, 1  ;;  %2775 = vperm.xlu1 %5275, %v7644_v49  }
 0x622   :  { %v3414_v39 = vmax.f32 %v3412_v26, %v3413_v17 }
 0x624   :  { %v3495_v37 = vrot.slane %v3414_v39, 7 }
 0x626   :  { %v3497_v46 = vsel %vm2432_vm12, %v3377_v31, %v3495_v37 }
 0x627   :  { %v8198_v61 = vmax.f32 %v8194_v12, %v3497_v46  ;;  %5279 = vset.pattern.permute.xlu2 %v7567_v20  ;;  %5332 = vset.pattern.permute.xlu0 %v7594_v27 }
 0x628   :  { %5278 = vset.pattern.permute.xlu1 %v7570_v53 }
 0x629   :  { %4761 = vst.msk [vmem:[#allocation3] sm:$0x3] %vm5709_vm0, %v8198_v61  ;;  %v8209_v15 = vperm.slane %v8198_v61, 0  ;;  %v8212_v31 = vperm.slane %v8198_v61, 1 }
 0x62b   :  { %v3521_v18 = vsub.f32 %v7923_v8, %v8209_v15  ;;  %v3522_v11 = vsub.f32 %v8069_v29, %v8212_v31  ;;  %v3519_v51 = vsub.f32 %v7936_v33, %v8209_v15  ;;  %v3520_v26 = vsub.f32 %v8082_v60, %v8212_v31 }
 0x62c   :  { %v3523_v8 = vsub.f32 %v7965_v41, %v8209_v15  ;;  %v3524_v29 = vsub.f32 %v7732_v44, %v8212_v31  ;;  %v3525_v33 = vsub.f32 %v7975_v40, %v8209_v15  ;;  %v3526_v60 = vsub.f32 %v7748_v14, %v8212_v31 }
 0x62d   :  { %v3651_v43 = vmul.f32 1.442695, %v3521_v18  ;;  %v3653_v17 = vmul.f32 1.442695, %v3522_v11  ;;  %v3647_v39 = vmul.f32 1.442695, %v3519_v51  ;;  %v3527_v46 = vsub.f32 %v7744_v55, %v8209_v15 }
 0x62e   :  { %v3649_v37 = vmul.f32 1.442695, %v3520_v26  ;;  %v3655_v18 = vmul.f32 1.442695, %v3523_v8  ;;  %v3528_v41 = vsub.f32 %v7735_v7, %v8212_v31  ;;  %v3657_v44 = vmul.f32 1.442695, %v3524_v29 }
 0x62f   :  { %2799 = vperm.xlu2 %5279, %v7644_v49   ;;  %4354 = vperm.xlu0 %5332, %v8188_v19   ;;  %5353 = vpow2.f32 %v3651_v43  ;;  %v3659_v40 = vmul.f32 1.442695, %v3525_v33  ;;  %v3529_v11 = vsub.f32 %v7753_v22, %v8209_v15  ;;  %v3661_v51 = vmul.f32 1.442695, %v3526_v60 }
 0x630   :  { %2793 = vperm.xlu1 %5278, %v7644_v49   ;;  %5355 = vpow2.f32 %v3653_v17  ;;  %v3530_v14 = vsub.f32 %v7769_v2, %v8212_v31  ;;  %v3663_v26 = vmul.f32 1.442695, %v3527_v46  ;;  %v3531_v7 = vsub.f32 %v7760_v42, %v8209_v15 }
 0x631   :  { %5357 = vpow2.f32 %v3647_v39  ;;  %v3665_v17 = vmul.f32 1.442695, %v3528_v41  ;;  %v3532_v39 = vsub.f32 %v7780_v34, %v8212_v31  ;;  %v3667_v2 = vmul.f32 1.442695, %v3529_v11 }
 0x632   :  { %5359 = vpow2.f32 %v3649_v37  ;;  %v3533_v8 = vsub.f32 %v7785_v58, %v8209_v15  ;;  %v3669_v29 = vmul.f32 1.442695, %v3530_v14  ;;  %v3534_v33 = vsub.f32 %v7800_v50, %v8212_v31 }
 0x633   :  { %5361 = vpow2.f32 %v3655_v18  ;;  %v3671_v60 = vmul.f32 1.442695, %v3531_v7  ;;  %v3535_v58 = vsub.f32 %v7832_v32, %v8209_v15  ;;  %v8270_v46 = vperm.slane %v7904_v48, 1 }
 0x634   :  { %5363 = vpow2.f32 %v3657_v44  ;;  %v3673_v18 = vmul.f32 1.442695, %v3532_v39  ;;  %v3536_v50 = vsub.f32 %v7847_v4, %v8212_v31  ;;  %v3537_v44 = vsub.f32 %v7792_v9, %v8209_v15 }
 0x635   :  { %v8244_v55 = vpop.eup %5353  ;;  %5365 = vpow2.f32 %v3659_v40  ;;  %10092 = vst [vmem:[#allocation186_spill] sm:$0xff] %v8270_v46  ;;  %v3675_v40 = vmul.f32 1.442695, %v3533_v8  ;;  %v3538_v32 = vsub.f32 %v7804_v1, %v8212_v31  ;;  %v3677_v48 = vmul.f32 1.442695, %v3534_v33 }
 0x636   :  { %v8249_v43 = vpop.eup %5355  ;;  %5367 = vpow2.f32 %v3661_v51  ;;  %v3539_v9 = vsub.f32 %v7809_v62, %v8209_v15  ;;  %v3540_v39 = vsub.f32 %v7827_v36, %v8212_v31  ;;  %v3683_v8 = vmul.f32 1.442695, %v3537_v44 }
 0x637   :  { %5281 = vset.pattern.permute.xlu2 %v7585_v35  ;;  %5337 = vset.pattern.permute.xlu0 %v7606_v16  ;;  %v8253_v22 = vpop.eup %5357  ;;  %5369 = vpow2.f32 %v3663_v26  ;;  %v3679_v26 = vmul.f32 1.442695, %v3535_v58  ;;  %v3685_v62 = vmul.f32 1.442695, %v3538_v32 }
 0x638   :  { %5280 = vset.pattern.permute.xlu1 %v7533_v38  ;;  %v8257_v37 = vpop.eup %5359  ;;  %v3907_v42 = vadd.f32 %v8253_v22, %v8244_v55  ;;  %5371 = vpow2.f32 %v3665_v17  ;;  %v3681_v17 = vmul.f32 1.442695, %v3536_v50 }
 0x639   :  { %v3944_v34 = vadd.f32 %v8257_v37, %v8249_v43  ;;  %v8274_v41 = vpop.eup %5361  ;;  %5373 = vpow2.f32 %v3667_v2 }
 0x63a   :  { %v8278_v11 = vpop.eup %5363  ;;  %v3908_v51 = vadd.f32 %v8274_v41, %v3907_v42  ;;  %5375 = vpow2.f32 %v3669_v29  ;;  %v3541_v29 = vsub.f32 %v7836_v25, %v8209_v15  ;;  %v3543_v25 = vsub.f32 %v7858_v13, %v8209_v15 }
 0x63b   :  { %v8283_v14 = vpop.eup %5365  ;;  %5377 = vpow2.f32 %v3671_v60  ;;  %v3945_v4 = vadd.f32 %v8278_v11, %v3944_v34  ;;  %v3542_v60 = vsub.f32 %v7853_v56, %v8212_v31  ;;  %v3689_v56 = vmul.f32 1.442695, %v3540_v39  ;;  %v10101_v39 = vld [vmem:[#allocation158_spill] sm:$0xff] }
 0x63c   :  { %v8289_v7 = vpop.eup %5367  ;;  %5379 = vpow2.f32 %v3673_v18  ;;  %v3909_v1 = vadd.f32 %v8283_v14, %v3908_v51  ;;  %v3687_v18 = vmul.f32 1.442695, %v3539_v9 }
 0x63d   :  { %v8294_v2 = vpop.eup %5369  ;;  %v3946_v42 = vadd.f32 %v8289_v7, %v3945_v4  ;;  %5381 = vpow2.f32 %v3675_v40  ;;  %v10097_v40 = vld [vmem:[#allocation153_spill] sm:$0xff]  ;;  %v3691_v4 = vmul.f32 1.442695, %v3541_v29 }
 0x63e   :  { %10093 = vst [vmem:[#allocation187_spill] sm:$0xff] %v8294_v2  ;;  %v8299_v33 = vpop.eup %5371  ;;  %v3910_v34 = vadd.f32 %v8294_v2, %v3909_v1  ;;  %5383 = vpow2.f32 %v3677_v48  ;;  %v3544_v32 = vsub.f32 %v10097_v40, %v8212_v31  ;;  %v3693_v1 = vmul.f32 1.442695, %v3542_v60  ;;  %v10103_v40 = vld [vmem:[#allocation157_spill] sm:$0xff] }
 0x63f   :  { %2811 = vperm.xlu2 %5281, %v7644_v49   ;;  %4385 = vperm.xlu0 %5337, %v8270_v46   ;;  %10094 = vst [vmem:[#allocation188_spill] sm:$0xff] %v8299_v33  ;;  %v8304_v58 = vpop.eup %5373  ;;  %5385 = vpow2.f32 %v3679_v26  ;;  %v3947_v36 = vadd.f32 %v8299_v33, %v3946_v42  ;;  %v10099_v26 = vld [vmem:[#allocation154_spill] sm:$0xff]  ;;  %v3546_v42 = vsub.f32 %v10101_v39, %v8212_v31 }
 0x640   :  { %2805 = vperm.xlu1 %5280, %v7644_v49   ;;  %10095 = vst [vmem:[#allocation189_spill] sm:$0xff] %v8304_v58  ;;  %v8310_v50 = vpop.eup %5375  ;;  %5387 = vpow2.f32 %v3681_v17  ;;  %v3911_v44 = vadd.f32 %v8304_v58, %v3910_v34  ;;  %v3545_v13 = vsub.f32 %v10099_v26, %v8209_v15 }
 0x641   :  { %10096 = vst [vmem:[#allocation190_spill] sm:$0xff] %v8310_v50  ;;  %v8316_v51 = vpop.eup %5377  ;;  %5389 = vpow2.f32 %v3683_v8  ;;  %v3948_v48 = vadd.f32 %v8310_v50, %v3947_v36  ;;  %v3547_v8 = vsub.f32 %v10103_v40, %v8209_v15  ;;  %v3695_v36 = vmul.f32 1.442695, %v3543_v25  ;;  %v8344_v25 = vpop.permute.xlu2 %2660  ;;  %v10145_v50 = vld [vmem:[#allocation148_spill] sm:$0xff] }
 0x642   :  { %10098 = vst [vmem:[#allocation153_spill] sm:$0xff] %v8316_v51  ;;  %v8321_v9 = vpop.eup %5379  ;;  %5391 = vpow2.f32 %v3685_v62  ;;  %v3912_v17 = vadd.f32 %v8316_v51, %v3911_v44  ;;  %v3548_v62 = vsub.f32 %v7951_v10, %v8212_v31  ;;  %v3697_v44 = vmul.f32 1.442695, %v3544_v32  ;;  %v10106_v51 = vld [vmem:[#allocation159_spill] sm:$0xff] }
 0x643   :  { %10100 = vst [vmem:[#allocation154_spill] sm:$0xff] %v8321_v9  ;;  %v8326_v34 = vpop.eup %5381  ;;  %v3949_v29 = vadd.f32 %v8321_v9, %v3948_v48  ;;  %5393 = vpow2.f32 %v3687_v18  ;;  %v3699_v19 = vmul.f32 1.442695, %v3545_v13  ;;  %v3549_v48 = vsub.f32 %v10106_v51, %v8209_v15 }
 0x644   :  { %10102 = vst [vmem:[#allocation158_spill] sm:$0xff] %v8326_v34  ;;  %v8332_v26 = vpop.eup %5383  ;;  %v3913_v60 = vadd.f32 %v8326_v34, %v3912_v17  ;;  %5395 = vpow2.f32 %v3689_v56  ;;  %v3701_v9 = vmul.f32 1.442695, %v3546_v42  ;;  %v10108_v56 = vld [vmem:[#allocation163_spill] sm:$0xff]  ;;  %v10111_v42 = vld [vmem:[#allocation170_spill] sm:$0xff] }
 0x645   :  { %10104 = vst [vmem:[#allocation157_spill] sm:$0xff] %v8332_v26  ;;  %v8337_v39 = vpop.eup %5385  ;;  %5397 = vpow2.f32 %v3691_v4  ;;  %v3950_v40 = vadd.f32 %v8332_v26, %v3949_v29  ;;  %v3550_v32 = vsub.f32 %v10108_v56, %v8212_v31  ;;  %v3551_v4 = vsub.f32 -1e+09, %v8209_v15 }
 0x646   :  { %10105 = vst [vmem:[#allocation191_spill] sm:$0xff] %v8337_v39  ;;  %v8342_v18 = vpop.eup %5387  ;;  %5399 = vpow2.f32 %v3693_v1  ;;  %v3914_v10 = vadd.f32 %v8337_v39, %v3913_v60  ;;  %v3703_v29 = vmul.f32 1.442695, %v3547_v8  ;;  %v3705_v26 = vmul.f32 1.442695, %v3548_v62 }
 0x647   :  { %5284 = vset.pattern.permute.xlu2 %v7594_v27  ;;  %5342 = vset.pattern.permute.xlu0 %v7570_v53  ;;  %10107 = vst [vmem:[#allocation159_spill] sm:$0xff] %v8342_v18  ;;  %v8349_v17 = vpop.eup %5389  ;;  %v3951_v51 = vadd.f32 %v8342_v18, %v3950_v40  ;;  %5401 = vpow2.f32 %v3695_v36  ;;  %v3552_v60 = vsub.f32 %v10111_v42, %v8212_v31  ;;  %v3707_v8 = vmul.f32 1.442695, %v3549_v48  ;;  %v8365_v36 = vpop.permute.xlu1 %2672 }
 0x648   :  { %5283 = vset.pattern.permute.xlu1 %v7597_v3  ;;  %10109 = vst [vmem:[#allocation163_spill] sm:$0xff] %v8349_v17  ;;  %v8354_v13 = vpop.eup %5391  ;;  %v3915_v1 = vadd.f32 %v8349_v17, %v3914_v10  ;;  %5403 = vpow2.f32 %v3697_v44  ;;  %v3709_v40 = vmul.f32 1.442695, %v3550_v32  ;;  %v3554_v10 = vsub.f32 %v8038_v47, %v8212_v31  ;;  %v10115_v44 = vld [vmem:[#allocation145_spill] sm:$0xff] }
 0x649   :  { %10110 = vst [vmem:[#allocation192_spill] sm:$0xff] %v8354_v13  ;;  %v8360_v56 = vpop.eup %5393  ;;  %5405 = vpow2.f32 %v3699_v19  ;;  %v3952_v15 = vadd.f32 %v8354_v13, %v3951_v51  ;;  %v2921_v42 = vmul.f32 %v10115_v44, %v8344_v25  ;;  %v3711_v19 = vmul.f32 1.442695, %v3551_v4 }
 0x64a   :  { %10112 = vst [vmem:[#allocation170_spill] sm:$0xff] %v8360_v56  ;;  %v8363_v39 = vpop.eup %5395  ;;  %5407 = vpow2.f32 %v3701_v9  ;;  %v3916_v62 = vadd.f32 %v8360_v56, %v3915_v1  ;;  %v3713_v9 = vmul.f32 1.442695, %v3552_v60  ;;  %v10117_v1 = vld [vmem:[#allocation161_spill] sm:$0xff]  ;;  %v2925_v34 = vmul.f32 %v10115_v44, %v8365_v36 }
 0x64b   :  { %10113 = vst [vmem:[#allocation193_spill] sm:$0xff] %v8363_v39  ;;  %v8370_v18 = vpop.eup %5397  ;;  %5409 = vpow2.f32 %v3703_v29  ;;  %v3953_v48 = vadd.f32 %v8363_v39, %v3952_v15  ;;  %v3556_v47 = vsub.f32 %v10117_v1, %v8212_v31  ;;  %v3558_v4 = vsub.f32 %v8046_v28, %v8212_v31  ;;  %v10121_v39 = vld [vmem:[#allocation146_spill] sm:$0xff] }
 0x64c   :  { %10114 = vst [vmem:[#allocation194_spill] sm:$0xff] %v8370_v18  ;;  %v8376_v51 = vpop.eup %5399  ;;  %5411 = vpow2.f32 %v3705_v26  ;;  %v3917_v32 = vadd.f32 %v8370_v18, %v3916_v62  ;;  %v8390_v26 = vpop.permute.xlu2 %2678  ;;  %v3717_v62 = vmul.f32 1.442695, %v3554_v10  ;;  %v8400_v28 = vsel %vm3021_vm13, %v2921_v42, -1e+09 }
 0x64d   :  { %10116 = vst [vmem:[#allocation145_spill] sm:$0xff] %v8376_v51  ;;  %v8381_v56 = vpop.eup %5401  ;;  %v3954_v29 = vadd.f32 %v8376_v51, %v3953_v48  ;;  %5413 = vpow2.f32 %v3707_v8  ;;  %v3721_v10 = vmul.f32 1.442695, %v3556_v47  ;;  %v8415_v42 = vsel %vm3025_vm14, %v2925_v34, -1e+09  ;;  %v10129_v34 = vld [vmem:[#allocation149_spill] sm:$0xff] }
 0x64e   :  { %10118 = vst [vmem:[#allocation161_spill] sm:$0xff] %v8381_v56  ;;  %v8388_v15 = vpop.eup %5403  ;;  %v3918_v60 = vadd.f32 %v8381_v56, %v3917_v32  ;;  %5415 = vpow2.f32 %v3709_v40  ;;  %v3560_v32 = vsub.f32 %v8062_v57, %v8212_v31  ;;  %v3725_v47 = vmul.f32 1.442695, %v3558_v4  ;;  %v10127_v57 = vld [vmem:[#allocation174_spill] sm:$0xff] }
 0x64f   :  { %2829 = vperm.xlu2 %5284, %v7644_v49   ;;  %4415 = vperm.xlu0 %5342, %v8270_v46   ;;  %10119 = vst [vmem:[#allocation195_spill] sm:$0xff] %v8388_v15  ;;  %v8395_v18 = vpop.eup %5405  ;;  %5417 = vpow2.f32 %v3711_v19  ;;  %v3955_v8 = vadd.f32 %v8388_v15, %v3954_v29  ;;  %v2927_v19 = vmul.f32 %v10115_v44, %v8390_v26 }
 0x650   :  { %2823 = vperm.xlu1 %5283, %v7644_v49   ;;  %10120 = vst [vmem:[#allocation196_spill] sm:$0xff] %v8395_v18  ;;  %v8404_v48 = vpop.eup %5407  ;;  %5419 = vpow2.f32 %v3713_v9  ;;  %v3919_v40 = vadd.f32 %v8395_v18, %v3918_v60  ;;  %v8422_v9 = vpop.permute.xlu1 %2684  ;;  %v3562_v18 = vsub.f32 %v10127_v57, %v8212_v31  ;;  %v3415_v56 = vmax.f32 %v8400_v28, %v10129_v34 }
 0x651   :  { %10122 = vst [vmem:[#allocation146_spill] sm:$0xff] %v8400_v28  ;;  %v8410_v1 = vpop.eup %5409  ;;  %v3956_v29 = vadd.f32 %v8404_v48, %v3955_v8  ;;  %5421 = vpow2.f32 %v3717_v62  ;;  %v3729_v51 = vmul.f32 1.442695, %v3560_v32  ;;  %v8444_v13 = vsel %vm3027_vm7, %v2927_v19, -1e+09 }
 0x652   :  { %10123 = vst [vmem:[#allocation197_spill] sm:$0xff] %v8404_v48  ;;  %v3920_v60 = vadd.f32 %v8410_v1, %v3919_v40  ;;  %5423 = vpow2.f32 %v3721_v10  ;;  %v10131_v40 = vld [vmem:[#allocation176_spill] sm:$0xff]  ;;  %v3416_v62 = vmax.f32 %v3415_v56, %v8415_v42  ;;  %v10135_v56 = vld [vmem:[#allocation166_spill] sm:$0xff]  ;;  %v3568_v19 = vsub.f32 %v8111_v45, %v8212_v31 }
 0x653   :  { %10124 = vst [vmem:[#allocation198_spill] sm:$0xff] %v8410_v1  ;;  %v3564_v1 = vsub.f32 %v10131_v40, %v8212_v31  ;;  %5425 = vpow2.f32 %v3725_v47  ;;  %v3733_v40 = vmul.f32 1.442695, %v3562_v18 }
 0x654   :  { %10125 = vst [vmem:[#allocation199_spill] sm:$0xff] %v8415_v42  ;;  %v8451_v32 = vpop.permute.xlu2 %2690  ;;  %5427 = vpow2.f32 %v3729_v51  ;;  %v3417_v18 = vmax.f32 %v3416_v62, %v8444_v13  ;;  %v3745_v62 = vmul.f32 1.442695, %v3568_v19 }
 0x655   :  { %10133 = vst [vmem:[#allocation201_spill] sm:$0xff] %v8444_v13  ;;  %v3737_v47 = vmul.f32 1.442695, %v3564_v1  ;;  %v2931_v45 = vmul.f32 %v10115_v44, %v8451_v32  ;;  %5429 = vpow2.f32 %v3733_v40  ;;  %v3570_v1 = vsub.f32 %v8126_v23, %v8212_v31  ;;  %v10140_v40 = vld [vmem:[#allocation150_spill] sm:$0xff] }
 0x656   :  { %v3572_v13 = vsub.f32 %v8134_v24, %v8212_v31  ;;  %v10141_v23 = vld [vmem:[#allocation138_spill] sm:$0xff] }
 0x657   :  { %5286 = vset.pattern.permute.xlu2 %v7612_v21  ;;  %5347 = vset.pattern.permute.xlu0 %v7597_v3  ;;  %5431 = vpow2.f32 %v3737_v47  ;;  %v8493_v19 = vsel %vm3031_vm2, %v2931_v45, -1e+09  ;;  %v10144_v24 = vld [vmem:[#allocation182_spill] sm:$0xff]  ;;  %vm10170_vm2 = vcmp.ge.s32.totalorder %v10121_v39, %v7612_v21 }
 0x658   :  { %5285 = vset.pattern.permute.xlu1 %v7552_v54  ;;  %10142 = vst [vmem:[#allocation150_spill] sm:$0xff] %v8493_v19  ;;  %v3574_v47 = vsub.f32 %v10144_v24, %v8212_v31 }
 0x65f   :  { %2841 = vperm.xlu2 %5286, %v7644_v49   ;;  %4445 = vperm.xlu0 %5347, %v8270_v46   ;;  %v8498_v46 = vpop.permute.xlu2 %2708 }
 0x660   :  { %2835 = vperm.xlu1 %5285, %v7644_v49   ;;  %v8420_v49 = vpop.eup %5411 }
 0x661   :  { %10126 = vst [vmem:[#allocation200_spill] sm:$0xff] %v8420_v49  ;;  %v8427_v15 = vpop.eup %5413  ;;  %v3957_v8 = vadd.f32 %v8420_v49, %v3956_v29  ;;  %v2929_v29 = vmul.f32 %v10115_v44, %v8422_v9 }
 0x662   :  { %10128 = vst [vmem:[#allocation174_spill] sm:$0xff] %v8427_v15  ;;  %v8433_v48 = vpop.eup %5415  ;;  %v3921_v4 = vadd.f32 %v8427_v15, %v3920_v60  ;;  %v3566_v15 = vsub.f32 %v10135_v56, %v8212_v31 }
 0x663   :  { %10130 = vst [vmem:[#allocation149_spill] sm:$0xff] %v8433_v48  ;;  %v8438_v57 = vpop.eup %5417  ;;  %v3958_v10 = vadd.f32 %v8433_v48, %v3957_v8 }
 0x664   :  { %10132 = vst [vmem:[#allocation176_spill] sm:$0xff] %v8438_v57  ;;  %v8449_v49 = vpop.eup %5419  ;;  %v3922_v60 = vadd.f32 %v8438_v57, %v3921_v4  ;;  %v8468_v4 = vsel %vm3029_vm15, %v2929_v29, -1e+09  ;;  %v3741_v51 = vmul.f32 1.442695, %v3566_v15  ;;  %v2933_v15 = vmul.f32 %v10115_v44, %v10140_v40 }
 0x665   :  { %10134 = vst [vmem:[#allocation202_spill] sm:$0xff] %v8449_v49  ;;  %v3959_v17 = vadd.f32 %v8449_v49, %v3958_v10  ;;  %v8460_v42 = vpop.eup %5421  ;;  %v8475_v49 = vpop.permute.xlu1 %2702  ;;  %vm10169_vm15 = vcmp.ge.s32.totalorder %v10121_v39, %v7552_v54 }
 0x666   :  { %10136 = vst [vmem:[#allocation166_spill] sm:$0xff] %v8460_v42  ;;  %v3923_v8 = vadd.f32 %v8438_v57, %v3922_v60  ;;  %v8473_v56 = vpop.eup %5423  ;;  %5433 = vpow2.f32 %v3741_v51  ;;  %v3753_v51 = vmul.f32 1.442695, %v3572_v13 }
 0x667   :  { %5289 = vset.pattern.permute.xlu2 %v7606_v16  ;;  %10137 = vst [vmem:[#allocation203_spill] sm:$0xff] %v8468_v4  ;;  %v3960_v10 = vadd.f32 %v8460_v42, %v3959_v17  ;;  %v8482_v48 = vpop.eup %5425  ;;  %v3418_v17 = vmax.f32 %v3417_v18, %v8468_v4  ;;  %5435 = vpow2.f32 %v3745_v62 }
 0x668   :  { %5288 = vset.pattern.permute.xlu1 %v7530_v0  ;;  %10138 = vst [vmem:[#allocation204_spill] sm:$0xff] %v8473_v56  ;;  %v3924_v60 = vadd.f32 %v8438_v57, %v3923_v8 }
 0x669   :  { %v3961_v29 = vadd.f32 %v8473_v56, %v3960_v10  ;;  %10139 = vst [vmem:[#allocation205_spill] sm:$0xff] %v8482_v48  ;;  %v8496_v10 = vpop.eup %5427  ;;  %v2935_v56 = vmul.f32 %v10115_v44, %v8475_v49 }
 0x66a   :  { %v3925_v42 = vadd.f32 %v8438_v57, %v3924_v60  ;;  %10143 = vst [vmem:[#allocation138_spill] sm:$0xff] %v8496_v10  ;;  %v3749_v60 = vmul.f32 1.442695, %v3570_v1  ;;  %v8507_v58 = vpop.eup %5429  ;;  %v8515_v1 = vsel %vm3033_vm1, %v2933_v15, -1e+09 }
 0x66b   :  { %v3962_v8 = vadd.f32 %v8482_v48, %v3961_v29  ;;  %10146 = vst [vmem:[#allocation182_spill] sm:$0xff] %v8507_v58  ;;  %v3419_v29 = vmax.f32 %v3418_v17, %v8493_v19  ;;  %v10148_v48 = vld [vmem:[#allocation168_spill] sm:$0xff]  ;;  %v3757_v17 = vmul.f32 1.442695, %v3574_v47  ;;  %v8532_v15 = vsel %vm3035_vm3, %v2935_v56, -1e+09 }
 0x66c   :  { %v3926_v18 = vadd.f32 %v8438_v57, %v3925_v42  ;;  %10147 = vst [vmem:[#allocation148_spill] sm:$0xff] %v8515_v1  ;;  %5437 = vpow2.f32 %v3749_v60  ;;  %v10154_v47 = vld [vmem:[#allocation183_spill] sm:$0xff] }
 0x66d   :  { %v3963_v45 = vadd.f32 %v8496_v10, %v3962_v8  ;;  %v3576_v8 = vsub.f32 %v10148_v48, %v8212_v31  ;;  %v8520_v10 = vpop.eup %5431  ;;  %v8522_v33 = vpop.permute.xlu1 %2714  ;;  %v2937_v48 = vmul.f32 %v10115_v44, %v8498_v46  ;;  %v3420_v60 = vmax.f32 %v3419_v29, %v8515_v1  ;;  %v10156_v1 = vld [vmem:[#allocation147_spill] sm:$0xff] }
 0x66e   :  { %v3927_v42 = vadd.f32 %v8438_v57, %v3926_v18  ;;  %10149 = vst [vmem:[#allocation168_spill] sm:$0xff] %v8520_v10  ;;  %v10150_v18 = vld [vmem:[#allocation144_spill] sm:$0xff]  ;;  %v8538_v28 = vpop.eup %5433  ;;  %5439 = vpow2.f32 %v3753_v51  ;;  %v2939_v56 = vmul.f32 %v10115_v44, %v8522_v33 }
 0x66f   :  { %4094 = vperm.xlu2 %5289, %v10145_v50   ;;  %v3964_v24 = vadd.f32 %v8507_v58, %v3963_v45  ;;  %v10151_v13 = vrot.slane %v10150_v18, 1  ;;  %v10152_v58 = vld [vmem:[#allocation142_spill] sm:$0xff]  ;;  %10153 = vst [vmem:[#allocation144_spill] sm:$0xff] %v8538_v28  ;;  %v3761_v4 = vmul.f32 1.442695, %v3576_v8  ;;  %v8547_v2 = vpop.eup %5435  ;;  %5441 = vpow2.f32 %v3757_v17 }
 0x670   :  { %4088 = vperm.xlu1 %5288, %v10145_v50   ;;  %v3928_v62 = vadd.f32 %v8438_v57, %v3927_v42  ;;  %5352 = vset.pattern.permute.xlu0 %v10152_v58  ;;  %v3578_v42 = vsub.f32 %v10154_v47, %v8212_v31  ;;  %10155 = vst [vmem:[#allocation142_spill] sm:$0xff] %v8547_v2  ;;  %v8560_v51 = vsel %vm3037_vm6, %v2937_v48, -1e+09 }
 0x671   :  { %v8527_v19 = vperm.slane %v10151_v13, 1  ;;  %v3965_v45 = vadd.f32 %v8520_v10, %v3964_v24  ;;  %v3421_v24 = vmax.f32 %v3420_v60, %v8532_v15  ;;  %v8550_v10 = vpop.permute.xlu2 %2720  ;;  %10157 = vst [vmem:[#allocation183_spill] sm:$0xff] %v8560_v51  ;;  %v3582_v17 = vsub.f32 %v8182_v5, %v8212_v31 }
 0x672   :  { %v3929_v18 = vadd.f32 %v8438_v57, %v3928_v62  ;;  %v3580_v62 = vsub.f32 %v8173_v52, %v8212_v31  ;;  %v3765_v60 = vmul.f32 1.442695, %v3578_v42  ;;  %v2941_v52 = vmul.f32 %v10115_v44, %v8550_v10 }
 0x673   :  { %v3966_v13 = vadd.f32 %v8538_v28, %v3965_v45  ;;  %v8555_v47 = vmul.f32 %v8527_v19, %v10156_v1  ;;  %v8566_v45 = vpop.eup %5437  ;;  %v8572_v1 = vmul.f32 %v8527_v19, %v8344_v25  ;;  %5443 = vpow2.f32 %v3761_v4 }
 0x674   :  { %v3930_v29 = vadd.f32 %v8438_v57, %v3929_v18  ;;  %10158 = vst [vmem:[#allocation147_spill] sm:$0xff] %v8566_v45  ;;  %v8579_v18 = vsel %vm3039_vm4, %v2939_v56, -1e+09  ;;  %v8584_v31 = vpop.eup %5439  ;;  %v3422_v25 = vmax.f32 %v3421_v24, %v8560_v51  ;;  %5445 = vpow2.f32 %v3765_v60 }
 0x675   :  { %v3967_v8 = vadd.f32 %v8547_v2, %v3966_v13  ;;  %10159 = vst [vmem:[#allocation206_spill] sm:$0xff] %v8579_v18  ;;  %v8587_v42 = vpop.permute.xlu1 %2732  ;;  %v3769_v2 = vmul.f32 1.442695, %v3580_v62  ;;  %v8595_v28 = vpop.eup %5441  ;;  %v3452_v4 = vmax.f32 %v8572_v1, %v8555_v47  ;;  %vm10173_vm1 = vcmp.ge.s32.totalorder %v10121_v39, %v10152_v58 }
 0x676   :  { %v3931_v48 = vadd.f32 %v8438_v57, %v3930_v29  ;;  %10160 = vst [vmem:[#allocation207_spill] sm:$0xff] %v8584_v31  ;;  %v8592_v29 = vmul.f32 %v8527_v19, %v8365_v36 }
 0x677   :  { %5291 = vset.pattern.permute.xlu2 %v7558_v63  ;;  %v3968_v5 = vadd.f32 %v8566_v45, %v3967_v8  ;;  %10161 = vst [vmem:[#allocation208_spill] sm:$0xff] %v8595_v28  ;;  %v3423_v8 = vmax.f32 %v3422_v25, %v8579_v18  ;;  %v3773_v45 = vmul.f32 1.442695, %v3582_v17  ;;  %v10162_v63 = vld [vmem:[#allocation141_spill] sm:$0xff]  ;;  %v8614_v25 = vmul.f32 %v8527_v19, %v8390_v26 }
 0x678   :  { %5290 = vset.pattern.permute.xlu1 %v7539_v30  ;;  %v3932_v13 = vadd.f32 %v8438_v57, %v3931_v48  ;;  %v8604_v48 = vsel %vm3041_vm5, %v2941_v52, -1e+09  ;;  %v2945_v17 = vmul.f32 %v10115_v44, %v8587_v42  ;;  %5447 = vpow2.f32 %v3769_v2 }
 0x679   :  { %v3969_v56 = vadd.f32 %v8584_v31, %v3968_v5  ;;  %10163 = vst [vmem:[#allocation141_spill] sm:$0xff] %v8604_v48  ;;  %v8607_v5 = vpop.permute.xlu2 %2738  ;;  %v8609_v62 = vpop.eup %5443  ;;  %v3453_v31 = vmax.f32 %v3452_v4, %v8592_v29  ;;  %v3424_v60 = vmax.f32 %v3423_v8, %v8604_v48  ;;  %5449 = vpow2.f32 %v3773_v45 }
 0x67a   :  { %v3933_v24 = vadd.f32 %v8438_v57, %v3932_v13  ;;  %10164 = vst [vmem:[#allocation209_spill] sm:$0xff] %v8609_v62  ;;  %v8629_v4 = vpop.eup %5445  ;;  %v8635_v2 = vsel %vm3045_vm8, %v2945_v17, -1e+09  ;;  %v2947_v8 = vmul.f32 %v10115_v44, %v8607_v5 }
 0x67b   :  { %v3970_v36 = vadd.f32 %v8595_v28, %v3969_v56  ;;  %v8625_v56 = vmul.f32 %v8527_v19, %v8422_v9  ;;  %10165 = vst [vmem:[#allocation210_spill] sm:$0xff] %v8629_v4  ;;  %v3454_v28 = vmax.f32 %v3453_v31, %v8614_v25  ;;  %v8647_v31 = vmul.f32 %v8527_v19, %v8451_v32 }
 0x67c   :  { %v3934_v52 = vadd.f32 %v8438_v57, %v3933_v24  ;;  %v10166_v24 = vld [vmem:[#allocation152_spill] sm:$0xff] }
 0x67d   :  { %v3971_v13 = vadd.f32 %v8609_v62, %v3970_v36  ;;  %v8627_v26 = vpop.permute.xlu1 %2744  ;;  %v3425_v45 = vmax.f32 %v3424_v60, %v10166_v24  ;;  %v3455_v48 = vmax.f32 %v3454_v28, %v8625_v56  ;;  %v8661_v28 = vsel %vm10169_vm15, %v2947_v8, -1e+09 }
 0x67e   :  { %v3935_v36 = vadd.f32 %v8438_v57, %v3934_v52  ;;  %v8642_v62 = vpop.eup %5447  ;;  %v2949_v17 = vmul.f32 %v10115_v44, %v8627_v26 }
 0x67f   :  { %4106 = vperm.xlu2 %5291, %v10145_v50   ;;  %v3972_v9 = vadd.f32 %v8629_v4, %v3971_v13  ;;  %10167 = vst [vmem:[#allocation152_spill] sm:$0xff] %v8642_v62  ;;  %v3426_v18 = vmax.f32 %v3425_v45, %v8635_v2  ;;  %v8656_v13 = vpop.eup %5449 }
 0x680   :  { %4100 = vperm.xlu1 %5290, %v10145_v50   ;;  %v3936_v60 = vadd.f32 %v8438_v57, %v3935_v36  ;;  %10168 = vst [vmem:[#allocation211_spill] sm:$0xff] %v8656_v13  ;;  %v8669_v36 = vmul.f32 %v8527_v19, %v10140_v40  ;;  %v8685_v40 = vmul.f32 %v8527_v19, %v8475_v49 }
 0x681   :  { %v8652_v51 = vpop.permute.xlu2 %2750  ;;  %v3973_v52 = vadd.f32 %v8642_v62, %v3972_v9  ;;  %v3456_v9 = vmax.f32 %v3455_v48, %v8647_v31  ;;  %v8675_v62 = vsel %vm10170_vm2, %v2949_v17, -1e+09  ;;  %v3427_v4 = vmax.f32 %v3426_v18, %v8661_v28 }
 0x682   :  { %v3937_v32 = vadd.f32 %v8438_v57, %v3936_v60  ;;  %10171 = vst [vmem:[#allocation212_spill] sm:$0xff] %v8675_v62  ;;  %v2951_v8 = vmul.f32 %v10115_v44, %v8652_v51  ;;  %v10172_v60 = vsub.f32 %v8194_v12, %v8198_v61 }
 0x683   :  { %v3974_v45 = vadd.f32 %v8656_v13, %v3973_v52  ;;  %v3428_v48 = vmax.f32 %v3427_v4, %v8675_v62  ;;  %v3457_v18 = vmax.f32 %v3456_v9, %v8669_v36 }
 0x684   :  { %v3505_v52 = vmul.f32 1.442695, %v10172_v60  ;;  %v3938_v13 = vrot.slane %v3937_v32, 4  ;;  %v8691_v44 = vsel %vm10173_vm1, %v2951_v8, -1e+09  ;;  %v8696_v60 = vmul.f32 %v8527_v19, %v8498_v46 }
 0x685   :  { %v3975_v57 = vrot.slane %v3974_v45, 4  ;;  %v3458_v49 = vmax.f32 %v3457_v18, %v8685_v40 }
 0x686   :  { %v3939_v21 = vadd.f32 %v3938_v13, %v3937_v32  ;;  %5451 = vpow2.f32 %v3505_v52  ;;  %v8704_v13 = vmul.f32 %v8527_v19, %v8522_v33  ;;  %v3903_v52 = vld [vmem:[#allocation4] sm:$0x3] }
 0x687   :  { %5294 = vset.pattern.permute.xlu2 %v7570_v53  ;;  %v3976_v17 = vadd.f32 %v3975_v57, %v3974_v45  ;;  %v3429_v57 = vmax.f32 %v3428_v48, %v8691_v44  ;;  %v3459_v46 = vmax.f32 %v3458_v49, %v8696_v60  ;;  %v8712_v48 = vmul.f32 %v8527_v19, %v8550_v10 }
 0x688   :  { %5293 = vset.pattern.permute.xlu1 %v10141_v23  ;;  %v3940_v12 = vrot.slane %v3939_v21, 2  ;;  %v8727_v10 = vmul.f32 %v8527_v19, %v8587_v42 }
 0x689   :  { %v3977_v61 = vrot.slane %v3976_v17, 2  ;;  %v3430_v8 = vmax.f32 %v3429_v57, -1e+09  ;;  %v3460_v18 = vmax.f32 %v3459_v46, %v8704_v13  ;;  %v10175_v57 = vld [vmem:[#allocation151_spill] sm:$0xff]  ;;  %v8734_v46 = vmul.f32 %v8527_v19, %v8607_v5 }
 0x68a   :  { %v3941_v39 = vadd.f32 %v3940_v12, %v3939_v21 }
 0x68b   :  { %v3978_v4 = vadd.f32 %v3977_v61, %v3976_v17  ;;  %v3431_v12 = vmax.f32 %v3430_v8, -1e+09 }
 0x68c   :  { %v3942_v32 = vrot.slane %v3941_v39, 1  ;;  %v8706_v9 = vpop.eup %5451 }
 0x68d   :  { %v3979_v45 = vrot.slane %v3978_v4, 1  ;;  %10174 = vst [vmem:[#allocation213_spill] sm:$0xff] %v8706_v9  ;;  %v3905_v33 = vmul.f32 %v8706_v9, %v3903_v52  ;;  %v8739_v52 = vmul.f32 %v8527_v19, %v8627_v26 }
 0x68e   :  { %v3943_v21 = vadd.f32 %v3942_v32, %v3941_v39 }
 0x68f   :  { %4124 = vperm.xlu2 %5294, %v10145_v50   ;;  %v3980_v62 = vadd.f32 %v3979_v45, %v3978_v4  ;;  %v8720_v4 = vmul.f32 %v8527_v19, %v10175_v57  ;;  %v3461_v45 = vmax.f32 %v3460_v18, %v8712_v48 }
 0x690   :  { %4118 = vperm.xlu1 %5293, %v10145_v50  }
 0x691   :  { %v4059_v17 = vrot.slane %v3980_v62, 7  ;;  %v3432_v62 = vmax.f32 %v3431_v12, -1e+09  ;;  %v3462_v39 = vmax.f32 %v3461_v45, %v8720_v4  ;;  %v10176_v45 = vld [vmem:[#allocation156_spill] sm:$0xff] }
 0x693   :  { %v4061_v61 = vsel %vm2432_vm12, %v3943_v21, %v4059_v17  ;;  %v3463_v32 = vmax.f32 %v3462_v39, %v8727_v10  ;;  %v3433_v8 = vmax.f32 %v3432_v62, -1e+09  ;;  %v2764_v21 = vpop.permute.xlu1 %2763  ;;  %v2770_v17 = vpop.permute.xlu2 %2769  ;;  %v10177_v62 = vld [vmem:[#allocation165_spill] sm:$0xff] }
 0x694   :  { %v4065_v49 = vadd.f32 %v4061_v61, %v3905_v33  ;;  %v2758_v33 = vpop.permute.xlu0 %2757  ;;  %v8745_v61 = vmul.f32 %v8527_v19, %v8652_v51  ;;  %v2956_v26 = vmul.f32 %v8527_v19, %v2764_v21  ;;  %vm10178_vm3 = vcmp.ge.s32.totalorder %v10176_v45, %v10177_v62 }
 0x695   :  { %v3464_v42 = vmax.f32 %v3463_v32, %v8734_v46  ;;  %v3434_v18 = vmax.f32 %v3433_v8, -1e+09  ;;  %v2954_v5 = vmul.f32 %v8527_v19, %v2758_v33 }
 0x696   :  { %4071 = vst.msk [vmem:[#allocation4] sm:$0x3] %vm5709_vm0, %v4065_v49 }
 0x697   :  { %5296 = vset.pattern.permute.xlu2 %v7533_v38  ;;  %v3465_v12 = vmax.f32 %v3464_v42, %v8739_v52  ;;  %v3435_v49 = vmax.f32 %v3434_v18, -1e+09  ;;  %v8755_v39 = vsel %vm10178_vm3, %v2954_v5, -1e+09  ;;  %v10180_v42 = vld [vmem:[#allocation167_spill] sm:$0xff]  ;;  %v2958_v18 = vmul.f32 %v8527_v19, %v2770_v17 }
 0x698   :  { %5295 = vset.pattern.permute.xlu1 %v7567_v20  ;;  %10179 = vst [vmem:[#allocation151_spill] sm:$0xff] %v8755_v39  ;;  %vm10181_vm4 = vcmp.ge.s32.totalorder %v10176_v45, %v10180_v42 }
 0x699   :  { %v3466_v57 = vmax.f32 %v3465_v12, %v8745_v61  ;;  %v3436_v32 = vmax.f32 %v3435_v49, -1e+09  ;;  %v8760_v33 = vsel %vm10181_vm4, %v2956_v26, -1e+09  ;;  %v10183_v49 = vld [vmem:[#allocation155_spill] sm:$0xff]  ;;  %v10185_v26 = vld [vmem:[#allocation169_spill] sm:$0xff] }
 0x69a   :  { %10182 = vst [vmem:[#allocation156_spill] sm:$0xff] %v8760_v33  ;;  %vm10184_vm5 = vcmp.ge.s32.totalorder %v10176_v45, %v10183_v49  ;;  %vm10186_vm6 = vcmp.ge.s32.totalorder %v10176_v45, %v10185_v26 }
 0x69b   :  { %v2776_v8 = vpop.permute.xlu1 %2775  ;;  %v2782_v51 = vpop.permute.xlu2 %2781  ;;  %v3467_v9 = vmax.f32 %v3466_v57, %v8755_v39  ;;  %v3437_v12 = vmax.f32 %v3436_v32, -1e+09  ;;  %v8771_v62 = vsel %vm10184_vm5, %v2958_v18, -1e+09  ;;  %v10188_v18 = vld [vmem:[#allocation171_spill] sm:$0xff] }
 0x69c   :  { %v2960_v21 = vmul.f32 %v8527_v19, %v2776_v8  ;;  %v2962_v57 = vmul.f32 %v8527_v19, %v2782_v51  ;;  %vm10189_vm8 = vcmp.ge.s32.totalorder %v10176_v45, %v10188_v18 }
 0x69d   :  { %v3468_v5 = vmax.f32 %v3467_v9, %v8760_v33  ;;  %v3438_v8 = vmax.f32 %v3437_v12, -1e+09  ;;  %v2788_v9 = vpop.permute.xlu0 %2787 }
 0x69e   :  { %v8776_v17 = vsel %vm10186_vm6, %v2960_v21, -1e+09  ;;  %v2964_v39 = vmul.f32 %v8527_v19, %v2788_v9  ;;  %v8785_v49 = vsel %vm10189_vm8, %v2962_v57, -1e+09  ;;  %v10194_v57 = vld [vmem:[#allocation173_spill] sm:$0xff] }
 0x69f   :  { %4136 = vperm.xlu2 %5296, %v10145_v50   ;;  %10187 = vst [vmem:[#allocation165_spill] sm:$0xff] %v8776_v17  ;;  %v3469_v42 = vmax.f32 %v3468_v5, %v8771_v62  ;;  %v3439_v21 = vmax.f32 %v3438_v8, -1e+09  ;;  %v10191_v5 = vld [vmem:[#allocation172_spill] sm:$0xff]  ;;  %vm10195_vm7 = vcmp.ge.s32.totalorder %v10176_v45, %v10194_v57 }
 0x6a0   :  { %4130 = vperm.xlu1 %5295, %v10145_v50   ;;  %10190 = vst [vmem:[#allocation167_spill] sm:$0xff] %v8785_v49  ;;  %vm10192_vm13 = vcmp.ge.s32.totalorder %v10176_v45, %v10191_v5 }
 0x6a1   :  { %v3470_v33 = vmax.f32 %v3469_v42, %v8776_v17  ;;  %v8794_v26 = vsel %vm10192_vm13, %v2964_v39, -1e+09  ;;  %v3440_v42 = vmax.f32 %v3439_v21, -1e+09  ;;  %v10197_v21 = vld [vmem:[#allocation162_spill] sm:$0xff] }
 0x6a2   :  { %10193 = vst [vmem:[#allocation155_spill] sm:$0xff] %v8794_v26  ;;  %vm10198_vm14 = vcmp.ge.s32.totalorder %v10176_v45, %v10197_v21 }
 0x6a3   :  { %v2794_v32 = vpop.permute.xlu1 %2793  ;;  %v2800_v38 = vpop.permute.xlu2 %2799  ;;  %v3471_v12 = vmax.f32 %v3470_v33, %v8785_v49  ;;  %v3441_v33 = vmax.f32 %v3440_v42, -1e+09 }
 0x6a4   :  { %v2966_v51 = vmul.f32 %v8527_v19, %v2794_v32  ;;  %v2968_v8 = vmul.f32 %v8527_v19, %v2800_v38  ;;  %v10199_v38 = vld [vmem:[#allocation175_spill] sm:$0xff] }
 0x6a5   :  { %vm10200_vm15 = vcmp.ge.s32.totalorder %v10176_v45, %v10199_v38  ;;  %v2818_v42 = vpop.permute.xlu0 %2817 }
 0x6a6   :  { %v8799_v18 = vsel %vm10195_vm7, %v2966_v51, -1e+09  ;;  %v8810_v5 = vsel %vm10198_vm14, %v2968_v8, -1e+09  ;;  %v2974_v49 = vmul.f32 %v8527_v19, %v2818_v42  ;;  %v10202_v8 = vld [vmem:[#allocation177_spill] sm:$0xff] }
 0x6a7   :  { %5299 = vset.pattern.permute.xlu2 %v7597_v3  ;;  %10196 = vst [vmem:[#allocation169_spill] sm:$0xff] %v8799_v18  ;;  %vm10203_vm2 = vcmp.ge.s32.totalorder %v10176_v45, %v10202_v8 }
 0x6a8   :  { %5298 = vset.pattern.permute.xlu1 %v10162_v63 }
 0x6ab   :  { %v2812_v9 = vpop.permute.xlu2 %2811 }
 0x6ac   :  { %v2972_v51 = vmul.f32 %v8527_v19, %v2812_v9 }
 0x6ae   :  { %v8824_v21 = vsel %vm10203_vm2, %v2972_v51, -1e+09 }
 0x6af   :  { %4154 = vperm.xlu2 %5299, %v10145_v50  }
 0x6b0   :  { %4148 = vperm.xlu1 %5298, %v10145_v50  }
 0x6b2   :  { %v2806_v17 = vpop.permute.xlu1 %2805 }
 0x6b3   :  { %v2970_v32 = vmul.f32 %v8527_v19, %v2806_v17  ;;  %v3442_v17 = vmax.f32 %v3441_v33, -1e+09 }
 0x6b5   :  { %v3443_v9 = vmax.f32 %v3442_v17, -1e+09 }
 0x6b7   :  { %5301 = vset.pattern.permute.xlu2 %v7552_v54  ;;  %v3472_v54 = vmax.f32 %v3471_v12, %v8794_v26  ;;  %v8816_v12 = vsel %vm10200_vm15, %v2970_v32, -1e+09  ;;  %v2830_v26 = vpop.permute.xlu2 %2829 }
 0x6b8   :  { %5300 = vset.pattern.permute.xlu1 %v7594_v27  ;;  %10201 = vst [vmem:[#allocation171_spill] sm:$0xff] %v8816_v12  ;;  %v2978_v42 = vmul.f32 %v8527_v19, %v2830_v26 }
 0x6b9   :  { %v3473_v39 = vmax.f32 %v3472_v54, %v8799_v18 }
 0x6bb   :  { %v3474_v57 = vmax.f32 %v3473_v39, %v8810_v5  ;;  %v10204_v39 = vld [vmem:[#allocation178_spill] sm:$0xff] }
 0x6bc   :  { %vm10205_vm1 = vcmp.ge.s32.totalorder %v10176_v45, %v10204_v39  ;;  %v2848_v39 = vpop.permute.xlu0 %2847 }
 0x6bd   :  { %v3475_v54 = vmax.f32 %v3474_v57, %v8816_v12  ;;  %v8833_v38 = vsel %vm10205_vm1, %v2974_v49, -1e+09  ;;  %v3444_v57 = vmax.f32 %v3443_v9, -1e+09  ;;  %v10210_v49 = vld [vmem:[#allocation164_spill] sm:$0xff]  ;;  %v2984_v51 = vmul.f32 %v8527_v19, %v2848_v39 }
 0x6be   :  { %10206 = vst [vmem:[#allocation172_spill] sm:$0xff] %v8833_v38  ;;  %vm10211_vm3 = vcmp.ge.s32.totalorder %v10176_v45, %v10210_v49  ;;  %v10213_v49 = vld [vmem:[#allocation180_spill] sm:$0xff] }
 0x6bf   :  { %4166 = vperm.xlu2 %5301, %v10145_v50   ;;  %v3476_v33 = vmax.f32 %v3475_v54, %v8824_v21  ;;  %v2842_v12 = vpop.permute.xlu2 %2841  ;;  %v8848_v9 = vsel %vm10211_vm3, %v2978_v42, -1e+09  ;;  %v8868_v39 = vsel %vm3084_vm10, %v2984_v51, -1e+09 }
 0x6c0   :  { %4160 = vperm.xlu1 %5300, %v10145_v50   ;;  %v2982_v26 = vmul.f32 %v8527_v19, %v2842_v12 }
 0x6c1   :  { %v3477_v17 = vmax.f32 %v3476_v33, %v8833_v38 }
 0x6c2   :  { %v2824_v18 = vpop.permute.xlu1 %2823 }
 0x6c3   :  { %v2976_v32 = vmul.f32 %v8527_v19, %v2824_v18  ;;  %v3445_v18 = vmax.f32 %v3444_v57, -1e+09 }
 0x6c5   :  { %v8839_v8 = vsel %vm3076_vm11, %v2976_v32, -1e+09  ;;  %v3446_v38 = vrot.slane %v3445_v18, 4  ;;  %vm10214_vm11 = vcmp.ge.s32.totalorder %v10176_v45, %v10213_v49 }
 0x6c6   :  { %10208 = vst [vmem:[#allocation173_spill] sm:$0xff] %v8839_v8  ;;  %v3478_v54 = vmax.f32 %v3477_v17, %v8839_v8 }
 0x6c7   :  { %5304 = vset.pattern.permute.xlu2 %v7530_v0  ;;  %v10209_v0 = vld [vmem:[#allocation160_spill] sm:$0xff] }
 0x6c8   :  { %5303 = vset.pattern.permute.xlu1 %v10152_v58  ;;  %v3479_v57 = vmax.f32 %v3478_v54, %v8848_v9 }
 0x6cf   :  { %4185 = vperm.xlu2 %5304, %v10209_v0  }
 0x6d0   :  { %4178 = vperm.xlu1 %5303, %v10145_v50   ;;  %v8857_v50 = vsel %vm3082_vm9, %v2982_v26, -1e+09 }
 0x6d2   :  { %v2836_v32 = vpop.permute.xlu1 %2835 }
 0x6d3   :  { %v2980_v33 = vmul.f32 %v8527_v19, %v2836_v32  ;;  %v3447_v19 = vmax.f32 %v3445_v18, %v3446_v38  ;;  %v8877_v18 = vld [vmem:[#allocation3 + $0x2] sm:$0x3] }
 0x6d5   :  { %v8862_v42 = vsel %vm10214_vm11, %v2980_v33, -1e+09  ;;  %v3448_v32 = vrot.slane %v3447_v19, 2 }
 0x6d6   :  { %v3480_v12 = vmax.f32 %v3479_v57, %v8862_v42 }
 0x6d7   :  { %5306 = vset.pattern.permute.xlu2 %v7539_v30  ;;  %v3449_v57 = vmax.f32 %v3447_v19, %v3448_v32 }
 0x6d8   :  { %v3481_v54 = vmax.f32 %v3480_v12, %v8857_v50  ;;  %5305 = vset.pattern.permute.xlu1 %v7606_v16 }
 0x6d9   :  { %v3450_v8 = vrot.slane %v3449_v57, 1 }
 0x6da   :  { %v3482_v26 = vmax.f32 %v3481_v54, %v8868_v39 }
 0x6db   :  { %v3451_v38 = vmax.f32 %v3449_v57, %v3450_v8 }
 0x6dc   :  { %v3483_v17 = vrot.slane %v3482_v26, 4 }
 0x6de   :  { %v3484_v33 = vmax.f32 %v3482_v26, %v3483_v17 }
 0x6df   :  { %4197 = vperm.xlu2 %5306, %v10209_v0  }
 0x6e0   :  { %v3485_v49 = vrot.slane %v3484_v33, 2  ;;  %4191 = vperm.xlu1 %5305, %v10209_v0  }
 0x6e2   :  { %v3486_v45 = vmax.f32 %v3484_v33, %v3485_v49  ;;  %v4089_v32 = vpop.permute.xlu1 %4088 }
 0x6e3   :  { %v4471_v33 = vmul.f32 %v8253_v22, %v4089_v32 }
 0x6e4   :  { %v3487_v51 = vrot.slane %v3486_v45, 1 }
 0x6e6   :  { %v3488_v30 = vmax.f32 %v3486_v45, %v3487_v51  ;;  %v4472_v45 = vmul.f32 %v8257_v37, %v4089_v32  ;;  %v4113_v37 = vpop.permute.xlu0 %4112 }
 0x6e7   :  { %5309 = vset.pattern.permute.xlu2 %v10141_v23 }
 0x6e8   :  { %v3496_v12 = vrot.slane %v3488_v30, 7  ;;  %5308 = vset.pattern.permute.xlu1 %v7536_v59  ;;  %v4095_v30 = vpop.permute.xlu2 %4094 }
 0x6e9   :  { %v4473_v57 = vmul.f32 %v8244_v55, %v4095_v30  ;;  %v4474_v51 = vmul.f32 %v8249_v43, %v4095_v30 }
 0x6ea   :  { %v3498_v54 = vsel %vm2432_vm12, %v3451_v38, %v3496_v12 }
 0x6eb   :  { %v8882_v26 = vmax.f32 %v8877_v18, %v3498_v54  ;;  %v4599_v38 = vadd.f32 %v4473_v57, %v4471_v33  ;;  %v4636_v55 = vadd.f32 %v4474_v51, %v4472_v45  ;;  %v10216_v33 = vld [vmem:[#allocation187_spill] sm:$0xff] }
 0x6ec   :  { %v4479_v57 = vmul.f32 %v10216_v33, %v4113_v37 }
 0x6ed   :  { %4762 = vst.msk [vmem:[#allocation3 + $0x2] sm:$0x3] %vm5709_vm0, %v8882_v26  ;;  %v8896_v49 = vperm.slane %v8882_v26, 0  ;;  %v8903_v54 = vperm.slane %v8882_v26, 1 }
 0x6ef   :  { %4215 = vperm.xlu2 %5309, %v10209_v0   ;;  %v3597_v22 = vsub.f32 %v8532_v15, %v8896_v49  ;;  %v3586_v32 = vsub.f32 %v8555_v47, %v8903_v54  ;;  %v3584_v47 = vsub.f32 %v8572_v1, %v8903_v54 }
 0x6f0   :  { %4209 = vperm.xlu1 %5308, %v10209_v0   ;;  %v4107_v19 = vpop.permute.xlu2 %4106 }
 0x6f1   :  { %v3803_v30 = vmul.f32 1.442695, %v3597_v22 }
 0x6f2   :  { %v4101_v17 = vpop.permute.xlu1 %4100 }
 0x6f3   :  { %v4475_v8 = vmul.f32 %v8274_v41, %v4101_v17  ;;  %v4476_v12 = vmul.f32 %v8278_v11, %v4101_v17  ;;  %v4477_v41 = vmul.f32 %v8283_v14, %v4107_v19  ;;  %v3585_v11 = vsub.f32 %v10129_v34, %v8896_v49  ;;  %v10218_v34 = vld [vmem:[#allocation146_spill] sm:$0xff] }
 0x6f4   :  { %v4478_v17 = vmul.f32 %v8289_v7, %v4107_v19  ;;  %v3781_v14 = vmul.f32 1.442695, %v3586_v32  ;;  %v10219_v7 = vld [vmem:[#allocation188_spill] sm:$0xff]  ;;  %v3598_v19 = vsub.f32 %v8685_v40, %v8903_v54  ;;  %5453 = vpow2.f32 %v3803_v30 }
 0x6f5   :  { %v4637_v43 = vadd.f32 %v4636_v55, %v4476_v12  ;;  %v3779_v51 = vmul.f32 1.442695, %v3585_v11  ;;  %v3592_v12 = vsub.f32 %v8625_v56, %v8903_v54  ;;  %v3583_v55 = vsub.f32 %v10218_v34, %v8896_v49  ;;  %v10221_v11 = vld [vmem:[#allocation190_spill] sm:$0xff] }
 0x6f6   :  { %v3588_v40 = vsub.f32 %v8592_v29, %v8903_v54  ;;  %v3596_v29 = vsub.f32 %v8669_v36, %v8903_v54 }
 0x6f7   :  { %5311 = vset.pattern.permute.xlu2 %v7567_v20  ;;  %v4600_v20 = vadd.f32 %v4599_v38, %v4475_v8  ;;  %v4638_v45 = vadd.f32 %v4637_v43, %v4478_v17  ;;  %v10217_v38 = vld [vmem:[#allocation203_spill] sm:$0xff]  ;;  %v3775_v56 = vmul.f32 1.442695, %v3583_v55  ;;  %v3777_v17 = vmul.f32 1.442695, %v3584_v47  ;;  %v10224_v55 = vld [vmem:[#allocation201_spill] sm:$0xff] }
 0x6f8   :  { %5310 = vset.pattern.permute.xlu1 %v7570_v53  ;;  %v3591_v6 = vsub.f32 %v10217_v38, %v8896_v49  ;;  %v4125_v33 = vpop.permute.xlu2 %4124  ;;  %5455 = vpow2.f32 %v3779_v51  ;;  %v3589_v47 = vsub.f32 %v10224_v55, %v8896_v49  ;;  %v3805_v55 = vmul.f32 1.442695, %v3598_v19  ;;  %v10233_v19 = vld [vmem:[#allocation183_spill] sm:$0xff] }
 0x6f9   :  { %v4601_v15 = vadd.f32 %v4600_v20, %v4477_v41  ;;  %v4480_v20 = vmul.f32 %v10219_v7, %v4113_v37  ;;  %v10220_v41 = vld [vmem:[#allocation189_spill] sm:$0xff]  ;;  %v10222_v37 = vld [vmem:[#allocation199_spill] sm:$0xff]  ;;  %5457 = vpow2.f32 %v3781_v14 }
 0x6fa   :  { %v3791_v1 = vmul.f32 1.442695, %v3591_v6  ;;  %v3587_v38 = vsub.f32 %v10222_v37, %v8896_v49  ;;  %5459 = vpow2.f32 %v3775_v56  ;;  %v3590_v6 = vsub.f32 %v8614_v25, %v8903_v54  ;;  %v8943_v14 = vpop.eup %5453  ;;  %v10226_v56 = vld [vmem:[#allocation163_spill] sm:$0xff] }
 0x6fb   :  { %v4602_v22 = vadd.f32 %v4601_v15, %v4479_v57  ;;  %v4639_v30 = vadd.f32 %v4638_v45, %v4480_v20  ;;  %v3793_v15 = vmul.f32 1.442695, %v3592_v12  ;;  %v10223_v57 = vld [vmem:[#allocation148_spill] sm:$0xff]  ;;  %5461 = vpow2.f32 %v3777_v17  ;;  %v10229_v17 = vld [vmem:[#allocation154_spill] sm:$0xff] }
 0x6fc   :  { %v3595_v34 = vsub.f32 %v10223_v57, %v8896_v49  ;;  %v3783_v51 = vmul.f32 1.442695, %v3587_v38  ;;  %v3785_v45 = vmul.f32 1.442695, %v3588_v40  ;;  %5463 = vpow2.f32 %v3791_v1  ;;  %v10231_v40 = vld [vmem:[#allocation192_spill] sm:$0xff] }
 0x6fd   :  { %v3787_v20 = vmul.f32 1.442695, %v3589_v47  ;;  %5465 = vpow2.f32 %v3793_v15  ;;  %v3789_v57 = vmul.f32 1.442695, %v3590_v6  ;;  %v3594_v25 = vsub.f32 %v8647_v31, %v8903_v54 }
 0x6fe   :  { %v4484_v38 = vmul.f32 %v10229_v17, %v4125_v33  ;;  %5467 = vpow2.f32 %v3783_v51  ;;  %v3801_v15 = vmul.f32 1.442695, %v3596_v29 }
 0x6ff   :  { %4227 = vperm.xlu2 %5311, %v10209_v0   ;;  %5469 = vpow2.f32 %v3785_v45  ;;  %v10234_v45 = vld [vmem:[#allocation158_spill] sm:$0xff] }
 0x700   :  { %4221 = vperm.xlu1 %5310, %v10209_v0   ;;  %v4137_v47 = vpop.permute.xlu2 %4136  ;;  %5471 = vpow2.f32 %v3787_v20 }
 0x701   :  { %5473 = vpow2.f32 %v3789_v57  ;;  %v10237_v57 = vld [vmem:[#allocation206_spill] sm:$0xff] }
 0x702   :  { %v4119_v8 = vpop.permute.xlu1 %4118 }
 0x703   :  { %v4481_v43 = vmul.f32 %v10220_v41, %v4119_v8  ;;  %v4482_v32 = vmul.f32 %v10221_v11, %v4119_v8  ;;  %v4143_v8 = vpop.permute.xlu0 %4142  ;;  %v10225_v41 = vld [vmem:[#allocation150_spill] sm:$0xff] }
 0x704   :  { %v3593_v11 = vsub.f32 %v10225_v41, %v8896_v49  ;;  %v4489_v37 = vmul.f32 %v10226_v56, %v4143_v8 }
 0x705   :  { %v4603_v7 = vadd.f32 %v4602_v22, %v4481_v43  ;;  %v4640_v12 = vadd.f32 %v4639_v30, %v4482_v32  ;;  %v8950_v22 = vpop.eup %5455  ;;  %v10228_v43 = vld [vmem:[#allocation153_spill] sm:$0xff]  ;;  %v3799_v32 = vmul.f32 1.442695, %v3595_v34  ;;  %v4490_v30 = vmul.f32 %v10231_v40, %v4143_v8 }
 0x706   :  { %10227 = vst [vmem:[#allocation162_spill] sm:$0xff] %v8950_v22  ;;  %v4483_v36 = vmul.f32 %v10228_v43, %v4125_v33  ;;  %v8955_v1 = vpop.eup %5457  ;;  %v3795_v33 = vmul.f32 1.442695, %v3593_v11  ;;  %v3797_v8 = vmul.f32 1.442695, %v3594_v25  ;;  %v3599_v43 = vsub.f32 %v10233_v19, %v8896_v49  ;;  %v10235_v40 = vld [vmem:[#allocation157_spill] sm:$0xff] }
 0x707   :  { %5314 = vset.pattern.permute.xlu2 %v10162_v63  ;;  %10230 = vst [vmem:[#allocation175_spill] sm:$0xff] %v8955_v1  ;;  %v8959_v31 = vpop.eup %5459  ;;  %v4641_v41 = vadd.f32 %v4640_v12, %v4484_v38  ;;  %5475 = vpow2.f32 %v3799_v32  ;;  %v10236_v11 = vld [vmem:[#allocation191_spill] sm:$0xff]  ;;  %v3601_v25 = vsub.f32 %v10237_v57, %v8896_v49  ;;  %v3600_v38 = vsub.f32 %v8696_v60, %v8903_v54 }
 0x708   :  { %5313 = vset.pattern.permute.xlu1 %v7585_v35  ;;  %v4604_v6 = vadd.f32 %v4603_v7, %v4483_v36  ;;  %v8961_v56 = vpop.eup %5461  ;;  %v3981_v51 = vadd.f32 %v8959_v31, %v8950_v22  ;;  %v4487_v36 = vmul.f32 %v10236_v11, %v4137_v47  ;;  %5477 = vpow2.f32 %v3801_v15 }
 0x709   :  { %10232 = vst [vmem:[#allocation177_spill] sm:$0xff] %v8961_v56  ;;  %v8967_v29 = vpop.eup %5463  ;;  %v4018_v12 = vadd.f32 %v8961_v56, %v8955_v1  ;;  %5479 = vpow2.f32 %v3795_v33  ;;  %v3602_v15 = vsub.f32 %v8704_v13, %v8903_v54  ;;  %v3807_v11 = vmul.f32 1.442695, %v3599_v43 }
 0x70a   :  { %v8973_v20 = vpop.eup %5465  ;;  %5481 = vpow2.f32 %v3797_v8  ;;  %v3811_v13 = vmul.f32 1.442695, %v3601_v25  ;;  %v3809_v8 = vmul.f32 1.442695, %v3600_v38  ;;  %v3604_v43 = vsub.f32 %v8712_v48, %v8903_v54 }
 0x70b   :  { %v8980_v19 = vpop.eup %5467  ;;  %5483 = vpow2.f32 %v3805_v55  ;;  %v3606_v48 = vsub.f32 %v8720_v4, %v8903_v54 }
 0x70c   :  { %v8983_v1 = vpop.eup %5469  ;;  %v3982_v32 = vadd.f32 %v8980_v19, %v3981_v51  ;;  %5485 = vpow2.f32 %v3807_v11 }
 0x70d   :  { %v8988_v57 = vpop.eup %5471  ;;  %5487 = vpow2.f32 %v3809_v8 }
 0x70e   :  { %v8994_v33 = vpop.eup %5473  ;;  %v3983_v51 = vadd.f32 %v8988_v57, %v3982_v32  ;;  %v3817_v32 = vmul.f32 1.442695, %v3604_v43  ;;  %5489 = vpow2.f32 %v3811_v13  ;;  %v3612_v43 = vsub.f32 %v8739_v52, %v8903_v54 }
 0x70f   :  { %4245 = vperm.xlu2 %5314, %v10209_v0  }
 0x710   :  { %4239 = vperm.xlu1 %5313, %v10209_v0   ;;  %v3984_v25 = vadd.f32 %v8967_v29, %v3983_v51 }
 0x712   :  { %v4131_v34 = vpop.permute.xlu1 %4130 }
 0x713   :  { %v4485_v17 = vmul.f32 %v10234_v45, %v4131_v34  ;;  %v4486_v7 = vmul.f32 %v10235_v40, %v4131_v34  ;;  %v10238_v45 = vld [vmem:[#allocation159_spill] sm:$0xff] }
 0x714   :  { %v4488_v22 = vmul.f32 %v10238_v45, %v4137_v47  ;;  %v4019_v47 = vadd.f32 %v8983_v1, %v4018_v12 }
 0x715   :  { %v4605_v34 = vadd.f32 %v4604_v6, %v4485_v17  ;;  %v4642_v40 = vadd.f32 %v4641_v41, %v4486_v7  ;;  %v10239_v6 = vld [vmem:[#allocation141_spill] sm:$0xff]  ;;  %v9000_v17 = vpop.eup %5475 }
 0x716   :  { %v3603_v41 = vsub.f32 %v10239_v6, %v8896_v49  ;;  %v4020_v12 = vadd.f32 %v8994_v33, %v4019_v47  ;;  %v9009_v45 = vpop.eup %5477  ;;  %v3610_v47 = vsub.f32 %v8734_v46, %v8903_v54 }
 0x717   :  { %v4606_v56 = vadd.f32 %v4605_v34, %v4487_v36  ;;  %v4643_v60 = vadd.f32 %v4642_v40, %v4488_v22  ;;  %5316 = vset.pattern.permute.xlu2 %v7594_v27  ;;  %v3605_v36 = vsub.f32 %v10166_v24, %v8896_v49  ;;  %v3813_v34 = vmul.f32 1.442695, %v3602_v15  ;;  %v9014_v38 = vpop.eup %5479 }
 0x718   :  { %5315 = vset.pattern.permute.xlu1 %v7597_v3  ;;  %v9019_v40 = vpop.eup %5481  ;;  %v3608_v24 = vsub.f32 %v8727_v10, %v8903_v54  ;;  %v3985_v55 = vadd.f32 %v9014_v38, %v3984_v25 }
 0x719   :  { %v9002_v22 = vadd.f32 %v4606_v56, %v4489_v37  ;;  %v9004_v7 = vadd.f32 %v4643_v60, %v4490_v30  ;;  %v3607_v37 = vsub.f32 %v8635_v2, %v8896_v49  ;;  %v4021_v30 = vadd.f32 %v8973_v20, %v4020_v12  ;;  %v9034_v13 = vpop.eup %5483 }
 0x71a   :  { %v3815_v56 = vmul.f32 1.442695, %v3603_v41  ;;  %v3819_v15 = vmul.f32 1.442695, %v3605_v36  ;;  %v3609_v2 = vsub.f32 %v8661_v28, %v8896_v49  ;;  %5491 = vpow2.f32 %v3813_v34  ;;  %v10240_v41 = vld [vmem:[#allocation212_spill] sm:$0xff]  ;;  %v9040_v46 = vpop.eup %5485 }
 0x71b   :  { %v4022_v4 = vadd.f32 %v9019_v40, %v4021_v30  ;;  %v3986_v11 = vadd.f32 %v9000_v17, %v3985_v55  ;;  %v3821_v60 = vmul.f32 1.442695, %v3606_v48  ;;  %v3823_v6 = vmul.f32 1.442695, %v3607_v37  ;;  %v9045_v25 = vpop.eup %5487 }
 0x71c   :  { %v3611_v51 = vsub.f32 %v10240_v41, %v8896_v49  ;;  %5493 = vpow2.f32 %v3815_v56  ;;  %v3825_v8 = vmul.f32 1.442695, %v3608_v24  ;;  %v3827_v36 = vmul.f32 1.442695, %v3609_v2  ;;  %v9050_v52 = vpop.eup %5489 }
 0x71d   :  { %v4023_v10 = vadd.f32 %v9009_v45, %v4022_v4  ;;  %v3987_v28 = vadd.f32 %v8943_v14, %v3986_v11  ;;  %5495 = vpow2.f32 %v3817_v32  ;;  %v3613_v34 = vsub.f32 %v8691_v44, %v8896_v49  ;;  %10241 = vst [vmem:[#allocation178_spill] sm:$0xff] %v9050_v52 }
 0x71e   :  { %5497 = vpow2.f32 %v3819_v15  ;;  %v3829_v37 = vmul.f32 1.442695, %v3610_v47  ;;  %v3614_v30 = vsub.f32 %v8745_v61, %v8903_v54  ;;  %v3615_v56 = vsub.f32 -1e+09, %v8896_v49  ;;  %v10243_v15 = vld [vmem:[#allocation151_spill] sm:$0xff]  ;;  %v10245_v61 = vld [vmem:[#allocation156_spill] sm:$0xff] }
 0x71f   :  { %4257 = vperm.xlu2 %5316, %v10209_v0   ;;  %v4024_v12 = vadd.f32 %v9034_v13, %v4023_v10  ;;  %5499 = vpow2.f32 %v3821_v60  ;;  %v3988_v48 = vadd.f32 %v9040_v46, %v3987_v28  ;;  %v3831_v55 = vmul.f32 1.442695, %v3611_v51 }
 0x720   :  { %4251 = vperm.xlu1 %5315, %v10209_v0   ;;  %5501 = vpow2.f32 %v3823_v6  ;;  %v9054_v32 = vpop.eup %5491  ;;  %v3833_v44 = vmul.f32 1.442695, %v3612_v43  ;;  %v3616_v2 = vsub.f32 %v10243_v15, %v8903_v54  ;;  %v3618_v60 = vsub.f32 %v10245_v61, %v8903_v54  ;;  %v10252_v15 = vld [vmem:[#allocation170_spill] sm:$0xff] }
 0x721   :  { %v4025_v24 = vadd.f32 %v9045_v25, %v4024_v12  ;;  %10242 = vst [vmem:[#allocation179_spill] sm:$0xff] %v9054_v32  ;;  %5503 = vpow2.f32 %v3825_v8  ;;  %v3989_v4 = vadd.f32 %v9050_v52, %v3988_v48  ;;  %v3835_v47 = vmul.f32 1.442695, %v3613_v34  ;;  %v10249_v48 = vld [vmem:[#allocation143_spill] sm:$0xff] }
 0x722   :  { %v9059_v11 = vpop.eup %5493  ;;  %5505 = vpow2.f32 %v3827_v36  ;;  %v3837_v41 = vmul.f32 1.442695, %v3614_v30  ;;  %v3839_v8 = vmul.f32 1.442695, %v3615_v56  ;;  %v4149_v28 = vpop.permute.xlu1 %4148  ;;  %v3841_v34 = vmul.f32 1.442695, %v3616_v2 }
 0x723   :  { %10244 = vst [vmem:[#allocation160_spill] sm:$0xff] %v9059_v11  ;;  %v4026_v49 = vadd.f32 %v9054_v32, %v4025_v24  ;;  %v9064_v6 = vpop.eup %5495  ;;  %v3990_v10 = vadd.f32 %v9059_v11, %v3989_v4  ;;  %5507 = vpow2.f32 %v3829_v37  ;;  %v3620_v37 = vsub.f32 %v8771_v62, %v8903_v54  ;;  %v4155_v24 = vpop.permute.xlu2 %4154  ;;  %v10255_v62 = vld [vmem:[#allocation193_spill] sm:$0xff] }
 0x724   :  { %10246 = vst [vmem:[#allocation164_spill] sm:$0xff] %v9064_v6  ;;  %v9067_v51 = vpop.eup %5497  ;;  %5509 = vpow2.f32 %v3831_v55  ;;  %v3845_v56 = vmul.f32 1.442695, %v3618_v60  ;;  %v4491_v61 = vmul.f32 %v10252_v15, %v4149_v28 }
 0x725   :  { %10247 = vst [vmem:[#allocation181_spill] sm:$0xff] %v9067_v51  ;;  %v4027_v43 = vadd.f32 %v9064_v6, %v4026_v49  ;;  %v9071_v12 = vpop.eup %5499  ;;  %5511 = vpow2.f32 %v3833_v44  ;;  %v3991_v36 = vadd.f32 %v9067_v51, %v3990_v10  ;;  %v10253_v44 = vld [vmem:[#allocation165_spill] sm:$0xff]  ;;  %v4492_v51 = vmul.f32 %v10255_v62, %v4149_v28  ;;  %v10260_v28 = vld [vmem:[#allocation155_spill] sm:$0xff] }
 0x726   :  { %10248 = vst [vmem:[#allocation180_spill] sm:$0xff] %v9071_v12  ;;  %v9077_v30 = vpop.eup %5501  ;;  %5513 = vpow2.f32 %v3835_v47  ;;  %v3622_v10 = vsub.f32 %v10253_v44, %v8903_v54  ;;  %v4173_v47 = vpop.permute.xlu0 %4172  ;;  %v3849_v15 = vmul.f32 1.442695, %v3620_v37 }
 0x727   :  { %5319 = vset.pattern.permute.xlu2 %v10152_v58  ;;  %10250 = vst [vmem:[#allocation184_spill] sm:$0xff] %v9077_v30  ;;  %v4028_v4 = vadd.f32 %v9071_v12, %v4027_v43  ;;  %v9080_v55 = vpop.eup %5503  ;;  %v3992_v49 = vadd.f32 %v9077_v30, %v3991_v36  ;;  %5515 = vpow2.f32 %v3837_v41  ;;  %v10257_v36 = vld [vmem:[#allocation167_spill] sm:$0xff]  ;;  %v10259_v41 = vld [vmem:[#allocation169_spill] sm:$0xff]  ;;  %v4645_v11 = vadd.f32 %v9004_v7, %v4492_v51 }
 0x728   :  { %5318 = vset.pattern.permute.xlu1 %v10249_v48  ;;  %10251 = vst [vmem:[#allocation187_spill] sm:$0xff] %v9080_v55  ;;  %v9086_v2 = vpop.eup %5505  ;;  %5517 = vpow2.f32 %v3839_v8  ;;  %v3624_v30 = vsub.f32 %v10257_v36, %v8903_v54  ;;  %v3628_v44 = vsub.f32 %v10259_v41, %v8903_v54  ;;  %v10263_v36 = vld [vmem:[#allocation198_spill] sm:$0xff] }
 0x729   :  { %10254 = vst [vmem:[#allocation203_spill] sm:$0xff] %v9086_v2  ;;  %v4029_v60 = vadd.f32 %v9080_v55, %v4028_v4  ;;  %v9090_v6 = vpop.eup %5507  ;;  %5519 = vpow2.f32 %v3841_v34  ;;  %v3993_v43 = vadd.f32 %v9086_v2, %v3992_v49  ;;  %v3626_v4 = vsub.f32 %v10260_v28, %v8903_v54  ;;  %v10265_v28 = vld [vmem:[#allocation194_spill] sm:$0xff] }
 0x72a   :  { %10256 = vst [vmem:[#allocation146_spill] sm:$0xff] %v9090_v6  ;;  %v9095_v12 = vpop.eup %5509  ;;  %5521 = vpow2.f32 %v3845_v56  ;;  %v4608_v34 = vadd.f32 %v9002_v22, %v4491_v61  ;;  %v3853_v49 = vmul.f32 1.442695, %v3622_v10  ;;  %v4499_v55 = vmul.f32 %v10263_v36, %v4173_v47 }
 0x72b   :  { %10258 = vst [vmem:[#allocation188_spill] sm:$0xff] %v9095_v12  ;;  %v4030_v8 = vadd.f32 %v9090_v6, %v4029_v60  ;;  %v9102_v62 = vpop.eup %5511  ;;  %v3994_v37 = vadd.f32 %v9095_v12, %v3993_v43  ;;  %v4493_v6 = vmul.f32 %v10265_v28, %v4155_v24  ;;  %5523 = vpow2.f32 %v3849_v15  ;;  %v10266_v43 = vld [vmem:[#allocation145_spill] sm:$0xff]  ;;  %v4167_v7 = vpop.permute.xlu2 %4166  ;;  %v10268_v28 = vld [vmem:[#allocation195_spill] sm:$0xff] }
 0x72c   :  { %10261 = vst [vmem:[#allocation189_spill] sm:$0xff] %v9102_v62  ;;  %v9106_v2 = vpop.eup %5513  ;;  %v3857_v56 = vmul.f32 1.442695, %v3624_v30  ;;  %v3865_v10 = vmul.f32 1.442695, %v3628_v44  ;;  %v4494_v36 = vmul.f32 %v10266_v43, %v4155_v24  ;;  %5525 = vpow2.f32 %v3853_v49  ;;  %v10267_v30 = vld [vmem:[#allocation161_spill] sm:$0xff] }
 0x72d   :  { %10262 = vst [vmem:[#allocation190_spill] sm:$0xff] %v9106_v2  ;;  %v4031_v60 = vadd.f32 %v9102_v62, %v4030_v8  ;;  %v9112_v41 = vpop.eup %5515  ;;  %v3995_v22 = vadd.f32 %v9106_v2, %v3994_v37  ;;  %v3861_v12 = vmul.f32 1.442695, %v3626_v4  ;;  %v4609_v32 = vadd.f32 %v4608_v34, %v4493_v6  ;;  %v10269_v4 = vld [vmem:[#allocation196_spill] sm:$0xff]  ;;  %v10270_v6 = vld [vmem:[#allocation171_spill] sm:$0xff]  ;;  %v10271_v49 = vld [vmem:[#allocation197_spill] sm:$0xff] }
 0x72e   :  { %10264 = vst [vmem:[#allocation199_spill] sm:$0xff] %v9112_v41  ;;  %v9117_v61 = vpop.eup %5517  ;;  %v3630_v15 = vsub.f32 %v8810_v5, %v8903_v54  ;;  %v4646_v2 = vadd.f32 %v4645_v11, %v4494_v36  ;;  %v3632_v34 = vsub.f32 %v10270_v6, %v8903_v54  ;;  %5527 = vpow2.f32 %v3857_v56  ;;  %v10273_v56 = vld [vmem:[#allocation134_spill] sm:$0xff] }
 0x72f   :  { %4275 = vperm.xlu2 %5319, %v10209_v0   ;;  %v4032_v51 = vadd.f32 %v9112_v41, %v4031_v60  ;;  %v9121_v8 = vpop.eup %5519  ;;  %v4497_v60 = vmul.f32 %v10269_v4, %v4167_v7  ;;  %5529 = vpow2.f32 %v3861_v12 }
 0x730   :  { %4269 = vperm.xlu1 %5318, %v10209_v0   ;;  %v3996_v0 = vadd.f32 %v9117_v61, %v3995_v22  ;;  %v9129_v43 = vpop.eup %5521  ;;  %v4498_v22 = vmul.f32 %v10271_v49, %v4167_v7  ;;  %v3869_v36 = vmul.f32 1.442695, %v3630_v15  ;;  %5531 = vpow2.f32 %v3865_v10  ;;  %v10274_v7 = vld [vmem:[#allocation172_spill] sm:$0xff] }
 0x731   :  { %v4033_v24 = vadd.f32 %v9121_v8, %v4032_v51  ;;  %v3634_v51 = vsub.f32 %v8824_v21, %v8903_v54  ;;  %v3873_v12 = vmul.f32 1.442695, %v3632_v34  ;;  %v3636_v15 = vsub.f32 %v10274_v7, %v8903_v54 }
 0x732   :  { %v4161_v62 = vpop.permute.xlu1 %4160  ;;  %v3997_v41 = vadd.f32 %v9117_v61, %v3996_v0  ;;  %v10272_v0 = vld [vmem:[#allocation200_spill] sm:$0xff]  ;;  %5533 = vpow2.f32 %v3869_v36  ;;  %v3640_v36 = vsub.f32 %v8848_v9, %v8903_v54 }
 0x733   :  { %v4495_v37 = vmul.f32 %v10267_v30, %v4161_v62  ;;  %v4496_v44 = vmul.f32 %v10268_v28, %v4161_v62  ;;  %v4034_v30 = vadd.f32 %v9129_v43, %v4033_v24  ;;  %v9137_v62 = vpop.eup %5523  ;;  %v4500_v28 = vmul.f32 %v10272_v0, %v4173_v47 }
 0x734   :  { %v3998_v11 = vadd.f32 %v9117_v61, %v3997_v41  ;;  %v3877_v24 = vmul.f32 1.442695, %v3634_v51  ;;  %5535 = vpow2.f32 %v3873_v12  ;;  %v10276_v51 = vld [vmem:[#allocation185_spill] sm:$0xff]  ;;  %v3889_v12 = vmul.f32 1.442695, %v3640_v36  ;;  %v9201_v36 = vpop.permute.xlu2 %4185 }
 0x735   :  { %v4610_v5 = vadd.f32 %v4609_v32, %v4495_v37  ;;  %v4647_v52 = vadd.f32 %v4646_v2, %v4496_v44  ;;  %v4035_v32 = vadd.f32 %v9137_v62, %v4034_v30  ;;  %v9145_v2 = vpop.eup %5525 }
 0x736   :  { %v3999_v41 = vadd.f32 %v9117_v61, %v3998_v11  ;;  %v9154_v37 = vpop.eup %5527  ;;  %5537 = vpow2.f32 %v3877_v24 }
 0x737   :  { %v4611_v4 = vadd.f32 %v4610_v5, %v4497_v60  ;;  %v4648_v6 = vadd.f32 %v4647_v52, %v4498_v22  ;;  %5321 = vset.pattern.permute.xlu2 %v7606_v16  ;;  %v4036_v52 = vadd.f32 %v9145_v2, %v4035_v32  ;;  %v10275_v16 = vld [vmem:[#allocation173_spill] sm:$0xff]  ;;  %v9160_v34 = vpop.eup %5529 }
 0x738   :  { %5320 = vset.pattern.permute.xlu1 %v10273_v56  ;;  %v3638_v44 = vsub.f32 %v10275_v16, %v8903_v54  ;;  %v4000_v10 = vadd.f32 %v9117_v61, %v3999_v41  ;;  %v9164_v5 = vpop.eup %5531 }
 0x739   :  { %v9151_v21 = vadd.f32 %v4611_v4, %v4499_v55  ;;  %v4649_v47 = vadd.f32 %v4648_v6, %v4500_v28  ;;  %v4037_v60 = vadd.f32 %v9154_v37, %v4036_v52  ;;  %v3881_v55 = vmul.f32 1.442695, %v3636_v15  ;;  %v9171_v28 = vpop.eup %5533 }
 0x73a   :  { %v4001_v49 = vadd.f32 %v9117_v61, %v4000_v10  ;;  %v3885_v30 = vmul.f32 1.442695, %v3638_v44  ;;  %v3642_v6 = vsub.f32 %v8862_v42, %v8903_v54  ;;  %v9178_v41 = vpop.eup %5535  ;;  %v3644_v42 = vsub.f32 %v8857_v50, %v8903_v54 }
 0x73b   :  { %v4038_v22 = vadd.f32 %v9160_v34, %v4037_v60  ;;  %5539 = vpow2.f32 %v3881_v55  ;;  %10277 = vst [vmem:[#allocation148_spill] sm:$0xff] %v9178_v41 }
 0x73c   :  { %v4002_v11 = vadd.f32 %v9117_v61, %v4001_v49  ;;  %5541 = vpow2.f32 %v3885_v30  ;;  %v9182_v15 = vpop.eup %5537  ;;  %v3893_v16 = vmul.f32 1.442695, %v3642_v6  ;;  %v3646_v49 = vsub.f32 %v8868_v39, %v8903_v54  ;;  %v10281_v30 = vld [vmem:[#allocation139_spill] sm:$0xff] }
 0x73d   :  { %v4039_v0 = vadd.f32 %v9164_v5, %v4038_v22  ;;  %10278 = vst [vmem:[#allocation201_spill] sm:$0xff] %v9182_v15  ;;  %5543 = vpow2.f32 %v3889_v12 }
 0x73e   :  { %v4003_v4 = vadd.f32 %v9117_v61, %v4002_v11  ;;  %5545 = vpow2.f32 %v3893_v16  ;;  %v3897_v11 = vmul.f32 1.442695, %v3644_v42  ;;  %v10285_v16 = vld [vmem:[#allocation202_spill] sm:$0xff]  ;;  %v9217_v42 = vpop.permute.xlu2 %4197 }
 0x73f   :  { %4288 = vperm.xlu2 %5321, %v10276_v51   ;;  %v4040_v32 = vadd.f32 %v9171_v28, %v4039_v0 }
 0x740   :  { %4282 = vperm.xlu1 %5320, %v10276_v51   ;;  %v4004_v9 = vadd.f32 %v9117_v61, %v4003_v4  ;;  %v10282_v4 = vld [vmem:[#allocation149_spill] sm:$0xff]  ;;  %5547 = vpow2.f32 %v3897_v11 }
 0x741   :  { %v4041_v7 = vadd.f32 %v9178_v41, %v4040_v32  ;;  %v9188_v10 = vpop.eup %5539  ;;  %v3901_v32 = vmul.f32 1.442695, %v3646_v49 }
 0x742   :  { %v4005_v52 = vadd.f32 %v9117_v61, %v4004_v9  ;;  %10279 = vst [vmem:[#allocation150_spill] sm:$0xff] %v9188_v10  ;;  %v9195_v55 = vpop.eup %5541  ;;  %v9197_v22 = vpop.permute.xlu1 %4178 }
 0x743   :  { %v4042_v44 = vadd.f32 %v9182_v15, %v4041_v7  ;;  %10280 = vst [vmem:[#allocation163_spill] sm:$0xff] %v9195_v55  ;;  %v4502_v6 = vmul.f32 %v10282_v4, %v9197_v22  ;;  %v9206_v9 = vpop.eup %5543  ;;  %5549 = vpow2.f32 %v3901_v32  ;;  %v10301_v15 = vld [vmem:[#allocation176_spill] sm:$0xff] }
 0x744   :  { %v4006_v24 = vadd.f32 %v9117_v61, %v4005_v52  ;;  %10283 = vst [vmem:[#allocation153_spill] sm:$0xff] %v9206_v9  ;;  %v9210_v12 = vpop.eup %5545  ;;  %v4503_v41 = vmul.f32 %v10301_v15, %v9201_v36 }
 0x745   :  { %v4043_v60 = vadd.f32 %v9188_v10, %v4042_v44  ;;  %10284 = vst [vmem:[#allocation154_spill] sm:$0xff] %v9210_v12  ;;  %v4650_v7 = vadd.f32 %v4649_v47, %v4502_v6  ;;  %v4504_v44 = vmul.f32 %v10285_v16, %v9201_v36 }
 0x746   :  { %v4007_v0 = vadd.f32 %v9117_v61, %v4006_v24  ;;  %v9220_v49 = vpop.eup %5547 }
 0x747   :  { %5324 = vset.pattern.permute.xlu2 %v7536_v59  ;;  %v4044_v50 = vadd.f32 %v9195_v55, %v4043_v60  ;;  %10286 = vst [vmem:[#allocation192_spill] sm:$0xff] %v9220_v49  ;;  %v4651_v47 = vadd.f32 %v4650_v7, %v4504_v44  ;;  %v10290_v55 = vld [vmem:[#allocation205_spill] sm:$0xff]  ;;  %v10291_v44 = vsub.f32 %v8877_v18, %v8882_v26  ;;  %v3904_v26 = vld [vmem:[#allocation4 + $0x2] sm:$0x3] }
 0x748   :  { %5323 = vset.pattern.permute.xlu1 %v10281_v30  ;;  %v4008_v54 = vadd.f32 %v9117_v61, %v4007_v0  ;;  %v9223_v0 = vpop.permute.xlu0 %4203 }
 0x749   :  { %v4045_v39 = vadd.f32 %v9206_v9, %v4044_v50  ;;  %v10287_v50 = vld [vmem:[#allocation166_spill] sm:$0xff]  ;;  %v9227_v32 = vpop.eup %5549  ;;  %v4509_v36 = vmul.f32 %v10301_v15, %v9223_v0 }
 0x74a   :  { %v4009_v60 = vadd.f32 %v9117_v61, %v4008_v54  ;;  %10288 = vst [vmem:[#allocation183_spill] sm:$0xff] %v9227_v32 }
 0x74b   :  { %v4046_v52 = vadd.f32 %v9210_v12, %v4045_v39  ;;  %v10289_v39 = vld [vmem:[#allocation204_spill] sm:$0xff] }
 0x74c   :  { %v4010_v4 = vadd.f32 %v9117_v61, %v4009_v60  ;;  %v4508_v16 = vmul.f32 %v10289_v39, %v9217_v42 }
 0x74d   :  { %v4047_v6 = vadd.f32 %v9220_v49, %v4046_v52  ;;  %v3507_v52 = vmul.f32 1.442695, %v10291_v44 }
 0x74e   :  { %v4011_v9 = vadd.f32 %v9117_v61, %v4010_v4 }
 0x74f   :  { %4306 = vperm.xlu2 %5324, %v10276_v51   ;;  %v4048_v54 = vadd.f32 %v9227_v32, %v4047_v6  ;;  %5551 = vpow2.f32 %v3507_v52 }
 0x750   :  { %4300 = vperm.xlu1 %5323, %v10276_v51   ;;  %v4012_v60 = vrot.slane %v4011_v9, 4 }
 0x751   :  { %v4049_v49 = vrot.slane %v4048_v54, 4 }
 0x752   :  { %v4192_v24 = vpop.permute.xlu1 %4191 }
 0x753   :  { %v4506_v11 = vmul.f32 %v10287_v50, %v4192_v24  ;;  %v4510_v50 = vmul.f32 %v10290_v55, %v9223_v0 }
 0x755   :  { %v4652_v12 = vadd.f32 %v4651_v47, %v4506_v11  ;;  %v4013_v11 = vadd.f32 %v4012_v60, %v4011_v9  ;;  %v4050_v47 = vadd.f32 %v4049_v49, %v4048_v54  ;;  %v9242_v18 = vpop.eup %5551  ;;  %v4216_v60 = vpop.permute.xlu2 %4215 }
 0x756   :  { %10292 = vst [vmem:[#allocation158_spill] sm:$0xff] %v9242_v18  ;;  %v3906_v9 = vmul.f32 %v9242_v18, %v3904_v26 }
 0x757   :  { %v4653_v7 = vadd.f32 %v4652_v12, %v4508_v16  ;;  %5326 = vset.pattern.permute.xlu2 %v7570_v53  ;;  %v4014_v4 = vrot.slane %v4013_v11, 2  ;;  %v4051_v6 = vrot.slane %v4050_v47, 2 }
 0x758   :  { %5325 = vset.pattern.permute.xlu1 %v10141_v23 }
 0x759   :  { %v4654_v39 = vadd.f32 %v4653_v7, %v4510_v50  ;;  %v4015_v32 = vadd.f32 %v4014_v4, %v4013_v11  ;;  %v4052_v10 = vadd.f32 %v4051_v6, %v4050_v47  ;;  %v10293_v7 = vld [vmem:[#allocation135_spill] sm:$0xff]  ;;  %v10295_v11 = vld [vmem:[#allocation138_spill] sm:$0xff] }
 0x75a   :  { %v10297_v6 = vld [vmem:[#allocation182_spill] sm:$0xff] }
 0x75b   :  { %v4016_v53 = vrot.slane %v4015_v32, 1  ;;  %v4053_v55 = vrot.slane %v4052_v10, 1 }
 0x75d   :  { %v4054_v12 = vadd.f32 %v4053_v55, %v4052_v10  ;;  %v4017_v16 = vadd.f32 %v4016_v53, %v4015_v32  ;;  %v10296_v10 = vld [vmem:[#allocation174_spill] sm:$0xff]  ;;  %v4514_v53 = vmul.f32 %v10297_v6, %v4216_v60  ;;  %v4228_v55 = vpop.permute.xlu2 %4227 }
 0x75e   :  { %v4501_v32 = vmul.f32 %v10296_v10, %v9197_v22  ;;  %v4505_v22 = vmul.f32 %v10301_v15, %v4192_v24  ;;  %v4517_v0 = vmul.f32 %v10301_v15, %v4228_v55 }
 0x75f   :  { %4318 = vperm.xlu2 %5326, %v10276_v51   ;;  %v4060_v44 = vrot.slane %v4054_v12, 7  ;;  %v10298_v12 = vld [vmem:[#allocation168_spill] sm:$0xff] }
 0x760   :  { %4312 = vperm.xlu1 %5325, %v10276_v51  }
 0x761   :  { %v4062_v49 = vsel %vm2432_vm12, %v4017_v16, %v4060_v44 }
 0x762   :  { %v4066_v54 = vadd.f32 %v4062_v49, %v3906_v9  ;;  %v4210_v50 = vpop.permute.xlu1 %4209  ;;  %v4234_v9 = vpop.permute.xlu0 %4233  ;;  %v4613_v49 = vadd.f32 %v9151_v21, %v4501_v32  ;;  %v4507_v21 = vmul.f32 %v10301_v15, %v9217_v42  ;;  %v10302_v42 = vld [vmem:[#allocation137_spill] sm:$0xff] }
 0x763   :  { %v4512_v47 = vmul.f32 %v10295_v11, %v4210_v50  ;;  %v4511_v24 = vmul.f32 %v10301_v15, %v4210_v50 }
 0x764   :  { %4072 = vst.msk [vmem:[#allocation4 + $0x2] sm:$0x3] %vm5709_vm0, %v4066_v54  ;;  %v10299_v54 = vld [vmem:[#allocation144_spill] sm:$0xff]  ;;  %v4614_v6 = vadd.f32 %v4613_v49, %v4503_v41 }
 0x765   :  { %v4655_v4 = vadd.f32 %v4654_v39, %v4512_v47  ;;  %v4518_v11 = vmul.f32 %v10299_v54, %v4228_v55  ;;  %v10300_v47 = vld [vmem:[#allocation142_spill] sm:$0xff]  ;;  %v10306_v55 = vld [vmem:[#allocation209_spill] sm:$0xff] }
 0x766   :  { %v4520_v18 = vmul.f32 %v10300_v47, %v4234_v9 }
 0x767   :  { %5329 = vset.pattern.permute.xlu2 %v7585_v35  ;;  %v4656_v44 = vadd.f32 %v4655_v4, %v4514_v53  ;;  %v4615_v53 = vadd.f32 %v4614_v6, %v4505_v22 }
 0x768   :  { %5328 = vset.pattern.permute.xlu1 %v10293_v7 }
 0x769   :  { %v4616_v32 = vadd.f32 %v4615_v53, %v4507_v21  ;;  %v4246_v49 = vpop.permute.xlu2 %4245 }
 0x76f   :  { %4336 = vperm.xlu2 %5329, %v10276_v51  }
 0x770   :  { %4330 = vperm.xlu1 %5328, %v10276_v51  }
 0x772   :  { %v4222_v26 = vpop.permute.xlu1 %4221 }
 0x773   :  { %v4516_v16 = vmul.f32 %v10298_v12, %v4222_v26  ;;  %v4617_v12 = vadd.f32 %v4616_v32, %v4509_v36  ;;  %v4515_v41 = vmul.f32 %v10301_v15, %v4222_v26  ;;  %v10304_v26 = vld [vmem:[#allocation207_spill] sm:$0xff]  ;;  %v10305_v32 = vld [vmem:[#allocation208_spill] sm:$0xff] }
 0x774   :  { %v4524_v22 = vmul.f32 %v10304_v26, %v4246_v49 }
 0x775   :  { %v4657_v39 = vadd.f32 %v4656_v44, %v4516_v16  ;;  %v4513_v16 = vmul.f32 %v10301_v15, %v4216_v60  ;;  %v4519_v60 = vmul.f32 %v10301_v15, %v4234_v9 }
 0x777   :  { %v4658_v10 = vadd.f32 %v4657_v39, %v4518_v11  ;;  %5331 = vset.pattern.permute.xlu2 %v7597_v3  ;;  %v4618_v3 = vadd.f32 %v4617_v12, %v4511_v24  ;;  %v10303_v11 = vld [vmem:[#allocation147_spill] sm:$0xff]  ;;  %v4264_v12 = vpop.permute.xlu0 %4263 }
 0x778   :  { %5330 = vset.pattern.permute.xlu1 %v10162_v63  ;;  %v4529_v26 = vmul.f32 %v10301_v15, %v4264_v12 }
 0x779   :  { %v4659_v4 = vadd.f32 %v4658_v10, %v4520_v18  ;;  %v4619_v44 = vadd.f32 %v4618_v3, %v4513_v16  ;;  %v4258_v6 = vpop.permute.xlu2 %4257 }
 0x77a   :  { %v4528_v3 = vmul.f32 %v10306_v55, %v4258_v6 }
 0x77b   :  { %v4620_v54 = vadd.f32 %v4619_v44, %v4515_v41  ;;  %v10307_v41 = vld [vmem:[#allocation210_spill] sm:$0xff] }
 0x77c   :  { %v4530_v44 = vmul.f32 %v10307_v41, %v4264_v12 }
 0x77d   :  { %v4621_v47 = vadd.f32 %v4620_v54, %v4517_v0  ;;  %v4523_v54 = vmul.f32 %v10301_v15, %v4246_v49  ;;  %v4765_v49 = vld [vmem:[#allocation4] sm:$0x3] }
 0x77e   :  { %5553 = vrcp.f32 %v4765_v49  ;;  %vm4772_vm10 = vweird.f32 %v4765_v49 }
 0x77f   :  { %4348 = vperm.xlu2 %5331, %v10276_v51   ;;  %v4622_v21 = vadd.f32 %v4621_v47, %v4519_v60  ;;  %v4527_v47 = vmul.f32 %v10301_v15, %v4258_v6  ;;  %v10308_v60 = vld [vmem:[#allocation186_spill] sm:$0xff] }
 0x780   :  { %4342 = vperm.xlu1 %5330, %v10276_v51  }
 0x782   :  { %v4240_v18 = vpop.permute.xlu1 %4239 }
 0x783   :  { %v4522_v39 = vmul.f32 %v10303_v11, %v4240_v18  ;;  %v4521_v10 = vmul.f32 %v10301_v15, %v4240_v18 }
 0x785   :  { %v4660_v50 = vadd.f32 %v4659_v4, %v4522_v39  ;;  %v4623_v4 = vadd.f32 %v4622_v21, %v4521_v10 }
 0x787   :  { %5334 = vset.pattern.permute.xlu2 %v10249_v48  ;;  %v4661_v24 = vadd.f32 %v4660_v50, %v4524_v22  ;;  %v4624_v18 = vadd.f32 %v4623_v4, %v4523_v54 }
 0x788   :  { %5333 = vset.pattern.permute.xlu1 %v10302_v42 }
 0x789   :  { %v4276_v22 = vpop.permute.xlu2 %4275 }
 0x78f   :  { %4366 = vperm.xlu2 %5334, %v10276_v51  }
 0x790   :  { %4360 = vperm.xlu1 %5333, %v10276_v51  }
 0x792   :  { %v4252_v53 = vpop.permute.xlu1 %4251 }
 0x793   :  { %v4526_v36 = vmul.f32 %v10305_v32, %v4252_v53  ;;  %v4525_v9 = vmul.f32 %v10301_v15, %v4252_v53 }
 0x795   :  { %v4662_v16 = vadd.f32 %v4661_v24, %v4526_v36  ;;  %v4625_v0 = vadd.f32 %v4624_v18, %v4525_v9  ;;  %v4533_v36 = vmul.f32 %v10301_v15, %v4276_v22  ;;  %v10310_v24 = vld [vmem:[#allocation211_spill] sm:$0xff] }
 0x796   :  { %v4534_v6 = vmul.f32 %v10310_v24, %v4276_v22 }
 0x797   :  { %v4663_v11 = vadd.f32 %v4662_v16, %v4528_v3  ;;  %5336 = vset.pattern.permute.xlu2 %v10273_v56  ;;  %v4626_v50 = vadd.f32 %v4625_v0, %v4527_v47  ;;  %v10309_v56 = vld [vmem:[#allocation152_spill] sm:$0xff] }
 0x798   :  { %5335 = vset.pattern.permute.xlu1 %v10152_v58 }
 0x799   :  { %v4664_v39 = vadd.f32 %v4663_v11, %v4530_v44  ;;  %v4627_v32 = vadd.f32 %v4626_v50, %v4529_v26  ;;  %v5554_v44 = vpop.eup %5553 }
 0x79a   :  { %v4768_v0 = vmul.f32 %v5554_v44, %v4765_v49  ;;  %vm4773_vm9 = vweird.f32 %v5554_v44 }
 0x79b   :  { %vm4774_vm4 = vmor %vm4772_vm10, %vm4773_vm9 }
 0x79c   :  { %v4769_v26 = vsub.f32 1.0, %v4768_v0 }
 0x79f   :  { %4379 = vperm.xlu2 %5336, %v10308_v60  }
 0x7a0   :  { %4372 = vperm.xlu1 %5335, %v10276_v51   ;;  %v10311_v51 = vld [vmem:[#allocation136_spill] sm:$0xff] }
 0x7a2   :  { %v4270_v10 = vpop.permute.xlu1 %4269 }
 0x7a3   :  { %v4531_v53 = vmul.f32 %v10301_v15, %v4270_v10  ;;  %v4532_v21 = vmul.f32 %v10309_v56, %v4270_v10  ;;  %v10312_v56 = vld [vmem:[#allocation213_spill] sm:$0xff] }
 0x7a5   :  { %v4628_v55 = vadd.f32 %v4627_v32, %v4531_v53  ;;  %v4665_v3 = vadd.f32 %v4664_v39, %v4532_v21  ;;  %v4770_v32 = vmul.f32 %v5554_v44, %v4769_v26  ;;  %v4295_v26 = vpop.permute.xlu0 %4294 }
 0x7a7   :  { %v4629_v4 = vadd.f32 %v4628_v55, %v4533_v36  ;;  %v4666_v16 = vadd.f32 %v4665_v3, %v4534_v6  ;;  %5339 = vset.pattern.permute.xlu2 %v10281_v30  ;;  %v4073_v30 = vld [vmem:[#allocation5] sm:$0x3]  ;;  %v4771_v6 = vadd.f32 %v5554_v44, %v4770_v32  ;;  %v4778_v55 = vand.u32 2147483648, %v4765_v49 }
 0x7a8   :  { %5338 = vset.pattern.permute.xlu1 %v10311_v51  ;;  %v4075_v21 = vmul.f32 %v10312_v56, %v4073_v30  ;;  %v4776_v3 = vand.u32 2147483647, %v4765_v49 }
 0x7a9   :  { %v4630_v12 = vrot.slane %v4629_v4, 4  ;;  %v4667_v41 = vrot.slane %v4666_v16, 4 }
 0x7aa   :  { %vm4777_vm5 = vcmp.eq.f32.partialorder %v4776_v3, 8.507059e+37 }
 0x7ab   :  { %v4631_v54 = vadd.f32 %v4630_v12, %v4629_v4  ;;  %v4668_v9 = vadd.f32 %v4667_v41, %v4666_v16  ;;  %v4775_v4 = vsel %vm4774_vm4, %v5554_v44, %v4771_v6  ;;  %v4779_v16 = vor.u32 1.1754944e-38, %v4778_v55 }
 0x7ad   :  { %v4632_v11 = vrot.slane %v4631_v54, 2  ;;  %v4669_v18 = vrot.slane %v4668_v9, 2  ;;  %v4780_v12 = vsel %vm4777_vm5, %v4779_v16, %v4775_v4 }
 0x7af   :  { %v4633_v47 = vadd.f32 %v4632_v11, %v4631_v54  ;;  %v4670_v15 = vadd.f32 %v4669_v18, %v4668_v9  ;;  %4397 = vperm.xlu2 %5339, %v10308_v60   ;;  %v10313_v9 = vld [vmem:[#allocation177_spill] sm:$0xff]  ;;  %v10314_v11 = vld [vmem:[#allocation162_spill] sm:$0xff]  ;;  %v10315_v18 = vld [vmem:[#allocation175_spill] sm:$0xff] }
 0x7b0   :  { %4391 = vperm.xlu1 %5338, %v10308_v60  }
 0x7b1   :  { %v4634_v39 = vrot.slane %v4633_v47, 1  ;;  %v4671_v50 = vrot.slane %v4670_v15, 1 }
 0x7b2   :  { %v4283_v51 = vpop.permute.xlu1 %4282 }
 0x7b3   :  { %v4672_v22 = vadd.f32 %v4671_v50, %v4670_v15  ;;  %v4635_v10 = vadd.f32 %v4634_v39, %v4633_v47  ;;  %v4535_v54 = vmul.f32 %v8959_v31, %v4283_v51  ;;  %v4536_v49 = vmul.f32 %v10313_v9, %v4283_v51  ;;  %v10316_v15 = vld [vmem:[#allocation140_spill] sm:$0xff]  ;;  %v10318_v9 = vld [vmem:[#allocation179_spill] sm:$0xff] }
 0x7b5   :  { %v4751_v53 = vrot.slane %v4672_v22, 7  ;;  %v4539_v22 = vmul.f32 %v8980_v19, %v4295_v26 }
 0x7b7   :  { %v4753_v36 = vsel %vm2432_vm12, %v4635_v10, %v4751_v53  ;;  %5341 = vset.pattern.permute.xlu2 %v10141_v23  ;;  %v4540_v10 = vmul.f32 %v8983_v1, %v4295_v26 }
 0x7b8   :  { %v4757_v24 = vadd.f32 %v4753_v36, %v4075_v21  ;;  %5340 = vset.pattern.permute.xlu1 %v7536_v59  ;;  %v4289_v59 = vpop.permute.xlu2 %4288 }
 0x7b9   :  { %v4537_v44 = vmul.f32 %v10314_v11, %v4289_v59  ;;  %v4538_v0 = vmul.f32 %v10315_v18, %v4289_v59 }
 0x7ba   :  { %4759 = vst.msk [vmem:[#allocation5] sm:$0x3] %vm5709_vm0, %v4757_v24 }
 0x7bb   :  { %v4673_v39 = vadd.f32 %v4537_v44, %v4535_v54  ;;  %v4710_v50 = vadd.f32 %v4538_v0, %v4536_v49  ;;  %v10319_v44 = vld [vmem:[#allocation160_spill] sm:$0xff] }
 0x7bd   :  { %v4674_v56 = vadd.f32 %v4673_v39, %v4539_v22  ;;  %v4711_v21 = vadd.f32 %v4710_v50, %v4540_v10  ;;  %v10322_v39 = vld [vmem:[#allocation180_spill] sm:$0xff] }
 0x7be   :  { %v10323_v10 = vld [vmem:[#allocation184_spill] sm:$0xff] }
 0x7bf   :  { %4409 = vperm.xlu2 %5341, %v10308_v60  }
 0x7c0   :  { %4403 = vperm.xlu1 %5340, %v10308_v60   ;;  %v4307_v30 = vpop.permute.xlu2 %4306 }
 0x7c1   :  { %v4763_v23 = vld [vmem:[#allocation5] sm:$0x3]  ;;  %v4544_v24 = vmul.f32 %v8973_v20, %v4307_v30 }
 0x7c2   :  { %v4781_v41 = vmul.f32 %v4780_v12, %v4763_v23  ;;  %v4301_v47 = vpop.permute.xlu1 %4300  ;;  %v4325_v23 = vpop.permute.xlu0 %4324 }
 0x7c3   :  { %v4541_v31 = vmul.f32 %v8988_v57, %v4301_v47  ;;  %v4542_v53 = vmul.f32 %v8994_v33, %v4301_v47  ;;  %v4549_v12 = vmul.f32 %v8943_v14, %v4325_v23 }
 0x7c4   :  { %4797 = vst.msk [vmem:[#allocation14] sm:$0x3] %vm5709_vm0, %v4781_v41 }
 0x7c5   :  { %v4675_v32 = vadd.f32 %v4674_v56, %v4541_v31  ;;  %v4712_v36 = vadd.f32 %v4711_v21, %v4542_v53  ;;  %v10324_v53 = vld [vmem:[#allocation187_spill] sm:$0xff] }
 0x7c7   :  { %5344 = vset.pattern.permute.xlu2 %v10293_v7  ;;  %v4543_v7 = vmul.f32 %v8967_v29, %v4307_v30  ;;  %v4713_v33 = vadd.f32 %v4712_v36, %v4544_v24  ;;  %v4550_v29 = vmul.f32 %v9034_v13, %v4325_v23 }
 0x7c8   :  { %5343 = vset.pattern.permute.xlu1 %v10316_v15  ;;  %v4319_v6 = vpop.permute.xlu2 %4318  ;;  %v10321_v15 = vld [vmem:[#allocation181_spill] sm:$0xff] }
 0x7c9   :  { %v4676_v55 = vadd.f32 %v4675_v32, %v4543_v7  ;;  %v4547_v3 = vmul.f32 %v9000_v17, %v4319_v6  ;;  %v4548_v4 = vmul.f32 %v9009_v45, %v4319_v6 }
 0x7ca   :  { %v4355_v22 = vpop.permute.xlu0 %4354 }
 0x7cb   :  { %v4559_v31 = vmul.f32 %v10323_v10, %v4355_v22  ;;  %v4560_v56 = vmul.f32 %v10324_v53, %v4355_v22 }
 0x7cf   :  { %4427 = vperm.xlu2 %5344, %v10308_v60  }
 0x7d0   :  { %4421 = vperm.xlu1 %5343, %v10308_v60   ;;  %v4337_v14 = vpop.permute.xlu2 %4336 }
 0x7d1   :  { %v4554_v49 = vmul.f32 %v10318_v9, %v4337_v14 }
 0x7d2   :  { %v4313_v19 = vpop.permute.xlu1 %4312 }
 0x7d3   :  { %v4545_v1 = vmul.f32 %v9014_v38, %v4313_v19  ;;  %v4546_v57 = vmul.f32 %v9019_v40, %v4313_v19  ;;  %v10325_v19 = vld [vmem:[#allocation146_spill] sm:$0xff] }
 0x7d5   :  { %v4677_v16 = vadd.f32 %v4676_v55, %v4545_v1  ;;  %v4714_v51 = vadd.f32 %v4713_v33, %v4546_v57  ;;  %v10326_v55 = vld [vmem:[#allocation189_spill] sm:$0xff] }
 0x7d7   :  { %v4678_v20 = vadd.f32 %v4677_v16, %v4547_v3  ;;  %v4715_v59 = vadd.f32 %v4714_v51, %v4548_v4  ;;  %5346 = vset.pattern.permute.xlu2 %v10162_v63  ;;  %v10327_v16 = vld [vmem:[#allocation199_spill] sm:$0xff] }
 0x7d8   :  { %5345 = vset.pattern.permute.xlu1 %v7585_v35  ;;  %v10317_v35 = vld [vmem:[#allocation178_spill] sm:$0xff] }
 0x7d9   :  { %v4679_v38 = vadd.f32 %v4678_v20, %v4549_v12  ;;  %v4716_v40 = vadd.f32 %v4715_v59, %v4550_v29  ;;  %v4553_v54 = vmul.f32 %v10317_v35, %v4337_v14  ;;  %v4349_v11 = vpop.permute.xlu2 %4348  ;;  %v4386_v12 = vpop.permute.xlu0 %4385 }
 0x7da   :  { %v4558_v50 = vmul.f32 %v10322_v39, %v4349_v11  ;;  %v4570_v29 = vmul.f32 %v9129_v43, %v4386_v12 }
 0x7df   :  { %4439 = vperm.xlu2 %5346, %v10308_v60  }
 0x7e0   :  { %4433 = vperm.xlu1 %5345, %v10308_v60  }
 0x7e2   :  { %v4331_v17 = vpop.permute.xlu1 %4330 }
 0x7e3   :  { %v4551_v45 = vmul.f32 %v9040_v46, %v4331_v17  ;;  %v4552_v13 = vmul.f32 %v9045_v25, %v4331_v17  ;;  %v4557_v25 = vmul.f32 %v10321_v15, %v4349_v11  ;;  %v10328_v11 = vld [vmem:[#allocation203_spill] sm:$0xff] }
 0x7e5   :  { %v4680_v41 = vadd.f32 %v4679_v38, %v4551_v45  ;;  %v4717_v63 = vadd.f32 %v4716_v40, %v4552_v13 }
 0x7e7   :  { %5349 = vset.pattern.permute.xlu2 %v10302_v42  ;;  %v4681_v47 = vadd.f32 %v4680_v41, %v4553_v54  ;;  %v4718_v46 = vadd.f32 %v4717_v63, %v4554_v49  ;;  %v4416_v54 = vpop.permute.xlu0 %4415 }
 0x7e8   :  { %5348 = vset.pattern.permute.xlu1 %v7594_v27  ;;  %v10320_v27 = vld [vmem:[#allocation164_spill] sm:$0xff]  ;;  %v4580_v43 = vmul.f32 %v9164_v5, %v4416_v54 }
 0x7e9   :  { %v4367_v6 = vpop.permute.xlu2 %4366 }
 0x7ea   :  { %v4564_v33 = vmul.f32 %v10326_v55, %v4367_v6 }
 0x7ef   :  { %4457 = vperm.xlu2 %5349, %v10308_v60  }
 0x7f0   :  { %4451 = vperm.xlu1 %5348, %v10308_v60  }
 0x7f2   :  { %v4343_v42 = vpop.permute.xlu1 %4342 }
 0x7f3   :  { %v4555_v18 = vmul.f32 %v10319_v44, %v4343_v42  ;;  %v4556_v0 = vmul.f32 %v10320_v27, %v4343_v42  ;;  %v10330_v27 = vld [vmem:[#allocation190_spill] sm:$0xff] }
 0x7f5   :  { %v4682_v26 = vadd.f32 %v4681_v47, %v4555_v18  ;;  %v4719_v30 = vadd.f32 %v4718_v46, %v4556_v0 }
 0x7f7   :  { %v4683_v21 = vadd.f32 %v4682_v26, %v4557_v25  ;;  %v4720_v32 = vadd.f32 %v4719_v30, %v4558_v50  ;;  %5351 = vset.pattern.permute.xlu2 %v10152_v58 }
 0x7f8   :  { %5350 = vset.pattern.permute.xlu1 %v10249_v48 }
 0x7f9   :  { %v4684_v36 = vadd.f32 %v4683_v21, %v4559_v31  ;;  %v4721_v7 = vadd.f32 %v4720_v32, %v4560_v56  ;;  %v4380_v3 = vpop.permute.xlu2 %4379  ;;  %v4579_v56 = vmul.f32 %v9117_v61, %v4416_v54 }
 0x7fa   :  { %v4568_v48 = vmul.f32 %v9121_v8, %v4380_v3 }
 0x7ff   :  { %4469 = vperm.xlu2 %5351, %v10308_v60  }
 0x800   :  { %4463 = vperm.xlu1 %5350, %v10308_v60  }
 0x802   :  { %v4361_v24 = vpop.permute.xlu1 %4360 }
 0x803   :  { %v4562_v1 = vmul.f32 %v10325_v19, %v4361_v24  ;;  %v4561_v42 = vmul.f32 %v10328_v11, %v4361_v24  ;;  %v4766_v11 = vld [vmem:[#allocation4 + $0x2] sm:$0x3] }
 0x804   :  { %5555 = vrcp.f32 %v4766_v11  ;;  %vm4787_vm8 = vweird.f32 %v4766_v11 }
 0x805   :  { %v4722_v57 = vadd.f32 %v4721_v7, %v4562_v1  ;;  %v4685_v44 = vadd.f32 %v4684_v36, %v4561_v42  ;;  %v10331_v1 = vld [vmem:[#allocation148_spill] sm:$0xff] }
 0x807   :  { %v4723_v58 = vadd.f32 %v4722_v57, %v4564_v33  ;;  %v10332_v33 = vld [vmem:[#allocation201_spill] sm:$0xff] }
 0x809   :  { %v4398_v38 = vpop.permute.xlu2 %4397 }
 0x80a   :  { %v4574_v14 = vmul.f32 %v9145_v2, %v4398_v38  ;;  %v4573_v39 = vmul.f32 %v9117_v61, %v4398_v38 }
 0x812   :  { %v4373_v4 = vpop.permute.xlu1 %4372 }
 0x813   :  { %v4566_v51 = vmul.f32 %v10327_v16, %v4373_v4  ;;  %v4565_v2 = vmul.f32 %v10330_v27, %v4373_v4 }
 0x815   :  { %v4724_v23 = vadd.f32 %v4723_v58, %v4566_v51 }
 0x817   :  { %v4725_v20 = vadd.f32 %v4724_v23, %v4568_v48 }
 0x819   :  { %v4726_v60 = vadd.f32 %v4725_v20, %v4570_v29  ;;  %v4410_v45 = vpop.permute.xlu2 %4409  ;;  %v4446_v29 = vpop.permute.xlu0 %4445 }
 0x81a   :  { %v4578_v8 = vmul.f32 %v9160_v34, %v4410_v45  ;;  %v4569_v34 = vmul.f32 %v9117_v61, %v4386_v12  ;;  %v4577_v10 = vmul.f32 %v9117_v61, %v4410_v45 }
 0x822   :  { %v4392_v59 = vpop.permute.xlu1 %4391 }
 0x823   :  { %v4572_v40 = vmul.f32 %v9137_v62, %v4392_v59  ;;  %v10329_v62 = vld [vmem:[#allocation188_spill] sm:$0xff]  ;;  %v4571_v15 = vmul.f32 %v9117_v61, %v4392_v59 }
 0x824   :  { %v4563_v18 = vmul.f32 %v10329_v62, %v4367_v6 }
 0x825   :  { %v4727_v17 = vadd.f32 %v4726_v60, %v4572_v40  ;;  %v4589_v40 = vmul.f32 %v9117_v61, %v4446_v29 }
 0x826   :  { %v4686_v0 = vadd.f32 %v4685_v44, %v4563_v18  ;;  %v10337_v18 = vld [vmem:[#allocation192_spill] sm:$0xff] }
 0x827   :  { %v4728_v63 = vadd.f32 %v4727_v17, %v4574_v14  ;;  %v10334_v17 = vld [vmem:[#allocation163_spill] sm:$0xff] }
 0x828   :  { %v4687_v47 = vadd.f32 %v4686_v0, %v4565_v2  ;;  %v4590_v14 = vmul.f32 %v10334_v17, %v4446_v29 }
 0x829   :  { %v4428_v53 = vpop.permute.xlu2 %4427 }
 0x82a   :  { %v4583_v19 = vmul.f32 %v9117_v61, %v4428_v53  ;;  %v4584_v57 = vmul.f32 %v10331_v1, %v4428_v53  ;;  %v10339_v1 = vld [vmem:[#allocation158_spill] sm:$0xff] }
 0x832   :  { %v4404_v13 = vpop.permute.xlu1 %4403 }
 0x833   :  { %v4576_v41 = vmul.f32 %v9154_v37, %v4404_v13  ;;  %v4567_v37 = vmul.f32 %v9117_v61, %v4380_v3  ;;  %v4575_v50 = vmul.f32 %v9117_v61, %v4404_v13  ;;  %v10335_v13 = vld [vmem:[#allocation153_spill] sm:$0xff] }
 0x835   :  { %v4729_v35 = vadd.f32 %v4728_v63, %v4576_v41  ;;  %v4688_v46 = vadd.f32 %v4687_v47, %v4567_v37  ;;  %v10338_v37 = vld [vmem:[#allocation183_spill] sm:$0xff] }
 0x837   :  { %v4730_v9 = vadd.f32 %v4729_v35, %v4578_v8  ;;  %v4689_v25 = vadd.f32 %v4688_v46, %v4569_v34 }
 0x839   :  { %v4731_v49 = vadd.f32 %v4730_v9, %v4580_v43  ;;  %v4690_v5 = vadd.f32 %v4689_v25, %v4571_v15  ;;  %v4440_v4 = vpop.permute.xlu2 %4439  ;;  %v10336_v9 = vld [vmem:[#allocation154_spill] sm:$0xff] }
 0x83a   :  { %v4587_v23 = vmul.f32 %v9117_v61, %v4440_v4 }
 0x83b   :  { %v4691_v26 = vadd.f32 %v4690_v5, %v4573_v39 }
 0x83d   :  { %v4692_v30 = vadd.f32 %v4691_v26, %v4575_v50  ;;  %v5556_v26 = vpop.eup %5555 }
 0x83e   :  { %v4783_v53 = vmul.f32 %v5556_v26, %v4766_v11  ;;  %vm4788_vm6 = vweird.f32 %v5556_v26 }
 0x83f   :  { %v4693_v31 = vadd.f32 %v4692_v30, %v4577_v10  ;;  %vm4789_vm13 = vmor %vm4787_vm8, %vm4788_vm6 }
 0x841   :  { %v4694_v36 = vadd.f32 %v4693_v31, %v4579_v56 }
 0x842   :  { %v4422_v22 = vpop.permute.xlu1 %4421 }
 0x843   :  { %v4581_v21 = vmul.f32 %v9117_v61, %v4422_v22  ;;  %v4582_v32 = vmul.f32 %v9171_v28, %v4422_v22  ;;  %v10333_v28 = vld [vmem:[#allocation150_spill] sm:$0xff] }
 0x844   :  { %v4588_v12 = vmul.f32 %v10333_v28, %v4440_v4 }
 0x845   :  { %v4695_v24 = vadd.f32 %v4694_v36, %v4581_v21  ;;  %v4732_v6 = vadd.f32 %v4731_v49, %v4582_v32 }
 0x847   :  { %v4696_v16 = vadd.f32 %v4695_v24, %v4583_v19  ;;  %v4733_v51 = vadd.f32 %v4732_v6, %v4584_v57 }
 0x849   :  { %v4458_v38 = vpop.permute.xlu2 %4457 }
 0x84a   :  { %v4593_v43 = vmul.f32 %v9117_v61, %v4458_v38  ;;  %v4594_v49 = vmul.f32 %v10336_v9, %v4458_v38 }
 0x852   :  { %v4434_v7 = vpop.permute.xlu1 %4433 }
 0x853   :  { %v4585_v55 = vmul.f32 %v9117_v61, %v4434_v7  ;;  %v4586_v3 = vmul.f32 %v10332_v33, %v4434_v7  ;;  %v4784_v7 = vsub.f32 1.0, %v4783_v53 }
 0x855   :  { %v4697_v58 = vadd.f32 %v4696_v16, %v4585_v55  ;;  %v4734_v48 = vadd.f32 %v4733_v51, %v4586_v3  ;;  %v4785_v55 = vmul.f32 %v5556_v26, %v4784_v7  ;;  %v4793_v16 = vand.u32 2147483648, %v4766_v11 }
 0x856   :  { %v4791_v51 = vand.u32 2147483647, %v4766_v11 }
 0x857   :  { %v4698_v60 = vadd.f32 %v4697_v58, %v4587_v23  ;;  %v4735_v59 = vadd.f32 %v4734_v48, %v4588_v12  ;;  %v4786_v4 = vadd.f32 %v5556_v26, %v4785_v55  ;;  %v4794_v48 = vor.u32 1.1754944e-38, %v4793_v16 }
 0x858   :  { %vm4792_vm7 = vcmp.eq.f32.partialorder %v4791_v51, 8.507059e+37 }
 0x859   :  { %v4699_v63 = vadd.f32 %v4698_v60, %v4589_v40  ;;  %v4736_v8 = vadd.f32 %v4735_v59, %v4590_v14  ;;  %v4470_v42 = vpop.permute.xlu2 %4469  ;;  %v4790_v58 = vsel %vm4789_vm13, %v5556_v26, %v4786_v4 }
 0x85a   :  { %v4597_v47 = vmul.f32 %v9117_v61, %v4470_v42  ;;  %v4598_v46 = vmul.f32 %v10338_v37, %v4470_v42  ;;  %v4795_v28 = vsel %vm4792_vm7, %v4794_v48, %v4790_v58 }
 0x862   :  { %v4452_v20 = vpop.permute.xlu1 %4451 }
 0x863   :  { %v4591_v45 = vmul.f32 %v9117_v61, %v4452_v20  ;;  %v4592_v41 = vmul.f32 %v10335_v13, %v4452_v20 }
 0x865   :  { %v4700_v35 = vadd.f32 %v4699_v63, %v4591_v45  ;;  %v4737_v54 = vadd.f32 %v4736_v8, %v4592_v41 }
 0x867   :  { %v4701_v2 = vadd.f32 %v4700_v35, %v4593_v43  ;;  %v4738_v0 = vadd.f32 %v4737_v54, %v4594_v49 }
 0x872   :  { %v4464_v44 = vpop.permute.xlu1 %4463 }
 0x873   :  { %v4595_v62 = vmul.f32 %v9117_v61, %v4464_v44  ;;  %v4596_v27 = vmul.f32 %v10337_v18, %v4464_v44  ;;  %v4074_v61 = vld [vmem:[#allocation5 + $0x2] sm:$0x3] }
 0x874   :  { %v4076_v57 = vmul.f32 %v10339_v1, %v4074_v61 }
 0x875   :  { %v4702_v34 = vadd.f32 %v4701_v2, %v4595_v62  ;;  %v4739_v15 = vadd.f32 %v4738_v0, %v4596_v27 }
 0x877   :  { %v4703_v25 = vadd.f32 %v4702_v34, %v4597_v47  ;;  %v4740_v5 = vadd.f32 %v4739_v15, %v4598_v46 }
 0x879   :  { %v4704_v39 = vrot.slane %v4703_v25, 4  ;;  %v4741_v50 = vrot.slane %v4740_v5, 4 }
 0x87b   :  { %v4705_v30 = vadd.f32 %v4704_v39, %v4703_v25  ;;  %v4742_v22 = vadd.f32 %v4741_v50, %v4740_v5 }
 0x87d   :  { %v4706_v10 = vrot.slane %v4705_v30, 2  ;;  %v4743_v31 = vrot.slane %v4742_v22, 2 }
 0x87f   :  { %v4707_v56 = vadd.f32 %v4706_v10, %v4705_v30  ;;  %v4744_v21 = vadd.f32 %v4743_v31, %v4742_v22 }
 0x881   :  { %v4708_v32 = vrot.slane %v4707_v56, 1  ;;  %v4745_v36 = vrot.slane %v4744_v21, 1 }
 0x883   :  { %v4746_v24 = vadd.f32 %v4745_v36, %v4744_v21  ;;  %v4709_v6 = vadd.f32 %v4708_v32, %v4707_v56 }
 0x885   :  { %v4752_v19 = vrot.slane %v4746_v24, 7 }
 0x887   :  { %v4754_v33 = vsel %vm2432_vm12, %v4709_v6, %v4752_v19 }
 0x888   :  { %v4758_v3 = vadd.f32 %v4754_v33, %v4076_v57 }
 0x88a   :  { %4760 = vst.msk [vmem:[#allocation5 + $0x2] sm:$0x3] %vm5709_vm0, %v4758_v3 }
 0x891   :  { %v4764_v23 = vld [vmem:[#allocation5 + $0x2] sm:$0x3] }
 0x892   :  { %v4796_v12 = vmul.f32 %v4795_v28, %v4764_v23 }
 0x894   :  { %4798 = vst.msk [vmem:[#allocation14 + $0x2] sm:$0x3] %vm5709_vm0, %v4796_v12 }
 0x895 PF:  { %s4801_s9 = sld [smem:[#allocation7]]  ;;  %s5666_s10 = smov [#allocation14]  }
 0x896   :  { %s4806_s11 = sshll.u32 %s5666_s10, 4  ;;  %s5645_s21 = scalar_lea.hbm %s9411_s4, 4  ;;  %s4807_s11 = int_to_ptr.vmem [resolvable:$true] %s4806_s11 }
 0x89b   :  { %s4840_s12 = sshll.u32 %s4801_s9, 1 }
 0x89c   :  { %s4805_s15 = scalar_lea.hbm %s9411_s4, %s4840_s12 }
 0x89d   :  { %s4808_s16 = sshll.u32 %s4805_s15, 4  ;;  %s4809_s16 = int_to_ptr.hbm [resolvable:$true] %s4808_s16 }
 0x89e   :  { %s5641_s17 = sshra.s32 %s4809_s16, 4  ;;  %s5642_s17 = int_to_ptr.hbm [resolvable:$true] %s5641_s17 }
 0x89f   :  { %s5643_s18 = scalar_lea.hbm %s5642_s17, 4  ;;  %p5646_p3 = scmp.lt.s32.totalorder %s5642_s17, %s9411_s4 }
 0x8a0   :  { %p5644_p2 = scmp.ne.s32.totalorder %s5642_s17, %s5643_s18  ;;  %p5647_p4 = scmp.lt.s32.totalorder %s5645_s21, %s5643_s18 }
 0x8a2   :  { %p5648_p5 = por %p5647_p4, %p5646_p3 }
 0x8a4   :  { %p5649_p6 = pnand %p5648_p5, %p5644_p2 }
 0x8a6   :  { %5652 = shalt.err (!%p5649_p6)
}
 0x8a7   :  { %s5667_s24 = smov 32   ;;  %s5668_s25 = smov 2  }
 0x8a8   :  { %4814 = dma.vmem_to_hbm [thread:$0]  %s4807_s11, 64, %s4809_s16, [#allocation10], %s5667_s24, %s5667_s24, %s5668_s25  }
 0x8a9   :  { %5657 = dma.done.wait [#allocation10], 64  }
 0x8aa   :  { %5658 = vsyncadd [#allocation10], 4294967232 }
 0x8ab   :  { %4819 = vsyncpa [#allocation9], 1 }
 0x8ac   :  { %4820 = vsyncpa [#allocation12], 1 }
 0x8ad   :  { %4821 = vsyncpa [#allocation10], 1 }

</bundles_post_ra>
